<compile_context>
chip_gen: v5e
topology: v5e:2x2
jax: 0.10.0
libtpu: 0.0.40
codegen_flags: <defaults>
</compile_context>

<pallas_src>
import jax
import jax.numpy as jnp
from jax import lax
from jax.experimental import pallas as pl
from jax.experimental.pallas import tpu as pltpu

BN_EPS = 1e-5
# Below this channel count a 3x3 conv is one im2col matmul (K = 9*C); at/above it, 9
# accumulated K=C matmuls (K=C already fills MXU depth, and the 9x im2col temp is avoided).
IM2COL_MAX_C = 128


def _round_up(x, m):
    return (x + m - 1) // m * m


# ----------------------------------------------------------------------------
# Fused per-(head, batch) kernel
# ----------------------------------------------------------------------------
def make_fused_head_kernel(H, W, Cin, Cmid, Ncls, num_convs, compute_dtype):
    assert num_convs >= 1  # TODO(synk): num_convs == 0 path not implemented.

    def conv3x3(src_ref, w_ref, c_src):
        """3x3 'SAME' conv of the zero-haloed src buffer -> f32 (H, W, Cout)."""
        if c_src < IM2COL_MAX_C:
            cols = jnp.concatenate(
                [src_ref[dy:dy + H, dx:dx + W, :] for dy in range(3) for dx in range(3)],
                axis=-1)                                            # (H, W, 9*C)
            return jnp.dot(cols, w_ref[...], preferred_element_type=jnp.float32)
        # Large C: 9 accumulated K=C matmuls (no im2col temp, no lane-axis concat copies).
        acc = None
        for t, (dy, dx) in enumerate((dy, dx) for dy in range(3) for dx in range(3)):
            part = jnp.dot(src_ref[dy:dy + H, dx:dx + W, :],
                           w_ref[t * c_src:(t + 1) * c_src, :],
                           preferred_element_type=jnp.float32)
            acc = part if acc is None else acc + part
        return acc

    def zero_halo(ref):
        # Only the 1-element halo ring needs to be zero; interiors are fully rewritten every
        # layer.  Cheap (O((H+W)*C)) compared with a full-buffer fill (O(H*W*C)).
        rows, cols, c = ref.shape
        z_row = jnp.zeros((1, cols, c), ref.dtype)
        ref[0:1, :, :] = z_row
        ref[H + 1:H + 2, :, :] = z_row
        z_col = jnp.zeros((rows, 1, c), ref.dtype)
        ref[:, 0:1, :] = z_col
        ref[:, W + 1:W + 2, :] = z_col

    def kernel(*refs):
        # inputs: x, (w_i, b_i) * num_convs, w_cat_x, w_cat_y, b_cat, w_seg_t, b_seg
        x_ref = refs[0]
        conv_w = [refs[1 + 2 * i] for i in range(num_convs)]
        conv_b = [refs[2 + 2 * i] for i in range(num_convs)]
        base = 1 + 2 * num_convs
        wcx_ref, wcy_ref, bc_ref, ws_ref, bs_ref = refs[base:base + 5]
        o_ref = refs[base + 5]
        xp_ref, ya_ref, yb_ref = refs[base + 6:base + 9]

        # Halo-only init, every grid step (megacore-safe: with both axes "parallel" a core may
        # never see program_id()==0, so a "zero once" guard would be unsafe).
        zero_halo(xp_ref)
        zero_halo(ya_ref)
        zero_halo(yb_ref)

        # Stage x into the padded VMEM buffer (replaces any wrapper-side jnp.pad).
        xp_ref[1:H + 1, 1:W + 1, :] = x_ref[...]

        # convs_list[head]: num_convs x (Conv3x3 + folded-BN + ReLU); VMEM-resident ping-pong.
        src, c_src = xp_ref, Cin
        bufs = (ya_ref, yb_ref)
        for li in range(num_convs):
            y = jnp.maximum(conv3x3(src, conv_w[li], c_src) + conv_b[li][...], 0.0)
            dst = bufs[li % 2]
            dst[1:H + 1, 1:W + 1, :] = y.astype(dst.dtype)
            src, c_src = dst, Cmid

        # conv_cat on cat([x, y], channel) WITHOUT materializing the concat:
        # split weights -> two matmuls into one f32 accumulator.
        acc = conv3x3(xp_ref, wcx_ref, Cin) + conv3x3(src, wcy_ref, Cmid)
        y = jnp.maximum(acc + bc_ref[...], 0.0)                     # (H, W, Cmid), f32

        # Dropout2d: identity in eval.  conv_seg_head (1x1 conv + bias) computed in the
        # (Ncls, H*W) orientation -> lane-dense unmasked stores and NCHW-native output.
        y_flat = y.astype(compute_dtype).reshape(H * W, Cmid)
        out = lax.dot_general(ws_ref[...], y_flat,
                              dimension_numbers=(((1,), (1,)), ((), ())),
                              preferred_element_type=jnp.float32)   # (Ncls, H*W)
        o_ref[...] = out + bs_ref[...]

    return kernel


# ----------------------------------------------------------------------------
# Parameter construction (raw, matching the PyTorch module) and fused-prep
# ----------------------------------------------------------------------------
def _init_conv_module(key, cin, cout):
    kw, kg, kb, km, kv = jax.random.split(key, 5)
    return dict(
        w=jax.random.normal(kw, (3, 3, cin, cout), jnp.float32) * 0.1,   # HWIO
        gamma=jax.random.uniform(kg, (cout,), jnp.float32, 0.5, 1.5),
        beta=jax.random.normal(kb, (cout,), jnp.float32) * 0.1,
        mean=jax.random.normal(km, (cout,), jnp.float32) * 0.1,
        var=jax.random.uniform(kv, (cout,), jnp.float32, 0.5, 1.5),
    )


def init_params(key, in_channels, channels, num_classes, num_head, num_convs=2):
    heads = []
    for _ in range(num_head):
        key, k0, kc, ks = jax.random.split(key, 4)
        convs = [_init_conv_module(k0, in_channels, channels)]
        for _ in range(num_convs - 1):
            key, ki = jax.random.split(key)
            convs.append(_init_conv_module(ki, channels, channels))
        conv_cat = _init_conv_module(kc, in_channels + channels, channels)
        # conv_seg_head: normal_init(mean=0, std=0.01), bias=0
        seg_w = jax.random.normal(ks, (channels, num_classes), jnp.float32) * 0.01
        seg_b = jnp.zeros((num_classes,), jnp.float32)
        heads.append(dict(convs=convs, conv_cat=conv_cat, seg_w=seg_w, seg_b=seg_b))
    return heads


def _fold_conv_bn(cm):
    """Fold eval-mode BN into the conv weights; return (w_folded_HWIO, per-channel offset)."""
    scale = cm["gamma"] / jnp.sqrt(cm["var"] + BN_EPS)
    offset = cm["beta"] - cm["mean"] * scale
    return cm["w"] * scale, offset  # scale broadcasts over the Cout (last) axis


def prepare_fused_params(heads, in_channels, channels, num_convs,
                         compute_dtype=jnp.bfloat16):
    """Fold BN, reshape to matmul layout, split conv_cat, stack across heads.

    MXU operands (conv / seg weights) are cast to `compute_dtype`; BN offsets and the seg
    bias stay f32 (the VPU epilogue and accumulation are always f32).
    """
    w_convs = [[] for _ in range(num_convs)]
    b_convs = [[] for _ in range(num_convs)]
    w_cat_x, w_cat_y, b_cat, w_seg_t, b_seg = [], [], [], [], []
    for head in heads:
        for i, cm in enumerate(head["convs"]):
            w, off = _fold_conv_bn(cm)
            cin = w.shape[2]
            w_convs[i].append(w.reshape(9 * cin, channels).astype(compute_dtype))
            b_convs[i].append(off[None, :])                              # (1, Cmid) f32
        wc, offc = _fold_conv_bn(head["conv_cat"])
        w_cat_x.append(wc[:, :, :in_channels, :]
                       .reshape(9 * in_channels, channels).astype(compute_dtype))
        w_cat_y.append(wc[:, :, in_channels:, :]
                       .reshape(9 * channels, channels).astype(compute_dtype))
        b_cat.append(offc[None, :])
        w_seg_t.append(head["seg_w"].T.astype(compute_dtype))            # (Ncls, Cmid)
        b_seg.append(head["seg_b"][:, None])                             # (Ncls, 1) f32
    stack = lambda xs: jnp.stack(xs, axis=0)
    return dict(
        w_convs=[stack(ws) for ws in w_convs],
        b_convs=[stack(bs) for bs in b_convs],
        w_cat_x=stack(w_cat_x), w_cat_y=stack(w_cat_y), b_cat=stack(b_cat),
        w_seg_t=stack(w_seg_t), b_seg=stack(b_seg),
        compute_dtype=compute_dtype,
    )


# ----------------------------------------------------------------------------
# Forward pass (NCHW in / list of NCHW out, matching the PyTorch module)
# ----------------------------------------------------------------------------
def multihead_fcn_head_forward(x_nchw, fused, *, num_convs):
    N, Cin, H, W = x_nchw.shape
    num_head, _, Cmid = fused["w_convs"][0].shape
    Ncls = fused["w_seg_t"].shape[1]
    cdtype = fused["compute_dtype"]
    Wp = _round_up(W + 2, 8)   # sublane-aligned padded-scratch width

    # NCHW -> NHWC once in the wrapper (channels in lanes = matmul contraction axis);
    # input DMA moves compute_dtype bytes.
    x = jnp.transpose(x_nchw, (0, 2, 3, 1)).astype(cdtype)

    def head_spec(arr):
        # Per-head weight block: only ONE head's weights are VMEM-resident at a time; the
        # block index changes only on the outer (head) grid axis, so the pipeline re-DMAs
        # them num_head times total, prefetched behind compute.
        nd = arr.ndim - 1
        return pl.BlockSpec((None,) + arr.shape[1:],
                            lambda h, b, _nd=nd: (h,) + (0,) * _nd)

    inputs = [x]
    in_specs = [pl.BlockSpec((None, H, W, Cin), lambda h, b: (b, 0, 0, 0))]
    for wi, bi in zip(fused["w_convs"], fused["b_convs"]):
        inputs += [wi, bi]
        in_specs += [head_spec(wi), head_spec(bi)]
    for name in ("w_cat_x", "w_cat_y", "b_cat", "w_seg_t", "b_seg"):
        inputs.append(fused[name])
        in_specs.append(head_spec(fused[name]))

    kernel = make_fused_head_kernel(H, W, Cin, Cmid, Ncls, num_convs, cdtype)

    flops_per_step = 2 * H * W * (9 * Cin * Cmid
                                  + 9 * Cmid * Cmid * (num_convs - 1)
                                  + 9 * (Cin + Cmid) * Cmid
                                  + Cmid * Ncls)
    w_bytes = sum(int(fused[k].size) * fused[k].dtype.itemsize
                  for k in ("w_cat_x", "w_cat_y", "w_seg_t"))
    w_bytes += sum(int(w.size) * w.dtype.itemsize for w in fused["w_convs"])
    cost = pl.CostEstimate(
        flops=int(flops_per_step) * num_head * N,
        transcendentals=0,
        bytes_accessed=int(num_head * x.size * x.dtype.itemsize   # x re-read once per head
                           + w_bytes
                           + num_head * N * Ncls * H * W * 4))

    out = pl.pallas_call(
        kernel,
        out_shape=jax.ShapeDtypeStruct((num_head, N, Ncls, H * W), jnp.float32),
        # head-major grid: weights re-DMA only when the head changes; an even head count
        # splits cleanly across v7x's two TensorCores.
        grid=(num_head, N),
        in_specs=in_specs,
        out_specs=pl.BlockSpec((None, None, Ncls, H * W), lambda h, b: (h, b, 0, 0)),
        scratch_shapes=[
            pltpu.VMEM((H + 2, Wp, Cin), cdtype),   # zero-haloed x
            pltpu.VMEM((H + 2, Wp, Cmid), cdtype),  # zero-haloed intermediates (ping)
            pltpu.VMEM((H + 2, Wp, Cmid), cdtype),  # zero-haloed intermediates (pong)
        ],
        compiler_params=pltpu.CompilerParams(
            dimension_semantics=("parallel", "parallel"),
            vmem_limit_bytes=56 * 1024 * 1024),     # within v7x's 64 MiB per-TC VMEM
        cost_estimate=cost,
    )(*inputs)

    # (num_head, N, Ncls, H*W) -> per-head NCHW tensors: free reshape, no transpose pass.
    out = out.reshape(num_head, N, Ncls, H, W)
    return [out[h] for h in range(num_head)]


# ----------------------------------------------------------------------------
# Pure-JAX reference (uses the raw, unfolded parameters)
# ----------------------------------------------------------------------------
def _ref_conv_bn_relu(x, cm):
    y = lax.conv_general_dilated(x, cm["w"], (1, 1), "SAME",
                                 dimension_numbers=("NHWC", "HWIO", "NHWC"))
    scale = cm["gamma"] / jnp.sqrt(cm["var"] + BN_EPS)
    offset = cm["beta"] - cm["mean"] * scale
    return jnp.maximum(y * scale + offset, 0.0)


def reference_forward(x_nchw, heads):
    x = jnp.transpose(x_nchw, (0, 2, 3, 1)).astype(jnp.float32)
    outs = []
    for head in heads:
        out = x
        for cm in head["convs"]:
            out = _ref_conv_bn_relu(out, cm)
        out = _ref_conv_bn_relu(jnp.concatenate([x, out], axis=-1), head["conv_cat"])
        out = jnp.einsum("nhwc,co->nhwo", out, head["seg_w"]) + head["seg_b"]
        outs.append(jnp.transpose(out, (0, 3, 1, 2)))
    return outs


if __name__ == "__main__":
    def run_case(name, *, N, in_ch, ch, ncls, H, W, num_head, num_convs,
                 compute_dtype, rtol, atol):
        key = jax.random.PRNGKey(0)
        kx, kp = jax.random.split(key)
        x = jax.random.normal(kx, (N, in_ch, H, W), jnp.float32)   # NCHW input
        heads = init_params(kp, in_ch, ch, ncls, num_head, num_convs)
        fused = prepare_fused_params(heads, in_ch, ch, num_convs,
                                     compute_dtype=compute_dtype)
        outs = multihead_fcn_head_forward(x, fused, num_convs=num_convs)
        outs = [jax.block_until_ready(o) for o in outs]
        refs = reference_forward(x, heads)
        for o, r in zip(outs, refs):
            assert o.shape == (N, ncls, H, W), (name, o.shape)
            err = float(jnp.max(jnp.abs(o - r)))
            assert jnp.allclose(o, r, rtol=rtol, atol=atol), (name, err)

    # Exact-math check: f32 MXU operands, small channels (im2col path), tight tolerance.
    run_case("f32_small", N=2, in_ch=8, ch=16, ncls=4, H=16, W=16,
             num_head=2, num_convs=2, compute_dtype=jnp.float32, rtol=1e-4, atol=1e-4)

    # Production-style config: bf16 MXU operands + bf16 VMEM scratch, channels large enough
    # that the later convs take the 9-accumulated-dot (no-im2col) path.
    run_case("bf16_wide", N=2, in_ch=8, ch=128, ncls=4, H=8, W=8,
             num_head=2, num_convs=2, compute_dtype=jnp.bfloat16, rtol=1e-1, atol=1e-1)

    print("KERNEL_OK")
</pallas_src>

<mosaic_0001>
module attributes {stable_mosaic.version = 11 : i64} {
  func.func @kernel(%arg0: i32, %arg1: i32, %arg2: memref<1x16x16x8xf32, #tpu.memory_space<vmem>>, %arg3: memref<1x72x16xf32, #tpu.memory_space<vmem>>, %arg4: memref<1x1x16xf32, #tpu.memory_space<vmem>>, %arg5: memref<1x144x16xf32, #tpu.memory_space<vmem>>, %arg6: memref<1x1x16xf32, #tpu.memory_space<vmem>>, %arg7: memref<1x72x16xf32, #tpu.memory_space<vmem>>, %arg8: memref<1x144x16xf32, #tpu.memory_space<vmem>>, %arg9: memref<1x1x16xf32, #tpu.memory_space<vmem>>, %arg10: memref<1x4x16xf32, #tpu.memory_space<vmem>>, %arg11: memref<1x4x1xf32, #tpu.memory_space<vmem>>, %arg12: memref<1x1x4x256xf32, #tpu.memory_space<vmem>>, %arg13: memref<18x24x8xf32, #tpu.memory_space<vmem>>, %arg14: memref<18x24x16xf32, #tpu.memory_space<vmem>>, %arg15: memref<18x24x16xf32, #tpu.memory_space<vmem>>) attributes {dimension_semantics = [#tpu.dimension_semantics<parallel>, #tpu.dimension_semantics<parallel>], iteration_bounds = array<i64: 2, 2>, scalar_prefetch = 0 : i64, scratch_operands = 3 : i64, tpu.core_type = #tpu.core_type<tc>, window_params = [{transform_indices = @transform_0, window_bounds = array<i64: 1, 16, 16, 8>}, {transform_indices = @transform_1, window_bounds = array<i64: 1, 72, 16>}, {transform_indices = @transform_2, window_bounds = array<i64: 1, 1, 16>}, {transform_indices = @transform_3, window_bounds = array<i64: 1, 144, 16>}, {transform_indices = @transform_4, window_bounds = array<i64: 1, 1, 16>}, {transform_indices = @transform_5, window_bounds = array<i64: 1, 72, 16>}, {transform_indices = @transform_6, window_bounds = array<i64: 1, 144, 16>}, {transform_indices = @transform_7, window_bounds = array<i64: 1, 1, 16>}, {transform_indices = @transform_8, window_bounds = array<i64: 1, 4, 16>}, {transform_indices = @transform_9, window_bounds = array<i64: 1, 4, 1>}, {transform_indices = @transform_10, window_bounds = array<i64: 1, 1, 4, 256>}]} {
    %cst = arith.constant 0.000000e+00 : f32
    %0 = vector.broadcast %cst : f32 to vector<1x24x8xf32>
    %c0 = arith.constant 0 : index
    %c0_0 = arith.constant 0 : index
    %c0_1 = arith.constant 0 : index
    %1 = vector.load %arg13[%c0, %c0_0, %c0_1] : memref<18x24x8xf32, #tpu.memory_space<vmem>>, vector<1x24x8xf32>
    tpu.vector_store %arg13[%c0, %c0_0, %c0_1], %0 {strides = array<i32>} : memref<18x24x8xf32, #tpu.memory_space<vmem>>, vector<1x24x8xf32>,
    %c17 = arith.constant 17 : index
    %c0_2 = arith.constant 0 : index
    %c0_3 = arith.constant 0 : index
    %2 = vector.load %arg13[%c17, %c0_2, %c0_3] : memref<18x24x8xf32, #tpu.memory_space<vmem>>, vector<1x24x8xf32>
    tpu.vector_store %arg13[%c17, %c0_2, %c0_3], %0 {strides = array<i32>} : memref<18x24x8xf32, #tpu.memory_space<vmem>>, vector<1x24x8xf32>,
    %cst_4 = arith.constant 0.000000e+00 : f32
    %3 = vector.broadcast %cst_4 : f32 to vector<18x1x8xf32>
    %c0_5 = arith.constant 0 : index
    %c0_6 = arith.constant 0 : index
    %c0_7 = arith.constant 0 : index
    %4 = vector.load %arg13[%c0_5, %c0_6, %c0_7] : memref<18x24x8xf32, #tpu.memory_space<vmem>>, vector<18x1x8xf32>
    tpu.vector_store %arg13[%c0_5, %c0_6, %c0_7], %3 {strides = array<i32>} : memref<18x24x8xf32, #tpu.memory_space<vmem>>, vector<18x1x8xf32>,
    %c0_8 = arith.constant 0 : index
    %c17_9 = arith.constant 17 : index
    %c0_10 = arith.constant 0 : index
    %5 = vector.load %arg13[%c0_8, %c17_9, %c0_10] : memref<18x24x8xf32, #tpu.memory_space<vmem>>, vector<18x1x8xf32>
    tpu.vector_store %arg13[%c0_8, %c17_9, %c0_10], %3 {strides = array<i32>} : memref<18x24x8xf32, #tpu.memory_space<vmem>>, vector<18x1x8xf32>,
    %cst_11 = arith.constant 0.000000e+00 : f32
    %6 = vector.broadcast %cst_11 : f32 to vector<1x24x16xf32>
    %c0_12 = arith.constant 0 : index
    %c0_13 = arith.constant 0 : index
    %c0_14 = arith.constant 0 : index
    %7 = vector.load %arg14[%c0_12, %c0_13, %c0_14] : memref<18x24x16xf32, #tpu.memory_space<vmem>>, vector<1x24x16xf32>
    tpu.vector_store %arg14[%c0_12, %c0_13, %c0_14], %6 {strides = array<i32>} : memref<18x24x16xf32, #tpu.memory_space<vmem>>, vector<1x24x16xf32>,
    %c17_15 = arith.constant 17 : index
    %c0_16 = arith.constant 0 : index
    %c0_17 = arith.constant 0 : index
    %8 = vector.load %arg14[%c17_15, %c0_16, %c0_17] : memref<18x24x16xf32, #tpu.memory_space<vmem>>, vector<1x24x16xf32>
    tpu.vector_store %arg14[%c17_15, %c0_16, %c0_17], %6 {strides = array<i32>} : memref<18x24x16xf32, #tpu.memory_space<vmem>>, vector<1x24x16xf32>,
    %cst_18 = arith.constant 0.000000e+00 : f32
    %9 = vector.broadcast %cst_18 : f32 to vector<18x1x16xf32>
    %c0_19 = arith.constant 0 : index
    %c0_20 = arith.constant 0 : index
    %c0_21 = arith.constant 0 : index
    %10 = vector.load %arg14[%c0_19, %c0_20, %c0_21] : memref<18x24x16xf32, #tpu.memory_space<vmem>>, vector<18x1x16xf32>
    tpu.vector_store %arg14[%c0_19, %c0_20, %c0_21], %9 {strides = array<i32>} : memref<18x24x16xf32, #tpu.memory_space<vmem>>, vector<18x1x16xf32>,
    %c0_22 = arith.constant 0 : index
    %c17_23 = arith.constant 17 : index
    %c0_24 = arith.constant 0 : index
    %11 = vector.load %arg14[%c0_22, %c17_23, %c0_24] : memref<18x24x16xf32, #tpu.memory_space<vmem>>, vector<18x1x16xf32>
    tpu.vector_store %arg14[%c0_22, %c17_23, %c0_24], %9 {strides = array<i32>} : memref<18x24x16xf32, #tpu.memory_space<vmem>>, vector<18x1x16xf32>,
    %cst_25 = arith.constant 0.000000e+00 : f32
    %12 = vector.broadcast %cst_25 : f32 to vector<1x24x16xf32>
    %c0_26 = arith.constant 0 : index
    %c0_27 = arith.constant 0 : index
    %c0_28 = arith.constant 0 : index
    %13 = vector.load %arg15[%c0_26, %c0_27, %c0_28] : memref<18x24x16xf32, #tpu.memory_space<vmem>>, vector<1x24x16xf32>
    tpu.vector_store %arg15[%c0_26, %c0_27, %c0_28], %12 {strides = array<i32>} : memref<18x24x16xf32, #tpu.memory_space<vmem>>, vector<1x24x16xf32>,
    %c17_29 = arith.constant 17 : index
    %c0_30 = arith.constant 0 : index
    %c0_31 = arith.constant 0 : index
    %14 = vector.load %arg15[%c17_29, %c0_30, %c0_31] : memref<18x24x16xf32, #tpu.memory_space<vmem>>, vector<1x24x16xf32>
    tpu.vector_store %arg15[%c17_29, %c0_30, %c0_31], %12 {strides = array<i32>} : memref<18x24x16xf32, #tpu.memory_space<vmem>>, vector<1x24x16xf32>,
    %cst_32 = arith.constant 0.000000e+00 : f32
    %15 = vector.broadcast %cst_32 : f32 to vector<18x1x16xf32>
    %c0_33 = arith.constant 0 : index
    %c0_34 = arith.constant 0 : index
    %c0_35 = arith.constant 0 : index
    %16 = vector.load %arg15[%c0_33, %c0_34, %c0_35] : memref<18x24x16xf32, #tpu.memory_space<vmem>>, vector<18x1x16xf32>
    tpu.vector_store %arg15[%c0_33, %c0_34, %c0_35], %15 {strides = array<i32>} : memref<18x24x16xf32, #tpu.memory_space<vmem>>, vector<18x1x16xf32>,
    %c0_36 = arith.constant 0 : index
    %c17_37 = arith.constant 17 : index
    %c0_38 = arith.constant 0 : index
    %17 = vector.load %arg15[%c0_36, %c17_37, %c0_38] : memref<18x24x16xf32, #tpu.memory_space<vmem>>, vector<18x1x16xf32>
    tpu.vector_store %arg15[%c0_36, %c17_37, %c0_38], %15 {strides = array<i32>} : memref<18x24x16xf32, #tpu.memory_space<vmem>>, vector<18x1x16xf32>,
    %c0_39 = arith.constant 0 : index
    %c0_40 = arith.constant 0 : index
    %c0_41 = arith.constant 0 : index
    %c0_42 = arith.constant 0 : index
    %18 = vector.load %arg2[%c0_39, %c0_40, %c0_41, %c0_42] : memref<1x16x16x8xf32, #tpu.memory_space<vmem>>, vector<1x16x16x8xf32>
    %19 = vector.shape_cast %18 : vector<1x16x16x8xf32> to vector<16x16x8xf32>
    %c1 = arith.constant 1 : index
    %c1_43 = arith.constant 1 : index
    %c0_44 = arith.constant 0 : index
    %20 = vector.load %arg13[%c1, %c1_43, %c0_44] : memref<18x24x8xf32, #tpu.memory_space<vmem>>, vector<16x16x8xf32>
    tpu.vector_store %arg13[%c1, %c1_43, %c0_44], %19 {strides = array<i32>} : memref<18x24x8xf32, #tpu.memory_space<vmem>>, vector<16x16x8xf32>,
    %c0_45 = arith.constant 0 : index
    %c0_46 = arith.constant 0 : index
    %c0_47 = arith.constant 0 : index
    %21 = vector.load %arg13[%c0_45, %c0_46, %c0_47] : memref<18x24x8xf32, #tpu.memory_space<vmem>>, vector<16x16x8xf32>
    %c0_48 = arith.constant 0 : index
    %c1_49 = arith.constant 1 : index
    %c0_50 = arith.constant 0 : index
    %22 = vector.load %arg13[%c0_48, %c1_49, %c0_50] : memref<18x24x8xf32, #tpu.memory_space<vmem>>, vector<16x16x8xf32>
    %c0_51 = arith.constant 0 : index
    %c2 = arith.constant 2 : index
    %c0_52 = arith.constant 0 : index
    %23 = vector.load %arg13[%c0_51, %c2, %c0_52] : memref<18x24x8xf32, #tpu.memory_space<vmem>>, vector<16x16x8xf32>
    %c1_53 = arith.constant 1 : index
    %c0_54 = arith.constant 0 : index
    %c0_55 = arith.constant 0 : index
    %24 = vector.load %arg13[%c1_53, %c0_54, %c0_55] : memref<18x24x8xf32, #tpu.memory_space<vmem>>, vector<16x16x8xf32>
    %c1_56 = arith.constant 1 : index
    %c1_57 = arith.constant 1 : index
    %c0_58 = arith.constant 0 : index
    %25 = vector.load %arg13[%c1_56, %c1_57, %c0_58] : memref<18x24x8xf32, #tpu.memory_space<vmem>>, vector<16x16x8xf32>
    %c1_59 = arith.constant 1 : index
    %c2_60 = arith.constant 2 : index
    %c0_61 = arith.constant 0 : index
    %26 = vector.load %arg13[%c1_59, %c2_60, %c0_61] : memref<18x24x8xf32, #tpu.memory_space<vmem>>, vector<16x16x8xf32>
    %c2_62 = arith.constant 2 : index
    %c0_63 = arith.constant 0 : index
    %c0_64 = arith.constant 0 : index
    %27 = vector.load %arg13[%c2_62, %c0_63, %c0_64] : memref<18x24x8xf32, #tpu.memory_space<vmem>>, vector<16x16x8xf32>
    %c2_65 = arith.constant 2 : index
    %c1_66 = arith.constant 1 : index
    %c0_67 = arith.constant 0 : index
    %28 = vector.load %arg13[%c2_65, %c1_66, %c0_67] : memref<18x24x8xf32, #tpu.memory_space<vmem>>, vector<16x16x8xf32>
    %c2_68 = arith.constant 2 : index
    %c2_69 = arith.constant 2 : index
    %c0_70 = arith.constant 0 : index
    %29 = vector.load %arg13[%c2_68, %c2_69, %c0_70] : memref<18x24x8xf32, #tpu.memory_space<vmem>>, vector<16x16x8xf32>
    %30 = tpu.concatenate %21, %22, %23, %24, %25, %26, %27, %28, %29 in 2 : vector<16x16x8xf32>, vector<16x16x8xf32>, vector<16x16x8xf32>, vector<16x16x8xf32>, vector<16x16x8xf32>, vector<16x16x8xf32>, vector<16x16x8xf32>, vector<16x16x8xf32>, vector<16x16x8xf32> -> vector<16x16x72xf32>
    %c0_71 = arith.constant 0 : index
    %c0_72 = arith.constant 0 : index
    %c0_73 = arith.constant 0 : index
    %31 = vector.load %arg3[%c0_71, %c0_72, %c0_73] : memref<1x72x16xf32, #tpu.memory_space<vmem>>, vector<1x72x16xf32>
    %32 = vector.shape_cast %31 : vector<1x72x16xf32> to vector<72x16xf32>
    %cst_74 = arith.constant dense<0.000000e+00> : vector<16x16x16xf32>
    %33 = tpu.matmul %30, %32, %cst_74 {dimension_numbers = #tpu.dot_dimension_numbers<[2], [0], [0, 1], [1], [0, 0, 0, 1, 1, 1], [], []>} : vector<16x16x72xf32>, vector<72x16xf32>, vector<16x16x16xf32> -> vector<16x16x16xf32>
    %c0_75 = arith.constant 0 : index
    %c0_76 = arith.constant 0 : index
    %c0_77 = arith.constant 0 : index
    %34 = vector.load %arg4[%c0_75, %c0_76, %c0_77] : memref<1x1x16xf32, #tpu.memory_space<vmem>>, vector<1x1x16xf32>
    %35 = vector.shape_cast %34 : vector<1x1x16xf32> to vector<1x16xf32>
    %36 = vector.shape_cast %35 : vector<1x16xf32> to vector<1x1x16xf32>
    %37 = vector.broadcast %36 : vector<1x1x16xf32> to vector<16x16x16xf32>
    %38 = arith.addf %33, %37 : vector<16x16x16xf32>
    %cst_78 = arith.constant 0.000000e+00 : f32
    %39 = vector.broadcast %cst_78 : f32 to vector<16x16x16xf32>
    %40 = arith.maximumf %38, %39 : vector<16x16x16xf32>
    %c1_79 = arith.constant 1 : index
    %c1_80 = arith.constant 1 : index
    %c0_81 = arith.constant 0 : index
    %41 = vector.load %arg14[%c1_79, %c1_80, %c0_81] : memref<18x24x16xf32, #tpu.memory_space<vmem>>, vector<16x16x16xf32>
    tpu.vector_store %arg14[%c1_79, %c1_80, %c0_81], %40 {strides = array<i32>} : memref<18x24x16xf32, #tpu.memory_space<vmem>>, vector<16x16x16xf32>,
    %c0_82 = arith.constant 0 : index
    %c0_83 = arith.constant 0 : index
    %c0_84 = arith.constant 0 : index
    %42 = vector.load %arg14[%c0_82, %c0_83, %c0_84] : memref<18x24x16xf32, #tpu.memory_space<vmem>>, vector<16x16x16xf32>
    %c0_85 = arith.constant 0 : index
    %c1_86 = arith.constant 1 : index
    %c0_87 = arith.constant 0 : index
    %43 = vector.load %arg14[%c0_85, %c1_86, %c0_87] : memref<18x24x16xf32, #tpu.memory_space<vmem>>, vector<16x16x16xf32>
    %c0_88 = arith.constant 0 : index
    %c2_89 = arith.constant 2 : index
    %c0_90 = arith.constant 0 : index
    %44 = vector.load %arg14[%c0_88, %c2_89, %c0_90] : memref<18x24x16xf32, #tpu.memory_space<vmem>>, vector<16x16x16xf32>
    %c1_91 = arith.constant 1 : index
    %c0_92 = arith.constant 0 : index
    %c0_93 = arith.constant 0 : index
    %45 = vector.load %arg14[%c1_91, %c0_92, %c0_93] : memref<18x24x16xf32, #tpu.memory_space<vmem>>, vector<16x16x16xf32>
    %c1_94 = arith.constant 1 : index
    %c1_95 = arith.constant 1 : index
    %c0_96 = arith.constant 0 : index
    %46 = vector.load %arg14[%c1_94, %c1_95, %c0_96] : memref<18x24x16xf32, #tpu.memory_space<vmem>>, vector<16x16x16xf32>
    %c1_97 = arith.constant 1 : index
    %c2_98 = arith.constant 2 : index
    %c0_99 = arith.constant 0 : index
    %47 = vector.load %arg14[%c1_97, %c2_98, %c0_99] : memref<18x24x16xf32, #tpu.memory_space<vmem>>, vector<16x16x16xf32>
    %c2_100 = arith.constant 2 : index
    %c0_101 = arith.constant 0 : index
    %c0_102 = arith.constant 0 : index
    %48 = vector.load %arg14[%c2_100, %c0_101, %c0_102] : memref<18x24x16xf32, #tpu.memory_space<vmem>>, vector<16x16x16xf32>
    %c2_103 = arith.constant 2 : index
    %c1_104 = arith.constant 1 : index
    %c0_105 = arith.constant 0 : index
    %49 = vector.load %arg14[%c2_103, %c1_104, %c0_105] : memref<18x24x16xf32, #tpu.memory_space<vmem>>, vector<16x16x16xf32>
    %c2_106 = arith.constant 2 : index
    %c2_107 = arith.constant 2 : index
    %c0_108 = arith.constant 0 : index
    %50 = vector.load %arg14[%c2_106, %c2_107, %c0_108] : memref<18x24x16xf32, #tpu.memory_space<vmem>>, vector<16x16x16xf32>
    %51 = tpu.concatenate %42, %43, %44, %45, %46, %47, %48, %49, %50 in 2 : vector<16x16x16xf32>, vector<16x16x16xf32>, vector<16x16x16xf32>, vector<16x16x16xf32>, vector<16x16x16xf32>, vector<16x16x16xf32>, vector<16x16x16xf32>, vector<16x16x16xf32>, vector<16x16x16xf32> -> vector<16x16x144xf32>
    %c0_109 = arith.constant 0 : index
    %c0_110 = arith.constant 0 : index
    %c0_111 = arith.constant 0 : index
    %52 = vector.load %arg5[%c0_109, %c0_110, %c0_111] : memref<1x144x16xf32, #tpu.memory_space<vmem>>, vector<1x144x16xf32>
    %53 = vector.shape_cast %52 : vector<1x144x16xf32> to vector<144x16xf32>
    %cst_112 = arith.constant dense<0.000000e+00> : vector<16x16x16xf32>
    %54 = tpu.matmul %51, %53, %cst_112 {dimension_numbers = #tpu.dot_dimension_numbers<[2], [0], [0, 1], [1], [0, 0, 0, 1, 1, 1], [], []>} : vector<16x16x144xf32>, vector<144x16xf32>, vector<16x16x16xf32> -> vector<16x16x16xf32>
    %c0_113 = arith.constant 0 : index
    %c0_114 = arith.constant 0 : index
    %c0_115 = arith.constant 0 : index
    %55 = vector.load %arg6[%c0_113, %c0_114, %c0_115] : memref<1x1x16xf32, #tpu.memory_space<vmem>>, vector<1x1x16xf32>
    %56 = vector.shape_cast %55 : vector<1x1x16xf32> to vector<1x16xf32>
    %57 = vector.shape_cast %56 : vector<1x16xf32> to vector<1x1x16xf32>
    %58 = vector.broadcast %57 : vector<1x1x16xf32> to vector<16x16x16xf32>
    %59 = arith.addf %54, %58 : vector<16x16x16xf32>
    %cst_116 = arith.constant 0.000000e+00 : f32
    %60 = vector.broadcast %cst_116 : f32 to vector<16x16x16xf32>
    %61 = arith.maximumf %59, %60 : vector<16x16x16xf32>
    %c1_117 = arith.constant 1 : index
    %c1_118 = arith.constant 1 : index
    %c0_119 = arith.constant 0 : index
    %62 = vector.load %arg15[%c1_117, %c1_118, %c0_119] : memref<18x24x16xf32, #tpu.memory_space<vmem>>, vector<16x16x16xf32>
    tpu.vector_store %arg15[%c1_117, %c1_118, %c0_119], %61 {strides = array<i32>} : memref<18x24x16xf32, #tpu.memory_space<vmem>>, vector<16x16x16xf32>,
    %c0_120 = arith.constant 0 : index
    %c0_121 = arith.constant 0 : index
    %c0_122 = arith.constant 0 : index
    %63 = vector.load %arg13[%c0_120, %c0_121, %c0_122] : memref<18x24x8xf32, #tpu.memory_space<vmem>>, vector<16x16x8xf32>
    %c0_123 = arith.constant 0 : index
    %c1_124 = arith.constant 1 : index
    %c0_125 = arith.constant 0 : index
    %64 = vector.load %arg13[%c0_123, %c1_124, %c0_125] : memref<18x24x8xf32, #tpu.memory_space<vmem>>, vector<16x16x8xf32>
    %c0_126 = arith.constant 0 : index
    %c2_127 = arith.constant 2 : index
    %c0_128 = arith.constant 0 : index
    %65 = vector.load %arg13[%c0_126, %c2_127, %c0_128] : memref<18x24x8xf32, #tpu.memory_space<vmem>>, vector<16x16x8xf32>
    %c1_129 = arith.constant 1 : index
    %c0_130 = arith.constant 0 : index
    %c0_131 = arith.constant 0 : index
    %66 = vector.load %arg13[%c1_129, %c0_130, %c0_131] : memref<18x24x8xf32, #tpu.memory_space<vmem>>, vector<16x16x8xf32>
    %c1_132 = arith.constant 1 : index
    %c1_133 = arith.constant 1 : index
    %c0_134 = arith.constant 0 : index
    %67 = vector.load %arg13[%c1_132, %c1_133, %c0_134] : memref<18x24x8xf32, #tpu.memory_space<vmem>>, vector<16x16x8xf32>
    %c1_135 = arith.constant 1 : index
    %c2_136 = arith.constant 2 : index
    %c0_137 = arith.constant 0 : index
    %68 = vector.load %arg13[%c1_135, %c2_136, %c0_137] : memref<18x24x8xf32, #tpu.memory_space<vmem>>, vector<16x16x8xf32>
    %c2_138 = arith.constant 2 : index
    %c0_139 = arith.constant 0 : index
    %c0_140 = arith.constant 0 : index
    %69 = vector.load %arg13[%c2_138, %c0_139, %c0_140] : memref<18x24x8xf32, #tpu.memory_space<vmem>>, vector<16x16x8xf32>
    %c2_141 = arith.constant 2 : index
    %c1_142 = arith.constant 1 : index
    %c0_143 = arith.constant 0 : index
    %70 = vector.load %arg13[%c2_141, %c1_142, %c0_143] : memref<18x24x8xf32, #tpu.memory_space<vmem>>, vector<16x16x8xf32>
    %c2_144 = arith.constant 2 : index
    %c2_145 = arith.constant 2 : index
    %c0_146 = arith.constant 0 : index
    %71 = vector.load %arg13[%c2_144, %c2_145, %c0_146] : memref<18x24x8xf32, #tpu.memory_space<vmem>>, vector<16x16x8xf32>
    %72 = tpu.concatenate %63, %64, %65, %66, %67, %68, %69, %70, %71 in 2 : vector<16x16x8xf32>, vector<16x16x8xf32>, vector<16x16x8xf32>, vector<16x16x8xf32>, vector<16x16x8xf32>, vector<16x16x8xf32>, vector<16x16x8xf32>, vector<16x16x8xf32>, vector<16x16x8xf32> -> vector<16x16x72xf32>
    %c0_147 = arith.constant 0 : index
    %c0_148 = arith.constant 0 : index
    %c0_149 = arith.constant 0 : index
    %73 = vector.load %arg7[%c0_147, %c0_148, %c0_149] : memref<1x72x16xf32, #tpu.memory_space<vmem>>, vector<1x72x16xf32>
    %74 = vector.shape_cast %73 : vector<1x72x16xf32> to vector<72x16xf32>
    %cst_150 = arith.constant dense<0.000000e+00> : vector<16x16x16xf32>
    %75 = tpu.matmul %72, %74, %cst_150 {dimension_numbers = #tpu.dot_dimension_numbers<[2], [0], [0, 1], [1], [0, 0, 0, 1, 1, 1], [], []>} : vector<16x16x72xf32>, vector<72x16xf32>, vector<16x16x16xf32> -> vector<16x16x16xf32>
    %c0_151 = arith.constant 0 : index
    %c0_152 = arith.constant 0 : index
    %c0_153 = arith.constant 0 : index
    %76 = vector.load %arg15[%c0_151, %c0_152, %c0_153] : memref<18x24x16xf32, #tpu.memory_space<vmem>>, vector<16x16x16xf32>
    %c0_154 = arith.constant 0 : index
    %c1_155 = arith.constant 1 : index
    %c0_156 = arith.constant 0 : index
    %77 = vector.load %arg15[%c0_154, %c1_155, %c0_156] : memref<18x24x16xf32, #tpu.memory_space<vmem>>, vector<16x16x16xf32>
    %c0_157 = arith.constant 0 : index
    %c2_158 = arith.constant 2 : index
    %c0_159 = arith.constant 0 : index
    %78 = vector.load %arg15[%c0_157, %c2_158, %c0_159] : memref<18x24x16xf32, #tpu.memory_space<vmem>>, vector<16x16x16xf32>
    %c1_160 = arith.constant 1 : index
    %c0_161 = arith.constant 0 : index
    %c0_162 = arith.constant 0 : index
    %79 = vector.load %arg15[%c1_160, %c0_161, %c0_162] : memref<18x24x16xf32, #tpu.memory_space<vmem>>, vector<16x16x16xf32>
    %c1_163 = arith.constant 1 : index
    %c1_164 = arith.constant 1 : index
    %c0_165 = arith.constant 0 : index
    %80 = vector.load %arg15[%c1_163, %c1_164, %c0_165] : memref<18x24x16xf32, #tpu.memory_space<vmem>>, vector<16x16x16xf32>
    %c1_166 = arith.constant 1 : index
    %c2_167 = arith.constant 2 : index
    %c0_168 = arith.constant 0 : index
    %81 = vector.load %arg15[%c1_166, %c2_167, %c0_168] : memref<18x24x16xf32, #tpu.memory_space<vmem>>, vector<16x16x16xf32>
    %c2_169 = arith.constant 2 : index
    %c0_170 = arith.constant 0 : index
    %c0_171 = arith.constant 0 : index
    %82 = vector.load %arg15[%c2_169, %c0_170, %c0_171] : memref<18x24x16xf32, #tpu.memory_space<vmem>>, vector<16x16x16xf32>
    %c2_172 = arith.constant 2 : index
    %c1_173 = arith.constant 1 : index
    %c0_174 = arith.constant 0 : index
    %83 = vector.load %arg15[%c2_172, %c1_173, %c0_174] : memref<18x24x16xf32, #tpu.memory_space<vmem>>, vector<16x16x16xf32>
    %c2_175 = arith.constant 2 : index
    %c2_176 = arith.constant 2 : index
    %c0_177 = arith.constant 0 : index
    %84 = vector.load %arg15[%c2_175, %c2_176, %c0_177] : memref<18x24x16xf32, #tpu.memory_space<vmem>>, vector<16x16x16xf32>
    %85 = tpu.concatenate %76, %77, %78, %79, %80, %81, %82, %83, %84 in 2 : vector<16x16x16xf32>, vector<16x16x16xf32>, vector<16x16x16xf32>, vector<16x16x16xf32>, vector<16x16x16xf32>, vector<16x16x16xf32>, vector<16x16x16xf32>, vector<16x16x16xf32>, vector<16x16x16xf32> -> vector<16x16x144xf32>
    %c0_178 = arith.constant 0 : index
    %c0_179 = arith.constant 0 : index
    %c0_180 = arith.constant 0 : index
    %86 = vector.load %arg8[%c0_178, %c0_179, %c0_180] : memref<1x144x16xf32, #tpu.memory_space<vmem>>, vector<1x144x16xf32>
    %87 = vector.shape_cast %86 : vector<1x144x16xf32> to vector<144x16xf32>
    %cst_181 = arith.constant dense<0.000000e+00> : vector<16x16x16xf32>
    %88 = tpu.matmul %85, %87, %cst_181 {dimension_numbers = #tpu.dot_dimension_numbers<[2], [0], [0, 1], [1], [0, 0, 0, 1, 1, 1], [], []>} : vector<16x16x144xf32>, vector<144x16xf32>, vector<16x16x16xf32> -> vector<16x16x16xf32>
    %89 = arith.addf %75, %88 : vector<16x16x16xf32>
    %c0_182 = arith.constant 0 : index
    %c0_183 = arith.constant 0 : index
    %c0_184 = arith.constant 0 : index
    %90 = vector.load %arg9[%c0_182, %c0_183, %c0_184] : memref<1x1x16xf32, #tpu.memory_space<vmem>>, vector<1x1x16xf32>
    %91 = vector.shape_cast %90 : vector<1x1x16xf32> to vector<1x16xf32>
    %92 = vector.shape_cast %91 : vector<1x16xf32> to vector<1x1x16xf32>
    %93 = vector.broadcast %92 : vector<1x1x16xf32> to vector<16x16x16xf32>
    %94 = arith.addf %89, %93 : vector<16x16x16xf32>
    %cst_185 = arith.constant 0.000000e+00 : f32
    %95 = vector.broadcast %cst_185 : f32 to vector<16x16x16xf32>
    %96 = arith.maximumf %94, %95 : vector<16x16x16xf32>
    %97 = vector.shape_cast %96 : vector<16x16x16xf32> to vector<256x16xf32>
    %c0_186 = arith.constant 0 : index
    %c0_187 = arith.constant 0 : index
    %c0_188 = arith.constant 0 : index
    %98 = vector.load %arg10[%c0_186, %c0_187, %c0_188] : memref<1x4x16xf32, #tpu.memory_space<vmem>>, vector<1x4x16xf32>
    %99 = vector.shape_cast %98 : vector<1x4x16xf32> to vector<4x16xf32>
    %cst_189 = arith.constant dense<0.000000e+00> : vector<4x256xf32>
    %100 = tpu.matmul %99, %97, %cst_189 {dimension_numbers = #tpu.dot_dimension_numbers<[1], [1], [0], [0], [0, 0, 1, 0], [], []>} : vector<4x16xf32>, vector<256x16xf32>, vector<4x256xf32> -> vector<4x256xf32>
    %c0_190 = arith.constant 0 : index
    %c0_191 = arith.constant 0 : index
    %c0_192 = arith.constant 0 : index
    %101 = vector.load %arg11[%c0_190, %c0_191, %c0_192] : memref<1x4x1xf32, #tpu.memory_space<vmem>>, vector<1x4x1xf32>
    %102 = vector.shape_cast %101 : vector<1x4x1xf32> to vector<4x1xf32>
    %103 = vector.broadcast %102 : vector<4x1xf32> to vector<4x256xf32>
    %104 = arith.addf %100, %103 : vector<4x256xf32>
    %c0_193 = arith.constant 0 : index
    %c0_194 = arith.constant 0 : index
    %c0_195 = arith.constant 0 : index
    %c0_196 = arith.constant 0 : index
    %105 = vector.load %arg12[%c0_193, %c0_194, %c0_195, %c0_196] : memref<1x1x4x256xf32, #tpu.memory_space<vmem>>, vector<1x1x4x256xf32>
    %106 = vector.shape_cast %105 : vector<1x1x4x256xf32> to vector<4x256xf32>
    %107 = vector.shape_cast %104 : vector<4x256xf32> to vector<1x1x4x256xf32>
    tpu.vector_store %arg12[%c0_193, %c0_194, %c0_195, %c0_196], %107 {strides = array<i32>} : memref<1x1x4x256xf32, #tpu.memory_space<vmem>>, vector<1x1x4x256xf32>,
    return
  }
  func.func @transform_0(%arg0: i32, %arg1: i32) -> (i32, i32, i32, i32) {
    %c0_i32 = arith.constant 0 : i32
    %c0_i32_0 = arith.constant 0 : i32
    %c0_i32_1 = arith.constant 0 : i32
    %c0_i32_2 = arith.constant 0 : i32
    return %arg1, %c0_i32, %c0_i32_0, %c0_i32_1 : i32, i32, i32, i32
  }
  func.func @transform_1(%arg0: i32, %arg1: i32) -> (i32, i32, i32) {
    %c0_i32 = arith.constant 0 : i32
    %c0_i32_0 = arith.constant 0 : i32
    %c0_i32_1 = arith.constant 0 : i32
    return %arg0, %c0_i32, %c0_i32_0 : i32, i32, i32
  }
  func.func @transform_2(%arg0: i32, %arg1: i32) -> (i32, i32, i32) {
    %c0_i32 = arith.constant 0 : i32
    %c0_i32_0 = arith.constant 0 : i32
    %c0_i32_1 = arith.constant 0 : i32
    return %arg0, %c0_i32, %c0_i32_0 : i32, i32, i32
  }
  func.func @transform_3(%arg0: i32, %arg1: i32) -> (i32, i32, i32) {
    %c0_i32 = arith.constant 0 : i32
    %c0_i32_0 = arith.constant 0 : i32
    %c0_i32_1 = arith.constant 0 : i32
    return %arg0, %c0_i32, %c0_i32_0 : i32, i32, i32
  }
  func.func @transform_4(%arg0: i32, %arg1: i32) -> (i32, i32, i32) {
    %c0_i32 = arith.constant 0 : i32
    %c0_i32_0 = arith.constant 0 : i32
    %c0_i32_1 = arith.constant 0 : i32
    return %arg0, %c0_i32, %c0_i32_0 : i32, i32, i32
  }
  func.func @transform_5(%arg0: i32, %arg1: i32) -> (i32, i32, i32) {
    %c0_i32 = arith.constant 0 : i32
    %c0_i32_0 = arith.constant 0 : i32
    %c0_i32_1 = arith.constant 0 : i32
    return %arg0, %c0_i32, %c0_i32_0 : i32, i32, i32
  }
  func.func @transform_6(%arg0: i32, %arg1: i32) -> (i32, i32, i32) {
    %c0_i32 = arith.constant 0 : i32
    %c0_i32_0 = arith.constant 0 : i32
    %c0_i32_1 = arith.constant 0 : i32
    return %arg0, %c0_i32, %c0_i32_0 : i32, i32, i32
  }
  func.func @transform_7(%arg0: i32, %arg1: i32) -> (i32, i32, i32) {
    %c0_i32 = arith.constant 0 : i32
    %c0_i32_0 = arith.constant 0 : i32
    %c0_i32_1 = arith.constant 0 : i32
    return %arg0, %c0_i32, %c0_i32_0 : i32, i32, i32
  }
  func.func @transform_8(%arg0: i32, %arg1: i32) -> (i32, i32, i32) {
    %c0_i32 = arith.constant 0 : i32
    %c0_i32_0 = arith.constant 0 : i32
    %c0_i32_1 = arith.constant 0 : i32
    return %arg0, %c0_i32, %c0_i32_0 : i32, i32, i32
  }
  func.func @transform_9(%arg0: i32, %arg1: i32) -> (i32, i32, i32) {
    %c0_i32 = arith.constant 0 : i32
    %c0_i32_0 = arith.constant 0 : i32
    %c0_i32_1 = arith.constant 0 : i32
    return %arg0, %c0_i32, %c0_i32_0 : i32, i32, i32
  }
  func.func @transform_10(%arg0: i32, %arg1: i32) -> (i32, i32, i32, i32) {
    %c0_i32 = arith.constant 0 : i32
    %c0_i32_0 = arith.constant 0 : i32
    %c0_i32_1 = arith.constant 0 : i32
    return %arg0, %arg1, %c0_i32, %c0_i32_0 : i32, i32, i32, i32
  }
}

</mosaic_0001>

<bundles_post_ra>
// kernel: tpu_custom_call.1
= control target key start
LH: loop header
LB: loop body
LE: loop exit
PB: predicated region body
PF: predicated region fallthrough
CT: control target
= control target key end

     0   :  { %s15851_s0 = inlined_call_operand.vmem [shape: f32[2,16,16,8], index: 0, kind: input, shape index: {}]   ;;  %s15852_s1 = inlined_call_operand.vmem [shape: f32[2,72,16], index: 1, kind: input, shape index: {}]   ;;  %s15853_s2 = inlined_call_operand.vmem [shape: f32[2,1,16], index: 2, kind: input, shape index: {}]   ;;  %s15854_s3 = inlined_call_operand.vmem [shape: f32[2,144,16], index: 3, kind: input, shape index: {}]   ;;  %s15855_s4 = inlined_call_operand.vmem [shape: f32[2,1,16], index: 4, kind: input, shape index: {}]   ;;  %s15856_s5 = inlined_call_operand.vmem [shape: f32[2,72,16], index: 5, kind: input, shape index: {}]   ;;  %s15857_s6 = inlined_call_operand.vmem [shape: f32[2,144,16], index: 6, kind: input, shape index: {}]   ;;  %s15858_s7 = inlined_call_operand.vmem [shape: f32[2,1,16], index: 7, kind: input, shape index: {}]   ;;  %s15859_s8 = inlined_call_operand.vmem [shape: f32[2,4,16], index: 8, kind: input, shape index: {}]   ;;  %s15860_s9 = inlined_call_operand.vmem [shape: f32[2,4,1], index: 9, kind: input, shape index: {}]   ;;  %s15861_s10 = inlined_call_operand.hbm [shape: f32[2,2,4,256], index: 10, kind: output, shape index: {}]  }
   0x1   :  { %15974 = sst [smem:[#allocation197_spill]] %s15851_s0 }
   0x2   :  { %15975 = sst [smem:[#allocation198_spill]] %s15852_s1 }
   0x3   :  { %15 = vsyncpa [#allocation6], 0 }
   0x4   :  { %17 = vsyncpa [#allocation6 + $0x1], 0  ;;  %s10024_s13 = smov 0   ;;  %s10026_s14 = smov 0  }
   0x5   :  { %s10028_s15 = smov 0   ;;  %s10030_s16 = smov 0  }
   0x6   :  { %s10032_s17 = smov 0   ;;  %s10034_s18 = smov 0  }
   0x7   :  { %s10036_s19 = smov 0   ;;  %s10038_s20 = smov 0  }
   0x8 LB: > { %15976 = sst [smem:[#allocation8_spill]] %s9950_s19  ;;  %s8357_s21 = sadd.s32 4294967295, %s9954_s20   ;;  %s9954_s20 = sphi %s10038_s20, %s23_s20   ;;  %s9950_s19 = sphi %s10036_s19, %s16866_s19   ;;  %s9946_s18 = sphi %s10034_s18, %s16871_s18   ;;  %s9942_s17 = sphi %s10032_s17, %s16864_s17   ;;  %s9938_s16 = sphi %s10030_s16, %s16870_s16   ;;  %s9934_s15 = sphi %s10028_s15, %s16869_s15   ;;  %s9930_s14 = sphi %s10026_s14, %s16868_s14   ;;  %s9926_s13 = sphi %s10024_s13, %s16867_s13  }
   0x9   : > { %s8358_s22 = sadd.s32 4294967294, %s9954_s20   ;;  %s32_s23 = sadd.s32 1, %s9946_s18 }
   0xa   : > { %p33_p0 = scmp.ge.s32.totalorder %s32_s23, 2  ;;  %s35_s24 = sadd.s32 1, %s9950_s19 }
   0xb   : > { %p314_p1 = scmp.ne.s32.totalorder %s9934_s15, %s9930_s14  ;;  %p315_p2 = scmp.eq.s32.totalorder %s8357_s21, 3 }
   0xc   : > { %s16873_s23 = smov (%p33_p0, %s32_s23), 0  ;;  %s16875_s24 = smov (!%p33_p0, %s35_s24), %s9950_s19 }
   0xd   : > { %15977 = sst [smem:[#allocation9_spill]] %s16873_s23  ;;  %s300_s25 = ssub.s32 %s9946_s18, %s16873_s23 }
   0xe   : > { %p10075_p3 = por %p315_p2, %p314_p1  ;;  %p37_p4 = scmp.ge.s32.totalorder %s16875_s24, 2 }
   0xf   : > { %p320_p5 = scmp.ne.s32.totalorder %s9930_s14, %s9926_s13  ;;  %p321_p6 = scmp.eq.s32.totalorder %s8358_s22, 3 }
  0x10   : > { %p8361_p7 = scmp.ge.s32.totalorder %s9954_s20, 1  ;;  %s16877_s24 = smov (%p37_p4, %s16875_s24), 0 }
  0x11   : > { %15979 = sst [smem:[#allocation10_spill]] %s16877_s24  ;;  %p10084_p8 = por %p321_p6, %p320_p5 }
  0x12   : > { %p411_p9 = scmp.lt.s32.totalorder %s9954_s20, 5  ;;  %s299_s28 = ssub.s32 %s9950_s19, %s16877_s24 }
  0x13   : > { %s304_s29 = sadd.s32 1, %s9934_s15  ;;  %s301_s30 = sor.u32 %s300_s25, %s299_s28 }
  0x14   : > { %p412_p10 = pnand %p8361_p7, %p411_p9  ;;  %p302_p11 = scmp.eq.s32.totalorder %s301_s30, 0 }
  0x16   : > { %s10093_s11 = scalar_select %p302_p11, %s9934_s15, %s304_s29  }
  0x17   : > { %415 = sbr.rel (%p412_p10) target bundleno = 2741 (0xab5), region = 60 }
  0x1c   : > { %vm528_vm0 = vcmask 64512   ;;  %p486_p12 = scmp.lt.s32.totalorder %s9938_s16, 1  ;;  %v15862_v0 = vmov 0.0   ;;  %s15981_s0 = sld [smem:[#allocation197_spill]]  ;;  %vm536_vm1 = vcmask 57344   ;;  %vm573_vm2 = vcmask 130048  }
  0x1d   : > { %529 = vst.msk [vmem:[#allocation2] sm:$0xff] %vm528_vm0, %v15862_v0  ;;  %s15890_s29 = smov 8   ;;  %s15896_s30 = smov 16   ;;  %vm2103_vm3 = vcmask 195584   ;;  %vm2169_vm4 = vcmask 326656   ;;  %vm2136_vm5 = vcmask 261120  }
  0x1e   : > { %530 = vst.msk [vmem:[#allocation2 + $0x8] sm:$0xff] %vm528_vm0, %v15862_v0  ;;  %s487_s12 = scalar_select %p486_p12, %s9938_s16, 1  ;;  %vm2202_vm6 = vcmask 392192   ;;  %vm2268_vm7 = vcmask 523264   ;;  %vm2235_vm8 = vcmask 457728   ;;  %vm2314_vm9 = vcmask 588800  }
  0x1f   : > { %531 = vst.msk [vmem:[#allocation2 + $0x10] sm:$0xff] %vm528_vm0, %v15862_v0  ;;  %s15886_s22 = smov 40   ;;  %s15892_s25 = smov 48   ;;  %vm581_vm10 = vcmask 122880   ;;  %vm3902_vm11 = vcmask 654336   ;;  %vm3935_vm12 = vcmask 785408  }
  0x20   : > { %533 = vst.msk [vmem:[#allocation2 + $0x198] sm:$0xff] %vm528_vm0, %v15862_v0  ;;  %s8539_s21 = sshll.u32 %s487_s12, 8  ;;  %s15888_s12 = smov 24   ;;  %vm3968_vm13 = vcmask 916480   ;;  %vm8162_vm14 = vcmask 1043456  }
  0x21   : > { %534 = vst.msk [vmem:[#allocation2 + $0x1a0] sm:$0xff] %vm528_vm0, %v15862_v0  ;;  %p491_p13 = scmp.lt.s32.totalorder %s9942_s17, 1  ;;  %s15966_s23 = smov 64  }
  0x22   : > { %s10110_s28 = scalar_lea.vmem %s15981_s0, %s8539_s21  ;;  %535 = vst.msk [vmem:[#allocation2 + $0x1a8] sm:$0xff] %vm528_vm0, %v15862_v0  ;;  %s15894_s21 = smov 32  }
  0x23   : > { %v663_v1 = vld [vmem:[%s10110_s28 + $0x10] sm:$0xff]  ;;  %v661_v2 = vld [vmem:[%s10110_s28] sm:$0xff]  ;;  %v664_v3 = vld [vmem:[%s10110_s28 + $0x18] sm:$0xff]  ;;  %555 = vst.msk [vmem:[#allocation2 + $0x11] sm:$0x1] %vm536_vm1, %v15862_v0  ;;  %s16177_s1 = sld [smem:[#allocation198_spill]] }
  0x24   : > { %696 = vst.msk [vmem:[#allocation2 + $0x31] sm:$0xff] %vm528_vm0, %v663_v1  ;;  %v662_v4 = vld [vmem:[%s10110_s28 + $0x8] sm:$0xff]  ;;  %v665_v5 = vld [vmem:[%s10110_s28 + $0x20] sm:$0xff]  ;;  %v667_v7 = vld [vmem:[%s10110_s28 + $0x30] sm:$0xff]  ;;  %s15906_s19 = smov 80  }
  0x25   : > { %694 = vst.msk [vmem:[#allocation2 + $0x19] sm:$0xff] %vm528_vm0, %v661_v2  ;;  %v758_v6 = vld [vmem:[#allocation2 + $0x1] sm:$0xff]  ;;  %v668_v9 = vld [vmem:[%s10110_s28 + $0x38] sm:$0xff]  ;;  %v671_v13 = vld [vmem:[%s10110_s28 + $0x50] sm:$0xff] }
  0x26   : > { %697 = vst.msk [vmem:[#allocation2 + $0x39] sm:$0xff] %vm528_vm0, %v664_v3  ;;  %1047 = vrot.lane.b32.xlu0 %v758_v6, %s15890_s29  ;;  %v666_v8 = vld [vmem:[%s10110_s28 + $0x28] sm:$0xff]  ;;  %v669_v11 = vld [vmem:[%s10110_s28 + $0x40] sm:$0xff]  ;;  %v672_v17 = vld [vmem:[%s10110_s28 + $0x58] sm:$0xff] }
  0x27   : > { %695 = vst.msk [vmem:[#allocation2 + $0x21] sm:$0xff] %vm528_vm0, %v662_v4  ;;  %v670_v10 = vld [vmem:[%s10110_s28 + $0x48] sm:$0xff]  ;;  %v673_v16 = vld [vmem:[%s10110_s28 + $0x60] sm:$0xff]  ;;  %v676_v19 = vld [vmem:[%s10110_s28 + $0x78] sm:$0xff] }
  0x28   : > { %698 = vst.msk [vmem:[#allocation2 + $0x49] sm:$0xff] %vm528_vm0, %v665_v5  ;;  %v759_v15 = vld [vmem:[#allocation2 + $0x9] sm:$0xff]  ;;  %v677_v22 = vld [vmem:[%s10110_s28 + $0x80] sm:$0xff]  ;;  %v680_v27 = vld [vmem:[%s10110_s28 + $0x98] sm:$0xff] }
  0x29   : > { %700 = vst.msk [vmem:[#allocation2 + $0x61] sm:$0xff] %vm528_vm0, %v667_v7  ;;  %v674_v18 = vld [vmem:[%s10110_s28 + $0x68] sm:$0xff]  ;;  %v675_v20 = vld [vmem:[%s10110_s28 + $0x70] sm:$0xff]  ;;  %v681_v32 = vld [vmem:[%s10110_s28 + $0xa0] sm:$0xff] }
  0x2a   : > { %699 = vst.msk [vmem:[#allocation2 + $0x51] sm:$0xff] %vm528_vm0, %v666_v8  ;;  %v679_v25 = vld [vmem:[%s10110_s28 + $0x90] sm:$0xff]  ;;  %v678_v26 = vld [vmem:[%s10110_s28 + $0x88] sm:$0xff]  ;;  %v685_v37 = vld [vmem:[%s10110_s28 + $0xc0] sm:$0xff] }
  0x2b   : > { %v10132_v12 = vld [vmem:[#allocation2 + $0x31] sm:$0xff]  ;;  %701 = vst.msk [vmem:[#allocation2 + $0x69] sm:$0xff] %vm528_vm0, %v668_v9  ;;  %v682_v31 = vld [vmem:[%s10110_s28 + $0xa8] sm:$0xff]  ;;  %v689_v45 = vld [vmem:[%s10110_s28 + $0xe0] sm:$0xff] }
  0x2c   : > { %1055 = vrot.lane.b32.xlu2 %v10132_v12, %s15890_s29  ;;  %v10138_v14 = vld [vmem:[#allocation2 + $0x19] sm:$0xff]  ;;  %703 = vst.msk [vmem:[#allocation2 + $0x81] sm:$0xff] %vm528_vm0, %v670_v10  ;;  %v683_v33 = vld [vmem:[%s10110_s28 + $0xb0] sm:$0xff]  ;;  %v686_v39 = vld [vmem:[%s10110_s28 + $0xc8] sm:$0xff] }
  0x2d   : > { %1051 = vrot.lane.b32.xlu1 %v10138_v14, %s15890_s29  ;;  %702 = vst.msk [vmem:[#allocation2 + $0x79] sm:$0xff] %vm528_vm0, %v669_v11  ;;  %v10153_v21 = vld [vmem:[#allocation2 + $0x39] sm:$0xff]  ;;  %v687_v44 = vld [vmem:[%s10110_s28 + $0xd0] sm:$0xff]  ;;  %v690_v49 = vld [vmem:[%s10110_s28 + $0xe8] sm:$0xff] }
  0x2e   : > { %704 = vst.msk [vmem:[#allocation2 + $0x91] sm:$0xff] %vm528_vm0, %v671_v13  ;;  %1049 = vrot.lane.b32.xlu0 %v759_v15, %s15890_s29  ;;  %v10157_v23 = vld [vmem:[#allocation2 + $0x21] sm:$0xff]  ;;  %v684_v38 = vld [vmem:[%s10110_s28 + $0xb8] sm:$0xff]  ;;  %v791_v1 = vld [vmem:[#allocation2 + $0xa] sm:$0xff] }
  0x2f   : > { %706 = vst.msk [vmem:[#allocation2 + $0xa9] sm:$0xff] %vm528_vm0, %v673_v16  ;;  %v10163_v24 = vld [vmem:[#allocation2 + $0x49] sm:$0xff]  ;;  %v688_v43 = vld [vmem:[%s10110_s28 + $0xd8] sm:$0xff] }
  0x30   : > { %705 = vst.msk [vmem:[#allocation2 + $0x99] sm:$0xff] %vm528_vm0, %v672_v17  ;;  %v10176_v28 = vld [vmem:[#allocation2 + $0x61] sm:$0xff]  ;;  %v10376_v4 = vld [vmem:[#allocation2 + $0x32] sm:$0xff] }
  0x31   : > { %707 = vst.msk [vmem:[#allocation2 + $0xb1] sm:$0xff] %vm528_vm0, %v674_v18  ;;  %v10178_v29 = vld [vmem:[#allocation2 + $0x51] sm:$0xff]  ;;  %v790_v62 = vld [vmem:[#allocation2 + $0x2] sm:$0xff]  ;;  %v10372_v3 = vld [vmem:[#allocation2 + $0x1a] sm:$0xff] }
  0x32   : > { %709 = vst.msk [vmem:[#allocation2 + $0xc9] sm:$0xff] %vm528_vm0, %v676_v19  ;;  %v10182_v30 = vld [vmem:[#allocation2 + $0x69] sm:$0xff] }
  0x33   : > { %708 = vst.msk [vmem:[#allocation2 + $0xc1] sm:$0xff] %vm528_vm0, %v675_v20  ;;  %v10194_v34 = vld [vmem:[#allocation2 + $0x81] sm:$0xff]  ;;  %v10384_v6 = vld [vmem:[#allocation2 + $0x4a] sm:$0xff] }
  0x34   : > { %1057 = vrot.lane.b32.xlu2 %v10153_v21, %s15890_s29  ;;  %710 = vst.msk [vmem:[#allocation2 + $0xd9] sm:$0xff] %vm528_vm0, %v677_v22  ;;  %v10196_v35 = vld [vmem:[#allocation2 + $0x79] sm:$0xff]  ;;  %v10400_v11 = vld [vmem:[#allocation2 + $0x62] sm:$0xff] }
  0x35   : > { %1053 = vrot.lane.b32.xlu1 %v10157_v23, %s15890_s29  ;;  %712 = vst.msk [vmem:[#allocation2 + $0xf1] sm:$0xff] %vm528_vm0, %v679_v25  ;;  %v10200_v36 = vld [vmem:[#allocation2 + $0x91] sm:$0xff]  ;;  %v10404_v13 = vld [vmem:[#allocation2 + $0x7a] sm:$0xff] }
  0x36   : > { %711 = vst.msk [vmem:[#allocation2 + $0xe1] sm:$0xff] %vm528_vm0, %v678_v26  ;;  %1059 = vrot.lane.b32.xlu0 %v10163_v24, %s15890_s29  ;;  %v10212_v40 = vld [vmem:[#allocation2 + $0xa9] sm:$0xff] }
  0x37   : > { %713 = vst.msk [vmem:[#allocation2 + $0xf9] sm:$0xff] %vm528_vm0, %v680_v27  ;;  %v10214_v41 = vld [vmem:[#allocation2 + $0x99] sm:$0xff] }
  0x38   : > { %715 = vst.msk [vmem:[#allocation2 + $0x111] sm:$0xff] %vm528_vm0, %v682_v31  ;;  %v10218_v42 = vld [vmem:[#allocation2 + $0xb1] sm:$0xff] }
  0x39   : > { %714 = vst.msk [vmem:[#allocation2 + $0x109] sm:$0xff] %vm528_vm0, %v681_v32  ;;  %v10230_v46 = vld [vmem:[#allocation2 + $0xc9] sm:$0xff]  ;;  %v10414_v17 = vld [vmem:[#allocation2 + $0x92] sm:$0xff] }
  0x3a   : > { %716 = vst.msk [vmem:[#allocation2 + $0x121] sm:$0xff] %vm528_vm0, %v683_v33  ;;  %v10232_v47 = vld [vmem:[#allocation2 + $0xc1] sm:$0xff]  ;;  %v10434_v27 = vld [vmem:[#allocation2 + $0xaa] sm:$0xff] }
  0x3b   : > { %718 = vst.msk [vmem:[#allocation2 + $0x139] sm:$0xff] %vm528_vm0, %v685_v37  ;;  %v10236_v48 = vld [vmem:[#allocation2 + $0xd9] sm:$0xff]  ;;  %v10438_v31 = vld [vmem:[#allocation2 + $0xc2] sm:$0xff] }
  0x3c   : > { %1063 = vrot.lane.b32.xlu2 %v10176_v28, %s15890_s29  ;;  %717 = vst.msk [vmem:[#allocation2 + $0x129] sm:$0xff] %vm528_vm0, %v684_v38  ;;  %v10248_v50 = vld [vmem:[#allocation2 + $0xf1] sm:$0xff] }
  0x3d   : > { %1061 = vrot.lane.b32.xlu1 %v10178_v29, %s15890_s29  ;;  %719 = vst.msk [vmem:[#allocation2 + $0x141] sm:$0xff] %vm528_vm0, %v686_v39  ;;  %v10252_v51 = vld [vmem:[#allocation2 + $0xe1] sm:$0xff] }
  0x3e   : > { %1065 = vrot.lane.b32.xlu0 %v10182_v30, %s15890_s29  ;;  %721 = vst.msk [vmem:[#allocation2 + $0x159] sm:$0xff] %vm528_vm0, %v688_v43  ;;  %v10260_v52 = vld [vmem:[#allocation2 + $0xf9] sm:$0xff] }
  0x3f   : > { %720 = vst.msk [vmem:[#allocation2 + $0x151] sm:$0xff] %vm528_vm0, %v687_v44  ;;  %v10276_v53 = vld [vmem:[#allocation2 + $0x111] sm:$0xff]  ;;  %v10450_v38 = vld [vmem:[#allocation2 + $0xda] sm:$0xff] }
  0x40   : > { %722 = vst.msk [vmem:[#allocation2 + $0x169] sm:$0xff] %vm528_vm0, %v689_v45  ;;  %v10280_v54 = vld [vmem:[#allocation2 + $0x109] sm:$0xff] }
  0x41   : > { %723 = vst.msk [vmem:[#allocation2 + $0x171] sm:$0xff] %vm528_vm0, %v690_v49  ;;  %v10288_v55 = vld [vmem:[#allocation2 + $0x121] sm:$0xff] }
  0x42   : > { %537 = vst.msk [vmem:[#allocation2] sm:$0x1] %vm536_vm1, %v15862_v0  ;;  %v10304_v56 = vld [vmem:[#allocation2 + $0x139] sm:$0xff] }
  0x43   : > { %538 = vst.msk [vmem:[#allocation2 + $0x18] sm:$0x1] %vm536_vm1, %v15862_v0  ;;  %v10308_v57 = vld [vmem:[#allocation2 + $0x129] sm:$0xff] }
  0x44   : > { %1069 = vrot.lane.b32.xlu2 %v10194_v34, %s15890_s29  ;;  %539 = vst.msk [vmem:[#allocation2 + $0x30] sm:$0x1] %vm536_vm1, %v15862_v0  ;;  %v10316_v58 = vld [vmem:[#allocation2 + $0x141] sm:$0xff] }
  0x45   : > { %1067 = vrot.lane.b32.xlu1 %v10196_v35, %s15890_s29  ;;  %540 = vst.msk [vmem:[#allocation2 + $0x48] sm:$0x1] %vm536_vm1, %v15862_v0  ;;  %v10332_v59 = vld [vmem:[#allocation2 + $0x159] sm:$0xff] }
  0x46   : > { %1071 = vrot.lane.b32.xlu0 %v10200_v36, %s15890_s29  ;;  %541 = vst.msk [vmem:[#allocation2 + $0x60] sm:$0x1] %vm536_vm1, %v15862_v0  ;;  %v10336_v60 = vld [vmem:[#allocation2 + $0x151] sm:$0xff] }
  0x47   : > { %542 = vst.msk [vmem:[#allocation2 + $0x78] sm:$0x1] %vm536_vm1, %v15862_v0  ;;  %v10344_v61 = vld [vmem:[#allocation2 + $0x169] sm:$0xff] }
  0x48   : > { %543 = vst.msk [vmem:[#allocation2 + $0x90] sm:$0x1] %vm536_vm1, %v15862_v0  ;;  %v10362_v63 = vld [vmem:[#allocation2 + $0x171] sm:$0xff] }
  0x49   : > { %544 = vst.msk [vmem:[#allocation2 + $0xa8] sm:$0x1] %vm536_vm1, %v15862_v0 }
  0x4a   : > { %545 = vst.msk [vmem:[#allocation2 + $0xc0] sm:$0x1] %vm536_vm1, %v15862_v0 }
  0x4b   : > { %546 = vst.msk [vmem:[#allocation2 + $0xd8] sm:$0x1] %vm536_vm1, %v15862_v0 }
  0x4c   : > { %1075 = vrot.lane.b32.xlu2 %v10212_v40, %s15890_s29  ;;  %547 = vst.msk [vmem:[#allocation2 + $0xf0] sm:$0x1] %vm536_vm1, %v15862_v0 }
  0x4d   : > { %1073 = vrot.lane.b32.xlu1 %v10214_v41, %s15890_s29  ;;  %548 = vst.msk [vmem:[#allocation2 + $0x108] sm:$0x1] %vm536_vm1, %v15862_v0 }
  0x4e   : > { %1077 = vrot.lane.b32.xlu0 %v10218_v42, %s15890_s29  ;;  %549 = vst.msk [vmem:[#allocation2 + $0x120] sm:$0x1] %vm536_vm1, %v15862_v0 }
  0x4f   : > { %550 = vst.msk [vmem:[#allocation2 + $0x138] sm:$0x1] %vm536_vm1, %v15862_v0 }
  0x50   : > { %551 = vst.msk [vmem:[#allocation2 + $0x150] sm:$0x1] %vm536_vm1, %v15862_v0 }
  0x51   : > { %552 = vst.msk [vmem:[#allocation2 + $0x168] sm:$0x1] %vm536_vm1, %v15862_v0 }
  0x52   : > { %553 = vst.msk [vmem:[#allocation2 + $0x180] sm:$0x1] %vm536_vm1, %v15862_v0 }
  0x53   : > { %554 = vst.msk [vmem:[#allocation2 + $0x198] sm:$0x1] %vm536_vm1, %v15862_v0 }
  0x54   : > { %1081 = vrot.lane.b32.xlu2 %v10230_v46, %s15890_s29  ;;  %556 = vst.msk [vmem:[#allocation2 + $0x29] sm:$0x1] %vm536_vm1, %v15862_v0 }
  0x55   : > { %1079 = vrot.lane.b32.xlu1 %v10232_v47, %s15890_s29  ;;  %557 = vst.msk [vmem:[#allocation2 + $0x41] sm:$0x1] %vm536_vm1, %v15862_v0 }
  0x56   : > { %1083 = vrot.lane.b32.xlu0 %v10236_v48, %s15890_s29  ;;  %558 = vst.msk [vmem:[#allocation2 + $0x59] sm:$0x1] %vm536_vm1, %v15862_v0 }
  0x57   : > { %559 = vst.msk [vmem:[#allocation2 + $0x71] sm:$0x1] %vm536_vm1, %v15862_v0 }
  0x58   : > { %560 = vst.msk [vmem:[#allocation2 + $0x89] sm:$0x1] %vm536_vm1, %v15862_v0 }
  0x59   : > { %561 = vst.msk [vmem:[#allocation2 + $0xa1] sm:$0x1] %vm536_vm1, %v15862_v0 }
  0x5a   : > { %562 = vst.msk [vmem:[#allocation2 + $0xb9] sm:$0x1] %vm536_vm1, %v15862_v0 }
  0x5b   : > { %563 = vst.msk [vmem:[#allocation2 + $0xd1] sm:$0x1] %vm536_vm1, %v15862_v0  ;;  %v10370_v2 = vld [vmem:[#allocation2 + $0x22] sm:$0xff] }
  0x5c   : > { %1087 = vrot.lane.b32.xlu2 %v10248_v50, %s15890_s29  ;;  %564 = vst.msk [vmem:[#allocation2 + $0xe9] sm:$0x1] %vm536_vm1, %v15862_v0  ;;  %v10386_v7 = vld [vmem:[#allocation2 + $0x3a] sm:$0xff] }
  0x5d   : > { %1085 = vrot.lane.b32.xlu1 %v10252_v51, %s15890_s29  ;;  %565 = vst.msk [vmem:[#allocation2 + $0x101] sm:$0x1] %vm536_vm1, %v15862_v0  ;;  %v10390_v8 = vld [vmem:[#allocation2 + $0x52] sm:$0xff] }
  0x5e   : > { %1089 = vrot.lane.b32.xlu0 %v10260_v52, %s15890_s29  ;;  %566 = vst.msk [vmem:[#allocation2 + $0x119] sm:$0x1] %vm536_vm1, %v15862_v0  ;;  %v10398_v10 = vld [vmem:[#allocation2 + $0x6a] sm:$0xff] }
  0x5f   : > { %567 = vst.msk [vmem:[#allocation2 + $0x131] sm:$0x1] %vm536_vm1, %v15862_v0  ;;  %v10416_v18 = vld [vmem:[#allocation2 + $0x82] sm:$0xff] }
  0x60   : > { %568 = vst.msk [vmem:[#allocation2 + $0x149] sm:$0x1] %vm536_vm1, %v15862_v0  ;;  %v10420_v19 = vld [vmem:[#allocation2 + $0x9a] sm:$0xff] }
  0x61   : > { %569 = vst.msk [vmem:[#allocation2 + $0x161] sm:$0x1] %vm536_vm1, %v15862_v0  ;;  %v10432_v26 = vld [vmem:[#allocation2 + $0xb2] sm:$0xff] }
  0x62   : > { %570 = vst.msk [vmem:[#allocation2 + $0x179] sm:$0x1] %vm536_vm1, %v15862_v0  ;;  %v10452_v39 = vld [vmem:[#allocation2 + $0xca] sm:$0xff] }
  0x63   : > { %571 = vst.msk [vmem:[#allocation2 + $0x191] sm:$0x1] %vm536_vm1, %v15862_v0  ;;  %v10456_v43 = vld [vmem:[#allocation2 + $0xe2] sm:$0xff] }
  0x64   : > { %1093 = vrot.lane.b32.xlu2 %v10276_v53, %s15890_s29  ;;  %572 = vst.msk [vmem:[#allocation2 + $0x1a9] sm:$0x1] %vm536_vm1, %v15862_v0  ;;  %v10474_v0 = vld [vmem:[#allocation2 + $0x10a] sm:$0xff] }
  0x65   : > { %1091 = vrot.lane.b32.xlu1 %v10280_v54, %s15890_s29 }
  0x66   : > { %1095 = vrot.lane.b32.xlu0 %v10288_v55, %s15890_s29 }
  0x6c   : > { %1099 = vrot.lane.b32.xlu2 %v10304_v56, %s15890_s29 }
  0x6d   : > { %1097 = vrot.lane.b32.xlu1 %v10308_v57, %s15890_s29 }
  0x6e   : > { %1101 = vrot.lane.b32.xlu0 %v10316_v58, %s15890_s29 }
  0x74   : > { %1105 = vrot.lane.b32.xlu2 %v10332_v59, %s15890_s29 }
  0x75   : > { %1103 = vrot.lane.b32.xlu1 %v10336_v60, %s15890_s29 }
  0x76   : > { %1107 = vrot.lane.b32.xlu0 %v10344_v61, %s15890_s29 }
  0x7c   : > { %1175 = vrot.lane.b32.xlu2 %v790_v62, %s15896_s30  ;;  %v10468_v62 = vld [vmem:[#allocation2 + $0xfa] sm:$0xff] }
  0x7d   : > { %1109 = vrot.lane.b32.xlu1 %v10362_v63, %s15890_s29  ;;  %s16342_s29 = smov 16  }
  0x7e   : > { %1177 = vrot.lane.b32.xlu0 %v791_v1, %s15896_s30  ;;  %v10470_v1 = vld [vmem:[#allocation2 + $0xf2] sm:$0xff] }
  0x84   : > { %1181 = vrot.lane.b32.xlu2 %v10370_v2, %s15896_s30 }
  0x85   : > { %1179 = vrot.lane.b32.xlu1 %v10372_v3, %s15896_s30 }
  0x86   : > { %v10380_v5 = vpop.permute.xlu2 %1055  ;;  %1183 = vrot.lane.b32.xlu0 %v10376_v4, %s15896_s30 }
  0x87   : > { %15982 = vst [vmem:[#allocation11_spill] sm:$0xff] %v10380_v5 }
  0x8c   : > { %1187 = vrot.lane.b32.xlu2 %v10384_v6, %s15896_s30 }
  0x8d   : > { %1185 = vrot.lane.b32.xlu1 %v10386_v7, %s15896_s30 }
  0x8e   : > { %v10394_v9 = vpop.permute.xlu2 %1057  ;;  %1189 = vrot.lane.b32.xlu0 %v10390_v8, %s15896_s30 }
  0x8f   : > { %15983 = vst [vmem:[#allocation12_spill] sm:$0xff] %v10394_v9  ;;  %v10522_v9 = vld [vmem:[#allocation2 + $0x142] sm:$0xff] }
  0x90   : > { %16002 = vst [vmem:[#allocation30_spill] sm:$0xff] %v10522_v9 }
  0x94   : > { %1193 = vrot.lane.b32.xlu2 %v10398_v10, %s15896_s30 }
  0x95   : > { %1191 = vrot.lane.b32.xlu1 %v10400_v11, %s15896_s30 }
  0x96   : > { %v10408_v15 = vpop.permute.xlu2 %1063  ;;  %1195 = vrot.lane.b32.xlu0 %v10404_v13, %s15896_s30 }
  0x97   : > { %15984 = vst [vmem:[#allocation13_spill] sm:$0xff] %v10408_v15 }
  0x98   : > { %v10412_v16 = vpop.permute.xlu0 %1047 }
  0x99   : > { %15985 = vst [vmem:[#allocation14_spill] sm:$0xff] %v10412_v16  ;;  %v729_v16 = vld [vmem:[#allocation2 + $0x20] sm:$0xff] }
  0x9c   : > { %1199 = vrot.lane.b32.xlu2 %v10414_v17, %s15896_s30 }
  0x9d   : > { %1197 = vrot.lane.b32.xlu1 %v10416_v18, %s15896_s30 }
  0x9e   : > { %v10424_v20 = vpop.permute.xlu2 %1069  ;;  %1201 = vrot.lane.b32.xlu0 %v10420_v19, %s15896_s30 }
  0x9f   : > { %15986 = vst [vmem:[#allocation15_spill] sm:$0xff] %v10424_v20  ;;  %v10428_v22 = vpop.permute.xlu1 %1051 }
  0xa0   : > { %15987 = vst [vmem:[#allocation16_spill] sm:$0xff] %v10428_v22  ;;  %v10430_v25 = vpop.permute.xlu0 %1049  ;;  %v10546_v22 = vld [vmem:[#allocation2 + $0x16a] sm:$0xff] }
  0xa1   : > { %15988 = vst [vmem:[#allocation17_spill] sm:$0xff] %v10430_v25  ;;  %v10552_v25 = vld [vmem:[#allocation2 + $0x172] sm:$0xff] }
  0xa2   : > { %16007 = vst [vmem:[#allocation35_spill] sm:$0xff] %v10546_v22 }
  0xa3   : > { %16009 = vst [vmem:[#allocation37_spill] sm:$0xff] %v10552_v25 }
  0xa4   : > { %1205 = vrot.lane.b32.xlu2 %v10432_v26, %s15896_s30 }
  0xa5   : > { %1203 = vrot.lane.b32.xlu1 %v10434_v27, %s15896_s30 }
  0xa6   : > { %v10442_v32 = vpop.permute.xlu2 %1075  ;;  %1207 = vrot.lane.b32.xlu0 %v10438_v31, %s15896_s30 }
  0xa7   : > { %15989 = vst [vmem:[#allocation18_spill] sm:$0xff] %v10442_v32  ;;  %v10446_v33 = vpop.permute.xlu1 %1053 }
  0xa8   : > { %15990 = vst [vmem:[#allocation19_spill] sm:$0xff] %v10446_v33  ;;  %v10448_v37 = vpop.permute.xlu0 %1059 }
  0xa9   : > { %15991 = vst [vmem:[#allocation20_spill] sm:$0xff] %v10448_v37 }
  0xac   : > { %1211 = vrot.lane.b32.xlu2 %v10450_v38, %s15896_s30 }
  0xad   : > { %1209 = vrot.lane.b32.xlu1 %v10452_v39, %s15896_s30 }
  0xae   : > { %v10460_v44 = vpop.permute.xlu2 %1081  ;;  %1213 = vrot.lane.b32.xlu0 %v10456_v43, %s15896_s30 }
  0xaf   : > { %15992 = vst [vmem:[#allocation21_spill] sm:$0xff] %v10460_v44  ;;  %v10464_v45 = vpop.permute.xlu1 %1061  ;;  %v10492_v44 = vld [vmem:[#allocation2 + $0x112] sm:$0xff] }
  0xb0   : > { %15993 = vst [vmem:[#allocation22_spill] sm:$0xff] %v10464_v45  ;;  %v10466_v49 = vpop.permute.xlu0 %1065  ;;  %v10488_v45 = vld [vmem:[#allocation2 + $0x122] sm:$0xff] }
  0xb1   : > { %15994 = vst [vmem:[#allocation23_spill] sm:$0xff] %v10466_v49  ;;  %v15997_v49 = vmov 0.0  }
  0xb2   : > { %574 = vst.msk [vmem:[#allocation3] sm:$0xff] %vm573_vm2, %v15997_v49 }
  0xb3   : > { %575 = vst.msk [vmem:[#allocation3 + $0x8] sm:$0xff] %vm573_vm2, %v15997_v49 }
  0xb4   : > { %1217 = vrot.lane.b32.xlu2 %v10468_v62, %s15896_s30  ;;  %576 = vst.msk [vmem:[#allocation3 + $0x10] sm:$0xff] %vm573_vm2, %v15997_v49 }
  0xb5   : > { %1215 = vrot.lane.b32.xlu1 %v10470_v1, %s15896_s30  ;;  %578 = vst.msk [vmem:[#allocation3 + $0x198] sm:$0xff] %vm573_vm2, %v15997_v49 }
  0xb6   : > { %v10478_v32 = vpop.permute.xlu2 %1087  ;;  %1219 = vrot.lane.b32.xlu0 %v10474_v0, %s15896_s30  ;;  %579 = vst.msk [vmem:[#allocation3 + $0x1a0] sm:$0xff] %vm573_vm2, %v15997_v49 }
  0xb7   : > { %15995 = vst [vmem:[#allocation24_spill] sm:$0xff] %v10478_v32  ;;  %v10482_v20 = vpop.permute.xlu1 %1067 }
  0xb8   : > { %15996 = vst [vmem:[#allocation25_spill] sm:$0xff] %v10482_v20  ;;  %v10486_v15 = vpop.permute.xlu0 %1071  ;;  %v10500_v20 = vld [vmem:[#allocation2 + $0x12a] sm:$0xff] }
  0xb9   : > { %15998 = vst [vmem:[#allocation26_spill] sm:$0xff] %v10486_v15 }
  0xba   : > { %580 = vst.msk [vmem:[#allocation3 + $0x1a8] sm:$0xff] %vm573_vm2, %v15997_v49 }
  0xbb   : > { %618 = vst.msk [vmem:[#allocation4] sm:$0xff] %vm573_vm2, %v15997_v49 }
  0xbc   : > { %1223 = vrot.lane.b32.xlu2 %v10488_v45, %s15896_s30  ;;  %619 = vst.msk [vmem:[#allocation4 + $0x8] sm:$0xff] %vm573_vm2, %v15997_v49 }
  0xbd   : > { %1221 = vrot.lane.b32.xlu1 %v10492_v44, %s15896_s30  ;;  %620 = vst.msk [vmem:[#allocation4 + $0x10] sm:$0xff] %vm573_vm2, %v15997_v49 }
  0xbe   : > { %v10508_v15 = vpop.permute.xlu2 %1093  ;;  %1225 = vrot.lane.b32.xlu0 %v10500_v20, %s15896_s30  ;;  %622 = vst.msk [vmem:[#allocation4 + $0x198] sm:$0xff] %vm573_vm2, %v15997_v49 }
  0xbf   : > { %15999 = vst [vmem:[#allocation27_spill] sm:$0xff] %v10508_v15  ;;  %v10514_v32 = vpop.permute.xlu1 %1073  ;;  %v10526_v15 = vld [vmem:[#allocation2 + $0x13a] sm:$0xff] }
  0xc0   : > { %16000 = vst [vmem:[#allocation28_spill] sm:$0xff] %v10514_v32  ;;  %v10520_v37 = vpop.permute.xlu0 %1077  ;;  %v10534_v32 = vld [vmem:[#allocation2 + $0x152] sm:$0xff] }
  0xc1   : > { %16001 = vst [vmem:[#allocation29_spill] sm:$0xff] %v10520_v37 }
  0xc2   : > { %623 = vst.msk [vmem:[#allocation4 + $0x1a0] sm:$0xff] %vm573_vm2, %v15997_v49 }
  0xc3   : > { %624 = vst.msk [vmem:[#allocation4 + $0x1a8] sm:$0xff] %vm573_vm2, %v15997_v49  ;;  %v10548_v49 = vld [vmem:[#allocation2 + $0x15a] sm:$0xff] }
  0xc4   : > { %1229 = vrot.lane.b32.xlu2 %v10522_v9, %s15896_s30  ;;  %16003 = vst [vmem:[#allocation31_spill] sm:$0xff] %v10534_v32 }
  0xc5   : > { %1227 = vrot.lane.b32.xlu1 %v10526_v15, %s15896_s30  ;;  %16008 = vst [vmem:[#allocation36_spill] sm:$0xff] %v10548_v49 }
  0xc6   : > { %v10538_v37 = vpop.permute.xlu2 %1099  ;;  %1231 = vrot.lane.b32.xlu0 %v10534_v32, %s15896_s30  ;;  %v728_v32 = vld [vmem:[#allocation2 + $0x18] sm:$0xff] }
  0xc7   : > { %16004 = vst [vmem:[#allocation32_spill] sm:$0xff] %v10538_v37  ;;  %v10542_v5 = vpop.permute.xlu1 %1079 }
  0xc8   : > { %16005 = vst [vmem:[#allocation33_spill] sm:$0xff] %v10542_v5  ;;  %v10544_v33 = vpop.permute.xlu0 %1083 }
  0xc9   : > { %16006 = vst [vmem:[#allocation34_spill] sm:$0xff] %v10544_v33 }
  0xcc   : > { %1235 = vrot.lane.b32.xlu2 %v10546_v22, %s15896_s30  ;;  %v730_v22 = vld [vmem:[#allocation2 + $0x30] sm:$0xff] }
  0xcd   : > { %1233 = vrot.lane.b32.xlu1 %v10548_v49, %s15896_s30 }
  0xce   : > { %v10556_v37 = vpop.permute.xlu2 %1105  ;;  %1237 = vrot.lane.b32.xlu0 %v10552_v25, %s15896_s30  ;;  %v10573_v25 = vld [vmem:[#allocation2 + $0x48] sm:$0xff]  ;;  %s16358_s30 = smov 32  }
  0xcf   : > { %16010 = vst [vmem:[#allocation38_spill] sm:$0xff] %v10556_v37  ;;  %v10560_v5 = vpop.permute.xlu1 %1085 }
  0xd0   : > { %16011 = vst [vmem:[#allocation39_spill] sm:$0xff] %v10560_v5  ;;  %v10562_v33 = vpop.permute.xlu0 %1089  ;;  %v731_v5 = vld [vmem:[#allocation2 + $0x38] sm:$0xff] }
  0xd1   : > { %16012 = vst [vmem:[#allocation40_spill] sm:$0xff] %v10562_v33  ;;  %v734_v33 = vld [vmem:[#allocation2 + $0x60] sm:$0xff] }
  0xd2   : > { %16016 = vst [vmem:[#allocation44_spill] sm:$0xff] %v10573_v25 }
  0xd4   : > { %1305 = vrot.lane.b32.xlu2 %v729_v16, %s15888_s12  ;;  %v10578_v16 = vld [vmem:[#allocation2 + $0x50] sm:$0xff] }
  0xd5   : > { %1303 = vrot.lane.b32.xlu1 %v728_v32, %s15888_s12  ;;  %16017 = vst [vmem:[#allocation45_spill] sm:$0xff] %v10578_v16 }
  0xd6   : > { %v10566_v9 = vpop.permute.xlu2 %1175  ;;  %1307 = vrot.lane.b32.xlu0 %v730_v22, %s15888_s12 }
  0xd7   : > { %16013 = vst [vmem:[#allocation41_spill] sm:$0xff] %v10566_v9  ;;  %v10569_v37 = vpop.permute.xlu1 %1091 }
  0xd8   : > { %16014 = vst [vmem:[#allocation42_spill] sm:$0xff] %v10569_v37  ;;  %v10571_v49 = vpop.permute.xlu0 %1095 }
  0xd9   : > { %16015 = vst [vmem:[#allocation43_spill] sm:$0xff] %v10571_v49  ;;  %v10588_v49 = vld [vmem:[#allocation2 + $0x68] sm:$0xff] }
  0xda   : > { %16021 = vst [vmem:[#allocation49_spill] sm:$0xff] %v10588_v49 }
  0xdc   : > { %1311 = vrot.lane.b32.xlu2 %v10573_v25, %s15888_s12  ;;  %v692_v25 = vld [vmem:[%s10110_s28 + $0xf8] sm:$0xff] }
  0xdd   : > { %1309 = vrot.lane.b32.xlu1 %v731_v5, %s15888_s12  ;;  %v10593_v5 = vld [vmem:[#allocation2 + $0x78] sm:$0xff]  ;;  %725 = vst.msk [vmem:[#allocation2 + $0x189] sm:$0xff] %vm528_vm0, %v692_v25 }
  0xde   : > { %v10580_v32 = vpop.permute.xlu2 %1181  ;;  %1313 = vrot.lane.b32.xlu0 %v10578_v16, %s15888_s12  ;;  %16022 = vst [vmem:[#allocation50_spill] sm:$0xff] %v10593_v5  ;;  %v737_v16 = vld [vmem:[#allocation2 + $0x80] sm:$0xff] }
  0xdf   : > { %16018 = vst [vmem:[#allocation46_spill] sm:$0xff] %v10580_v32  ;;  %v10584_v22 = vpop.permute.xlu1 %1097 }
  0xe0   : > { %16019 = vst [vmem:[#allocation47_spill] sm:$0xff] %v10584_v22  ;;  %v10586_v37 = vpop.permute.xlu0 %1101 }
  0xe1   : > { %16020 = vst [vmem:[#allocation48_spill] sm:$0xff] %v10586_v37  ;;  %v10603_v37 = vld [vmem:[#allocation2 + $0x90] sm:$0xff] }
  0xe2   : > { %16026 = vst [vmem:[#allocation54_spill] sm:$0xff] %v10603_v37 }
  0xe4   : > { %1317 = vrot.lane.b32.xlu2 %v10588_v49, %s15888_s12 }
  0xe5   : > { %1315 = vrot.lane.b32.xlu1 %v734_v33, %s15888_s12  ;;  %v10608_v33 = vld [vmem:[#allocation2 + $0x98] sm:$0xff] }
  0xe6   : > { %v10595_v9 = vpop.permute.xlu2 %1187  ;;  %1319 = vrot.lane.b32.xlu0 %v10593_v5, %s15888_s12  ;;  %16027 = vst [vmem:[#allocation55_spill] sm:$0xff] %v10608_v33  ;;  %v740_v5 = vld [vmem:[#allocation2 + $0xa8] sm:$0xff] }
  0xe7   : > { %16023 = vst [vmem:[#allocation51_spill] sm:$0xff] %v10595_v9  ;;  %v10599_v32 = vpop.permute.xlu1 %1103  ;;  %v10618_v9 = vld [vmem:[#allocation2 + $0xb0] sm:$0xff] }
  0xe8   : > { %16024 = vst [vmem:[#allocation52_spill] sm:$0xff] %v10599_v32  ;;  %v10601_v22 = vpop.permute.xlu0 %1107 }
  0xe9   : > { %16025 = vst [vmem:[#allocation53_spill] sm:$0xff] %v10601_v22 }
  0xea   : > { %16031 = vst [vmem:[#allocation59_spill] sm:$0xff] %v10618_v9 }
  0xec   : > { %1323 = vrot.lane.b32.xlu2 %v10603_v37, %s15888_s12  ;;  %v743_v37 = vld [vmem:[#allocation2 + $0xc8] sm:$0xff] }
  0xed   : > { %1321 = vrot.lane.b32.xlu1 %v737_v16, %s15888_s12  ;;  %v10623_v16 = vld [vmem:[#allocation2 + $0xc0] sm:$0xff] }
  0xee   : > { %v10610_v49 = vpop.permute.xlu2 %1193  ;;  %1325 = vrot.lane.b32.xlu0 %v10608_v33, %s15888_s12  ;;  %16032 = vst [vmem:[#allocation60_spill] sm:$0xff] %v10623_v16 }
  0xef   : > { %16028 = vst [vmem:[#allocation56_spill] sm:$0xff] %v10610_v49  ;;  %v10614_v32 = vpop.permute.xlu1 %1109 }
  0xf0   : > { %16029 = vst [vmem:[#allocation57_spill] sm:$0xff] %v10614_v32  ;;  %v10616_v22 = vpop.permute.xlu0 %1177 }
  0xf1   : > { %16030 = vst [vmem:[#allocation58_spill] sm:$0xff] %v10616_v22  ;;  %v10633_v22 = vld [vmem:[#allocation2 + $0xd8] sm:$0xff] }
  0xf2   : > { %16036 = vst [vmem:[#allocation64_spill] sm:$0xff] %v10633_v22 }
  0xf4   : > { %1329 = vrot.lane.b32.xlu2 %v10618_v9, %s15888_s12  ;;  %v691_v9 = vld [vmem:[%s10110_s28 + $0xf0] sm:$0xff]  ;;  %s9963_s28 = smov 56  }
  0xf5   : > { %1327 = vrot.lane.b32.xlu1 %v740_v5, %s15888_s12  ;;  %724 = vst.msk [vmem:[#allocation2 + $0x181] sm:$0xff] %vm528_vm0, %v691_v9  ;;  %v10641_v5 = vld [vmem:[#allocation2 + $0xe0] sm:$0xff]  ;;  %v10657_v9 = vld [vmem:[#allocation2 + $0x108] sm:$0xff] }
  0xf6   : > { %v10625_v49 = vpop.permute.xlu2 %1199  ;;  %1331 = vrot.lane.b32.xlu0 %v10623_v16, %s15888_s12  ;;  %v746_v16 = vld [vmem:[#allocation2 + $0xf0] sm:$0xff]  ;;  %16041 = vst [vmem:[#allocation69_spill] sm:$0xff] %v10657_v9 }
  0xf7   : > { %16033 = vst [vmem:[#allocation61_spill] sm:$0xff] %v10625_v49  ;;  %v10629_v33 = vpop.permute.xlu1 %1179 }
  0xf8   : > { %16034 = vst [vmem:[#allocation62_spill] sm:$0xff] %v10629_v33  ;;  %v10631_v32 = vpop.permute.xlu0 %1183 }
  0xf9   : > { %16035 = vst [vmem:[#allocation63_spill] sm:$0xff] %v10631_v32 }
  0xfc   : > { %1335 = vrot.lane.b32.xlu2 %v10633_v22, %s15888_s12  ;;  %v10652_v22 = vld [vmem:[#allocation2 + $0xf8] sm:$0xff] }
  0xfd   : > { %1333 = vrot.lane.b32.xlu1 %v743_v37, %s15888_s12  ;;  %16040 = vst [vmem:[#allocation68_spill] sm:$0xff] %v10652_v22 }
  0xfe   : > { %v10643_v49 = vpop.permute.xlu2 %1205  ;;  %1337 = vrot.lane.b32.xlu0 %v10641_v5, %s15888_s12 }
  0xff   : > { %16037 = vst [vmem:[#allocation65_spill] sm:$0xff] %v10643_v49  ;;  %v10648_v32 = vpop.permute.xlu1 %1185 }
 0x100   : > { %16038 = vst [vmem:[#allocation66_spill] sm:$0xff] %v10648_v32  ;;  %v10650_v33 = vpop.permute.xlu0 %1189  ;;  %v749_v32 = vld [vmem:[#allocation2 + $0x110] sm:$0xff] }
 0x101   : > { %16039 = vst [vmem:[#allocation67_spill] sm:$0xff] %v10650_v33  ;;  %v10667_v33 = vld [vmem:[#allocation2 + $0x120] sm:$0xff] }
 0x102   : > { %16045 = vst [vmem:[#allocation73_spill] sm:$0xff] %v10667_v33 }
 0x104   : > { %1341 = vrot.lane.b32.xlu2 %v10652_v22, %s15888_s12 }
 0x105   : > { %1339 = vrot.lane.b32.xlu1 %v746_v16, %s15888_s12  ;;  %v10672_v16 = vld [vmem:[#allocation2 + $0x128] sm:$0xff] }
 0x106   : > { %v10659_v37 = vpop.permute.xlu2 %1211  ;;  %1343 = vrot.lane.b32.xlu0 %v10657_v9, %s15888_s12  ;;  %16046 = vst [vmem:[#allocation74_spill] sm:$0xff] %v10672_v16  ;;  %v752_v9 = vld [vmem:[#allocation2 + $0x138] sm:$0xff] }
 0x107   : > { %16042 = vst [vmem:[#allocation70_spill] sm:$0xff] %v10659_v37  ;;  %v10663_v25 = vpop.permute.xlu1 %1191 }
 0x108   : > { %16043 = vst [vmem:[#allocation71_spill] sm:$0xff] %v10663_v25  ;;  %v10665_v49 = vpop.permute.xlu0 %1195 }
 0x109   : > { %16044 = vst [vmem:[#allocation72_spill] sm:$0xff] %v10665_v49  ;;  %v10682_v49 = vld [vmem:[#allocation2 + $0x140] sm:$0xff] }
 0x10a   : > { %16050 = vst [vmem:[#allocation78_spill] sm:$0xff] %v10682_v49 }
 0x10c   : > { %1347 = vrot.lane.b32.xlu2 %v10667_v33, %s15888_s12 }
 0x10d   : > { %1345 = vrot.lane.b32.xlu1 %v749_v32, %s15888_s12  ;;  %v10687_v32 = vld [vmem:[#allocation2 + $0x150] sm:$0xff] }
 0x10e   : > { %v10674_v22 = vpop.permute.xlu2 %1217  ;;  %1349 = vrot.lane.b32.xlu0 %v10672_v16, %s15888_s12  ;;  %16051 = vst [vmem:[#allocation79_spill] sm:$0xff] %v10687_v32  ;;  %v755_v16 = vld [vmem:[#allocation2 + $0x158] sm:$0xff] }
 0x10f   : > { %16047 = vst [vmem:[#allocation75_spill] sm:$0xff] %v10674_v22  ;;  %v10678_v37 = vpop.permute.xlu1 %1197 }
 0x110   : > { %16048 = vst [vmem:[#allocation76_spill] sm:$0xff] %v10678_v37  ;;  %v10680_v25 = vpop.permute.xlu0 %1201 }
 0x111   : > { %16049 = vst [vmem:[#allocation77_spill] sm:$0xff] %v10680_v25  ;;  %v10697_v25 = vld [vmem:[#allocation2 + $0x168] sm:$0xff] }
 0x114   : > { %1353 = vrot.lane.b32.xlu2 %v10682_v49, %s15888_s12 }
 0x115   : > { %1351 = vrot.lane.b32.xlu1 %v752_v9, %s15888_s12  ;;  %v10702_v9 = vld [vmem:[#allocation2 + $0x170] sm:$0xff] }
 0x116   : > { %v10689_v33 = vpop.permute.xlu2 %1223  ;;  %1355 = vrot.lane.b32.xlu0 %v10687_v32, %s15888_s12  ;;  %v10714_v32 = vld [vmem:[#allocation2 + $0x180] sm:$0xff] }
 0x117   : > { %16052 = vst [vmem:[#allocation80_spill] sm:$0xff] %v10689_v33  ;;  %v10693_v22 = vpop.permute.xlu1 %1203 }
 0x118   : > { %16053 = vst [vmem:[#allocation81_spill] sm:$0xff] %v10693_v22  ;;  %v10695_v37 = vpop.permute.xlu0 %1207 }
 0x119   : > { %16054 = vst [vmem:[#allocation82_spill] sm:$0xff] %v10695_v37  ;;  %v10712_v37 = vld [vmem:[#allocation2 + $0x188] sm:$0xff] }
 0x11a   : > { %16058 = vst [vmem:[#allocation86_spill] sm:$0xff] %v10712_v37 }
 0x11c   : > { %1359 = vrot.lane.b32.xlu2 %v10697_v25, %s15888_s12 }
 0x11d   : > { %1357 = vrot.lane.b32.xlu1 %v755_v16, %s15888_s12 }
 0x11e   : > { %v10704_v49 = vpop.permute.xlu2 %1229  ;;  %1361 = vrot.lane.b32.xlu0 %v10702_v9, %s15888_s12 }
 0x11f   : > { %16055 = vst [vmem:[#allocation83_spill] sm:$0xff] %v10704_v49  ;;  %v10708_v33 = vpop.permute.xlu1 %1209 }
 0x120   : > { %16056 = vst [vmem:[#allocation84_spill] sm:$0xff] %v10708_v33  ;;  %v10710_v22 = vpop.permute.xlu0 %1213 }
 0x121   : > { %16057 = vst [vmem:[#allocation85_spill] sm:$0xff] %v10710_v22 }
 0x124   : > { %1365 = vrot.lane.b32.xlu2 %v10712_v37, %s15888_s12 }
 0x125   : > { %1363 = vrot.lane.b32.xlu1 %v10714_v32, %s15888_s12 }
 0x126   : > { %v10720_v16 = vpop.permute.xlu2 %1235  ;;  %1431 = vrot.lane.b32.xlu0 %v10138_v14, %s15894_s21 }
 0x127   : > { %16059 = vst [vmem:[#allocation87_spill] sm:$0xff] %v10720_v16  ;;  %v10724_v49 = vpop.permute.xlu1 %1215 }
 0x128   : > { %16060 = vst [vmem:[#allocation88_spill] sm:$0xff] %v10724_v49  ;;  %v10726_v33 = vpop.permute.xlu0 %1219  ;;  %v973_v49 = vld [vmem:[#allocation2 + $0x139] sm:$0xff] }
 0x129   : > { %16061 = vst [vmem:[#allocation89_spill] sm:$0xff] %v10726_v33  ;;  %v16133_v33 = vld [vmem:[#allocation74_spill] sm:$0xff] }
 0x12c   : > { %1435 = vrot.lane.b32.xlu2 %v10132_v12, %s15894_s21 }
 0x12d   : > { %1433 = vrot.lane.b32.xlu1 %v10157_v23, %s15894_s21 }
 0x12e   : > { %v10732_v22 = vpop.permute.xlu2 %1305  ;;  %1437 = vrot.lane.b32.xlu0 %v10153_v21, %s15894_s21 }
 0x12f   : > { %v10736_v16 = vpop.permute.xlu1 %1221 }
 0x130   : > { %16062 = vst [vmem:[#allocation90_spill] sm:$0xff] %v10736_v16  ;;  %v10738_v37 = vpop.permute.xlu0 %1225 }
 0x131   : > { %16063 = vst [vmem:[#allocation91_spill] sm:$0xff] %v10738_v37 }
 0x134   : > { %1441 = vrot.lane.b32.xlu2 %v10178_v29, %s15894_s21 }
 0x135   : > { %1439 = vrot.lane.b32.xlu1 %v10163_v24, %s15894_s21 }
 0x136   : > { %v10744_v14 = vpop.permute.xlu2 %1311  ;;  %1443 = vrot.lane.b32.xlu0 %v10176_v28, %s15894_s21 }
 0x137   : > { %v10748_v12 = vpop.permute.xlu1 %1227 }
 0x138   : > { %16064 = vst [vmem:[#allocation92_spill] sm:$0xff] %v10748_v12  ;;  %v10750_v23 = vpop.permute.xlu0 %1231 }
 0x139   : > { %16065 = vst [vmem:[#allocation93_spill] sm:$0xff] %v10750_v23 }
 0x13c   : > { %1447 = vrot.lane.b32.xlu2 %v10196_v35, %s15894_s21 }
 0x13d   : > { %1445 = vrot.lane.b32.xlu1 %v10182_v30, %s15894_s21 }
 0x13e   : > { %v10756_v21 = vpop.permute.xlu2 %1317  ;;  %1449 = vrot.lane.b32.xlu0 %v10194_v34, %s15894_s21 }
 0x13f   : > { %v10760_v24 = vpop.permute.xlu1 %1233 }
 0x140   : > { %16066 = vst [vmem:[#allocation94_spill] sm:$0xff] %v10760_v24  ;;  %v10762_v29 = vpop.permute.xlu0 %1237  ;;  %v10850_v24 = vld [vmem:[#allocation2 + $0x189] sm:$0xff] }
 0x141   : > { %16067 = vst [vmem:[#allocation95_spill] sm:$0xff] %v10762_v29 }
 0x144   : > { %1453 = vrot.lane.b32.xlu2 %v10214_v41, %s15894_s21 }
 0x145   : > { %1451 = vrot.lane.b32.xlu1 %v10200_v36, %s15894_s21 }
 0x146   : > { %v10768_v28 = vpop.permute.xlu2 %1323  ;;  %1455 = vrot.lane.b32.xlu0 %v10212_v40, %s15894_s21 }
 0x147   : > { %16068 = vst [vmem:[#allocation96_spill] sm:$0xff] %v10768_v28  ;;  %v10772_v30 = vpop.permute.xlu1 %1303 }
 0x148   : > { %v10774_v35 = vpop.permute.xlu0 %1307 }
 0x14c   : > { %1459 = vrot.lane.b32.xlu2 %v10232_v47, %s15894_s21 }
 0x14d   : > { %1457 = vrot.lane.b32.xlu1 %v10218_v42, %s15894_s21 }
 0x14e   : > { %v10780_v34 = vpop.permute.xlu2 %1329  ;;  %1461 = vrot.lane.b32.xlu0 %v10230_v46, %s15894_s21 }
 0x14f   : > { %16069 = vst [vmem:[#allocation97_spill] sm:$0xff] %v10780_v34  ;;  %v10784_v36 = vpop.permute.xlu1 %1309 }
 0x150   : > { %v10786_v41 = vpop.permute.xlu0 %1313 }
 0x154   : > { %1465 = vrot.lane.b32.xlu2 %v10252_v51, %s15894_s21 }
 0x155   : > { %1463 = vrot.lane.b32.xlu1 %v10236_v48, %s15894_s21 }
 0x156   : > { %v10792_v40 = vpop.permute.xlu2 %1335  ;;  %1467 = vrot.lane.b32.xlu0 %v10248_v50, %s15894_s21 }
 0x157   : > { %v10796_v42 = vpop.permute.xlu1 %1315 }
 0x158   : > { %v10798_v47 = vpop.permute.xlu0 %1319 }
 0x15c   : > { %1471 = vrot.lane.b32.xlu2 %v10280_v54, %s15894_s21 }
 0x15d   : > { %1469 = vrot.lane.b32.xlu1 %v10260_v52, %s15894_s21 }
 0x15e   : > { %v10804_v46 = vpop.permute.xlu2 %1341  ;;  %1473 = vrot.lane.b32.xlu0 %v10276_v53, %s15894_s21 }
 0x15f   : > { %16070 = vst [vmem:[#allocation98_spill] sm:$0xff] %v10804_v46  ;;  %v10808_v48 = vpop.permute.xlu1 %1321 }
 0x160   : > { %16071 = vst [vmem:[#allocation99_spill] sm:$0xff] %v10808_v48  ;;  %v10810_v51 = vpop.permute.xlu0 %1325  ;;  %v999_v48 = vld [vmem:[#allocation2 + $0xf2] sm:$0xff] }
 0x161   : > { %16072 = vst [vmem:[#allocation100_spill] sm:$0xff] %v10810_v51 }
 0x164   : > { %1477 = vrot.lane.b32.xlu2 %v10308_v57, %s15894_s21 }
 0x165   : > { %1475 = vrot.lane.b32.xlu1 %v10288_v55, %s15894_s21 }
 0x166   : > { %v10816_v50 = vpop.permute.xlu2 %1347  ;;  %1479 = vrot.lane.b32.xlu0 %v10304_v56, %s15894_s21  ;;  %v10838_v56 = vld [vmem:[#allocation2 + $0x181] sm:$0xff] }
 0x167   : > { %16073 = vst [vmem:[#allocation101_spill] sm:$0xff] %v10816_v50  ;;  %v10820_v52 = vpop.permute.xlu1 %1327 }
 0x168   : > { %16074 = vst [vmem:[#allocation102_spill] sm:$0xff] %v10820_v52  ;;  %v10822_v54 = vpop.permute.xlu0 %1331  ;;  %v16128_v52 = vld [vmem:[#allocation69_spill] sm:$0xff] }
 0x169   : > { %16075 = vst [vmem:[#allocation103_spill] sm:$0xff] %v10822_v54  ;;  %v16111_v54 = vld [vmem:[#allocation45_spill] sm:$0xff] }
 0x16c   : > { %1483 = vrot.lane.b32.xlu2 %v10336_v60, %s15894_s21 }
 0x16d   : > { %1481 = vrot.lane.b32.xlu1 %v10316_v58, %s15894_s21 }
 0x16e   : > { %v10828_v53 = vpop.permute.xlu2 %1353  ;;  %1485 = vrot.lane.b32.xlu0 %v10332_v59, %s15894_s21 }
 0x16f   : > { %16076 = vst [vmem:[#allocation104_spill] sm:$0xff] %v10828_v53  ;;  %v10832_v55 = vpop.permute.xlu1 %1333  ;;  %v919_v53 = vld [vmem:[#allocation2 + $0x30] sm:$0xff] }
 0x170   : > { %16077 = vst [vmem:[#allocation105_spill] sm:$0xff] %v10832_v55  ;;  %v10834_v57 = vpop.permute.xlu0 %1337  ;;  %v920_v55 = vld [vmem:[#allocation2 + $0x38] sm:$0xff] }
 0x174   : > { %1489 = vrot.lane.b32.xlu2 %v10362_v63, %s15894_s21 }
 0x175   : > { %1487 = vrot.lane.b32.xlu1 %v10344_v61, %s15894_s21 }
 0x176   : > { %v10842_v60 = vpop.permute.xlu2 %1359  ;;  %1491 = vrot.lane.b32.xlu0 %v10838_v56, %s15894_s21 }
 0x177   : > { %16078 = vst [vmem:[#allocation106_spill] sm:$0xff] %v10842_v60  ;;  %v10846_v58 = vpop.permute.xlu1 %1339 }
 0x178   : > { %v10848_v59 = vpop.permute.xlu0 %1343 }
 0x179   : > { %16079 = vst [vmem:[#allocation107_spill] sm:$0xff] %v10848_v59  ;;  %v972_v59 = vld [vmem:[#allocation2 + $0x129] sm:$0xff] }
 0x17c   : > { %1559 = vrot.lane.b32.xlu2 %v10372_v3, %s15886_s22 }
 0x17d   : > { %1493 = vrot.lane.b32.xlu1 %v10850_v24, %s15894_s21 }
 0x17e   : > { %v10856_v63 = vpop.permute.xlu2 %1365  ;;  %1561 = vrot.lane.b32.xlu0 %v10370_v2, %s15886_s22 }
 0x17f   : > { %16080 = vst [vmem:[#allocation108_spill] sm:$0xff] %v10856_v63  ;;  %v10860_v61 = vpop.permute.xlu1 %1345  ;;  %v955_v63 = vld [vmem:[#allocation2 + $0x61] sm:$0xff] }
 0x180   : > { %16081 = vst [vmem:[#allocation109_spill] sm:$0xff] %v10860_v61  ;;  %v10862_v60 = vpop.permute.xlu0 %1349 }
 0x181   : > { %16082 = vst [vmem:[#allocation110_spill] sm:$0xff] %v10862_v60 }
 0x184   : > { %1565 = vrot.lane.b32.xlu2 %v10386_v7, %s15886_s22 }
 0x185   : > { %1563 = vrot.lane.b32.xlu1 %v10376_v4, %s15886_s22 }
 0x186   : > { %v10868_v23 = vpop.permute.xlu2 %1435  ;;  %1567 = vrot.lane.b32.xlu0 %v10384_v6, %s15886_s22 }
 0x187   : > { %v10872_v3 = vpop.permute.xlu1 %1351 }
 0x188   : > { %16083 = vst [vmem:[#allocation111_spill] sm:$0xff] %v10872_v3  ;;  %v10874_v12 = vpop.permute.xlu0 %1355  ;;  %v923_v3 = vld [vmem:[#allocation2 + $0x60] sm:$0xff] }
 0x189   : > { %16084 = vst [vmem:[#allocation112_spill] sm:$0xff] %v10874_v12 }
 0x18c   : > { %1571 = vrot.lane.b32.xlu2 %v10400_v11, %s15886_s22 }
 0x18d   : > { %1569 = vrot.lane.b32.xlu1 %v10390_v8, %s15886_s22 }
 0x18e   : > { %v10880_v2 = vpop.permute.xlu2 %1441  ;;  %1573 = vrot.lane.b32.xlu0 %v10398_v10, %s15886_s22 }
 0x18f   : > { %v10884_v4 = vpop.permute.xlu1 %1357 }
 0x190   : > { %16085 = vst [vmem:[#allocation113_spill] sm:$0xff] %v10884_v4  ;;  %v10886_v7 = vpop.permute.xlu0 %1361 }
 0x191   : > { %16086 = vst [vmem:[#allocation114_spill] sm:$0xff] %v10886_v7  ;;  %v16100_v7 = vld [vmem:[#allocation31_spill] sm:$0xff] }
 0x194   : > { %1577 = vrot.lane.b32.xlu2 %v10416_v18, %s15886_s22 }
 0x195   : > { %1575 = vrot.lane.b32.xlu1 %v10404_v13, %s15886_s22 }
 0x196   : > { %v10892_v6 = vpop.permute.xlu2 %1447  ;;  %1579 = vrot.lane.b32.xlu0 %v10414_v17, %s15886_s22 }
 0x197   : > { %16087 = vst [vmem:[#allocation115_spill] sm:$0xff] %v10892_v6  ;;  %v10896_v8 = vpop.permute.xlu1 %1363  ;;  %v1006_v6 = vld [vmem:[#allocation2 + $0x142] sm:$0xff] }
 0x198   : > { %16088 = vst [vmem:[#allocation116_spill] sm:$0xff] %v10896_v8  ;;  %v10898_v11 = vpop.permute.xlu0 %1431 }
 0x19c   : > { %1583 = vrot.lane.b32.xlu2 %v10434_v27, %s15886_s22 }
 0x19d   : > { %1581 = vrot.lane.b32.xlu1 %v10420_v19, %s15886_s22 }
 0x19e   : > { %v10904_v10 = vpop.permute.xlu2 %1453  ;;  %1585 = vrot.lane.b32.xlu0 %v10432_v26, %s15886_s22 }
 0x19f   : > { %16089 = vst [vmem:[#allocation117_spill] sm:$0xff] %v10904_v10  ;;  %v10908_v13 = vpop.permute.xlu1 %1433  ;;  %v16138_v10 = vld [vmem:[#allocation79_spill] sm:$0xff] }
 0x1a0   : > { %v10910_v18 = vpop.permute.xlu0 %1437 }
 0x1a4   : > { %1589 = vrot.lane.b32.xlu2 %v10452_v39, %s15886_s22 }
 0x1a5   : > { %1587 = vrot.lane.b32.xlu1 %v10438_v31, %s15886_s22 }
 0x1a6   : > { %v10916_v17 = vpop.permute.xlu2 %1459  ;;  %1591 = vrot.lane.b32.xlu0 %v10450_v38, %s15886_s22 }
 0x1a7   : > { %16090 = vst [vmem:[#allocation118_spill] sm:$0xff] %v10916_v17  ;;  %v10920_v19 = vpop.permute.xlu1 %1439 }
 0x1a8   : > { %v10922_v27 = vpop.permute.xlu0 %1443 }
 0x1ac   : > { %1595 = vrot.lane.b32.xlu2 %v10470_v1, %s15886_s22 }
 0x1ad   : > { %1593 = vrot.lane.b32.xlu1 %v10456_v43, %s15886_s22 }
 0x1ae   : > { %v10928_v26 = vpop.permute.xlu2 %1465  ;;  %1597 = vrot.lane.b32.xlu0 %v10468_v62, %s15886_s22 }
 0x1af   : > { %v10932_v31 = vpop.permute.xlu1 %1445 }
 0x1b0   : > { %v10934_v39 = vpop.permute.xlu0 %1449 }
 0x1b1   : > { %16091 = vst [vmem:[#allocation119_spill] sm:$0xff] %v10934_v39  ;;  %v997_v39 = vld [vmem:[#allocation2 + $0xda] sm:$0xff] }
 0x1b4   : > { %1601 = vrot.lane.b32.xlu2 %v10492_v44, %s15886_s22  ;;  %v16096_v44 = vld [vmem:[#allocation30_spill] sm:$0xff] }
 0x1b5   : > { %1599 = vrot.lane.b32.xlu1 %v10474_v0, %s15886_s22 }
 0x1b6   : > { %v10940_v38 = vpop.permute.xlu2 %1471  ;;  %1603 = vrot.lane.b32.xlu0 %v10488_v45, %s15886_s22  ;;  %v16099_v45 = vld [vmem:[#allocation36_spill] sm:$0xff] }
 0x1b7   : > { %16092 = vst [vmem:[#allocation120_spill] sm:$0xff] %v10940_v38  ;;  %v10944_v43 = vpop.permute.xlu1 %1451 }
 0x1b8   : > { %16093 = vst [vmem:[#allocation121_spill] sm:$0xff] %v10944_v43  ;;  %v10946_v1 = vpop.permute.xlu0 %1455  ;;  %v969_v43 = vld [vmem:[#allocation2 + $0x109] sm:$0xff] }
 0x1b9   : > { %16094 = vst [vmem:[#allocation122_spill] sm:$0xff] %v10946_v1 }
 0x1bc   : > { %1607 = vrot.lane.b32.xlu2 %v10526_v15, %s15886_s22  ;;  %v16102_v15 = vld [vmem:[#allocation35_spill] sm:$0xff] }
 0x1bd   : > { %1605 = vrot.lane.b32.xlu1 %v10500_v20, %s15886_s22 }
 0x1be   : > { %v10952_v62 = vpop.permute.xlu2 %1477  ;;  %1609 = vrot.lane.b32.xlu0 %v16096_v44, %s15886_s22  ;;  %v10972_v44 = vld [vmem:[#allocation2 + $0x182] sm:$0xff] }
 0x1bf   : > { %16095 = vst [vmem:[#allocation123_spill] sm:$0xff] %v10952_v62  ;;  %v10956_v0 = vpop.permute.xlu1 %1457 }
 0x1c0   : > { %16097 = vst [vmem:[#allocation30_spill] sm:$0xff] %v10956_v0  ;;  %v10958_v8 = vpop.permute.xlu0 %1461 }
 0x1c1   : > { %16098 = vst [vmem:[#allocation124_spill] sm:$0xff] %v10958_v8  ;;  %v10976_v8 = vld [vmem:[#allocation2 + $0x18a] sm:$0xff] }
 0x1c4   : > { %1613 = vrot.lane.b32.xlu2 %v16099_v45, %s15886_s22  ;;  %v16104_v45 = vld [vmem:[#allocation37_spill] sm:$0xff] }
 0x1c5   : > { %1611 = vrot.lane.b32.xlu1 %v16100_v7, %s15886_s22 }
 0x1c6   : > { %v10964_v4 = vpop.permute.xlu2 %1483  ;;  %1615 = vrot.lane.b32.xlu0 %v16102_v15, %s15886_s22 }
 0x1c7   : > { %16101 = vst [vmem:[#allocation36_spill] sm:$0xff] %v10964_v4  ;;  %v10968_v20 = vpop.permute.xlu1 %1463 }
 0x1c8   : > { %v10970_v12 = vpop.permute.xlu0 %1467 }
 0x1c9   : > { %16103 = vst [vmem:[#allocation31_spill] sm:$0xff] %v10970_v12 }
 0x1cc   : > { %1619 = vrot.lane.b32.xlu2 %v10972_v44, %s15886_s22 }
 0x1cd   : > { %1617 = vrot.lane.b32.xlu1 %v16104_v45, %s15886_s22  ;;  %v16108_v45 = vld [vmem:[#allocation44_spill] sm:$0xff] }
 0x1ce   : > { %v10980_v7 = vpop.permute.xlu2 %1489  ;;  %1621 = vrot.lane.b32.xlu0 %v10976_v8, %s15886_s22  ;;  %s11140_s22 = scalar_select %p491_p13, %s9942_s17, 1 }
 0x1cf   : > { %16105 = vst [vmem:[#allocation35_spill] sm:$0xff] %v10980_v7  ;;  %v10984_v15 = vpop.permute.xlu1 %1469 }
 0x1d0   : > { %16106 = vst [vmem:[#allocation37_spill] sm:$0xff] %v10984_v15  ;;  %v10986_v4 = vpop.permute.xlu0 %1473  ;;  %s11155_s0 = scalar_lea.vmem %s15855_s4, %s11140_s22  ;;  %v991_v15 = vld [vmem:[#allocation2 + $0x92] sm:$0xff]  ;;  %s15905_s24 = smul.u32 72, %s11140_s22 }
 0x1d1   : > { %16107 = vst [vmem:[#allocation125_spill] sm:$0xff] %v10986_v4 }
 0x1d2   : > { %s11269_s12 = scalar_lea.vmem %s16177_s1, %s15905_s24  ;;  %s15926_s24 = smov 96  }
 0x1d3   : > { %v2308_v46 = vld [vmem:[%s11269_s12 + $0x38] sm:$0xff]  ;;  %v2302_v12 = vld [vmem:[%s11269_s12 + $0x8] sm:$0xff] }
 0x1d4   : > { %1689 = vrot.lane.b32.xlu2 %v920_v55, %s15892_s25  ;;  %v16112_v55 = vld [vmem:[#allocation49_spill] sm:$0xff] }
 0x1d5   : > { %1687 = vrot.lane.b32.xlu1 %v919_v53, %s15892_s25 }
 0x1d6   : > { %v10990_v37 = vpop.permute.xlu2 %1559  ;;  %1691 = vrot.lane.b32.xlu0 %v16108_v45, %s15892_s25  ;;  %v926_v45 = vld [vmem:[#allocation2 + $0x80] sm:$0xff] }
 0x1d7   : > { %v10994_v7 = vpop.permute.xlu1 %1475 }
 0x1d8   : > { %16109 = vst [vmem:[#allocation44_spill] sm:$0xff] %v10994_v7  ;;  %v10996_v17 = vpop.permute.xlu0 %1479 }
 0x1d9   : > { %16110 = vst [vmem:[#allocation126_spill] sm:$0xff] %v10996_v17  ;;  %v16115_v17 = vld [vmem:[#allocation50_spill] sm:$0xff] }
 0x1dc   : > { %1695 = vrot.lane.b32.xlu2 %v923_v3, %s15892_s25  ;;  %v16116_v3 = vld [vmem:[#allocation54_spill] sm:$0xff] }
 0x1dd   : > { %1693 = vrot.lane.b32.xlu1 %v16111_v54, %s15892_s25 }
 0x1de   : > { %v11001_v0 = vpop.permute.xlu2 %1565  ;;  %1697 = vrot.lane.b32.xlu0 %v16112_v55, %s15892_s25  ;;  %v929_v55 = vld [vmem:[#allocation2 + $0xa8] sm:$0xff] }
 0x1df   : > { %v11005_v53 = vpop.permute.xlu1 %1481 }
 0x1e0   : > { %16113 = vst [vmem:[#allocation45_spill] sm:$0xff] %v11005_v53  ;;  %v11007_v62 = vpop.permute.xlu0 %1485 }
 0x1e1   : > { %16114 = vst [vmem:[#allocation49_spill] sm:$0xff] %v11007_v62  ;;  %v16119_v62 = vld [vmem:[#allocation55_spill] sm:$0xff] }
 0x1e4   : > { %1701 = vrot.lane.b32.xlu2 %v926_v45, %s15892_s25  ;;  %v16121_v45 = vld [vmem:[#allocation59_spill] sm:$0xff] }
 0x1e5   : > { %1699 = vrot.lane.b32.xlu1 %v16115_v17, %s15892_s25 }
 0x1e6   : > { %v11012_v60 = vpop.permute.xlu2 %1571  ;;  %1703 = vrot.lane.b32.xlu0 %v16116_v3, %s15892_s25  ;;  %v932_v3 = vld [vmem:[#allocation2 + $0xc8] sm:$0xff] }
 0x1e7   : > { %v11016_v54 = vpop.permute.xlu1 %1487 }
 0x1e8   : > { %16117 = vst [vmem:[#allocation50_spill] sm:$0xff] %v11016_v54  ;;  %v11018_v34 = vpop.permute.xlu0 %1491 }
 0x1e9   : > { %16118 = vst [vmem:[#allocation54_spill] sm:$0xff] %v11018_v34  ;;  %v16123_v34 = vld [vmem:[#allocation60_spill] sm:$0xff] }
 0x1ec   : > { %1707 = vrot.lane.b32.xlu2 %v929_v55, %s15892_s25  ;;  %v16125_v55 = vld [vmem:[#allocation64_spill] sm:$0xff] }
 0x1ed   : > { %1705 = vrot.lane.b32.xlu1 %v16119_v62, %s15892_s25 }
 0x1ee   : > { %v11023_v53 = vpop.permute.xlu2 %1577  ;;  %1709 = vrot.lane.b32.xlu0 %v16121_v45, %s15892_s25  ;;  %v935_v45 = vld [vmem:[#allocation2 + $0xf0] sm:$0xff] }
 0x1ef   : > { %16120 = vst [vmem:[#allocation55_spill] sm:$0xff] %v11023_v53  ;;  %v11027_v17 = vpop.permute.xlu1 %1493 }
 0x1f0   : > { %16122 = vst [vmem:[#allocation59_spill] sm:$0xff] %v11027_v17  ;;  %v11029_v16 = vpop.permute.xlu0 %1561 }
 0x1f4   : > { %1713 = vrot.lane.b32.xlu2 %v932_v3, %s15892_s25  ;;  %v16127_v3 = vld [vmem:[#allocation68_spill] sm:$0xff] }
 0x1f5   : > { %1711 = vrot.lane.b32.xlu1 %v16123_v34, %s15892_s25 }
 0x1f6   : > { %v11034_v54 = vpop.permute.xlu2 %1583  ;;  %1715 = vrot.lane.b32.xlu0 %v16125_v55, %s15892_s25  ;;  %v938_v55 = vld [vmem:[#allocation2 + $0x110] sm:$0xff] }
 0x1f7   : > { %16124 = vst [vmem:[#allocation60_spill] sm:$0xff] %v11034_v54  ;;  %v11038_v62 = vpop.permute.xlu1 %1563 }
 0x1f8   : > { %v11040_v7 = vpop.permute.xlu0 %1567 }
 0x1fc   : > { %1719 = vrot.lane.b32.xlu2 %v935_v45, %s15892_s25  ;;  %v16130_v45 = vld [vmem:[#allocation73_spill] sm:$0xff] }
 0x1fd   : > { %1717 = vrot.lane.b32.xlu1 %v10641_v5, %s15892_s25 }
 0x1fe   : > { %v11045_v1 = vpop.permute.xlu2 %1589  ;;  %1721 = vrot.lane.b32.xlu0 %v16127_v3, %s15892_s25  ;;  %v941_v3 = vld [vmem:[#allocation2 + $0x138] sm:$0xff] }
 0x1ff   : > { %16126 = vst [vmem:[#allocation64_spill] sm:$0xff] %v11045_v1  ;;  %v11049_v34 = vpop.permute.xlu1 %1569 }
 0x200   : > { %v11051_v54 = vpop.permute.xlu0 %1573 }
 0x204   : > { %1725 = vrot.lane.b32.xlu2 %v938_v55, %s15892_s25  ;;  %v16135_v55 = vld [vmem:[#allocation78_spill] sm:$0xff] }
 0x205   : > { %1723 = vrot.lane.b32.xlu1 %v16128_v52, %s15892_s25 }
 0x206   : > { %v11056_v50 = vpop.permute.xlu2 %1595  ;;  %1727 = vrot.lane.b32.xlu0 %v16130_v45, %s15892_s25  ;;  %v944_v45 = vld [vmem:[#allocation2 + $0x158] sm:$0xff] }
 0x207   : > { %16129 = vst [vmem:[#allocation68_spill] sm:$0xff] %v11056_v50  ;;  %v11060_v5 = vpop.permute.xlu1 %1575  ;;  %v2303_v50 = vld [vmem:[%s11269_s12 + $0x10] sm:$0xff] }
 0x208   : > { %16131 = vst [vmem:[#allocation69_spill] sm:$0xff] %v11060_v5  ;;  %v11062_v1 = vpop.permute.xlu0 %1579  ;;  %v1003_v5 = vld [vmem:[#allocation2 + $0x122] sm:$0xff] }
 0x209   : > { %16132 = vst [vmem:[#allocation73_spill] sm:$0xff] %v11062_v1  ;;  %v967_v1 = vld [vmem:[#allocation2 + $0xf1] sm:$0xff] }
 0x20c   : > { %1731 = vrot.lane.b32.xlu2 %v941_v3, %s15892_s25 }
 0x20d   : > { %1729 = vrot.lane.b32.xlu1 %v16133_v33, %s15892_s25 }
 0x20e   : > { %v11067_v17 = vpop.permute.xlu2 %1601  ;;  %1733 = vrot.lane.b32.xlu0 %v16135_v55, %s15892_s25 }
 0x20f   : > { %16134 = vst [vmem:[#allocation74_spill] sm:$0xff] %v11067_v17  ;;  %v11071_v52 = vpop.permute.xlu1 %1581  ;;  %v954_v17 = vld [vmem:[#allocation2 + $0x51] sm:$0xff] }
 0x210   : > { %16136 = vst [vmem:[#allocation78_spill] sm:$0xff] %v11071_v52  ;;  %v11073_v4 = vpop.permute.xlu0 %1585  ;;  %v952_v52 = vld [vmem:[#allocation2 + $0x39] sm:$0xff] }
 0x211   : > { %16137 = vst [vmem:[#allocation127_spill] sm:$0xff] %v11073_v4  ;;  %v949_v4 = vld [vmem:[#allocation2 + $0x198] sm:$0xff] }
 0x214   : > { %1737 = vrot.lane.b32.xlu2 %v944_v45, %s15892_s25  ;;  %v16142_v45 = vld [vmem:[#allocation86_spill] sm:$0xff] }
 0x215   : > { %1735 = vrot.lane.b32.xlu1 %v16138_v10, %s15892_s25 }
 0x216   : > { %v11078_v61 = vpop.permute.xlu2 %1607  ;;  %1739 = vrot.lane.b32.xlu0 %v10697_v25, %s15892_s25  ;;  %v950_v25 = vld [vmem:[#allocation2 + $0x1a0] sm:$0xff] }
 0x217   : > { %16139 = vst [vmem:[#allocation79_spill] sm:$0xff] %v11078_v61  ;;  %v11082_v33 = vpop.permute.xlu1 %1587 }
 0x218   : > { %16140 = vst [vmem:[#allocation128_spill] sm:$0xff] %v11082_v33  ;;  %v11084_v3 = vpop.permute.xlu0 %1591  ;;  %v951_v33 = vld [vmem:[#allocation2 + $0x31] sm:$0xff] }
 0x21c   : > { %1743 = vrot.lane.b32.xlu2 %v10714_v32, %s15892_s25 }
 0x21d   : > { %1741 = vrot.lane.b32.xlu1 %v10702_v9, %s15892_s25 }
 0x21e   : > { %v11090_v55 = vpop.permute.xlu2 %1613  ;;  %1745 = vrot.lane.b32.xlu0 %v16142_v45, %s15892_s25  ;;  %v953_v45 = vld [vmem:[#allocation2 + $0x49] sm:$0xff] }
 0x21f   : > { %16141 = vst [vmem:[#allocation129_spill] sm:$0xff] %v11090_v55  ;;  %v11094_v10 = vpop.permute.xlu1 %1593 }
 0x220   : > { %v11096_v61 = vpop.permute.xlu0 %1597 }
 0x221   : > { %16143 = vst [vmem:[#allocation86_spill] sm:$0xff] %v11096_v61  ;;  %v975_v61 = vld [vmem:[#allocation2 + $0x151] sm:$0xff] }
 0x224   : > { %1749 = vrot.lane.b32.xlu2 %v950_v25, %s15892_s25 }
 0x225   : > { %1747 = vrot.lane.b32.xlu1 %v949_v4, %s15892_s25  ;;  %s498_s25 = scalar_lea.vmem %s15853_s2, %s11140_s22 }
 0x226   : > { %v11100_v32 = vpop.permute.xlu2 %1619  ;;  %1815 = vrot.lane.b32.xlu0 %v951_v33, %s9963_s28  ;;  %v956_v33 = vld [vmem:[#allocation2 + $0x69] sm:$0xff] }
 0x227   : > { %16144 = vst [vmem:[#allocation130_spill] sm:$0xff] %v11100_v32  ;;  %v11103_v9 = vpop.permute.xlu1 %1599 }
 0x228   : > { %16145 = vst [vmem:[#allocation131_spill] sm:$0xff] %v11103_v9  ;;  %v11105_v55 = vpop.permute.xlu0 %1603  ;;  %v968_v9 = vld [vmem:[#allocation2 + $0xf9] sm:$0xff] }
 0x229   : > { %16146 = vst [vmem:[#allocation132_spill] sm:$0xff] %v11105_v55  ;;  %v957_v55 = vld [vmem:[#allocation2 + $0x79] sm:$0xff] }
 0x22c   : > { %1819 = vrot.lane.b32.xlu2 %v953_v45, %s9963_s28 }
 0x22d   : > { %1817 = vrot.lane.b32.xlu1 %v952_v52, %s9963_s28 }
 0x22e   : > { %v11109_v25 = vpop.permute.xlu2 %1689  ;;  %1821 = vrot.lane.b32.xlu0 %v954_v17, %s9963_s28  ;;  %v959_v17 = vld [vmem:[#allocation2 + $0x91] sm:$0xff] }
 0x22f   : > { %v11112_v4 = vpop.permute.xlu1 %1605 }
 0x230   : > { %16147 = vst [vmem:[#allocation133_spill] sm:$0xff] %v11112_v4  ;;  %v11114_v32 = vpop.permute.xlu0 %1609  ;;  %v958_v4 = vld [vmem:[#allocation2 + $0x81] sm:$0xff] }
 0x231   : > { %16148 = vst [vmem:[#allocation134_spill] sm:$0xff] %v11114_v32  ;;  %v960_v32 = vld [vmem:[#allocation2 + $0x99] sm:$0xff] }
 0x234   : > { %1825 = vrot.lane.b32.xlu2 %v956_v33, %s9963_s28 }
 0x235   : > { %1823 = vrot.lane.b32.xlu1 %v955_v63, %s9963_s28 }
 0x236   : > { %v11118_v45 = vpop.permute.xlu2 %1695  ;;  %1827 = vrot.lane.b32.xlu0 %v957_v55, %s9963_s28  ;;  %v962_v55 = vld [vmem:[#allocation2 + $0xb1] sm:$0xff] }
 0x237   : > { %v11121_v52 = vpop.permute.xlu1 %1611 }
 0x238   : > { %16149 = vst [vmem:[#allocation135_spill] sm:$0xff] %v11121_v52  ;;  %v11123_v51 = vpop.permute.xlu0 %1615  ;;  %v961_v52 = vld [vmem:[#allocation2 + $0xa9] sm:$0xff] }
 0x239   : > { %16150 = vst [vmem:[#allocation136_spill] sm:$0xff] %v11123_v51  ;;  %v963_v51 = vld [vmem:[#allocation2 + $0xc1] sm:$0xff] }
 0x23c   : > { %1831 = vrot.lane.b32.xlu2 %v959_v17, %s9963_s28 }
 0x23d   : > { %1829 = vrot.lane.b32.xlu1 %v958_v4, %s9963_s28 }
 0x23e   : > { %v11127_v33 = vpop.permute.xlu2 %1701  ;;  %1833 = vrot.lane.b32.xlu0 %v960_v32, %s9963_s28 }
 0x23f   : > { %v11130_v63 = vpop.permute.xlu1 %1617 }
 0x240   : > { %16151 = vst [vmem:[#allocation137_spill] sm:$0xff] %v11130_v63  ;;  %v11132_v29 = vpop.permute.xlu0 %1621 }
 0x241   : > { %16152 = vst [vmem:[#allocation138_spill] sm:$0xff] %v11132_v29 }
 0x244   : > { %1837 = vrot.lane.b32.xlu2 %v962_v55, %s9963_s28  ;;  %v965_v55 = vld [vmem:[#allocation2 + $0xd9] sm:$0xff] }
 0x245   : > { %1835 = vrot.lane.b32.xlu1 %v961_v52, %s9963_s28  ;;  %v964_v52 = vld [vmem:[#allocation2 + $0xc9] sm:$0xff] }
 0x246   : > { %v11137_v17 = vpop.permute.xlu2 %1707  ;;  %1839 = vrot.lane.b32.xlu0 %v963_v51, %s9963_s28  ;;  %v966_v51 = vld [vmem:[#allocation2 + $0xe1] sm:$0xff] }
 0x247   : > { %16153 = vst [vmem:[#allocation139_spill] sm:$0xff] %v11137_v17  ;;  %v11143_v32 = vpop.permute.xlu1 %1687 }
 0x248   : > { %v11149_v4 = vpop.permute.xlu0 %1691 }
 0x24c   : > { %1843 = vrot.lane.b32.xlu2 %v965_v55, %s9963_s28 }
 0x24d   : > { %1841 = vrot.lane.b32.xlu1 %v964_v52, %s9963_s28 }
 0x24e   : > { %v11163_v63 = vpop.permute.xlu2 %1713  ;;  %1845 = vrot.lane.b32.xlu0 %v966_v51, %s9963_s28  ;;  %v971_v51 = vld [vmem:[#allocation2 + $0x121] sm:$0xff] }
 0x24f   : > { %16154 = vst [vmem:[#allocation140_spill] sm:$0xff] %v11163_v63  ;;  %v11166_v29 = vpop.permute.xlu1 %1693  ;;  %v970_v63 = vld [vmem:[#allocation2 + $0x111] sm:$0xff] }
 0x250   : > { %v11168_v17 = vpop.permute.xlu0 %1697 }
 0x254   : > { %1849 = vrot.lane.b32.xlu2 %v968_v9, %s9963_s28 }
 0x255   : > { %1847 = vrot.lane.b32.xlu1 %v967_v1, %s9963_s28 }
 0x256   : > { %v11172_v38 = vpop.permute.xlu2 %1719  ;;  %1851 = vrot.lane.b32.xlu0 %v969_v43, %s9963_s28  ;;  %v974_v43 = vld [vmem:[#allocation2 + $0x141] sm:$0xff] }
 0x257   : > { %v11175_v55 = vpop.permute.xlu1 %1699 }
 0x258   : > { %v11177_v52 = vpop.permute.xlu0 %1703 }
 0x259   : > { %16155 = vst [vmem:[#allocation141_spill] sm:$0xff] %v11177_v52  ;;  %v1004_v52 = vld [vmem:[#allocation2 + $0x12a] sm:$0xff] }
 0x25c   : > { %1855 = vrot.lane.b32.xlu2 %v971_v51, %s9963_s28 }
 0x25d   : > { %1853 = vrot.lane.b32.xlu1 %v970_v63, %s9963_s28 }
 0x25e   : > { %v11181_v28 = vpop.permute.xlu2 %1725  ;;  %1857 = vrot.lane.b32.xlu0 %v972_v59, %s9963_s28  ;;  %v977_v59 = vld [vmem:[#allocation2 + $0x169] sm:$0xff] }
 0x25f   : > { %16156 = vst [vmem:[#allocation142_spill] sm:$0xff] %v11181_v28  ;;  %v11184_v1 = vpop.permute.xlu1 %1705  ;;  %v976_v28 = vld [vmem:[#allocation2 + $0x159] sm:$0xff] }
 0x260   : > { %16157 = vst [vmem:[#allocation143_spill] sm:$0xff] %v11184_v1  ;;  %v11186_v9 = vpop.permute.xlu0 %1709 }
 0x261   : > { %16158 = vst [vmem:[#allocation144_spill] sm:$0xff] %v11186_v9  ;;  %v978_v9 = vld [vmem:[#allocation2 + $0x171] sm:$0xff] }
 0x264   : > { %1861 = vrot.lane.b32.xlu2 %v974_v43, %s9963_s28 }
 0x265   : > { %1859 = vrot.lane.b32.xlu1 %v973_v49, %s9963_s28 }
 0x266   : > { %v11190_v53 = vpop.permute.xlu2 %1731  ;;  %1863 = vrot.lane.b32.xlu0 %v975_v61, %s9963_s28  ;;  %v981_v61 = vld [vmem:[#allocation2 + $0x199] sm:$0xff] }
 0x267   : > { %16159 = vst [vmem:[#allocation145_spill] sm:$0xff] %v11190_v53  ;;  %v11193_v63 = vpop.permute.xlu1 %1711  ;;  %v987_v53 = vld [vmem:[#allocation2 + $0x62] sm:$0xff] }
 0x268   : > { %16160 = vst [vmem:[#allocation146_spill] sm:$0xff] %v11193_v63  ;;  %v11195_v51 = vpop.permute.xlu0 %1715  ;;  %v985_v63 = vld [vmem:[#allocation2 + $0x4a] sm:$0xff] }
 0x269   : > { %16161 = vst [vmem:[#allocation147_spill] sm:$0xff] %v11195_v51 }
 0x26c   : > { %1867 = vrot.lane.b32.xlu2 %v977_v59, %s9963_s28 }
 0x26d   : > { %1865 = vrot.lane.b32.xlu1 %v976_v28, %s9963_s28 }
 0x26e   : > { %v11199_v1 = vpop.permute.xlu2 %1737  ;;  %1869 = vrot.lane.b32.xlu0 %v978_v9, %s9963_s28  ;;  %v983_v9 = vld [vmem:[#allocation2 + $0x32] sm:$0xff] }
 0x26f   : > { %16162 = vst [vmem:[#allocation148_spill] sm:$0xff] %v11199_v1  ;;  %v11202_v49 = vpop.permute.xlu1 %1717  ;;  %v982_v1 = vld [vmem:[#allocation2 + $0x1a1] sm:$0xff] }
 0x270   : > { %16163 = vst [vmem:[#allocation149_spill] sm:$0xff] %v11202_v49  ;;  %v11204_v43 = vpop.permute.xlu0 %1721  ;;  %v984_v49 = vld [vmem:[#allocation2 + $0x3a] sm:$0xff] }
 0x274   : > { %1873 = vrot.lane.b32.xlu2 %v10850_v24, %s9963_s28 }
 0x275   : > { %1871 = vrot.lane.b32.xlu1 %v10838_v56, %s9963_s28 }
 0x276   : > { %v11210_v51 = vpop.permute.xlu2 %1743  ;;  %1875 = vrot.lane.b32.xlu0 %v981_v61, %s9963_s28  ;;  %v986_v61 = vld [vmem:[#allocation2 + $0x52] sm:$0xff] }
 0x277   : > { %16164 = vst [vmem:[#allocation150_spill] sm:$0xff] %v11210_v51  ;;  %v11213_v28 = vpop.permute.xlu1 %1723 }
 0x278   : > { %16165 = vst [vmem:[#allocation151_spill] sm:$0xff] %v11213_v28  ;;  %v11215_v59 = vpop.permute.xlu0 %1727  ;;  %v2307_v28 = vld [vmem:[%s11269_s12 + $0x30] sm:$0xff] }
 0x279   : > { %16166 = vst [vmem:[#allocation152_spill] sm:$0xff] %v11215_v59 }
 0x27c   : > { %1943 = vrot.lane.b32.xlu2 %v983_v9, %s15966_s23 }
 0x27d   : > { %1877 = vrot.lane.b32.xlu1 %v982_v1, %s9963_s28 }
 0x27e   : > { %v11219_v24 = vpop.permute.xlu2 %1749  ;;  %1945 = vrot.lane.b32.xlu0 %v984_v49, %s15966_s23  ;;  %v989_v49 = vld [vmem:[#allocation2 + $0x7a] sm:$0xff] }
 0x27f   : > { %16167 = vst [vmem:[#allocation153_spill] sm:$0xff] %v11219_v24  ;;  %v11222_v56 = vpop.permute.xlu1 %1729  ;;  %v988_v24 = vld [vmem:[#allocation2 + $0x6a] sm:$0xff] }
 0x280   : > { %16168 = vst [vmem:[#allocation154_spill] sm:$0xff] %v11222_v56  ;;  %v11224_v51 = vpop.permute.xlu0 %1733 }
 0x281   : > { %16169 = vst [vmem:[#allocation155_spill] sm:$0xff] %v11224_v51  ;;  %v990_v51 = vld [vmem:[#allocation2 + $0x82] sm:$0xff] }
 0x284   : > { %1949 = vrot.lane.b32.xlu2 %v986_v61, %s15966_s23 }
 0x285   : > { %1947 = vrot.lane.b32.xlu1 %v985_v63, %s15966_s23 }
 0x286   : > { %v11228_v59 = vpop.permute.xlu2 %1819  ;;  %1951 = vrot.lane.b32.xlu0 %v987_v53, %s15966_s23  ;;  %v992_v53 = vld [vmem:[#allocation2 + $0x9a] sm:$0xff] }
 0x287   : > { %v11231_v1 = vpop.permute.xlu1 %1735 }
 0x288   : > { %16170 = vst [vmem:[#allocation156_spill] sm:$0xff] %v11231_v1  ;;  %v11233_v9 = vpop.permute.xlu0 %1739  ;;  %v994_v1 = vld [vmem:[#allocation2 + $0xb2] sm:$0xff] }
 0x289   : > { %16171 = vst [vmem:[#allocation157_spill] sm:$0xff] %v11233_v9  ;;  %v993_v9 = vld [vmem:[#allocation2 + $0xaa] sm:$0xff] }
 0x28c   : > { %1955 = vrot.lane.b32.xlu2 %v989_v49, %s15966_s23 }
 0x28d   : > { %1953 = vrot.lane.b32.xlu1 %v988_v24, %s15966_s23 }
 0x28e   : > { %v11237_v56 = vpop.permute.xlu2 %1825  ;;  %1957 = vrot.lane.b32.xlu0 %v990_v51, %s15966_s23 }
 0x28f   : > { %v11240_v63 = vpop.permute.xlu1 %1741 }
 0x290   : > { %16172 = vst [vmem:[#allocation158_spill] sm:$0xff] %v11240_v63  ;;  %v11242_v61 = vpop.permute.xlu0 %1745  ;;  %v995_v63 = vld [vmem:[#allocation2 + $0xc2] sm:$0xff] }
 0x291   : > { %16173 = vst [vmem:[#allocation159_spill] sm:$0xff] %v11242_v61  ;;  %v996_v61 = vld [vmem:[#allocation2 + $0xca] sm:$0xff] }
 0x294   : > { %1961 = vrot.lane.b32.xlu2 %v992_v53, %s15966_s23 }
 0x295   : > { %1959 = vrot.lane.b32.xlu1 %v991_v15, %s15966_s23 }
 0x296   : > { %v11246_v49 = vpop.permute.xlu2 %1831  ;;  %1963 = vrot.lane.b32.xlu0 %v993_v9, %s15966_s23 }
 0x297   : > { %16174 = vst [vmem:[#allocation160_spill] sm:$0xff] %v11246_v49  ;;  %v11249_v24 = vpop.permute.xlu1 %1747  ;;  %v1000_v49 = vld [vmem:[#allocation2 + $0xfa] sm:$0xff] }
 0x298   : > { %16175 = vst [vmem:[#allocation161_spill] sm:$0xff] %v11249_v24  ;;  %v11251_v51 = vpop.permute.xlu0 %1815  ;;  %v998_v24 = vld [vmem:[#allocation2 + $0xe2] sm:$0xff] }
 0x29c   : > { %1967 = vrot.lane.b32.xlu2 %v995_v63, %s15966_s23 }
 0x29d   : > { %1965 = vrot.lane.b32.xlu1 %v994_v1, %s15966_s23 }
 0x29e   : > { %v11255_v53 = vpop.permute.xlu2 %1837  ;;  %1969 = vrot.lane.b32.xlu0 %v996_v61, %s15966_s23  ;;  %v2309_v61 = vld [vmem:[%s11269_s12 + $0x40] sm:$0xff] }
 0x29f   : > { %16176 = vst [vmem:[#allocation162_spill] sm:$0xff] %v11255_v53  ;;  %v11258_v15 = vpop.permute.xlu1 %1817  ;;  %2418 = vmatpush.msra.mxu0 %v2309_v61  ;;  %8540 = vmatpush.msra.mxu1 %v2309_v61  ;;  %v1001_v53 = vld [vmem:[#allocation2 + $0x10a] sm:$0xff] }
 0x2a0   : > { %v11261_v9 = vpop.permute.xlu0 %1821  ;;  %8541 = vmatpush.msra.mxu3 %v2309_v61 }
 0x2a1   : > { %2419 = vmatpush.msra.mxu0 %v2308_v46  ;;  %8542 = vmatpush.msra.mxu1 %v2308_v46 }
 0x2a2   : > { %8543 = vmatpush.msra.mxu3 %v2308_v46  ;;  %v2305_v46 = vld [vmem:[%s11269_s12 + $0x20] sm:$0xff] }
 0x2a3   : > { %2420 = vmatpush.msra.mxu0 %v2307_v28  ;;  %8544 = vmatpush.msra.mxu1 %v2307_v28 }
 0x2a4   : > { %1973 = vrot.lane.b32.xlu2 %v998_v24, %s15966_s23  ;;  %8545 = vmatpush.msra.mxu3 %v2307_v28  ;;  %v1005_v28 = vld [vmem:[#allocation2 + $0x13a] sm:$0xff] }
 0x2a5   : > { %1971 = vrot.lane.b32.xlu1 %v997_v39, %s15966_s23  ;;  %v2306_v39 = vld [vmem:[%s11269_s12 + $0x28] sm:$0xff] }
 0x2a6   : > { %v11272_v1 = vpop.permute.xlu2 %1843  ;;  %1975 = vrot.lane.b32.xlu0 %v999_v48, %s15966_s23  ;;  %v1002_v48 = vld [vmem:[#allocation2 + $0x112] sm:$0xff]  ;;  %2421 = vmatpush.msra.mxu0 %v2306_v39 }
 0x2a7   : > { %16178 = vst [vmem:[#allocation163_spill] sm:$0xff] %v11272_v1  ;;  %v11275_v63 = vpop.permute.xlu1 %1823  ;;  %8546 = vmatpush.msra.mxu1 %v2306_v39  ;;  %8547 = vmatpush.msra.mxu3 %v2306_v39 }
 0x2a8   : > { %v11278_v24 = vpop.permute.xlu0 %1827  ;;  %2422 = vmatpush.msra.mxu0 %v2305_v46 }
 0x2a9   : > { %8548 = vmatpush.msra.mxu1 %v2305_v46  ;;  %8549 = vmatpush.msra.mxu3 %v2305_v46 }
 0x2ac   : > { %1979 = vrot.lane.b32.xlu2 %v1001_v53, %s15966_s23 }
 0x2ad   : > { %1977 = vrot.lane.b32.xlu1 %v1000_v49, %s15966_s23  ;;  %v2304_v49 = vld [vmem:[%s11269_s12 + $0x18] sm:$0xff] }
 0x2ae   : > { %v11285_v1 = vpop.permute.xlu2 %1849  ;;  %1981 = vrot.lane.b32.xlu0 %v1002_v48, %s15966_s23  ;;  %2423 = vmatpush.msra.mxu0 %v2304_v49 }
 0x2af   : > { %v11288_v61 = vpop.permute.xlu1 %1829  ;;  %8550 = vmatpush.msra.mxu1 %v2304_v49  ;;  %8551 = vmatpush.msra.mxu3 %v2304_v49 }
 0x2b0   : > { %v11291_v53 = vpop.permute.xlu0 %1833  ;;  %2424 = vmatpush.msra.mxu0 %v2303_v50 }
 0x2b1   : > { %16179 = vst [vmem:[#allocation164_spill] sm:$0xff] %v11291_v53  ;;  %8552 = vmatpush.msra.mxu1 %v2303_v50  ;;  %v2301_v53 = vld [vmem:[%s11269_s12] sm:$0xff]  ;;  %8553 = vmatpush.msra.mxu3 %v2303_v50  ;;  %v1010_v50 = vld [vmem:[#allocation2 + $0x172] sm:$0xff]  ;;  %s16359_s12 = smov 48  }
 0x2b2   : > { %2425 = vmatpush.msra.mxu0 %v2302_v12 }
 0x2b3   : > { %8554 = vmatpush.msra.mxu1 %v2302_v12  ;;  %8555 = vmatpush.msra.mxu3 %v2302_v12 }
 0x2b4   : > { %1985 = vrot.lane.b32.xlu2 %v1004_v52, %s15966_s23  ;;  %2426 = vmatpush.msra.mxu0 %v2301_v53  ;;  %v1007_v52 = vld [vmem:[#allocation2 + $0x152] sm:$0xff] }
 0x2b5   : > { %1983 = vrot.lane.b32.xlu1 %v1003_v5, %s15966_s23  ;;  %8556 = vmatpush.msra.mxu1 %v2301_v53  ;;  %v1008_v5 = vld [vmem:[#allocation2 + $0x15a] sm:$0xff] }
 0x2b6   : > { %v11298_v48 = vpop.permute.xlu2 %1855  ;;  %1987 = vrot.lane.b32.xlu0 %v1005_v28, %s15966_s23  ;;  %8557 = vmatpush.msra.mxu3 %v2301_v53 }
 0x2b7   : > { %16180 = vst [vmem:[#allocation165_spill] sm:$0xff] %v11298_v48  ;;  %v11301_v39 = vpop.permute.xlu1 %1835 }
 0x2b8   : > { %16181 = vst [vmem:[#allocation166_spill] sm:$0xff] %v11301_v39  ;;  %v11304_v46 = vpop.permute.xlu0 %1839 }
 0x2b9   : > { %16182 = vst [vmem:[#allocation167_spill] sm:$0xff] %v11304_v46  ;;  %v1009_v46 = vld [vmem:[#allocation2 + $0x16a] sm:$0xff] }
 0x2bc   : > { %1991 = vrot.lane.b32.xlu2 %v1007_v52, %s15966_s23  ;;  %v1013_v52 = vld [vmem:[#allocation2 + $0x19a] sm:$0xff] }
 0x2bd   : > { %1989 = vrot.lane.b32.xlu1 %v1006_v6, %s15966_s23 }
 0x2be   : > { %v11308_v49 = vpop.permute.xlu2 %1861  ;;  %1993 = vrot.lane.b32.xlu0 %v1008_v5, %s15966_s23  ;;  %v1014_v5 = vld [vmem:[#allocation2 + $0x1a2] sm:$0xff] }
 0x2bf   : > { %16183 = vst [vmem:[#allocation168_spill] sm:$0xff] %v11308_v49  ;;  %v11311_v28 = vpop.permute.xlu1 %1841 }
 0x2c0   : > { %16184 = vst [vmem:[#allocation169_spill] sm:$0xff] %v11311_v28  ;;  %v11313_v39 = vpop.permute.xlu0 %1845  ;;  %v16189_v28 = vld [vmem:[#allocation41_spill] sm:$0xff] }
 0x2c1   : > { %16185 = vst [vmem:[#allocation170_spill] sm:$0xff] %v11313_v39  ;;  %v726_v39 = vld [vmem:[#allocation2] sm:$0xff] }
 0x2c4   : > { %1997 = vrot.lane.b32.xlu2 %v1010_v50, %s15966_s23 }
 0x2c5   : > { %1995 = vrot.lane.b32.xlu1 %v1009_v46, %s15966_s23 }
 0x2c6   : > { %v11317_v12 = vpop.permute.xlu2 %1867  ;;  %1999 = vrot.lane.b32.xlu0 %v10972_v44, %s15966_s23 }
 0x2c7   : > { %16186 = vst [vmem:[#allocation171_spill] sm:$0xff] %v11317_v12  ;;  %v11321_v6 = vpop.permute.xlu1 %1847  ;;  %v16188_v12 = vld [vmem:[#allocation14_spill] sm:$0xff] }
 0x2c8   : > { %v11323_v53 = vpop.permute.xlu0 %1851  ;;  %v2039_v44 = vsel %vm528_vm0, %v726_v39, %v16188_v12 }
 0x2c9   : > { %v2071_v49 = vsel %vm573_vm2, %v2039_v44, %v16189_v28 }
 0x2ca   : > { %v2104_v48 = vsel %vm2103_vm3, %v2071_v49, %v10772_v30 }
 0x2cc   : > { %2003 = vrot.lane.b32.xlu2 %v1013_v52, %s15966_s23 }
 0x2cd   : > { %2001 = vrot.lane.b32.xlu1 %v10976_v8, %s15966_s23  ;;  %v2137_v8 = vsel %vm2136_vm5, %v2104_v48, %v10898_v11 }
 0x2ce   : > { %v11328_v50 = vpop.permute.xlu2 %1873  ;;  %2005 = vrot.lane.b32.xlu0 %v1014_v5, %s15966_s23  ;;  %v2170_v5 = vsel %vm2169_vm4, %v2137_v8, %v10990_v37 }
 0x2cf   : > { %16187 = vst [vmem:[#allocation172_spill] sm:$0xff] %v11328_v50  ;;  %v11331_v46 = vpop.permute.xlu1 %1853  ;;  %v2203_v39 = vsel %vm2202_vm6, %v2170_v5, %v11143_v32  ;;  %v727_v32 = vld [vmem:[#allocation2 + $0x8] sm:$0xff]  ;;  %v16193_v5 = vld [vmem:[#allocation17_spill] sm:$0xff] }
 0x2d0   : > { %v11337_v52 = vpop.permute.xlu0 %1857  ;;  %v2236_v28 = vsel %vm2235_vm8, %v2203_v39, %v11251_v51  ;;  %v2040_v51 = vsel %vm528_vm0, %v727_v32, %v16193_v5  ;;  %v16194_v39 = vld [vmem:[#allocation58_spill] sm:$0xff] }
 0x2d1   : > { %v2072_v50 = vsel %vm573_vm2, %v2040_v51, %v16194_v39  ;;  %v9756_v39 = vld [vmem:[#allocation2 + $0x18] sm:$0xff] }
 0x2d6   : > { %v1944_v12 = vpop.permute.xlu2 %1943 }
 0x2d7   : > { %v11349_v44 = vpop.permute.xlu1 %1859  ;;  %v2269_v30 = vsel %vm2268_vm7, %v2236_v28, %v1944_v12  ;;  %v2105_v28 = vsel %vm2103_vm3, %v2072_v50, %v10732_v22 }
 0x2d8   : > { %8371 = vmatmul.msk.f32.vlgmr.msra.gmra.mxu0 %vm2314_vm9, %v2269_v30  ;;  %v11353_v11 = vpop.permute.xlu0 %1863  ;;  %v2138_v12 = vsel %vm2136_vm5, %v2105_v28, %v10908_v13  ;;  %v16196_v13 = vld [vmem:[#allocation62_spill] sm:$0xff] }
 0x2d9   : > { %v2171_v30 = vsel %vm2169_vm4, %v2138_v12, %v11029_v16 }
 0x2de   : > { %v1950_v28 = vpop.permute.xlu2 %1949 }
 0x2df   : > { %v11355_v37 = vpop.permute.xlu1 %1865 }
 0x2e0   : > { %v11357_v48 = vpop.permute.xlu0 %1869 }
 0x2e1   : > { %16190 = vst [vmem:[#allocation14_spill] sm:$0xff] %v11357_v48 }
 0x2e7   : > { %v11359_v49 = vpop.permute.xlu1 %1871 }
 0x2e8   : > { %16191 = vst [vmem:[#allocation41_spill] sm:$0xff] %v11359_v49  ;;  %v11361_v8 = vpop.permute.xlu0 %1875  ;;  %v16195_v49 = vld [vmem:[#allocation16_spill] sm:$0xff] }
 0x2e9   : > { %16192 = vst [vmem:[#allocation173_spill] sm:$0xff] %v11361_v8  ;;  %v2204_v8 = vsel %vm2202_vm6, %v2171_v30, %v11109_v25  ;;  %v2041_v22 = vsel %vm528_vm0, %v9756_v39, %v16195_v49 }
 0x2ea   : > { %v2237_v32 = vsel %vm2235_vm8, %v2204_v8, %v11258_v15  ;;  %v2073_v16 = vsel %vm573_vm2, %v2041_v22, %v16196_v13  ;;  %v1956_v22 = vpop.permute.xlu2 %1955 }
 0x2eb   : > { %v2106_v50 = vsel %vm2103_vm3, %v2073_v16, %v10774_v35 }
 0x2ec   : > { %v2139_v25 = vsel %vm2136_vm5, %v2106_v50, %v10868_v23  ;;  %v16198_v23 = vld [vmem:[#allocation46_spill] sm:$0xff] }
 0x2ed   : > { %v2172_v15 = vsel %vm2169_vm4, %v2139_v25, %v11038_v62 }
 0x2ee   : > { %v2205_v12 = vsel %vm2202_vm6, %v2172_v15, %v11149_v4 }
 0x2ef   : > { %v11373_v48 = vpop.permute.xlu1 %1877  ;;  %v2238_v49 = vsel %vm2235_vm8, %v2205_v12, %v11228_v59 }
 0x2f0   : > { %v1946_v5 = vpop.permute.xlu0 %1945 }
 0x2f1   : > { %v2270_v51 = vsel %vm2268_vm7, %v2237_v32, %v1946_v5  ;;  %v9757_v5 = vld [vmem:[#allocation2 + $0x20] sm:$0xff] }
 0x2f2   : > { %8372 = vmatmul.msk.f32.gmra.mxu0 %vm2314_vm9, %v2270_v51  ;;  %v16197_v51 = vld [vmem:[#allocation19_spill] sm:$0xff] }
 0x2f3   : > { %v2042_v35 = vsel %vm528_vm0, %v9757_v5, %v16197_v51  ;;  %v11431_v51 = vpop.permute.xlu2 %1961 }
 0x2f4   : > { %v2074_v39 = vsel %vm573_vm2, %v2042_v35, %v16198_v23  ;;  %v9759_v23 = vld [vmem:[#allocation2 + $0x38] sm:$0xff] }
 0x2f5   : > { %v2107_v62 = vsel %vm2103_vm3, %v2074_v39, %v10784_v36  ;;  %v16199_v36 = vld [vmem:[#allocation11_spill] sm:$0xff]  ;;  %v16201_v39 = vld [vmem:[#allocation12_spill] sm:$0xff] }
 0x2f6   : > { %v2140_v4 = vsel %vm2136_vm5, %v2107_v62, %v10910_v18  ;;  %v16200_v18 = vld [vmem:[#allocation63_spill] sm:$0xff] }
 0x2f7   : > { %v1948_v8 = vpop.permute.xlu1 %1947  ;;  %v2173_v59 = vsel %vm2169_vm4, %v2140_v4, %v11001_v0 }
 0x2f8   : > { %v1952_v30 = vpop.permute.xlu0 %1951  ;;  %v2271_v32 = vsel %vm2268_vm7, %v2238_v49, %v1948_v8  ;;  %v2206_v16 = vsel %vm2202_vm6, %v2173_v59, %v11166_v29  ;;  %v9758_v8 = vld [vmem:[#allocation2 + $0x30] sm:$0xff] }
 0x2f9   : > { %v2239_v50 = vsel %vm2235_vm8, %v2206_v16, %v11261_v9  ;;  %v2043_v12 = vsel %vm528_vm0, %v9758_v8, %v16199_v36  ;;  %v9760_v8 = vld [vmem:[#allocation2 + $0x48] sm:$0xff] }
 0x2fa   : > { %8373 = vmatmul.msk.f32.gmra.mxu0 %vm2314_vm9, %v2271_v32  ;;  %v2272_v15 = vsel %vm2268_vm7, %v2239_v50, %v1950_v28  ;;  %v2075_v0 = vsel %vm573_vm2, %v2043_v12, %v16200_v18  ;;  %v16204_v12 = vld [vmem:[#allocation33_spill] sm:$0xff] }
 0x2fb   : > { %v2108_v49 = vsel %vm2103_vm3, %v2075_v0, %v10744_v14  ;;  %v11460_v18 = vpop.permute.xlu2 %1967 }
 0x2fc   : > { %v2141_v29 = vsel %vm2136_vm5, %v2108_v49, %v10920_v19  ;;  %v2044_v19 = vsel %vm528_vm0, %v9759_v23, %v16201_v39 }
 0x2fd   : > { %v2174_v9 = vsel %vm2169_vm4, %v2141_v29, %v11040_v7  ;;  %v16202_v7 = vld [vmem:[#allocation66_spill] sm:$0xff] }
 0x2fe   : > { %v2207_v28 = vsel %vm2202_vm6, %v2174_v9, %v11118_v45  ;;  %v2076_v62 = vsel %vm573_vm2, %v2044_v19, %v16202_v7  ;;  %v16207_v7 = vld [vmem:[#allocation21_spill] sm:$0xff] }
 0x2ff   : > { %v1954_v13 = vpop.permute.xlu1 %1953  ;;  %v2240_v5 = vsel %vm2235_vm8, %v2207_v28, %v11275_v63  ;;  %v2109_v45 = vsel %vm2103_vm3, %v2076_v62, %v10786_v41  ;;  %v16203_v41 = vld [vmem:[#allocation20_spill] sm:$0xff] }
 0x300   : > { %v11411_v25 = vpop.permute.xlu0 %1957  ;;  %v2273_v14 = vsel %vm2268_vm7, %v2240_v5, %v1952_v30  ;;  %v2142_v63 = vsel %vm2136_vm5, %v2109_v45, %v10880_v2  ;;  %v2045_v36 = vsel %vm528_vm0, %v9760_v8, %v16203_v41  ;;  %v9761_v2 = vld [vmem:[#allocation2 + $0xc0] sm:$0xff]  ;;  %v9763_v45 = vld [vmem:[#allocation2 + $0x50] sm:$0xff] }
 0x301   : > { %v2175_v4 = vsel %vm2169_vm4, %v2142_v63, %v11049_v34  ;;  %v2055_v34 = vsel %vm528_vm0, %v9761_v2, %v16204_v12 }
 0x302   : > { %8374 = vmatmul.msk.f32.gmra.mxu0 %vm2314_vm9, %v2272_v15  ;;  %v2208_v30 = vsel %vm2202_vm6, %v2175_v4, %v11168_v17  ;;  %v16205_v17 = vld [vmem:[#allocation51_spill] sm:$0xff] }
 0x303   : > { %v2241_v16 = vsel %vm2235_vm8, %v2208_v30, %v11237_v56  ;;  %v2077_v0 = vsel %vm573_vm2, %v2045_v36, %v16205_v17  ;;  %v16206_v56 = vld [vmem:[#allocation82_spill] sm:$0xff]  ;;  %v16211_v17 = vld [vmem:[#allocation13_spill] sm:$0xff] }
 0x304   : > { %v2274_v15 = vsel %vm2268_vm7, %v2241_v16, %v1954_v13  ;;  %v2087_v49 = vsel %vm573_vm2, %v2055_v34, %v16206_v56  ;;  %v2110_v29 = vsel %vm2103_vm3, %v2077_v0, %v10796_v42  ;;  %v11505_v16 = vpop.permute.xlu2 %1973  ;;  %v16212_v56 = vld [vmem:[#allocation34_spill] sm:$0xff] }
 0x305   : > { %v2120_v13 = vsel %vm2103_vm3, %v2087_v49, %v10792_v40  ;;  %v2143_v9 = vsel %vm2136_vm5, %v2110_v29, %v10922_v27  ;;  %v16214_v49 = vld [vmem:[#allocation71_spill] sm:$0xff] }
 0x306   : > { %v2153_v28 = vsel %vm2136_vm5, %v2120_v13, %v10968_v20  ;;  %v2176_v5 = vsel %vm2169_vm4, %v2143_v9, %v11012_v60  ;;  %v16215_v9 = vld [vmem:[#allocation115_spill] sm:$0xff] }
 0x307   : > { %v11425_v32 = vpop.permute.xlu1 %1959  ;;  %v2209_v42 = vsel %vm2202_vm6, %v2176_v5, %v11175_v55  ;;  %v16209_v55 = vld [vmem:[#allocation67_spill] sm:$0xff] }
 0x308   : > { %v11433_v35 = vpop.permute.xlu0 %1963  ;;  %v2242_v27 = vsel %vm2235_vm8, %v2209_v42, %v11278_v24  ;;  %v16216_v5 = vld [vmem:[#allocation31_spill] sm:$0xff] }
 0x309   : > { %v2275_v60 = vsel %vm2268_vm7, %v2242_v27, %v1956_v22  ;;  %v16218_v27 = vld [vmem:[#allocation69_spill] sm:$0xff] }
 0x30a   : > { %8375 = vmatmul.msk.f32.gmra.mxu0 %vm2314_vm9, %v2273_v14  ;;  %v2186_v14 = vsel %vm2169_vm4, %v2153_v28, %v11084_v3  ;;  %v9762_v3 = vld [vmem:[#allocation2 + $0xc8] sm:$0xff] }
 0x30b   : > { %v2219_v40 = vsel %vm2202_vm6, %v2186_v14, %v11172_v38  ;;  %v2056_v62 = vsel %vm528_vm0, %v9762_v3, %v16207_v7  ;;  %v16208_v38 = vld [vmem:[#allocation22_spill] sm:$0xff] }
 0x30c   : > { %v2252_v20 = vsel %vm2235_vm8, %v2219_v40, %v11321_v6  ;;  %v2046_v63 = vsel %vm528_vm0, %v9763_v45, %v16208_v38  ;;  %v16210_v6 = vld [vmem:[#allocation84_spill] sm:$0xff] }
 0x30d   : > { %v2078_v24 = vsel %vm573_vm2, %v2046_v63, %v16209_v55  ;;  %v2088_v22 = vsel %vm573_vm2, %v2056_v62, %v16210_v6  ;;  %v16217_v40 = vld [vmem:[#allocation68_spill] sm:$0xff] }
 0x30e   : > { %v2111_v4 = vsel %vm2103_vm3, %v2078_v24, %v10756_v21  ;;  %v2121_v30 = vsel %vm2103_vm3, %v2088_v22, %v10834_v57  ;;  %v9766_v55 = vld [vmem:[#allocation2 + $0x68] sm:$0xff]  ;;  %v16222_v24 = vld [vmem:[#allocation23_spill] sm:$0xff] }
 0x30f   : > { %v11447_v59 = vpop.permute.xlu1 %1965  ;;  %v2144_v8 = vsel %vm2136_vm5, %v2111_v4, %v10932_v31  ;;  %v2048_v6 = vsel %vm528_vm0, %v9766_v55, %v16222_v24  ;;  %v9767_v22 = vld [vmem:[#allocation2 + $0xe0] sm:$0xff] }
 0x310   : > { %v11453_v50 = vpop.permute.xlu0 %1969  ;;  %v2177_v41 = vsel %vm2169_vm4, %v2144_v8, %v11051_v54  ;;  %v16223_v4 = vld [vmem:[#allocation39_spill] sm:$0xff]  ;;  %v16225_v8 = vld [vmem:[#allocation85_spill] sm:$0xff] }
 0x311   : > { %v2210_v21 = vsel %vm2202_vm6, %v2177_v41, %v11127_v33  ;;  %v9765_v33 = vld [vmem:[#allocation2 + $0xd8] sm:$0xff]  ;;  %v16244_v55 = vld [vmem:[#allocation131_spill] sm:$0xff] }
 0x312   : > { %8376 = vmatmul.msk.f32.gmra.mxu0 %vm2314_vm9, %v2274_v15  ;;  %v2154_v15 = vsel %vm2136_vm5, %v2121_v30, %v10928_v26  ;;  %v2243_v26 = vsel %vm2235_vm8, %v2210_v21, %v11288_v61  ;;  %v2058_v30 = vsel %vm528_vm0, %v9767_v22, %v16223_v4  ;;  %v16226_v41 = vld [vmem:[#allocation98_spill] sm:$0xff]  ;;  %v16245_v22 = vld [vmem:[#allocation139_spill] sm:$0xff] }
 0x313   : > { %v2187_v36 = vsel %vm2169_vm4, %v2154_v15, %v11094_v10  ;;  %v2276_v54 = vsel %vm2268_vm7, %v2243_v26, %v11411_v25  ;;  %v9764_v10 = vld [vmem:[#allocation2 + $0x60] sm:$0xff]  ;;  %v16229_v26 = vld [vmem:[#allocation37_spill] sm:$0xff] }
 0x314   : > { %v2220_v57 = vsel %vm2202_vm6, %v2187_v36, %v11204_v43  ;;  %v2047_v0 = vsel %vm528_vm0, %v9764_v10, %v16211_v17  ;;  %v2057_v43 = vsel %vm528_vm0, %v9765_v33, %v16212_v56  ;;  %v16231_v17 = vld [vmem:[#allocation86_spill] sm:$0xff] }
 0x315   : > { %v2253_v12 = vsel %vm2235_vm8, %v2220_v57, %v11285_v1  ;;  %v16213_v1 = vld [vmem:[#allocation70_spill] sm:$0xff]  ;;  %v2079_v25 = vsel %vm573_vm2, %v2047_v0, %v16214_v49  ;;  %v16228_v57 = vld [vmem:[#allocation119_spill] sm:$0xff] }
 0x316   : > { %v2089_v61 = vsel %vm573_vm2, %v2057_v43, %v16213_v1  ;;  %v2112_v13 = vsel %vm2103_vm3, %v2079_v25, %v10798_v47  ;;  %v16220_v47 = vld [vmem:[#allocation151_spill] sm:$0xff]  ;;  %v16232_v33 = vld [vmem:[#allocation142_spill] sm:$0xff] }
 0x317   : > { %v11479_v23 = vpop.permute.xlu1 %1971  ;;  %v2122_v29 = vsel %vm2103_vm3, %v2089_v61, %v10846_v58  ;;  %v2145_v28 = vsel %vm2136_vm5, %v2112_v13, %v16215_v9  ;;  %v16221_v58 = vld [vmem:[#allocation160_spill] sm:$0xff]  ;;  %v16233_v43 = vld [vmem:[#allocation143_spill] sm:$0xff] }
 0x318   : > { %v1976_v39 = vpop.permute.xlu0 %1975  ;;  %v2155_v14 = vsel %vm2136_vm5, %v2122_v29, %v16216_v5  ;;  %v16234_v61 = vld [vmem:[#allocation164_spill] sm:$0xff] }
 0x319   : > { %v2285_v19 = vsel %vm2268_vm7, %v2252_v20, %v1976_v39  ;;  %v2188_v42 = vsel %vm2169_vm4, %v2155_v14, %v16217_v40  ;;  %v2178_v20 = vsel %vm2169_vm4, %v2145_v28, %v16218_v27  ;;  %v1980_v39 = vpop.permute.xlu2 %1979  ;;  %v9768_v28 = vld [vmem:[#allocation2 + $0xf0] sm:$0xff]  ;;  %v16235_v5 = vld [vmem:[#allocation24_spill] sm:$0xff]  ;;  %v9769_v40 = vld [vmem:[#allocation2 + $0x78] sm:$0xff] }
 0x31a   : > { %8377 = vmatmul.msk.f32.gmra.mxu0 %vm2314_vm9, %v2275_v60  ;;  %8387 = vmatmul.msk.f32.vlgmr.msra.gmra.mxu1 %vm2314_vm9, %v2285_v19  ;;  %v16219_v60 = vld [vmem:[#allocation141_spill] sm:$0xff]  ;;  %v2221_v3 = vsel %vm2202_vm6, %v2188_v42, %v16220_v47  ;;  %v2059_v14 = vsel %vm528_vm0, %v9768_v28, %v16235_v5  ;;  %v16257_v28 = vld [vmem:[#allocation108_spill] sm:$0xff] }
 0x31b   : > { %v2211_v19 = vsel %vm2202_vm6, %v2178_v20, %v16219_v60  ;;  %v2254_v62 = vsel %vm2235_vm8, %v2221_v3, %v11323_v53  ;;  %v16224_v53 = vld [vmem:[#allocation56_spill] sm:$0xff]  ;;  %v16236_v42 = vld [vmem:[#allocation25_spill] sm:$0xff] }
 0x31c   : > { %v2244_v7 = vsel %vm2235_vm8, %v2211_v19, %v16221_v58  ;;  %v2287_v63 = vsel %vm2268_vm7, %v2254_v62, %v1980_v39  ;;  %v2080_v15 = vsel %vm573_vm2, %v2048_v6, %v16224_v53  ;;  %v2049_v27 = vsel %vm528_vm0, %v9769_v40, %v16236_v42  ;;  %v16238_v39 = vld [vmem:[#allocation88_spill] sm:$0xff]  ;;  %v16240_v19 = vld [vmem:[#allocation107_spill] sm:$0xff]  ;;  %v16259_v42 = vld [vmem:[#allocation117_spill] sm:$0xff] }
 0x31d   : > { %v2277_v38 = vsel %vm2268_vm7, %v2244_v7, %v11425_v32  ;;  %v2090_v32 = vsel %vm573_vm2, %v2058_v30, %v16225_v8  ;;  %v16239_v60 = vld [vmem:[#allocation96_spill] sm:$0xff]  ;;  %v16242_v7 = vld [vmem:[#allocation121_spill] sm:$0xff] }
 0x31e   : > { %v2123_v36 = vsel %vm2103_vm3, %v2090_v32, %v16226_v41  ;;  %v16241_v3 = vld [vmem:[#allocation120_spill] sm:$0xff]  ;;  %v16248_v32 = vld [vmem:[#allocation166_spill] sm:$0xff] }
 0x31f   : > { %v1978_v2 = vpop.permute.xlu1 %1977  ;;  %v16246_v30 = vld [vmem:[#allocation152_spill] sm:$0xff] }
 0x320   : > { %v1982_v31 = vpop.permute.xlu0 %1981  ;;  %v2286_v34 = vsel %vm2268_vm7, %v2253_v12, %v1978_v2  ;;  %v16227_v2 = vld [vmem:[#allocation99_spill] sm:$0xff] }
 0x321   : > { %v2113_v21 = vsel %vm2103_vm3, %v2080_v15, %v16227_v2  ;;  %v16247_v15 = vld [vmem:[#allocation165_spill] sm:$0xff] }
 0x322   : > { %8378 = vmatmul.msk.f32.gmra.mxu0 %vm2314_vm9, %v2276_v54  ;;  %8388 = vmatmul.msk.f32.gmra.mxu1 %vm2314_vm9, %v2286_v34  ;;  %v2146_v12 = vsel %vm2136_vm5, %v2113_v21, %v16228_v57  ;;  %v2156_v54 = vsel %vm2136_vm5, %v2123_v36, %v16229_v26  ;;  %v16230_v34 = vld [vmem:[#allocation55_spill] sm:$0xff] }
 0x323   : > { %v2179_v10 = vsel %vm2169_vm4, %v2146_v12, %v16230_v34  ;;  %v2189_v0 = vsel %vm2169_vm4, %v2156_v54, %v16231_v17  ;;  %v9770_v57 = vld [vmem:[#allocation2 + $0x80] sm:$0xff]  ;;  %v9771_v54 = vld [vmem:[#allocation2 + $0xf8] sm:$0xff]  ;;  %v16250_v34 = vld [vmem:[#allocation40_spill] sm:$0xff] }
 0x324   : > { %v2222_v56 = vsel %vm2202_vm6, %v2189_v0, %v16232_v33  ;;  %v2212_v1 = vsel %vm2202_vm6, %v2179_v10, %v16233_v43  ;;  %v16249_v12 = vld [vmem:[#allocation15_spill] sm:$0xff]  ;;  %v2060_v10 = vsel %vm528_vm0, %v9771_v54, %v16250_v34  ;;  %v9772_v17 = vld [vmem:[#allocation2 + $0x170] sm:$0xff]  ;;  %v16253_v43 = vld [vmem:[#allocation76_spill] sm:$0xff] }
 0x325   : > { %v2245_v49 = vsel %vm2235_vm8, %v2212_v1, %v16234_v61  ;;  %v2255_v25 = vsel %vm2235_vm8, %v2222_v56, %v11331_v46  ;;  %v16237_v46 = vld [vmem:[#allocation72_spill] sm:$0xff]  ;;  %v2050_v26 = vsel %vm528_vm0, %v9770_v57, %v16249_v12  ;;  %v16251_v0 = vld [vmem:[#allocation57_spill] sm:$0xff]  ;;  %v16254_v61 = vld [vmem:[#allocation95_spill] sm:$0xff] }
 0x326   : > { %v2278_v29 = vsel %vm2268_vm7, %v2245_v49, %v11431_v51  ;;  %v2288_v9 = vsel %vm2268_vm7, %v2255_v25, %v1982_v31  ;;  %v2081_v20 = vsel %vm573_vm2, %v2049_v27, %v16237_v46  ;;  %v2091_v51 = vsel %vm573_vm2, %v2059_v14, %v16238_v39  ;;  %v16258_v14 = vld [vmem:[#allocation109_spill] sm:$0xff]  ;;  %v16261_v39 = vld [vmem:[#allocation59_spill] sm:$0xff]  ;;  %v9774_v57 = vld [vmem:[#allocation2 + $0x108] sm:$0xff] }
 0x327   : > { %v2114_v31 = vsel %vm2103_vm3, %v2081_v20, %v16239_v60  ;;  %v2124_v47 = vsel %vm2103_vm3, %v2091_v51, %v16240_v19  ;;  %v1984_v6 = vpop.permute.xlu1 %1983  ;;  %v2070_v33 = vsel %vm528_vm0, %v9772_v17, %v16251_v0  ;;  %v2082_v1 = vsel %vm573_vm2, %v2050_v26, %v16253_v43  ;;  %v16260_v46 = vld [vmem:[#allocation125_spill] sm:$0xff]  ;;  %v16262_v60 = vld [vmem:[#allocation74_spill] sm:$0xff]  ;;  %v16276_v43 = vld [vmem:[#allocation44_spill] sm:$0xff] }
 0x328   : > { %v11556_v45 = vpop.permute.xlu0 %1987  ;;  %v2157_v58 = vsel %vm2136_vm5, %v2124_v47, %v16241_v3  ;;  %v2147_v62 = vsel %vm2136_vm5, %v2114_v31, %v16242_v7  ;;  %v2102_v49 = vsel %vm573_vm2, %v2070_v33, %v16254_v61  ;;  %v16255_v25 = vmov 0.0   ;;  %v16263_v19 = vld [vmem:[#allocation78_spill] sm:$0xff]  ;;  %v1986_v7 = vpop.permute.xlu2 %1985  ;;  %v16272_v54 = vld [vmem:[#allocation89_spill] sm:$0xff]  ;;  %v16277_v61 = vld [vmem:[#allocation60_spill] sm:$0xff] }
 0x329   : > { %v2190_v24 = vsel %vm2169_vm4, %v2157_v58, %v16244_v55  ;;  %602 = vst.msk [vmem:[#allocation3 + $0x41] sm:$0x1] %vm581_vm10, %v16255_v25  ;;  %v2135_v5 = vsel %vm2103_vm3, %v2102_v49, %v16257_v28  ;;  %v16264_v3 = vld [vmem:[#allocation138_spill] sm:$0xff]  ;;  %v16279_v28 = vld [vmem:[#allocation145_spill] sm:$0xff] }
 0x32a   : > { %8379 = vmatmul.msk.f32.gmra.mxu0 %vm2314_vm9, %v2277_v38  ;;  %8389 = vmatmul.msk.f32.gmra.mxu1 %vm2314_vm9, %v2287_v63  ;;  %v16243_v38 = vld [vmem:[#allocation73_spill] sm:$0xff]  ;;  %v2223_v53 = vsel %vm2202_vm6, %v2190_v24, %v16246_v30  ;;  %582 = vst.msk [vmem:[#allocation3] sm:$0x1] %vm581_vm10, %v16255_v25  ;;  %v2168_v51 = vsel %vm2136_vm5, %v2135_v5, %v16261_v39  ;;  %v16267_v24 = vld [vmem:[#allocation154_spill] sm:$0xff] }
 0x32b   : > { %v2180_v63 = vsel %vm2169_vm4, %v2147_v62, %v16243_v38  ;;  %v2256_v8 = vsel %vm2235_vm8, %v2223_v53, %v16247_v15  ;;  %583 = vst.msk [vmem:[#allocation3 + $0x18] sm:$0x1] %vm581_vm10, %v16255_v25  ;;  %v2201_v58 = vsel %vm2169_vm4, %v2168_v51, %v16264_v3  ;;  %v16265_v62 = vld [vmem:[#allocation144_spill] sm:$0xff]  ;;  %v16274_v0 = vld [vmem:[#allocation102_spill] sm:$0xff]  ;;  %v9775_v51 = vld [vmem:[#allocation2 + $0x110] sm:$0xff] }
 0x32c   : > { %v2213_v4 = vsel %vm2202_vm6, %v2180_v63, %v16245_v22  ;;  %v2289_v21 = vsel %vm2268_vm7, %v2256_v8, %v1984_v6  ;;  %584 = vst.msk [vmem:[#allocation3 + $0x30] sm:$0x1] %vm581_vm10, %v16255_v25  ;;  %v16266_v63 = vld [vmem:[#allocation153_spill] sm:$0xff]  ;;  %v16268_v22 = vld [vmem:[#allocation162_spill] sm:$0xff] }
 0x32d   : > { %v2246_v41 = vsel %vm2235_vm8, %v2213_v4, %v16248_v32  ;;  %v2234_v55 = vsel %vm2202_vm6, %v2201_v58, %v16266_v63  ;;  %585 = vst.msk [vmem:[#allocation3 + $0x48] sm:$0x1] %vm581_vm10, %v16255_v25  ;;  %v16285_v3 = vld [vmem:[#allocation90_spill] sm:$0xff] }
 0x32e   : > { %v2279_v2 = vsel %vm2268_vm7, %v2246_v41, %v11433_v35  ;;  %v16252_v35 = vld [vmem:[#allocation75_spill] sm:$0xff]  ;;  %v2267_v53 = vsel %vm2235_vm8, %v2234_v55, %v11373_v48  ;;  %586 = vst.msk [vmem:[#allocation3 + $0x60] sm:$0x1] %vm581_vm10, %v16255_v25  ;;  %v16270_v48 = vld [vmem:[#allocation42_spill] sm:$0xff] }
 0x32f   : > { %v2092_v56 = vsel %vm573_vm2, %v2060_v10, %v16252_v35  ;;  %587 = vst.msk [vmem:[#allocation3 + $0x78] sm:$0x1] %vm581_vm10, %v16255_v25  ;;  %v2061_v12 = vsel %vm528_vm0, %v9774_v57, %v16270_v48  ;;  %v16273_v10 = vld [vmem:[#allocation101_spill] sm:$0xff]  ;;  %v16275_v35 = vld [vmem:[#allocation122_spill] sm:$0xff]  ;;  %v16288_v55 = vld [vmem:[#allocation123_spill] sm:$0xff] }
 0x330   : > { %v11591_v13 = vpop.permute.xlu0 %1993  ;;  %v2125_v40 = vsel %vm2103_vm3, %v2092_v56, %v16258_v14  ;;  %588 = vst.msk [vmem:[#allocation3 + $0x90] sm:$0x1] %vm581_vm10, %v16255_v25  ;;  %v2093_v34 = vsel %vm573_vm2, %v2061_v12, %v16272_v54  ;;  %v16280_v14 = vld [vmem:[#allocation146_spill] sm:$0xff]  ;;  %v16295_v48 = vld [vmem:[#allocation169_spill] sm:$0xff] }
 0x331   : > { %v2158_v20 = vsel %vm2136_vm5, %v2125_v40, %v16260_v46  ;;  %589 = vst.msk [vmem:[#allocation3 + $0xa8] sm:$0x1] %vm581_vm10, %v16255_v25  ;;  %v2126_v17 = vsel %vm2103_vm3, %v2093_v34, %v16273_v10  ;;  %v9777_v34 = vld [vmem:[#allocation2 + $0xa8] sm:$0xff]  ;;  %v16296_v10 = vld [vmem:[#allocation18_spill] sm:$0xff] }
 0x332   : > { %8380 = vmatmul.msk.f32.gmra.mxu0 %vm2314_vm9, %v2278_v29  ;;  %8390 = vmatmul.msk.f32.gmra.mxu1 %vm2314_vm9, %v2288_v9  ;;  %v16256_v29 = vld [vmem:[#allocation100_spill] sm:$0xff]  ;;  %v2191_v31 = vsel %vm2169_vm4, %v2158_v20, %v16262_v60  ;;  %590 = vst.msk [vmem:[#allocation3 + $0xc0] sm:$0x1] %vm581_vm10, %v16255_v25  ;;  %v16282_v60 = vld [vmem:[#allocation27_spill] sm:$0xff] }
 0x333   : > { %v2115_v9 = vsel %vm2103_vm3, %v2082_v1, %v16256_v29  ;;  %v2224_v6 = vsel %vm2202_vm6, %v2191_v31, %v16267_v24  ;;  %v2159_v1 = vsel %vm2136_vm5, %v2126_v17, %v16276_v43  ;;  %591 = vst.msk [vmem:[#allocation3 + $0xd8] sm:$0x1] %vm581_vm10, %v16255_v25  ;;  %v16278_v29 = vld [vmem:[#allocation132_spill] sm:$0xff]  ;;  %v2062_v31 = vsel %vm528_vm0, %v9775_v51, %v16282_v60  ;;  %v16299_v43 = vld [vmem:[#allocation81_spill] sm:$0xff]  ;;  %v1992_v60 = vpop.permute.xlu2 %1991 }
 0x334   : > { %v2148_v27 = vsel %vm2136_vm5, %v2115_v9, %v16259_v42  ;;  %v2257_v30 = vsel %vm2235_vm8, %v2224_v6, %v11337_v52  ;;  %v2192_v9 = vsel %vm2169_vm4, %v2159_v1, %v16278_v29  ;;  %592 = vst.msk [vmem:[#allocation3 + $0xf0] sm:$0x1] %vm581_vm10, %v16255_v25  ;;  %v16281_v42 = vld [vmem:[#allocation167_spill] sm:$0xff]  ;;  %v2094_v58 = vsel %vm573_vm2, %v2062_v31, %v16285_v3  ;;  %v16289_v6 = vld [vmem:[#allocation30_spill] sm:$0xff] }
 0x335   : > { %v2181_v47 = vsel %vm2169_vm4, %v2148_v27, %v16263_v19  ;;  %v2290_v32 = vsel %vm2268_vm7, %v2257_v30, %v1986_v7  ;;  %v2225_v5 = vsel %vm2202_vm6, %v2192_v9, %v16279_v28  ;;  %593 = vst.msk [vmem:[#allocation3 + $0x108] sm:$0x1] %vm581_vm10, %v16255_v25  ;;  %v9776_v19 = vld [vmem:[#allocation2 + $0x98] sm:$0xff]  ;;  %v16286_v7 = vld [vmem:[#allocation97_spill] sm:$0xff]  ;;  %v2053_v17 = vsel %vm528_vm0, %v9777_v34, %v16296_v10  ;;  %v16301_v29 = vld [vmem:[#allocation111_spill] sm:$0xff] }
 0x336   : > { %v2214_v38 = vsel %vm2202_vm6, %v2181_v47, %v16265_v62  ;;  %v2258_v46 = vsel %vm2235_vm8, %v2225_v5, %v11349_v44  ;;  %594 = vst.msk [vmem:[#allocation3 + $0x120] sm:$0x1] %vm581_vm10, %v16255_v25  ;;  %v16283_v47 = vld [vmem:[#allocation28_spill] sm:$0xff]  ;;  %v2085_v1 = vsel %vm573_vm2, %v2053_v17, %v16299_v43  ;;  %v16302_v5 = vld [vmem:[#allocation118_spill] sm:$0xff]  ;;  %v16306_v31 = vld [vmem:[#allocation147_spill] sm:$0xff] }
 0x337   : > { %v2247_v4 = vsel %vm2235_vm8, %v2214_v38, %v16268_v22  ;;  %v2291_v39 = vsel %vm2268_vm7, %v2258_v46, %v11556_v45  ;;  %595 = vst.msk [vmem:[#allocation3 + $0x138] sm:$0x1] %vm581_vm10, %v16255_v25  ;;  %v2052_v44 = vsel %vm528_vm0, %v9776_v19, %v16283_v47  ;;  %v16287_v38 = vld [vmem:[#allocation110_spill] sm:$0xff]  ;;  %v16304_v46 = vld [vmem:[#allocation79_spill] sm:$0xff]  ;;  %v16307_v47 = vld [vmem:[#allocation156_spill] sm:$0xff] }
 0x338   : > { %v11626_v36 = vpop.permute.xlu0 %1999  ;;  %v2280_v8 = vsel %vm2268_vm7, %v2247_v4, %v11447_v59  ;;  %v16271_v59 = vld [vmem:[#allocation61_spill] sm:$0xff]  ;;  %596 = vst.msk [vmem:[#allocation3 + $0x150] sm:$0x1] %vm581_vm10, %v16255_v25  ;;  %v2127_v63 = vsel %vm2103_vm3, %v2094_v58, %v16287_v38  ;;  %v16290_v4 = vld [vmem:[#allocation127_spill] sm:$0xff]  ;;  %v9781_v43 = vld [vmem:[#allocation2 + $0x138] sm:$0xff] }
 0x339   : > { %597 = vst.msk [vmem:[#allocation3 + $0x168] sm:$0x1] %vm581_vm10, %v16255_v25  ;;  %v2160_v24 = vsel %vm2136_vm5, %v2127_v63, %v16288_v55  ;;  %v9779_v38 = vld [vmem:[#allocation2 + $0xb0] sm:$0xff] }
 0x33a   : > { %8381 = vmatmul.msk.f32.gmra.mxu0 %vm2314_vm9, %v2279_v2  ;;  %8391 = vmatmul.msk.f32.gmra.mxu1 %vm2314_vm9, %v2289_v21  ;;  %v9773_v2 = vld [vmem:[#allocation2 + $0x90] sm:$0xff]  ;;  %v16269_v21 = vld [vmem:[#allocation26_spill] sm:$0xff]  ;;  %598 = vst.msk [vmem:[#allocation3 + $0x180] sm:$0x1] %vm581_vm10, %v16255_v25 }
 0x33b   : > { %v2051_v52 = vsel %vm528_vm0, %v9773_v2, %v16269_v21  ;;  %599 = vst.msk [vmem:[#allocation3 + $0x198] sm:$0x1] %vm581_vm10, %v16255_v25  ;;  %v16293_v2 = vld [vmem:[#allocation155_spill] sm:$0xff]  ;;  %v16309_v63 = vld [vmem:[#allocation29_spill] sm:$0xff] }
 0x33c   : > { %v2083_v26 = vsel %vm573_vm2, %v2051_v52, %v16271_v59  ;;  %600 = vst.msk [vmem:[#allocation3 + $0x11] sm:$0x1] %vm581_vm10, %v16255_v25  ;;  %v16294_v52 = vld [vmem:[#allocation168_spill] sm:$0xff]  ;;  %v11793_v59 = vld [vmem:[%s498_s25] ss:$0 sm:$0xff]  ;;  %v2054_v55 = vsel %vm528_vm0, %v9779_v38, %v16309_v63  ;;  %v16320_v10 = vld [vmem:[#allocation149_spill] sm:$0xff]  ;;  %v1998_v38 = vpop.permute.xlu2 %1997 }
 0x33d   : > { %v2116_v33 = vsel %vm2103_vm3, %v2083_v26, %v16274_v0  ;;  %601 = vst.msk [vmem:[#allocation3 + $0x29] sm:$0x1] %vm581_vm10, %v16255_v25  ;;  %v9778_v0 = vld [vmem:[#allocation2 + $0x120] sm:$0xff]  ;;  %s8561_s25 = smul.u32 144, %s11140_s22  ;;  %v16334_v63 = vld [vmem:[#allocation158_spill] sm:$0xff] }
 0x33e   : > { %v2149_v56 = vsel %vm2136_vm5, %v2116_v33, %v16275_v35  ;;  %603 = vst.msk [vmem:[#allocation3 + $0x59] sm:$0x1] %vm581_vm10, %v16255_v25  ;;  %v16297_v33 = vld [vmem:[#allocation43_spill] sm:$0xff] }
 0x33f   : > { %v2182_v49 = vsel %vm2169_vm4, %v2149_v56, %v16277_v61  ;;  %604 = vst.msk [vmem:[#allocation3 + $0x71] sm:$0x1] %vm581_vm10, %v16255_v25  ;;  %v2063_v35 = vsel %vm528_vm0, %v9778_v0, %v16297_v33  ;;  %v16300_v61 = vld [vmem:[#allocation103_spill] sm:$0xff]  ;;  %v16321_v0 = vld [vmem:[#allocation170_spill] sm:$0xff]  ;;  %s11925_s21 = scalar_lea.vmem %s15854_s3, %s8561_s25 }
 0x340   : > { %v2006_v15 = vpop.permute.xlu0 %2005  ;;  %v2215_v40 = vsel %vm2202_vm6, %v2182_v49, %v16280_v14  ;;  %605 = vst.msk [vmem:[#allocation3 + $0x89] sm:$0x1] %vm581_vm10, %v16255_v25  ;;  %v2118_v49 = vsel %vm2103_vm3, %v2085_v1, %v16300_v61  ;;  %v16322_v1 = vld [vmem:[#allocation32_spill] sm:$0xff] }
 0x341   : > { %v2300_v41 = vsel %vm2268_vm7, %v2267_v53, %v2006_v15  ;;  %v2248_v27 = vsel %vm2235_vm8, %v2215_v40, %v16281_v42  ;;  %v16291_v53 = vld [vmem:[#allocation133_spill] sm:$0xff]  ;;  %606 = vst.msk [vmem:[#allocation3 + $0xa1] sm:$0x1] %vm581_vm10, %v16255_v25  ;;  %v2151_v14 = vsel %vm2136_vm5, %v2118_v49, %v16302_v5  ;;  %v16303_v40 = vld [vmem:[#allocation126_spill] sm:$0xff]  ;;  %v2065_v61 = vsel %vm528_vm0, %v9781_v43, %v16322_v1 }
 0x342   : > { %8382 = vmatmul.msk.f32.gmra.mxu0 %vm2314_vm9, %v2280_v8  ;;  %8392 = vmatmul.msk.f32.gmra.mxu1 %vm2314_vm9, %v2290_v32  ;;  %v2281_v20 = vsel %vm2268_vm7, %v2248_v27, %v11460_v18  ;;  %v16284_v18 = vld [vmem:[#allocation77_spill] sm:$0xff]  ;;  %v2193_v15 = vsel %vm2169_vm4, %v2160_v24, %v16291_v53  ;;  %v1990_v8 = vpop.permute.xlu1 %1989  ;;  %v16292_v32 = vld [vmem:[#allocation140_spill] sm:$0xff]  ;;  %607 = vst.msk [vmem:[#allocation3 + $0xb9] sm:$0x1] %vm581_vm10, %v16255_v25  ;;  %v16344_v43 = vld [vmem:[#allocation38_spill] sm:$0xff] }
 0x343   : > { %8402 = vmatmul.msk.f32.vlgmr.msra.gmra.mxu3 %vm2314_vm9, %v2300_v41  ;;  %v2084_v45 = vsel %vm573_vm2, %v2052_v44, %v16284_v18  ;;  %v2226_v21 = vsel %vm2202_vm6, %v2193_v15, %v16293_v2  ;;  %608 = vst.msk [vmem:[#allocation3 + $0xd1] sm:$0x1] %vm581_vm10, %v16255_v25  ;;  %v9780_v24 = vld [vmem:[#allocation2 + $0x128] sm:$0xff] }
 0x344   : > { %v2117_v62 = vsel %vm2103_vm3, %v2084_v45, %v16286_v7  ;;  %v2259_v57 = vsel %vm2235_vm8, %v2226_v21, %v16294_v52  ;;  %609 = vst.msk [vmem:[#allocation3 + $0xe9] sm:$0x1] %vm581_vm10, %v16255_v25  ;;  %v16308_v45 = vld [vmem:[#allocation163_spill] sm:$0xff]  ;;  %v16313_v53 = vld [vmem:[#allocation104_spill] sm:$0xff]  ;;  %v16316_v21 = vld [vmem:[#allocation45_spill] sm:$0xff] }
 0x345   : > { %v2150_v22 = vsel %vm2136_vm5, %v2117_v62, %v16289_v6  ;;  %v2292_v54 = vsel %vm2268_vm7, %v2259_v57, %v1990_v8  ;;  %610 = vst.msk [vmem:[#allocation3 + $0x101] sm:$0x1] %vm581_vm10, %v16255_v25  ;;  %v16310_v6 = vld [vmem:[#allocation47_spill] sm:$0xff]  ;;  %v16314_v8 = vld [vmem:[#allocation105_spill] sm:$0xff]  ;;  %v16317_v57 = vld [vmem:[#allocation64_spill] sm:$0xff] }
 0x346   : > { %v2183_v30 = vsel %vm2169_vm4, %v2150_v22, %v16290_v4  ;;  %611 = vst.msk [vmem:[#allocation3 + $0x119] sm:$0x1] %vm581_vm10, %v16255_v25  ;;  %v2064_v22 = vsel %vm528_vm0, %v9780_v24, %v16310_v6  ;;  %v16312_v4 = vld [vmem:[#allocation91_spill] sm:$0xff]  ;;  %v16335_v6 = vld [vmem:[#allocation14_spill] sm:$0xff] }
 0x347   : > { %v2216_v41 = vsel %vm2202_vm6, %v2183_v30, %v16292_v32  ;;  %612 = vst.msk [vmem:[#allocation3 + $0x131] sm:$0x1] %vm581_vm10, %v16255_v25  ;;  %v2096_v30 = vsel %vm573_vm2, %v2064_v22, %v16312_v4  ;;  %v9783_v4 = vld [vmem:[#allocation2 + $0x150] sm:$0xff] }
 0x348   : > { %v2249_v12 = vsel %vm2235_vm8, %v2216_v41, %v16295_v48  ;;  %613 = vst.msk [vmem:[#allocation3 + $0x149] sm:$0x1] %vm581_vm10, %v16255_v25  ;;  %v2129_v15 = vsel %vm2103_vm3, %v2096_v30, %v16313_v53  ;;  %v16315_v41 = vld [vmem:[#allocation124_spill] sm:$0xff] }
 0x349   : > { %v2282_v26 = vsel %vm2268_vm7, %v2249_v12, %v11453_v50  ;;  %v16298_v50 = vld [vmem:[#allocation80_spill] sm:$0xff]  ;;  %614 = vst.msk [vmem:[#allocation3 + $0x161] sm:$0x1] %vm581_vm10, %v16255_v25  ;;  %v2162_v52 = vsel %vm2136_vm5, %v2129_v15, %v16316_v21  ;;  %v16318_v12 = vld [vmem:[#allocation134_spill] sm:$0xff] }
 0x34a   : > { %8383 = vmatmul.msk.f32.gmra.mxu0 %vm2314_vm9, %v2281_v20  ;;  %8393 = vmatmul.msk.f32.gmra.mxu1 %vm2314_vm9, %v2291_v39  ;;  %v2095_v56 = vsel %vm573_vm2, %v2063_v35, %v16298_v50  ;;  %v16305_v39 = vld [vmem:[#allocation128_spill] sm:$0xff]  ;;  %615 = vst.msk [vmem:[#allocation3 + $0x179] sm:$0x1] %vm581_vm10, %v16255_v25  ;;  %v2621_v21 = vld [vmem:[#allocation3 + $0x1] sm:$0xff] }
 0x34b   : > { %v2128_v9 = vsel %vm2103_vm3, %v2095_v56, %v16301_v29  ;;  %v2184_v51 = vsel %vm2169_vm4, %v2151_v14, %v16305_v39  ;;  %616 = vst.msk [vmem:[#allocation3 + $0x191] sm:$0x1] %vm581_vm10, %v16255_v25  ;;  %v16325_v29 = vld [vmem:[#allocation36_spill] sm:$0xff]  ;;  %v1996_v14 = vpop.permute.xlu1 %1995 }
 0x34c   : > { %v2161_v42 = vsel %vm2136_vm5, %v2128_v9, %v16303_v40  ;;  %v2217_v19 = vsel %vm2202_vm6, %v2184_v51, %v16306_v31  ;;  %617 = vst.msk [vmem:[#allocation3 + $0x1a9] sm:$0x1] %vm581_vm10, %v16255_v25  ;;  %v16327_v40 = vld [vmem:[#allocation157_spill] sm:$0xff]  ;;  %v4018_v39 = vld [vmem:[%s11925_s21 + $0x88] sm:$0xff]  ;;  %v9782_v51 = vld [vmem:[#allocation2 + $0x140] sm:$0xff] }
 0x34d   : > { %v2194_v20 = vsel %vm2169_vm4, %v2161_v42, %v16304_v46  ;;  %v2250_v3 = vsel %vm2235_vm8, %v2217_v19, %v16308_v45  ;;  %625 = vst.msk [vmem:[#allocation4] sm:$0x1] %vm581_vm10, %v16255_v25  ;;  %4246 = vmatpush.msra.mxu2 %v4018_v39  ;;  %v16330_v19 = vld [vmem:[#allocation83_spill] sm:$0xff]  ;;  %8558 = vmatpush.msrb.mxu3 %v4018_v39  ;;  %v16336_v30 = vld [vmem:[#allocation52_spill] sm:$0xff] }
 0x34e   : > { %v2227_v44 = vsel %vm2202_vm6, %v2194_v20, %v16307_v47  ;;  %v2283_v7 = vsel %vm2268_vm7, %v2250_v3, %v11479_v23  ;;  %626 = vst.msk [vmem:[#allocation4 + $0x18] sm:$0x1] %vm581_vm10, %v16255_v25  ;;  %v16332_v3 = vld [vmem:[#allocation49_spill] sm:$0xff]  ;;  %v2067_v53 = vsel %vm528_vm0, %v9783_v4, %v16336_v30  ;;  %v16350_v39 = vld [vmem:[#allocation172_spill] sm:$0xff] }
 0x34f   : > { %v2260_v58 = vsel %vm2235_vm8, %v2227_v44, %v11353_v11  ;;  %v16311_v11 = vld [vmem:[#allocation65_spill] sm:$0xff]  ;;  %627 = vst.msk [vmem:[#allocation4 + $0x30] sm:$0x1] %vm581_vm10, %v16255_v25  ;;  %v4017_v44 = vld [vmem:[%s11925_s21 + $0x80] sm:$0xff] }
 0x350   : > { %v2293_v62 = vsel %vm2268_vm7, %v2260_v58, %v1992_v60  ;;  %v2086_v23 = vsel %vm573_vm2, %v2054_v55, %v16311_v11  ;;  %628 = vst.msk [vmem:[#allocation4 + $0x48] sm:$0x1] %vm581_vm10, %v16255_v25  ;;  %v16329_v60 = vld [vmem:[#allocation48_spill] sm:$0xff]  ;;  %4247 = vmatpush.msra.mxu2 %v4017_v44  ;;  %8559 = vmatpush.msrb.mxu3 %v4017_v44 }
 0x351   : > { %v2119_v32 = vsel %vm2103_vm3, %v2086_v23, %v16314_v8  ;;  %629 = vst.msk [vmem:[#allocation4 + $0x60] sm:$0x1] %vm581_vm10, %v16255_v25  ;;  %v2066_v31 = vsel %vm528_vm0, %v9782_v51, %v16329_v60  ;;  %v16337_v8 = vld [vmem:[#allocation93_spill] sm:$0xff] }
 0x352   : > { %8384 = vmatmul.msk.f32.gmra.mxu0 %vm2314_vm9, %v2282_v26  ;;  %8394 = vmatmul.msk.f32.gmra.mxu1 %vm2314_vm9, %v2292_v54  ;;  %v2152_v2 = vsel %vm2136_vm5, %v2119_v32, %v16315_v41  ;;  %v2195_v26 = vsel %vm2169_vm4, %v2162_v52, %v16318_v12  ;;  %v16319_v54 = vld [vmem:[#allocation148_spill] sm:$0xff]  ;;  %630 = vst.msk [vmem:[#allocation4 + $0x78] sm:$0x1] %vm581_vm10, %v16255_v25  ;;  %v16338_v41 = vld [vmem:[#allocation106_spill] sm:$0xff] }
 0x353   : > { %v2185_v48 = vsel %vm2169_vm4, %v2152_v2, %v16317_v57  ;;  %v2228_v34 = vsel %vm2202_vm6, %v2195_v26, %v16319_v54  ;;  %631 = vst.msk [vmem:[#allocation4 + $0x90] sm:$0x1] %vm581_vm10, %v16255_v25  ;;  %v2098_v47 = vsel %vm573_vm2, %v2066_v31, %v16330_v19  ;;  %v2099_v32 = vsel %vm573_vm2, %v2067_v53, %v16337_v8  ;;  %v2622_v52 = vld [vmem:[#allocation3 + $0x9] sm:$0xff]  ;;  %v16340_v26 = vld [vmem:[#allocation136_spill] sm:$0xff] }
 0x354   : > { %v2218_v17 = vsel %vm2202_vm6, %v2185_v48, %v16320_v10  ;;  %v2261_v35 = vsel %vm2235_vm8, %v2228_v34, %v11355_v37  ;;  %v16323_v37 = vld [vmem:[#allocation92_spill] sm:$0xff]  ;;  %632 = vst.msk [vmem:[#allocation4 + $0xa8] sm:$0x1] %vm581_vm10, %v16255_v25  ;;  %v2132_v2 = vsel %vm2103_vm3, %v2099_v32, %v16338_v41  ;;  %v16339_v57 = vld [vmem:[#allocation50_spill] sm:$0xff]  ;;  %v8646_v12 = vpack.i.bf16 %v2622_v52, %v2621_v21 }
 0x355   : > { %v2428_v28 = vpop.f32.mrf.mxu0  ;;  %v2251_v33 = vsel %vm2235_vm8, %v2218_v17, %v16321_v0  ;;  %v2294_v56 = vsel %vm2268_vm7, %v2261_v35, %v11591_v13  ;;  %v16324_v13 = vld [vmem:[#allocation112_spill] sm:$0xff]  ;;  %633 = vst.msk [vmem:[#allocation4 + $0xc0] sm:$0x1] %vm581_vm10, %v16255_v25  ;;  %v2165_v48 = vsel %vm2136_vm5, %v2132_v2, %v16339_v57  ;;  %v16341_v34 = vld [vmem:[#allocation150_spill] sm:$0xff]  ;;  %v16343_v0 = vld [vmem:[#allocation41_spill] sm:$0xff] }
 0x356   : > { %v2429_v27 = vadd.f32 %v11793_v59, %v2428_v28  ;;  %v2284_v50 = vsel %vm2268_vm7, %v2251_v33, %v11505_v16  ;;  %v2097_v16 = vsel %vm573_vm2, %v2065_v61, %v16323_v37  ;;  %v16326_v28 = vld [vmem:[#allocation135_spill] sm:$0xff]  ;;  %634 = vst.msk [vmem:[#allocation4 + $0xd8] sm:$0x1] %vm581_vm10, %v16255_v25  ;;  %v2198_v54 = vsel %vm2169_vm4, %v2165_v48, %v16340_v26  ;;  %v16345_v37 = vld [vmem:[#allocation94_spill] sm:$0xff]  ;;  %v9785_v19 = vld [vmem:[#allocation2 + $0x168] sm:$0xff] }
 0x357   : > { %v2130_v49 = vsel %vm2103_vm3, %v2097_v16, %v16324_v13  ;;  %635 = vst.msk [vmem:[#allocation4 + $0xf0] sm:$0x1] %vm581_vm10, %v16255_v25  ;;  %v2231_v10 = vsel %vm2202_vm6, %v2198_v54, %v16341_v34  ;;  %8647 = vrot.lane.b32.xlu1 %v8646_v12, %s16342_s29 }
 0x358   : > { %v2524_v18 = vmax.f32 %v2429_v27, 0.0  ;;  %v2163_v9 = vsel %vm2136_vm5, %v2130_v49, %v16325_v29  ;;  %v16328_v27 = vld [vmem:[#allocation171_spill] sm:$0xff]  ;;  %636 = vst.msk [vmem:[#allocation4 + $0x108] sm:$0x1] %vm581_vm10, %v16255_v25  ;;  %v2264_v33 = vsel %vm2235_vm8, %v2231_v10, %v16343_v0 }
 0x359   : > { %v2196_v5 = vsel %vm2169_vm4, %v2163_v9, %v16326_v28  ;;  %637 = vst.msk [vmem:[#allocation4 + $0x120] sm:$0x1] %vm581_vm10, %v16255_v25  ;;  %v16347_v28 = vld [vmem:[#allocation35_spill] sm:$0xff] }
 0x35a   : > { %2557 = vst.msk [vmem:[#allocation3 + $0x19] sm:$0xff] %vm573_vm2, %v2524_v18  ;;  %8385 = vmatmul.msk.f32.gmra.mxu0 %vm2314_vm9, %v2283_v7  ;;  %8395 = vmatmul.msk.f32.gmra.mxu1 %vm2314_vm9, %v2293_v62  ;;  %v2229_v42 = vsel %vm2202_vm6, %v2196_v5, %v16327_v40  ;;  %v16331_v18 = vld [vmem:[#allocation113_spill] sm:$0xff] }
 0x35b   : > { %v2262_v46 = vsel %vm2235_vm8, %v2229_v42, %v16328_v27  ;;  %v2131_v45 = vsel %vm2103_vm3, %v2098_v47, %v16331_v18  ;;  %638 = vst.msk [vmem:[#allocation4 + $0x138] sm:$0x1] %vm581_vm10, %v16255_v25  ;;  %v16333_v7 = vld [vmem:[#allocation129_spill] sm:$0xff]  ;;  %v2002_v42 = vpop.permute.xlu1 %2001  ;;  %v16349_v27 = vld [vmem:[#allocation159_spill] sm:$0xff] }
 0x35c   : > { %v2295_v20 = vsel %vm2268_vm7, %v2262_v46, %v1996_v14  ;;  %v2164_v58 = vsel %vm2136_vm5, %v2131_v45, %v16332_v3  ;;  %639 = vst.msk [vmem:[#allocation4 + $0x150] sm:$0x1] %vm581_vm10, %v16255_v25  ;;  %v16348_v14 = vld [vmem:[#allocation137_spill] sm:$0xff]  ;;  %v16352_v45 = vld [vmem:[#allocation87_spill] sm:$0xff] }
 0x35d   : > { %v2197_v62 = vsel %vm2169_vm4, %v2164_v58, %v16333_v7  ;;  %640 = vst.msk [vmem:[#allocation4 + $0x168] sm:$0x1] %vm581_vm10, %v16255_v25  ;;  %v16351_v47 = vld [vmem:[#allocation53_spill] sm:$0xff]  ;;  %v16353_v58 = vld [vmem:[#allocation116_spill] sm:$0xff] }
 0x35e   : > { %v2230_v55 = vsel %vm2202_vm6, %v2197_v62, %v16334_v63  ;;  %641 = vst.msk [vmem:[#allocation4 + $0x180] sm:$0x1] %vm581_vm10, %v16255_v25  ;;  %v2069_v44 = vsel %vm528_vm0, %v9785_v19, %v16351_v47  ;;  %v16354_v62 = vld [vmem:[#allocation54_spill] sm:$0xff] }
 0x35f   : > { %v2263_v22 = vsel %vm2235_vm8, %v2230_v55, %v16335_v6  ;;  %642 = vst.msk [vmem:[#allocation4 + $0x198] sm:$0x1] %vm581_vm10, %v16255_v25  ;;  %v2101_v3 = vsel %vm573_vm2, %v2069_v44, %v16352_v45  ;;  %v16355_v63 = vld [vmem:[#allocation130_spill] sm:$0xff]  ;;  %v16356_v6 = vld [vmem:[#allocation161_spill] sm:$0xff] }
 0x360   : > { %v2296_v23 = vsel %vm2268_vm7, %v2263_v22, %v1998_v38  ;;  %643 = vst.msk [vmem:[#allocation4 + $0x11] sm:$0x1] %vm581_vm10, %v16255_v25  ;;  %v2134_v7 = vsel %vm2103_vm3, %v2101_v3, %v16353_v58 }
 0x361   : > { %644 = vst.msk [vmem:[#allocation4 + $0x29] sm:$0x1] %vm581_vm10, %v16255_v25  ;;  %v2623_v13 = vld [vmem:[#allocation3 + $0x19] sm:$0xff]  ;;  %v2167_v38 = vsel %vm2136_vm5, %v2134_v7, %v16354_v62 }
 0x362   : > { %8386 = vmatmul.msk.f32.gmra.mxu0 %vm2314_vm9, %v2284_v50  ;;  %8396 = vmatmul.msk.f32.gmra.mxu1 %vm2314_vm9, %v2294_v56  ;;  %645 = vst.msk [vmem:[#allocation4 + $0x41] sm:$0x1] %vm581_vm10, %v16255_v25  ;;  %v2297_v50 = vsel %vm2268_vm7, %v2264_v33, %v11626_v36  ;;  %v9784_v56 = vld [vmem:[#allocation2 + $0x158] sm:$0xff]  ;;  %v2200_v55 = vsel %vm2169_vm4, %v2167_v38, %v16355_v63 }
 0x363   : > { %646 = vst.msk [vmem:[#allocation4 + $0x59] sm:$0x1] %vm581_vm10, %v16255_v25  ;;  %v2068_v1 = vsel %vm528_vm0, %v9784_v56, %v16344_v43  ;;  %v16346_v36 = vld [vmem:[#allocation114_spill] sm:$0xff]  ;;  %v2233_v22 = vsel %vm2202_vm6, %v2200_v55, %v16356_v6 }
 0x364   : > { %647 = vst.msk [vmem:[#allocation4 + $0x71] sm:$0x1] %vm581_vm10, %v16255_v25  ;;  %v2100_v16 = vsel %vm573_vm2, %v2068_v1, %v16345_v37 }
 0x365   : > { %648 = vst.msk [vmem:[#allocation4 + $0x89] sm:$0x1] %vm581_vm10, %v16255_v25  ;;  %v2133_v29 = vsel %vm2103_vm3, %v2100_v16, %v16346_v36 }
 0x366   : > { %649 = vst.msk [vmem:[#allocation4 + $0xa1] sm:$0x1] %vm581_vm10, %v16255_v25  ;;  %v2166_v5 = vsel %vm2136_vm5, %v2133_v29, %v16347_v28 }
 0x367   : > { %650 = vst.msk [vmem:[#allocation4 + $0xb9] sm:$0x1] %vm581_vm10, %v16255_v25  ;;  %v2199_v40 = vsel %vm2169_vm4, %v2166_v5, %v16348_v14 }
 0x368   : > { %651 = vst.msk [vmem:[#allocation4 + $0xd1] sm:$0x1] %vm581_vm10, %v16255_v25  ;;  %v2232_v46 = vsel %vm2202_vm6, %v2199_v40, %v16349_v27 }
 0x369   : > { %652 = vst.msk [vmem:[#allocation4 + $0xe9] sm:$0x1] %vm581_vm10, %v16255_v25  ;;  %v2265_v51 = vsel %vm2235_vm8, %v2232_v46, %v16350_v39 }
 0x36a   : > { %8397 = vmatmul.msk.f32.gmra.mxu1 %vm2314_vm9, %v2295_v20  ;;  %653 = vst.msk [vmem:[#allocation4 + $0x101] sm:$0x1] %vm581_vm10, %v16255_v25  ;;  %v2298_v31 = vsel %vm2268_vm7, %v2265_v51, %v2002_v42 }
 0x36b   : > { %654 = vst.msk [vmem:[#allocation4 + $0x119] sm:$0x1] %vm581_vm10, %v16255_v25 }
 0x36c   : > { %655 = vst.msk [vmem:[#allocation4 + $0x131] sm:$0x1] %vm581_vm10, %v16255_v25 }
 0x36d   : > { %656 = vst.msk [vmem:[#allocation4 + $0x149] sm:$0x1] %vm581_vm10, %v16255_v25 }
 0x36e   : > { %657 = vst.msk [vmem:[#allocation4 + $0x161] sm:$0x1] %vm581_vm10, %v16255_v25 }
 0x36f   : > { %v2431_v24 = vpop.f32.mrf.mxu0  ;;  %658 = vst.msk [vmem:[#allocation4 + $0x179] sm:$0x1] %vm581_vm10, %v16255_v25 }
 0x370   : > { %v2432_v11 = vadd.f32 %v11793_v59, %v2431_v24  ;;  %659 = vst.msk [vmem:[#allocation4 + $0x191] sm:$0x1] %vm581_vm10, %v16255_v25  ;;  %v2004_v24 = vpop.permute.xlu2 %2003 }
 0x371   : > { %660 = vst.msk [vmem:[#allocation4 + $0x1a9] sm:$0x1] %vm581_vm10, %v16255_v25 }
 0x372   : > { %v2525_v15 = vmax.f32 %v2432_v11, 0.0  ;;  %8398 = vmatmul.msk.f32.gmra.mxu1 %vm2314_vm9, %v2296_v23  ;;  %v16357_v23 = vld [vmem:[#allocation173_spill] sm:$0xff] }
 0x373   : > { %v2266_v4 = vsel %vm2235_vm8, %v2233_v22, %v16357_v23 }
 0x374   : > { %2558 = vst.msk [vmem:[#allocation3 + $0x21] sm:$0xff] %vm573_vm2, %v2525_v15  ;;  %v2299_v53 = vsel %vm2268_vm7, %v2266_v4, %v2004_v24 }
 0x377   : > { %v2434_v17 = vpop.f32.mrf.mxu0 }
 0x378   : > { %v2435_v35 = vadd.f32 %v11793_v59, %v2434_v17 }
 0x37a   : > { %v2526_v61 = vmax.f32 %v2435_v35, 0.0  ;;  %8399 = vmatmul.msk.f32.gmra.mxu1 %vm2314_vm9, %v2297_v50 }
 0x37b   : > { %v2624_v49 = vld [vmem:[#allocation3 + $0x21] sm:$0xff] }
 0x37c   : > { %2559 = vst.msk [vmem:[#allocation3 + $0x31] sm:$0xff] %vm573_vm2, %v2526_v61  ;;  %v8651_v9 = vpack.i.bf16 %v2624_v49, %v2623_v13 }
 0x37e   : > { %8652 = vrot.lane.b32.xlu2 %v8651_v9, %s16342_s29 }
 0x37f   : > { %v2437_v20 = vpop.f32.mrf.mxu0 }
 0x380   : > { %v2438_v60 = vadd.f32 %v11793_v59, %v2437_v20 }
 0x382   : > { %v2527_v18 = vmax.f32 %v2438_v60, 0.0  ;;  %8400 = vmatmul.msk.f32.gmra.mxu1 %vm2314_vm9, %v2298_v31 }
 0x383   : > { %v2625_v8 = vld [vmem:[#allocation3 + $0x31] sm:$0xff] }
 0x384   : > { %2560 = vst.msk [vmem:[#allocation3 + $0x39] sm:$0xff] %vm573_vm2, %v2527_v18 }
 0x387   : > { %v2440_v11 = vpop.f32.mrf.mxu0 }
 0x388   : > { %v2441_v30 = vadd.f32 %v11793_v59, %v2440_v11 }
 0x38a   : > { %v2528_v15 = vmax.f32 %v2441_v30, 0.0  ;;  %8401 = vmatmul.msk.f32.gmra.mxu1 %vm2314_vm9, %v2299_v53 }
 0x38b   : > { %v12069_v32 = vld [vmem:[#allocation3 + $0x32] sm:$0xff]  ;;  %v12071_v2 = vld [vmem:[#allocation3 + $0x3a] sm:$0xff] }
 0x38c   : > { %v2626_v41 = vld [vmem:[#allocation3 + $0x39] sm:$0xff]  ;;  %2561 = vst.msk [vmem:[#allocation3 + $0x49] sm:$0xff] %vm573_vm2, %v2528_v15  ;;  %8403 = vmatmul.msk.f32.vlgmr.msra.gmra.mxu2 %vm573_vm2, %v12069_v32  ;;  %v8736_v21 = vpack.i.bf16 %v12071_v2, %v12069_v32 }
 0x38d   : > { %v12076_v25 = vpack.i.bf16 %v2626_v41, %v2625_v8 }
 0x38f   : > { %8657 = vrot.lane.b32.xlu0 %v12076_v25, %s16342_s29  ;;  %v2443_v52 = vpop.f32.mrf.mxu0 }
 0x390   : > { %v2444_v57 = vadd.f32 %v11793_v59, %v2443_v52 }
 0x392   : > { %v2529_v48 = vmax.f32 %v2444_v57, 0.0 }
 0x393   : > { %v2627_v0 = vld [vmem:[#allocation3 + $0x49] sm:$0xff] }
 0x394   : > { %2562 = vst.msk [vmem:[#allocation3 + $0x51] sm:$0xff] %vm573_vm2, %v2529_v48  ;;  %8404 = vmatmul.msk.f32.gmra.mxu2 %vm573_vm2, %v12071_v2  ;;  %v2595_v2 = vld [vmem:[#allocation3 + $0x48] sm:$0xff] }
 0x397   : > { %v2446_v12 = vpop.f32.mrf.mxu0  ;;  %v2476_v26 = vpop.f32.mrf.mxu1 }
 0x398   : > { %v2447_v54 = vadd.f32 %v11793_v59, %v2446_v12  ;;  %v2477_v34 = vadd.f32 %v11793_v59, %v2476_v26 }
 0x39a   : > { %v2530_v10 = vmax.f32 %v2447_v54, 0.0  ;;  %v2540_v17 = vmax.f32 %v2477_v34, 0.0 }
 0x39b   : > { %v12088_v33 = vld [vmem:[#allocation3 + $0x4a] sm:$0xff]  ;;  %v12090_v50 = vld [vmem:[#allocation3 + $0x52] sm:$0xff] }
 0x39c   : > { %v2628_v35 = vld [vmem:[#allocation3 + $0x51] sm:$0xff]  ;;  %2563 = vst.msk [vmem:[#allocation3 + $0x61] sm:$0xff] %vm573_vm2, %v2530_v10  ;;  %8405 = vmatmul.msk.f32.gmra.mxu2 %vm573_vm2, %v12088_v33  ;;  %v8741_v43 = vpack.i.bf16 %v12090_v50, %v12088_v33 }
 0x39d   : > { %v12095_v56 = vpack.i.bf16 %v2628_v35, %v2627_v0  ;;  %2573 = vst.msk [vmem:[#allocation3 + $0xd9] sm:$0xff] %vm573_vm2, %v2540_v17  ;;  %v2596_v32 = vld [vmem:[#allocation3 + $0x50] sm:$0xff] }
 0x39f   : > { %8662 = vrot.lane.b32.xlu1 %v12095_v56, %s16342_s29  ;;  %v2449_v1 = vpop.f32.mrf.mxu0  ;;  %v2479_v61 = vpop.f32.mrf.mxu1 }
 0x3a0   : > { %v2450_v37 = vadd.f32 %v11793_v59, %v2449_v1  ;;  %v2480_v16 = vadd.f32 %v11793_v59, %v2479_v61 }
 0x3a2   : > { %v2531_v13 = vmax.f32 %v2450_v37, 0.0  ;;  %v2541_v49 = vmax.f32 %v2480_v16, 0.0 }
 0x3a3   : > { %v2629_v40 = vld [vmem:[#allocation3 + $0x61] sm:$0xff] }
 0x3a4   : > { %2564 = vst.msk [vmem:[#allocation3 + $0x69] sm:$0xff] %vm573_vm2, %v2531_v13  ;;  %8406 = vmatmul.msk.f32.gmra.mxu2 %vm573_vm2, %v12090_v50 }
 0x3a5   : > { %2574 = vst.msk [vmem:[#allocation3 + $0xe1] sm:$0xff] %vm573_vm2, %v2541_v49 }
 0x3a7   : > { %v2452_v36 = vpop.f32.mrf.mxu0  ;;  %v2482_v29 = vpop.f32.mrf.mxu1 }
 0x3a8   : > { %v2453_v9 = vadd.f32 %v11793_v59, %v2452_v36  ;;  %v2483_v28 = vadd.f32 %v11793_v59, %v2482_v29 }
 0x3aa   : > { %v2532_v5 = vmax.f32 %v2453_v9, 0.0  ;;  %v2542_v14 = vmax.f32 %v2483_v28, 0.0 }
 0x3ab   : > { %v12110_v42 = vld [vmem:[#allocation3 + $0x62] sm:$0xff]  ;;  %v12112_v46 = vld [vmem:[#allocation3 + $0x6a] sm:$0xff] }
 0x3ac   : > { %v2630_v27 = vld [vmem:[#allocation3 + $0x69] sm:$0xff]  ;;  %2565 = vst.msk [vmem:[#allocation3 + $0x79] sm:$0xff] %vm573_vm2, %v2532_v5  ;;  %8407 = vmatmul.msk.f32.gmra.mxu2 %vm573_vm2, %v12110_v42  ;;  %v8746_v39 = vpack.i.bf16 %v12112_v46, %v12110_v42  ;;  %v2640_v29 = vld [vmem:[#allocation3 + $0xe1] sm:$0xff] }
 0x3ad   : > { %v12117_v20 = vpack.i.bf16 %v2630_v27, %v2629_v40  ;;  %2575 = vst.msk [vmem:[#allocation3 + $0xf1] sm:$0xff] %vm573_vm2, %v2542_v14  ;;  %v2639_v14 = vld [vmem:[#allocation3 + $0xd9] sm:$0xff] }
 0x3ae   : > { %v12181_v40 = vpack.i.bf16 %v2640_v29, %v2639_v14  ;;  %v2654_v14 = vld [vmem:[#allocation3 + $0xa] sm:$0xff] }
 0x3af   : > { %8667 = vrot.lane.b32.xlu2 %v12117_v20, %s16342_s29  ;;  %v2455_v51 = vpop.f32.mrf.mxu0  ;;  %v2485_v60 = vpop.f32.mrf.mxu1 }
 0x3b0   : > { %v2456_v31 = vadd.f32 %v11793_v59, %v2455_v51  ;;  %v2486_v19 = vadd.f32 %v11793_v59, %v2485_v60 }
 0x3b2   : > { %v2533_v47 = vmax.f32 %v2456_v31, 0.0  ;;  %v2543_v44 = vmax.f32 %v2486_v19, 0.0 }
 0x3b3   : > { %v2631_v38 = vld [vmem:[#allocation3 + $0x79] sm:$0xff] }
 0x3b4   : > { %2566 = vst.msk [vmem:[#allocation3 + $0x81] sm:$0xff] %vm573_vm2, %v2533_v47  ;;  %8408 = vmatmul.msk.f32.gmra.mxu2 %vm573_vm2, %v12112_v46 }
 0x3b5   : > { %2576 = vst.msk [vmem:[#allocation3 + $0xf9] sm:$0xff] %vm573_vm2, %v2543_v44 }
 0x3b7   : > { %v2458_v18 = vpop.f32.mrf.mxu0  ;;  %v2488_v45 = vpop.f32.mrf.mxu1 }
 0x3b8   : > { %v2459_v3 = vadd.f32 %v11793_v59, %v2458_v18  ;;  %v2489_v58 = vadd.f32 %v11793_v59, %v2488_v45 }
 0x3ba   : > { %v2534_v7 = vmax.f32 %v2459_v3, 0.0  ;;  %v2544_v62 = vmax.f32 %v2489_v58, 0.0 }
 0x3bb   : > { %v12132_v63 = vld [vmem:[#allocation3 + $0x7a] sm:$0xff]  ;;  %v12134_v24 = vld [vmem:[#allocation3 + $0x82] sm:$0xff] }
 0x3bc   : > { %v2632_v55 = vld [vmem:[#allocation3 + $0x81] sm:$0xff]  ;;  %2567 = vst.msk [vmem:[#allocation3 + $0x91] sm:$0xff] %vm573_vm2, %v2534_v7  ;;  %8409 = vmatmul.msk.f32.gmra.mxu2 %vm573_vm2, %v12132_v63  ;;  %v8751_v22 = vpack.i.bf16 %v12134_v24, %v12132_v63  ;;  %v12347_v63 = vpack.i.bf16 %v2596_v32, %v2595_v2 }
 0x3bd   : > { %v12139_v6 = vpack.i.bf16 %v2632_v55, %v2631_v38  ;;  %2577 = vst.msk [vmem:[#allocation3 + $0x109] sm:$0xff] %vm573_vm2, %v2544_v62 }
 0x3bf   : > { %8672 = vrot.lane.b32.xlu0 %v12139_v6, %s16342_s29  ;;  %v2461_v11 = vpop.f32.mrf.mxu0  ;;  %v2491_v23 = vpop.f32.mrf.mxu1 }
 0x3c0   : > { %v2462_v4 = vadd.f32 %v11793_v59, %v2461_v11  ;;  %v2492_v30 = vadd.f32 %v11793_v59, %v2491_v23 }
 0x3c2   : > { %v2535_v53 = vmax.f32 %v2462_v4, 0.0  ;;  %v2545_v15 = vmax.f32 %v2492_v30, 0.0  ;;  %v2642_v30 = vld [vmem:[#allocation3 + $0xf9] sm:$0xff] }
 0x3c3   : > { %v2633_v17 = vld [vmem:[#allocation3 + $0x91] sm:$0xff] }
 0x3c4   : > { %2568 = vst.msk [vmem:[#allocation3 + $0x99] sm:$0xff] %vm573_vm2, %v2535_v53  ;;  %8410 = vmatmul.msk.f32.gmra.mxu2 %vm573_vm2, %v12134_v24 }
 0x3c5   : > { %2578 = vst.msk [vmem:[#allocation3 + $0x111] sm:$0xff] %vm573_vm2, %v2545_v15 }
 0x3c6   : > { %v2521_v8 = vpop.f32.mrf.mxu3 }
 0x3c7   : > { %v2522_v41 = vadd.f32 %v11793_v59, %v2521_v8  ;;  %v2464_v52 = vpop.f32.mrf.mxu0  ;;  %v2494_v57 = vpop.f32.mrf.mxu1 }
 0x3c8   : > { %v2465_v48 = vadd.f32 %v11793_v59, %v2464_v52  ;;  %v2495_v12 = vadd.f32 %v11793_v59, %v2494_v57 }
 0x3c9   : > { %v2555_v26 = vmax.f32 %v2522_v41, 0.0  ;;  %v2641_v41 = vld [vmem:[#allocation3 + $0xf1] sm:$0xff] }
 0x3ca   : > { %v2536_v54 = vmax.f32 %v2465_v48, 0.0  ;;  %v2546_v34 = vmax.f32 %v2495_v12, 0.0  ;;  %v12217_v57 = vpack.i.bf16 %v2642_v30, %v2641_v41  ;;  %v2655_v41 = vld [vmem:[#allocation3 + $0x1a] sm:$0xff] }
 0x3cb   : > { %2588 = vst.msk [vmem:[#allocation3 + $0x189] sm:$0xff] %vm573_vm2, %v2555_v26  ;;  %v12156_v10 = vld [vmem:[#allocation3 + $0x92] sm:$0xff]  ;;  %v12176_v5 = vld [vmem:[#allocation3 + $0x9a] sm:$0xff] }
 0x3cc   : > { %v2634_v0 = vld [vmem:[#allocation3 + $0x99] sm:$0xff]  ;;  %2569 = vst.msk [vmem:[#allocation3 + $0xa9] sm:$0xff] %vm573_vm2, %v2536_v54  ;;  %8411 = vmatmul.msk.f32.gmra.mxu2 %vm573_vm2, %v12156_v10  ;;  %v12161_v35 = vld [vmem:[#allocation3 + $0x10a] sm:$0xff]  ;;  %v8756_v33 = vpack.i.bf16 %v12176_v5, %v12156_v10 }
 0x3cd   : > { %v12163_v1 = vpack.i.bf16 %v2634_v0, %v2633_v17  ;;  %v12165_v61 = vld [vmem:[#allocation3 + $0x112] sm:$0xff]  ;;  %2579 = vst.msk [vmem:[#allocation3 + $0x121] sm:$0xff] %vm573_vm2, %v2546_v34  ;;  %8421 = vmatmul.msk.f32.vlgmr.msrb.gmra.mxu3 %vm573_vm2, %v12161_v35 }
 0x3ce   : > { %v8781_v37 = vpack.i.bf16 %v12165_v61, %v12161_v35 }
 0x3cf   : > { %8677 = vrot.lane.b32.xlu1 %v12163_v1, %s16342_s29  ;;  %v2467_v16 = vpop.f32.mrf.mxu0  ;;  %v2497_v13 = vpop.f32.mrf.mxu1 }
 0x3d0   : > { %v2468_v49 = vadd.f32 %v11793_v59, %v2467_v16  ;;  %v2498_v36 = vadd.f32 %v11793_v59, %v2497_v13 }
 0x3d2   : > { %v2537_v9 = vmax.f32 %v2468_v49, 0.0  ;;  %v2547_v28 = vmax.f32 %v2498_v36, 0.0 }
 0x3d3   : > { %v2635_v18 = vld [vmem:[#allocation3 + $0xa9] sm:$0xff] }
 0x3d4   : > { %2570 = vst.msk [vmem:[#allocation3 + $0xb1] sm:$0xff] %vm573_vm2, %v2537_v9  ;;  %8412 = vmatmul.msk.f32.gmra.mxu2 %vm573_vm2, %v12176_v5  ;;  %v2645_v7 = vld [vmem:[#allocation3 + $0x121] sm:$0xff] }
 0x3d5   : > { %2580 = vst.msk [vmem:[#allocation3 + $0x129] sm:$0xff] %vm573_vm2, %v2547_v28  ;;  %8422 = vmatmul.msk.f32.gmra.mxu3 %vm573_vm2, %v12165_v61  ;;  %v2653_v28 = vld [vmem:[#allocation3 + $0x2] sm:$0xff]  ;;  %v12390_v61 = vld [vmem:[#allocation3 + $0x38] sm:$0xff] }
 0x3d7   : > { %8692 = vrot.lane.b32.xlu1 %v12181_v40, %s16342_s29  ;;  %v2470_v27 = vpop.f32.mrf.mxu0  ;;  %v2500_v51 = vpop.f32.mrf.mxu1 }
 0x3d8   : > { %v2471_v60 = vadd.f32 %v11793_v59, %v2470_v27  ;;  %v2501_v31 = vadd.f32 %v11793_v59, %v2500_v51  ;;  %v2644_v27 = vld [vmem:[#allocation3 + $0x111] sm:$0xff]  ;;  %v12355_v24 = vpop.permute.xlu2 %8652 }
 0x3da   : > { %v2538_v19 = vmax.f32 %v2471_v60, 0.0  ;;  %v2548_v47 = vmax.f32 %v2501_v31, 0.0  ;;  %v8726_v31 = vpack.i.bf16 %v2654_v14, %v2653_v28 }
 0x3db   : > { %v12190_v44 = vld [vmem:[#allocation3 + $0xaa] sm:$0xff]  ;;  %v12210_v8 = vld [vmem:[#allocation3 + $0xb2] sm:$0xff] }
 0x3dc   : > { %v2636_v45 = vld [vmem:[#allocation3 + $0xb1] sm:$0xff]  ;;  %2571 = vst.msk [vmem:[#allocation3 + $0xc1] sm:$0xff] %vm573_vm2, %v2538_v19  ;;  %8413 = vmatmul.msk.f32.gmra.mxu2 %vm573_vm2, %v12190_v44  ;;  %v12195_v3 = vld [vmem:[#allocation3 + $0x122] sm:$0xff] }
 0x3dd   : > { %v12197_v58 = vpack.i.bf16 %v2636_v45, %v2635_v18  ;;  %v2646_v62 = vld [vmem:[#allocation3 + $0x129] sm:$0xff]  ;;  %2581 = vst.msk [vmem:[#allocation3 + $0x139] sm:$0xff] %vm573_vm2, %v2548_v47  ;;  %8423 = vmatmul.msk.f32.gmra.mxu3 %vm573_vm2, %v12195_v3 }
 0x3de   : > { %v12202_v38 = vpack.i.bf16 %v2646_v62, %v2645_v7  ;;  %v12215_v52 = vld [vmem:[#allocation3 + $0x12a] sm:$0xff] }
 0x3df   : > { %8682 = vrot.lane.b32.xlu2 %v12197_v58, %s16342_s29  ;;  %v2473_v55 = vpop.f32.mrf.mxu0  ;;  %v2503_v11 = vpop.f32.mrf.mxu1  ;;  %v2643_v19 = vld [vmem:[#allocation3 + $0x109] sm:$0xff]  ;;  %v8786_v42 = vpack.i.bf16 %v12215_v52, %v12195_v3 }
 0x3e0   : > { %8707 = vrot.lane.b32.xlu1 %v12202_v38, %s16342_s29  ;;  %v2474_v23 = vadd.f32 %v11793_v59, %v2473_v55  ;;  %v2504_v4 = vadd.f32 %v11793_v59, %v2503_v11  ;;  %v12250_v18 = vpack.i.bf16 %v2644_v27, %v2643_v19  ;;  %v2860_v55 = vld [vmem:[#allocation3 + $0xda] sm:$0xff]  ;;  %v12304_v27 = vld [vmem:[#allocation3 + $0x18a] sm:$0xff] }
 0x3e2   : > { %v2539_v53 = vmax.f32 %v2474_v23, 0.0  ;;  %v2549_v15 = vmax.f32 %v2504_v4, 0.0 }
 0x3e3   : > { %v2637_v34 = vld [vmem:[#allocation3 + $0xc1] sm:$0xff] }
 0x3e4   : > { %2572 = vst.msk [vmem:[#allocation3 + $0xc9] sm:$0xff] %vm573_vm2, %v2539_v53  ;;  %8414 = vmatmul.msk.f32.gmra.mxu2 %vm573_vm2, %v12210_v8  ;;  %v2647_v16 = vld [vmem:[#allocation3 + $0x139] sm:$0xff] }
 0x3e5   : > { %2582 = vst.msk [vmem:[#allocation3 + $0x141] sm:$0xff] %vm573_vm2, %v2549_v15  ;;  %8424 = vmatmul.msk.f32.gmra.mxu3 %vm573_vm2, %v12215_v52  ;;  %v12359_v52 = vld [vmem:[#allocation3 + $0x18] sm:$0xff] }
 0x3e7   : > { %8697 = vrot.lane.b32.xlu2 %v12217_v57, %s16342_s29  ;;  %v2506_v48 = vpop.f32.mrf.mxu1 }
 0x3e8   : > { %v2507_v12 = vadd.f32 %v11793_v59, %v2506_v48  ;;  %v2656_v48 = vld [vmem:[#allocation3 + $0x22] sm:$0xff] }
 0x3ea   : > { %v2550_v26 = vmax.f32 %v2507_v12, 0.0 }
 0x3eb   : > { %v12225_v54 = vld [vmem:[#allocation3 + $0xc2] sm:$0xff]  ;;  %v12243_v60 = vld [vmem:[#allocation3 + $0xca] sm:$0xff] }
 0x3ec   : > { %v2638_v17 = vld [vmem:[#allocation3 + $0xc9] sm:$0xff]  ;;  %2583 = vst.msk [vmem:[#allocation3 + $0x151] sm:$0xff] %vm573_vm2, %v2550_v26  ;;  %8415 = vmatmul.msk.f32.gmra.mxu2 %vm573_vm2, %v12225_v54  ;;  %v12230_v0 = vld [vmem:[#allocation3 + $0x13a] sm:$0xff] }
 0x3ed   : > { %v2648_v13 = vld [vmem:[#allocation3 + $0x141] sm:$0xff]  ;;  %v12232_v49 = vpack.i.bf16 %v2638_v17, %v2637_v34  ;;  %8425 = vmatmul.msk.f32.gmra.mxu3 %vm573_vm2, %v12230_v0  ;;  %v12277_v17 = vpack.i.bf16 %v2656_v48, %v2655_v41 }
 0x3ee   : > { %v12236_v36 = vpack.i.bf16 %v2648_v13, %v2647_v16  ;;  %v12248_v47 = vld [vmem:[#allocation3 + $0x142] sm:$0xff]  ;;  %v2862_v13 = vld [vmem:[#allocation3 + $0xf2] sm:$0xff] }
 0x3ef   : > { %8687 = vrot.lane.b32.xlu0 %v12232_v49, %s16342_s29  ;;  %v2509_v29 = vpop.f32.mrf.mxu1  ;;  %v2861_v26 = vld [vmem:[#allocation3 + $0xe2] sm:$0xff]  ;;  %v12343_v3 = vpack.i.bf16 %v12248_v47, %v12230_v0 }
 0x3f0   : > { %8712 = vrot.lane.b32.xlu2 %v12236_v36, %s16342_s29  ;;  %v2510_v9 = vadd.f32 %v11793_v59, %v2509_v29  ;;  %v12292_v10 = vpack.i.bf16 %v2861_v26, %v2860_v55  ;;  %v2603_v41 = vld [vmem:[#allocation3 + $0xa8] sm:$0xff]  ;;  %v2707_v48 = vld [vmem:[#allocation3 + $0x120] sm:$0xff] }
 0x3f1   : > { %v2700_v2 = vld [vmem:[#allocation3 + $0xc8] sm:$0xff] }
 0x3f2   : > { %v2551_v51 = vmax.f32 %v2510_v9, 0.0 }
 0x3f3   : > { %v2649_v23 = vld [vmem:[#allocation3 + $0x151] sm:$0xff] }
 0x3f4   : > { %2584 = vst.msk [vmem:[#allocation3 + $0x159] sm:$0xff] %vm573_vm2, %v2551_v51  ;;  %8416 = vmatmul.msk.f32.gmra.mxu2 %vm573_vm2, %v12243_v60 }
 0x3f5   : > { %8426 = vmatmul.msk.f32.gmra.mxu3 %vm573_vm2, %v12248_v47 }
 0x3f7   : > { %8702 = vrot.lane.b32.xlu0 %v12250_v18, %s16342_s29  ;;  %v2512_v45 = vpop.f32.mrf.mxu1 }
 0x3f8   : > { %8727 = vrot.lane.b32.xlu2 %v8726_v31, %s16358_s30  ;;  %v2513_v7 = vadd.f32 %v11793_v59, %v2512_v45  ;;  %v12309_v31 = vpack.i.bf16 %v12210_v8, %v12190_v44  ;;  %v2696_v8 = vld [vmem:[#allocation3 + $0x98] sm:$0xff]  ;;  %v2598_v45 = vld [vmem:[#allocation3 + $0x68] sm:$0xff] }
 0x3fa   : > { %v2552_v62 = vmax.f32 %v2513_v7, 0.0  ;;  %v2702_v7 = vld [vmem:[#allocation3 + $0xe0] sm:$0xff] }
 0x3fb   : > { %v12258_v11 = vld [vmem:[#allocation3 + $0x152] sm:$0xff]  ;;  %v12275_v34 = vld [vmem:[#allocation3 + $0x15a] sm:$0xff] }
 0x3fc   : > { %v2650_v4 = vld [vmem:[#allocation3 + $0x159] sm:$0xff]  ;;  %2585 = vst.msk [vmem:[#allocation3 + $0x169] sm:$0xff] %vm573_vm2, %v2552_v62  ;;  %8417 = vmatmul.msk.f32.gmra.mxu2 %vm573_vm2, %v2860_v55 }
 0x3fd   : > { %v12262_v30 = vpack.i.bf16 %v2650_v4, %v2649_v23  ;;  %8427 = vmatmul.msk.f32.gmra.mxu3 %vm573_vm2, %v12258_v11  ;;  %v2597_v62 = vld [vmem:[#allocation3 + $0x60] sm:$0xff]  ;;  %v2701_v55 = vld [vmem:[#allocation3 + $0xd8] sm:$0xff]  ;;  %v12376_v23 = vpack.i.bf16 %v12275_v34, %v12258_v11  ;;  %v2708_v11 = vld [vmem:[#allocation3 + $0x128] sm:$0xff] }
 0x3fe   : > { %v12378_v4 = vpack.i.bf16 %v2598_v45, %v2597_v62 }
 0x3ff   : > { %8717 = vrot.lane.b32.xlu0 %v12262_v30, %s16342_s29  ;;  %v2515_v53 = vpop.f32.mrf.mxu1 }
 0x400   : > { %8742 = vrot.lane.b32.xlu2 %v8741_v43, %s16358_s30  ;;  %v2516_v15 = vadd.f32 %v11793_v59, %v2515_v53  ;;  %v12380_v53 = vpack.i.bf16 %v2702_v7, %v2701_v55  ;;  %v2706_v55 = vld [vmem:[#allocation3 + $0x110] sm:$0xff] }
 0x401   : > { %v12431_v7 = vpop.permute.xlu0 %8657 }
 0x402   : > { %v2553_v12 = vmax.f32 %v2516_v15, 0.0  ;;  %v12392_v15 = vld [vmem:[#allocation3 + $0x30] sm:$0xff] }
 0x403   : > { %v2651_v9 = vld [vmem:[#allocation3 + $0x169] sm:$0xff] }
 0x404   : > { %2586 = vst.msk [vmem:[#allocation3 + $0x171] sm:$0xff] %vm573_vm2, %v2553_v12  ;;  %8418 = vmatmul.msk.f32.gmra.mxu2 %vm573_vm2, %v2861_v26  ;;  %v8811_v12 = vpack.i.bf16 %v12390_v61, %v12392_v15 }
 0x405   : > { %8428 = vmatmul.msk.f32.gmra.mxu3 %vm573_vm2, %v12275_v34  ;;  %v12398_v34 = vpack.i.bf16 %v2708_v11, %v2707_v48  ;;  %v2705_v48 = vld [vmem:[#allocation3 + $0x108] sm:$0xff] }
 0x407   : > { %8732 = vrot.lane.b32.xlu0 %v12277_v17, %s16358_s30  ;;  %v2518_v50 = vpop.f32.mrf.mxu1 }
 0x408   : > { %8757 = vrot.lane.b32.xlu2 %v8756_v33, %s16358_s30  ;;  %v2519_v43 = vadd.f32 %v11793_v59, %v2518_v50  ;;  %v2863_v59 = vld [vmem:[#allocation3 + $0xfa] sm:$0xff] }
 0x409   : > { %v12372_v47 = vpop.permute.xlu2 %8667  ;;  %v2600_v50 = vld [vmem:[#allocation3 + $0x80] sm:$0xff] }
 0x40a   : > { %v2554_v16 = vmax.f32 %v2519_v43, 0.0  ;;  %v2610_v43 = vld [vmem:[#allocation3 + $0xf8] sm:$0xff] }
 0x40b   : > { %v2872_v29 = vld [vmem:[#allocation3 + $0x16a] sm:$0xff]  ;;  %v2873_v51 = vld [vmem:[#allocation3 + $0x172] sm:$0xff] }
 0x40c   : > { %v2652_v28 = vld [vmem:[#allocation3 + $0x171] sm:$0xff]  ;;  %2587 = vst.msk [vmem:[#allocation3 + $0x181] sm:$0xff] %vm573_vm2, %v2554_v16  ;;  %8419 = vmatmul.msk.f32.gmra.mxu2 %vm573_vm2, %v2862_v13  ;;  %v12327_v44 = vpack.i.bf16 %v2873_v51, %v2872_v29 }
 0x40d   : > { %v12289_v14 = vpack.i.bf16 %v2652_v28, %v2651_v9  ;;  %8429 = vmatmul.msk.f32.gmra.mxu3 %vm573_vm2, %v2872_v29  ;;  %v2714_v16 = vld [vmem:[#allocation3 + $0x170] sm:$0xff]  ;;  %v2713_v9 = vld [vmem:[#allocation3 + $0x168] sm:$0xff] }
 0x40e   : > { %v2609_v29 = vld [vmem:[#allocation3 + $0xf0] sm:$0xff] }
 0x40f   : > { %8722 = vrot.lane.b32.xlu1 %v12289_v14, %s16342_s29  ;;  %8747 = vrot.lane.b32.xlu0 %v8746_v39, %s16358_s30  ;;  %v12323_v39 = vpack.i.bf16 %v2863_v59, %v2862_v13  ;;  %v2599_v13 = vld [vmem:[#allocation3 + $0x78] sm:$0xff] }
 0x410   : > { %8772 = vrot.lane.b32.xlu2 %v12292_v10, %s16358_s30  ;;  %v12407_v28 = vpack.i.bf16 %v2600_v50, %v2599_v13  ;;  %v2711_v13 = vld [vmem:[#allocation3 + $0x150] sm:$0xff] }
 0x413   : > { %v12302_v5 = vld [vmem:[#allocation3 + $0x182] sm:$0xff] }
 0x414   : > { %8420 = vmatmul.msk.f32.gmra.mxu2 %vm573_vm2, %v2863_v59  ;;  %v12409_v59 = vpack.i.bf16 %v2610_v43, %v2609_v29  ;;  %v2716_v11 = vld [vmem:[#allocation3 + $0x188] sm:$0xff] }
 0x415   : > { %8430 = vmatmul.msk.f32.gmra.mxu3 %vm573_vm2, %v2873_v51  ;;  %v12411_v51 = vpack.i.bf16 %v2714_v16, %v2713_v9  ;;  %v2712_v16 = vld [vmem:[#allocation3 + $0x158] sm:$0xff] }
 0x416   : > { %v12453_v9 = vpack.i.bf16 %v2712_v16, %v2711_v13  ;;  %v2751_v16 = vld [vmem:[#allocation3 + $0x32] sm:$0xff]  ;;  %v2752_v13 = vld [vmem:[#allocation3 + $0x3a] sm:$0xff] }
 0x417   : > { %8737 = vrot.lane.b32.xlu1 %v8736_v21, %s16358_s30  ;;  %8762 = vrot.lane.b32.xlu0 %v12309_v31, %s16358_s30  ;;  %v12339_v21 = vpack.i.bf16 %v12243_v60, %v12225_v54  ;;  %v2695_v54 = vld [vmem:[#allocation3 + $0x90] sm:$0xff] }
 0x418   : > { %8787 = vrot.lane.b32.xlu2 %v8786_v42, %s16358_s30  ;;  %v12363_v60 = vpack.i.bf16 %v2696_v8, %v2695_v54  ;;  %v2616_v42 = vld [vmem:[#allocation3 + $0x140] sm:$0xff]  ;;  %v2615_v8 = vld [vmem:[#allocation3 + $0x138] sm:$0xff] }
 0x419   : > { %v2699_v54 = vld [vmem:[#allocation3 + $0xc0] sm:$0xff]  ;;  %v12423_v45 = vpack.i.bf16 %v2616_v42, %v2615_v8 }
 0x41a   : > { %v2717_v8 = vld [vmem:[#allocation3 + $0x19] sm:$0xff] }
 0x41d   : > { %8431 = vmatmul.msk.f32.gmra.mxu3 %vm573_vm2, %v12302_v5 }
 0x41f   : > { %8752 = vrot.lane.b32.xlu1 %v8751_v22, %s16358_s30  ;;  %8777 = vrot.lane.b32.xlu0 %v12323_v39, %s16358_s30  ;;  %v12357_v22 = vld [vmem:[#allocation3 + $0x20] sm:$0xff] }
 0x420   : > { %8802 = vrot.lane.b32.xlu2 %v12327_v44, %s16358_s30  ;;  %v8806_v0 = vpack.i.bf16 %v12357_v22, %v12359_v52 }
 0x425   : > { %8432 = vmatmul.msk.f32.gmra.mxu3 %vm573_vm2, %v12304_v27 }
 0x427   : > { %8767 = vrot.lane.b32.xlu1 %v12339_v21, %s16358_s30  ;;  %8792 = vrot.lane.b32.xlu0 %v12343_v3, %s16358_s30 }
 0x428   : > { %8817 = vrot.lane.b32.xlu2 %v12347_v63, %s16359_s12 }
 0x42f   : > { %8782 = vrot.lane.b32.xlu1 %v8781_v37, %s16358_s30  ;;  %8807 = vrot.lane.b32.xlu0 %v8806_v0, %s16359_s12  ;;  %v2604_v37 = vld [vmem:[#allocation3 + $0xb0] sm:$0xff]  ;;  %v12421_v0 = vpack.i.bf16 %v2700_v2, %v2699_v54  ;;  %v2718_v2 = vld [vmem:[#allocation3 + $0x21] sm:$0xff] }
 0x430   : > { %8832 = vrot.lane.b32.xlu2 %v12363_v60, %s16359_s12  ;;  %v12396_v26 = vpack.i.bf16 %v2604_v37, %v2603_v41  ;;  %v2715_v37 = vld [vmem:[#allocation3 + $0x180] sm:$0xff]  ;;  %v12435_v41 = vpop.permute.xlu1 %8647 }
 0x431   : > { %v12439_v50 = vpack.i.bf16 %v2716_v11, %v2715_v37 }
 0x437   : > { %8797 = vrot.lane.b32.xlu1 %v12376_v23, %s16358_s30  ;;  %8822 = vrot.lane.b32.xlu0 %v12378_v4, %s16359_s12 }
 0x438   : > { %8847 = vrot.lane.b32.xlu2 %v12380_v53, %s16359_s12  ;;  %v12451_v29 = vpop.permute.xlu1 %8662 }
 0x439   : > { %v12388_v35 = vpop.permute.xlu2 %8682 }
 0x43a   : > { %16360 = vst [vmem:[#allocation17_spill] sm:$0xff] %v12388_v35 }
 0x43f   : > { %8812 = vrot.lane.b32.xlu1 %v8811_v12, %s16359_s12  ;;  %8837 = vrot.lane.b32.xlu0 %v12396_v26, %s16359_s12  ;;  %v12437_v12 = vpack.i.bf16 %v2706_v55, %v2705_v48  ;;  %v8886_v55 = vpack.i.bf16 %v2718_v2, %v2717_v8  ;;  %v8971_v2 = vpack.i.bf16 %v2752_v13, %v2751_v16  ;;  %v2747_v8 = vld [vmem:[#allocation3 + $0x181] sm:$0xff] }
 0x440   : > { %8862 = vrot.lane.b32.xlu2 %v12398_v34, %s16359_s12 }
 0x441   : > { %v12405_v33 = vpop.permute.xlu2 %8697  ;;  %v12465_v54 = vpop.permute.xlu1 %8677 }
 0x442   : > { %16361 = vst [vmem:[#allocation58_spill] sm:$0xff] %v12405_v33  ;;  %v2836_v33 = vld [vmem:[#allocation3 + $0x139] sm:$0xff] }
 0x447   : > { %8827 = vrot.lane.b32.xlu1 %v12407_v28, %s16359_s12  ;;  %8852 = vrot.lane.b32.xlu0 %v12409_v59, %s16359_s12 }
 0x448   : > { %8877 = vrot.lane.b32.xlu2 %v12411_v51, %s16359_s12 }
 0x449   : > { %v12476_v37 = vpop.permute.xlu1 %8692 }
 0x44a   : > { %v12419_v32 = vpop.permute.xlu2 %8712  ;;  %16366 = vst [vmem:[#allocation11_spill] sm:$0xff] %v12476_v37  ;;  %v4009_v37 = vld [vmem:[%s11925_s21 + $0x40] sm:$0xff] }
 0x44b   : > { %16362 = vst [vmem:[#allocation16_spill] sm:$0xff] %v12419_v32 }
 0x44f   : > { %8842 = vrot.lane.b32.xlu1 %v12421_v0, %s16359_s12  ;;  %8867 = vrot.lane.b32.xlu0 %v12423_v45, %s16359_s12 }
 0x450   : > { %8892 = vrot.lane.b32.xlu2 %v12076_v25, %s15966_s23  ;;  %v12447_v25 = vpop.permute.xlu0 %8672 }
 0x452   : > { %v12433_v62 = vpop.permute.xlu2 %8727 }
 0x457   : > { %8857 = vrot.lane.b32.xlu1 %v12437_v12, %s16359_s12  ;;  %8882 = vrot.lane.b32.xlu0 %v12439_v50, %s16359_s12 }
 0x458   : > { %8907 = vrot.lane.b32.xlu2 %v12139_v6, %s15966_s23 }
 0x45a   : > { %v12449_v43 = vpop.permute.xlu2 %8742 }
 0x45f   : > { %8872 = vrot.lane.b32.xlu1 %v12453_v9, %s16359_s12  ;;  %8897 = vrot.lane.b32.xlu0 %v12095_v56, %s15966_s23 }
 0x460   : > { %8922 = vrot.lane.b32.xlu2 %v12232_v49, %s15966_s23 }
 0x461   : > { %v12461_v6 = vpop.permute.xlu0 %8687 }
 0x462   : > { %16363 = vst [vmem:[#allocation62_spill] sm:$0xff] %v12461_v6  ;;  %v12463_v42 = vpop.permute.xlu2 %8757  ;;  %v4459_v6 = vld [vmem:[#allocation2 + $0xc9] sm:$0xff] }
 0x467   : > { %8887 = vrot.lane.b32.xlu1 %v8886_v55, %s15966_s23  ;;  %8912 = vrot.lane.b32.xlu0 %v12163_v1, %s15966_s23  ;;  %v2757_v55 = vld [vmem:[#allocation3 + $0x7a] sm:$0xff] }
 0x468   : > { %8937 = vrot.lane.b32.xlu2 %v12250_v18, %s15966_s23 }
 0x469   : > { %v12472_v56 = vpop.permute.xlu0 %8702 }
 0x46a   : > { %16364 = vst [vmem:[#allocation19_spill] sm:$0xff] %v12472_v56  ;;  %v12474_v49 = vpop.permute.xlu2 %8772  ;;  %v2831_v56 = vld [vmem:[#allocation3 + $0xf9] sm:$0xff] }
 0x46b   : > { %16365 = vst [vmem:[#allocation46_spill] sm:$0xff] %v12474_v49  ;;  %v4455_v49 = vld [vmem:[#allocation2 + $0x99] sm:$0xff] }
 0x46f   : > { %8902 = vrot.lane.b32.xlu1 %v12117_v20, %s15966_s23  ;;  %8927 = vrot.lane.b32.xlu0 %v12181_v40, %s15966_s23  ;;  %v12494_v20 = vpop.permute.xlu1 %8707 }
 0x470   : > { %8952 = vrot.lane.b32.xlu2 %v12262_v30, %s15966_s23  ;;  %16369 = vst [vmem:[#allocation66_spill] sm:$0xff] %v12494_v20  ;;  %v2755_v30 = vld [vmem:[#allocation3 + $0x62] sm:$0xff]  ;;  %v2814_v20 = vld [vmem:[#allocation3 + $0x31] sm:$0xff] }
 0x471   : > { %v12484_v11 = vpop.permute.xlu0 %8717  ;;  %v8981_v48 = vpack.i.bf16 %v12112_v46, %v2755_v30  ;;  %v2758_v30 = vld [vmem:[#allocation3 + $0x82] sm:$0xff] }
 0x472   : > { %16367 = vst [vmem:[#allocation63_spill] sm:$0xff] %v12484_v11  ;;  %v12486_v1 = vpop.permute.xlu2 %8787  ;;  %v8986_v16 = vpack.i.bf16 %v2758_v30, %v2757_v55  ;;  %v2770_v11 = vld [vmem:[#allocation3 + $0x112] sm:$0xff] }
 0x473   : > { %16368 = vst [vmem:[#allocation12_spill] sm:$0xff] %v12486_v1  ;;  %v2835_v1 = vld [vmem:[#allocation3 + $0x129] sm:$0xff] }
 0x477   : > { %8917 = vrot.lane.b32.xlu1 %v12197_v58, %s15966_s23  ;;  %8942 = vrot.lane.b32.xlu0 %v12202_v38, %s15966_s23 }
 0x478   : > { %8967 = vrot.lane.b32.xlu2 %v12277_v17, %s15906_s19 }
 0x479   : > { %v12496_v40 = vpop.permute.xlu0 %8732 }
 0x47a   : > { %v12498_v18 = vpop.permute.xlu2 %8802 }
 0x47b   : > { %16370 = vst [vmem:[#allocation20_spill] sm:$0xff] %v12498_v18  ;;  %v2754_v18 = vld [vmem:[#allocation3 + $0x52] sm:$0xff] }
 0x47f   : > { %8932 = vrot.lane.b32.xlu1 %v12217_v57, %s15966_s23  ;;  %8957 = vrot.lane.b32.xlu0 %v12289_v14, %s15966_s23 }
 0x480   : > { %8982 = vrot.lane.b32.xlu2 %v8981_v48, %s15906_s19  ;;  %v2748_v48 = vld [vmem:[#allocation3 + $0x189] sm:$0xff] }
 0x481   : > { %v12506_v58 = vpop.permute.xlu1 %8722  ;;  %v12510_v17 = vpop.permute.xlu0 %8747  ;;  %v12523_v19 = vpack.i.bf16 %v2748_v48, %v2747_v8  ;;  %v2760_v48 = vld [vmem:[#allocation3 + $0x9a] sm:$0xff] }
 0x482   : > { %16371 = vst [vmem:[#allocation33_spill] sm:$0xff] %v12506_v58  ;;  %v12508_v38 = vpop.permute.xlu2 %8817 }
 0x487   : > { %8947 = vrot.lane.b32.xlu1 %v12236_v36, %s15966_s23  ;;  %8972 = vrot.lane.b32.xlu0 %v8971_v2, %s15906_s19  ;;  %v2753_v2 = vld [vmem:[#allocation3 + $0x4a] sm:$0xff] }
 0x488   : > { %8997 = vrot.lane.b32.xlu2 %v12309_v31, %s15906_s19  ;;  %v8976_v58 = vpack.i.bf16 %v2754_v18, %v2753_v2 }
 0x489   : > { %v12517_v46 = vpop.permute.xlu1 %8737  ;;  %v12521_v14 = vpop.permute.xlu0 %8762 }
 0x48a   : > { %v12519_v57 = vpop.permute.xlu2 %8832  ;;  %16372 = vst [vmem:[#allocation51_spill] sm:$0xff] %v12521_v14  ;;  %v2590_v14 = vld [vmem:[#allocation3 + $0x8] sm:$0xff] }
 0x48f   : > { %8962 = vrot.lane.b32.xlu1 %v12523_v19, %s15966_s23  ;;  %8987 = vrot.lane.b32.xlu0 %v8986_v16, %s15906_s19  ;;  %v2769_v16 = vld [vmem:[#allocation3 + $0x10a] sm:$0xff]  ;;  %s13206_s23 = scalar_lea.vmem %s15857_s6, %s8561_s25  ;;  %s16671_s25 = smov 112  }
 0x490   : > { %9012 = vrot.lane.b32.xlu2 %v12323_v39, %s15906_s19  ;;  %v2759_v39 = vld [vmem:[#allocation3 + $0x92] sm:$0xff]  ;;  %v9016_v18 = vpack.i.bf16 %v2770_v11, %v2769_v16  ;;  %v2771_v11 = vld [vmem:[#allocation3 + $0x122] sm:$0xff] }
 0x491   : > { %v12530_v36 = vpop.permute.xlu1 %8752  ;;  %v12534_v13 = vpop.permute.xlu0 %8777  ;;  %v8991_v32 = vpack.i.bf16 %v2760_v48, %v2759_v39  ;;  %v2772_v39 = vld [vmem:[#allocation3 + $0x12a] sm:$0xff]  ;;  %v2783_v48 = vld [vmem:[#allocation3 + $0x38] sm:$0xff] }
 0x492   : > { %v12532_v31 = vpop.permute.xlu2 %8847  ;;  %16374 = vst [vmem:[#allocation21_spill] sm:$0xff] %v12534_v13  ;;  %v2782_v16 = vld [vmem:[#allocation3 + $0x30] sm:$0xff] }
 0x493   : > { %16373 = vst [vmem:[#allocation82_spill] sm:$0xff] %v12532_v31  ;;  %v2830_v13 = vld [vmem:[#allocation3 + $0xf1] sm:$0xff]  ;;  %v4004_v31 = vld [vmem:[%s11925_s21 + $0x18] sm:$0xff] }
 0x497   : > { %8977 = vrot.lane.b32.xlu1 %v8976_v58, %s15906_s19  ;;  %9002 = vrot.lane.b32.xlu0 %v12339_v21, %s15906_s19  ;;  %v16378_v21 = vpack.i.bf16 %v12304_v27, %v12302_v5 }
 0x498   : > { %9027 = vrot.lane.b32.xlu2 %v12343_v3, %s15906_s19 }
 0x499   : > { %v12541_v8 = vpop.permute.xlu1 %8767  ;;  %v12545_v30 = vpop.permute.xlu0 %8792 }
 0x49a   : > { %16375 = vst [vmem:[#allocation22_spill] sm:$0xff] %v12541_v8  ;;  %v12543_v55 = vpop.permute.xlu2 %8862  ;;  %v4002_v8 = vld [vmem:[%s11925_s21 + $0x8] sm:$0xff] }
 0x49b   : > { %16376 = vst [vmem:[#allocation67_spill] sm:$0xff] %v12543_v55  ;;  %v2824_v55 = vld [vmem:[#allocation3 + $0xa9] sm:$0xff] }
 0x49c   : > { %16377 = vst [vmem:[#allocation84_spill] sm:$0xff] %v12545_v30  ;;  %v2818_v30 = vld [vmem:[#allocation3 + $0x61] sm:$0xff] }
 0x49f   : > { %8992 = vrot.lane.b32.xlu1 %v8991_v32, %s15906_s19  ;;  %9017 = vrot.lane.b32.xlu0 %v9016_v18, %s15906_s19  ;;  %v9021_v18 = vpack.i.bf16 %v2772_v39, %v2771_v11 }
 0x4a0   : > { %9042 = vrot.lane.b32.xlu2 %v16378_v21, %s15906_s19  ;;  %v9046_v21 = vpack.i.bf16 %v2783_v48, %v2782_v16  ;;  %v2817_v48 = vld [vmem:[#allocation3 + $0x51] sm:$0xff]  ;;  %v2816_v16 = vld [vmem:[#allocation3 + $0x49] sm:$0xff] }
 0x4a1   : > { %v12553_v3 = vpop.permute.xlu1 %8782  ;;  %v12557_v2 = vpop.permute.xlu0 %8807 }
 0x4a2   : > { %16379 = vst [vmem:[#allocation13_spill] sm:$0xff] %v12553_v3  ;;  %v12555_v58 = vpop.permute.xlu2 %8877  ;;  %v2821_v3 = vld [vmem:[#allocation3 + $0x81] sm:$0xff] }
 0x4a3   : > { %16380 = vst [vmem:[#allocation34_spill] sm:$0xff] %v12555_v58 }
 0x4a7   : > { %9007 = vrot.lane.b32.xlu1 %v12292_v10, %s15906_s19  ;;  %9032 = vrot.lane.b32.xlu0 %v12376_v23, %s15906_s19 }
 0x4a8   : > { %9057 = vrot.lane.b32.xlu2 %v12378_v4, %s15926_s24 }
 0x4a9   : > { %v12565_v32 = vpop.permute.xlu1 %8797  ;;  %v12569_v27 = vpop.permute.xlu0 %8822 }
 0x4aa   : > { %16381 = vst [vmem:[#allocation70_spill] sm:$0xff] %v12565_v32  ;;  %v12567_v5 = vpop.permute.xlu2 %8892 }
 0x4af   : > { %9022 = vrot.lane.b32.xlu1 %v9021_v18, %s15906_s19  ;;  %9047 = vrot.lane.b32.xlu0 %v9046_v21, %s15926_s24  ;;  %v9131_v18 = vpack.i.bf16 %v2817_v48, %v2816_v16  ;;  %v2822_v48 = vld [vmem:[#allocation3 + $0x91] sm:$0xff] }
 0x4b0   : > { %9072 = vrot.lane.b32.xlu2 %v12396_v26, %s15926_s24 }
 0x4b1   : > { %v12575_v10 = vpop.permute.xlu1 %8812  ;;  %v12579_v4 = vpop.permute.xlu0 %8837 }
 0x4b2   : > { %v12577_v23 = vpop.permute.xlu2 %8907 }
 0x4b7   : > { %9037 = vrot.lane.b32.xlu1 %v12327_v44, %s15906_s19  ;;  %9062 = vrot.lane.b32.xlu0 %v12407_v28, %s15926_s24  ;;  %s15964_s19 = smov 112  }
 0x4b8   : > { %9087 = vrot.lane.b32.xlu2 %v12409_v59, %s15926_s24 }
 0x4b9   : > { %v12587_v11 = vpop.permute.xlu1 %8827  ;;  %v12591_v26 = vpop.permute.xlu0 %8852 }
 0x4ba   : > { %v12589_v39 = vpop.permute.xlu2 %8922  ;;  %16383 = vst [vmem:[#allocation115_spill] sm:$0xff] %v12591_v26  ;;  %v4013_v26 = vld [vmem:[%s11925_s21 + $0x60] sm:$0xff] }
 0x4bb   : > { %16382 = vst [vmem:[#allocation71_spill] sm:$0xff] %v12589_v39  ;;  %v4464_v39 = vld [vmem:[#allocation2 + $0x109] sm:$0xff] }
 0x4bf   : > { %9052 = vrot.lane.b32.xlu1 %v12347_v63, %s15926_s24  ;;  %9077 = vrot.lane.b32.xlu0 %v12421_v0, %s15926_s24 }
 0x4c0   : > { %9102 = vrot.lane.b32.xlu2 %v12423_v45, %s15926_s24 }
 0x4c1   : > { %v12599_v44 = vpop.permute.xlu1 %8842  ;;  %v12603_v59 = vpop.permute.xlu0 %8867 }
 0x4c2   : > { %16384 = vst [vmem:[#allocation31_spill] sm:$0xff] %v12599_v44  ;;  %v12601_v28 = vpop.permute.xlu2 %8937  ;;  %v4478_v44 = vld [vmem:[#allocation2 + $0x32] sm:$0xff] }
 0x4c3   : > { %16385 = vst [vmem:[#allocation68_spill] sm:$0xff] %v12601_v28  ;;  %v2841_v28 = vld [vmem:[#allocation3 + $0x171] sm:$0xff] }
 0x4c4   : > { %16386 = vst [vmem:[#allocation69_spill] sm:$0xff] %v12603_v59  ;;  %v2828_v59 = vld [vmem:[#allocation3 + $0xd9] sm:$0xff] }
 0x4c7   : > { %9067 = vrot.lane.b32.xlu1 %v12363_v60, %s15926_s24  ;;  %9092 = vrot.lane.b32.xlu0 %v12437_v12, %s15926_s24  ;;  %v2812_v60 = vld [vmem:[#allocation3 + $0x198] sm:$0xff]  ;;  %v2813_v12 = vld [vmem:[#allocation3 + $0x1a0] sm:$0xff] }
 0x4c8   : > { %9117 = vrot.lane.b32.xlu2 %v12439_v50, %s15926_s24  ;;  %v9121_v32 = vpack.i.bf16 %v2813_v12, %v2812_v60 }
 0x4c9   : > { %v12611_v63 = vpop.permute.xlu1 %8857  ;;  %v12615_v45 = vpop.permute.xlu0 %8882 }
 0x4ca   : > { %16387 = vst [vmem:[#allocation141_spill] sm:$0xff] %v12611_v63  ;;  %v12613_v0 = vpop.permute.xlu2 %8952  ;;  %v2820_v63 = vld [vmem:[#allocation3 + $0x79] sm:$0xff] }
 0x4cb   : > { %16388 = vst [vmem:[#allocation151_spill] sm:$0xff] %v12613_v0  ;;  %v2819_v0 = vld [vmem:[#allocation3 + $0x69] sm:$0xff] }
 0x4cc   : > { %16389 = vst [vmem:[#allocation160_spill] sm:$0xff] %v12615_v45  ;;  %v2823_v45 = vld [vmem:[#allocation3 + $0x99] sm:$0xff]  ;;  %v9136_v60 = vpack.i.bf16 %v2819_v0, %v2818_v30  ;;  %v2834_v30 = vld [vmem:[#allocation3 + $0x121] sm:$0xff] }
 0x4cd   : > { %v9146_v16 = vpack.i.bf16 %v2823_v45, %v2822_v48  ;;  %v2815_v48 = vld [vmem:[#allocation3 + $0x39] sm:$0xff] }
 0x4cf   : > { %9082 = vrot.lane.b32.xlu1 %v12380_v53, %s15926_s24  ;;  %9107 = vrot.lane.b32.xlu0 %v12453_v9, %s15926_s24 }
 0x4d0   : > { %9132 = vrot.lane.b32.xlu2 %v9131_v18, %s15964_s19 }
 0x4d1   : > { %v12622_v50 = vpop.permute.xlu1 %8872  ;;  %v12626_v58 = vpop.permute.xlu0 %8897 }
 0x4d2   : > { %16390 = vst [vmem:[#allocation23_spill] sm:$0xff] %v12622_v50  ;;  %v12624_v21 = vpop.permute.xlu2 %8967  ;;  %v2829_v50 = vld [vmem:[#allocation3 + $0xe1] sm:$0xff] }
 0x4d3   : > { %v9161_v12 = vpack.i.bf16 %v2829_v50, %v2828_v59  ;;  %v9126_v59 = vpack.i.bf16 %v2815_v48, %v2814_v20  ;;  %v9176_v50 = vpack.i.bf16 %v2835_v1, %v2834_v30  ;;  %v2840_v20 = vld [vmem:[#allocation3 + $0x169] sm:$0xff]  ;;  %v9166_v1 = vpack.i.bf16 %v2831_v56, %v2830_v13 }
 0x4d4   : > { %v9191_v48 = vpack.i.bf16 %v2841_v28, %v2840_v20  ;;  %v2833_v20 = vld [vmem:[#allocation3 + $0x111] sm:$0xff] }
 0x4d7   : > { %9097 = vrot.lane.b32.xlu1 %v12398_v34, %s15926_s24  ;;  %9122 = vrot.lane.b32.xlu0 %v9121_v32, %s15926_s24 }
 0x4d8   : > { %9147 = vrot.lane.b32.xlu2 %v9146_v16, %s15964_s19  ;;  %v2825_v16 = vld [vmem:[#allocation3 + $0xb1] sm:$0xff] }
 0x4d9   : > { %v12632_v53 = vpop.permute.xlu1 %8887  ;;  %v12636_v18 = vpop.permute.xlu0 %8912  ;;  %v9151_v0 = vpack.i.bf16 %v2825_v16, %v2824_v55  ;;  %v9141_v55 = vpack.i.bf16 %v2821_v3, %v2820_v63 }
 0x4da   : > { %v12634_v9 = vpop.permute.xlu2 %8982 }
 0x4df   : > { %9112 = vrot.lane.b32.xlu1 %v12411_v51, %s15926_s24  ;;  %9137 = vrot.lane.b32.xlu0 %v9136_v60, %s15964_s19  ;;  %s16398_s24 = smov 8  }
 0x4e0   : > { %9162 = vrot.lane.b32.xlu2 %v9161_v12, %s15964_s19 }
 0x4e1   : > { %v12642_v34 = vpop.permute.xlu1 %8902  ;;  %v12646_v45 = vpop.permute.xlu0 %8927 }
 0x4e2   : > { %v12644_v32 = vpop.permute.xlu2 %8997  ;;  %16392 = vst [vmem:[#allocation56_spill] sm:$0xff] %v12646_v45 }
 0x4e3   : > { %16391 = vst [vmem:[#allocation39_spill] sm:$0xff] %v12644_v32 }
 0x4e7   : > { %9127 = vrot.lane.b32.xlu1 %v9126_v59, %s15964_s19  ;;  %9152 = vrot.lane.b32.xlu0 %v9151_v0, %s15964_s19  ;;  %v2827_v0 = vld [vmem:[#allocation3 + $0xc9] sm:$0xff] }
 0x4e8   : > { %9177 = vrot.lane.b32.xlu2 %v9176_v50, %s15964_s19  ;;  %v2837_v50 = vld [vmem:[#allocation3 + $0x141] sm:$0xff] }
 0x4e9   : > { %v12651_v51 = vpop.permute.xlu1 %8917  ;;  %v12655_v12 = vpop.permute.xlu0 %8942  ;;  %v9181_v56 = vpack.i.bf16 %v2837_v50, %v2836_v33  ;;  %v2838_v50 = vld [vmem:[#allocation3 + $0x151] sm:$0xff] }
 0x4ea   : > { %v12653_v60 = vpop.permute.xlu2 %9012  ;;  %16394 = vst [vmem:[#allocation98_spill] sm:$0xff] %v12655_v12  ;;  %v2826_v12 = vld [vmem:[#allocation3 + $0xc1] sm:$0xff] }
 0x4eb   : > { %16393 = vst [vmem:[#allocation85_spill] sm:$0xff] %v12653_v60  ;;  %v4442_v60 = vld [vmem:[#allocation2 + $0x1] sm:$0xff]  ;;  %v9156_v3 = vpack.i.bf16 %v2827_v0, %v2826_v12  ;;  %v2839_v0 = vld [vmem:[#allocation3 + $0x159] sm:$0xff] }
 0x4ef   : > { %9142 = vrot.lane.b32.xlu1 %v9141_v55, %s15964_s19  ;;  %9167 = vrot.lane.b32.xlu0 %v9166_v1, %s15964_s19  ;;  %v2832_v55 = vld [vmem:[#allocation3 + $0x109] sm:$0xff]  ;;  %v4445_v1 = vld [vmem:[#allocation2 + $0x21] sm:$0xff] }
 0x4f0   : > { %9192 = vrot.lane.b32.xlu2 %v9191_v48, %s15964_s19  ;;  %v9171_v48 = vpack.i.bf16 %v2833_v20, %v2832_v55  ;;  %v2845_v20 = vld [vmem:[#allocation3 + $0x1a1] sm:$0xff] }
 0x4f1   : > { %v12660_v16 = vpop.permute.xlu1 %8932  ;;  %v12664_v59 = vpop.permute.xlu0 %8957 }
 0x4f2   : > { %16395 = vst [vmem:[#allocation99_spill] sm:$0xff] %v12660_v16  ;;  %v12662_v30 = vpop.permute.xlu2 %9027  ;;  %v4457_v16 = vld [vmem:[#allocation2 + $0xb1] sm:$0xff] }
 0x4f3   : > { %16396 = vst [vmem:[#allocation119_spill] sm:$0xff] %v12662_v30  ;;  %v4451_v30 = vld [vmem:[#allocation2 + $0x69] sm:$0xff] }
 0x4f4   : > { %16397 = vst [vmem:[#allocation37_spill] sm:$0xff] %v12664_v59  ;;  %v4446_v59 = vld [vmem:[#allocation2 + $0x31] sm:$0xff] }
 0x4f7   : > { %9157 = vrot.lane.b32.xlu1 %v9156_v3, %s15964_s19  ;;  %9182 = vrot.lane.b32.xlu0 %v9181_v56, %s15964_s19  ;;  %v4443_v3 = vld [vmem:[#allocation2 + $0x9] sm:$0xff] }
 0x4f8   : > { %4730 = vrot.lane.b32.xlu2 %v4442_v60, %s16398_s24  ;;  %v4448_v56 = vld [vmem:[#allocation2 + $0x49] sm:$0xff] }
 0x4f9   : > { %v12669_v13 = vpop.permute.xlu1 %8947  ;;  %v12673_v63 = vpop.permute.xlu0 %8972 }
 0x4fa   : > { %16399 = vst [vmem:[#allocation55_spill] sm:$0xff] %v12669_v13  ;;  %v12671_v28 = vpop.permute.xlu2 %9042  ;;  %v4454_v13 = vld [vmem:[#allocation2 + $0x91] sm:$0xff] }
 0x4fb   : > { %16400 = vst [vmem:[#allocation86_spill] sm:$0xff] %v12671_v28  ;;  %v9186_v28 = vpack.i.bf16 %v2839_v0, %v2838_v50 }
 0x4ff   : > { %9172 = vrot.lane.b32.xlu1 %v9171_v48, %s15964_s19  ;;  %9197 = vrot.lane.b32.xlu0 %v12523_v19, %s15964_s19  ;;  %v2844_v19 = vld [vmem:[#allocation3 + $0x199] sm:$0xff] }
 0x500   : > { %4736 = vrot.lane.b32.xlu2 %v4445_v1, %s16398_s24 }
 0x501   : > { %v12679_v33 = vpop.permute.xlu1 %8962  ;;  %v12683_v12 = vpop.permute.xlu0 %8987 }
 0x502   : > { %16401 = vst [vmem:[#allocation142_spill] sm:$0xff] %v12679_v33  ;;  %v12681_v60 = vpop.permute.xlu2 %9057  ;;  %v9201_v33 = vpack.i.bf16 %v2845_v20, %v2844_v19  ;;  %v4016_v19 = vld [vmem:[%s11925_s21 + $0x78] sm:$0xff] }
 0x503   : > { %v4447_v20 = vld [vmem:[#allocation2 + $0x39] sm:$0xff]  ;;  %4119 = vmatpush.msrb.mxu1 %v4016_v19  ;;  %v4450_v19 = vld [vmem:[#allocation2 + $0x61] sm:$0xff] }
 0x507   : > { %9187 = vrot.lane.b32.xlu1 %v9186_v28, %s15964_s19  ;;  %4732 = vrot.lane.b32.xlu0 %v4443_v3, %s16398_s24  ;;  %v4444_v3 = vld [vmem:[#allocation2 + $0x19] sm:$0xff] }
 0x508   : > { %4742 = vrot.lane.b32.xlu2 %v4448_v56, %s16398_s24  ;;  %v4449_v56 = vld [vmem:[#allocation2 + $0x51] sm:$0xff] }
 0x509   : > { %v12688_v55 = vpop.permute.xlu1 %8977  ;;  %v12692_v48 = vpop.permute.xlu0 %9002 }
 0x50a   : > { %v12690_v1 = vpop.permute.xlu2 %9072  ;;  %16402 = vst [vmem:[#allocation143_spill] sm:$0xff] %v12692_v48  ;;  %v4468_v48 = vld [vmem:[#allocation2 + $0x139] sm:$0xff] }
 0x50f   : > { %9202 = vrot.lane.b32.xlu1 %v9201_v33, %s15964_s19  ;;  %4738 = vrot.lane.b32.xlu0 %v4446_v59, %s16398_s24  ;;  %s16550_s19 = smov 40  }
 0x510   : > { %4748 = vrot.lane.b32.xlu2 %v4451_v30, %s16398_s24 }
 0x511   : > { %v12697_v28 = vpop.permute.xlu1 %8992  ;;  %v12701_v50 = vpop.permute.xlu0 %9017 }
 0x512   : > { %v12699_v0 = vpop.permute.xlu2 %9087  ;;  %16404 = vst [vmem:[#allocation24_spill] sm:$0xff] %v12701_v50  ;;  %v4452_v50 = vld [vmem:[#allocation2 + $0x79] sm:$0xff] }
 0x513   : > { %16403 = vst [vmem:[#allocation164_spill] sm:$0xff] %v12699_v0  ;;  %v4008_v0 = vld [vmem:[%s11925_s21 + $0x38] sm:$0xff] }
 0x517   : > { %4734 = vrot.lane.b32.xlu1 %v4444_v3, %s16398_s24  ;;  %4744 = vrot.lane.b32.xlu0 %v4449_v56, %s16398_s24 }
 0x518   : > { %4754 = vrot.lane.b32.xlu2 %v4454_v13, %s16398_s24  ;;  %v4015_v13 = vld [vmem:[%s11925_s21 + $0x70] sm:$0xff] }
 0x519   : > { %v12706_v33 = vpop.permute.xlu1 %9007  ;;  %v12710_v59 = vpop.permute.xlu0 %9032  ;;  %4120 = vmatpush.msrb.mxu1 %v4015_v13 }
 0x51a   : > { %16405 = vst [vmem:[#allocation25_spill] sm:$0xff] %v12706_v33  ;;  %v12708_v30 = vpop.permute.xlu2 %9102  ;;  %v4005_v33 = vld [vmem:[%s11925_s21 + $0x20] sm:$0xff] }
 0x51b   : > { %16406 = vst [vmem:[#allocation72_spill] sm:$0xff] %v12708_v30  ;;  %v4014_v30 = vld [vmem:[%s11925_s21 + $0x68] sm:$0xff] }
 0x51c   : > { %16407 = vst [vmem:[#allocation88_spill] sm:$0xff] %v12710_v59  ;;  %4121 = vmatpush.msrb.mxu1 %v4014_v30  ;;  %v4010_v30 = vld [vmem:[%s11925_s21 + $0x48] sm:$0xff] }
 0x51e   : > { %4122 = vmatpush.msrb.mxu1 %v4013_v26  ;;  %v4453_v26 = vld [vmem:[#allocation2 + $0x81] sm:$0xff] }
 0x51f   : > { %4740 = vrot.lane.b32.xlu1 %v4447_v20, %s16398_s24  ;;  %4750 = vrot.lane.b32.xlu0 %v4452_v50, %s16398_s24  ;;  %v4460_v20 = vld [vmem:[#allocation2 + $0xd9] sm:$0xff] }
 0x520   : > { %4760 = vrot.lane.b32.xlu2 %v4457_v16, %s16398_s24  ;;  %v4012_v50 = vld [vmem:[%s11925_s21 + $0x58] sm:$0xff]  ;;  %v4011_v16 = vld [vmem:[%s11925_s21 + $0x50] sm:$0xff] }
 0x521   : > { %v12717_v3 = vpop.permute.xlu1 %9022  ;;  %v12721_v59 = vpop.permute.xlu0 %9047  ;;  %4123 = vmatpush.msrb.mxu1 %v4012_v50 }
 0x522   : > { %16408 = vst [vmem:[#allocation96_spill] sm:$0xff] %v12717_v3  ;;  %v12719_v56 = vpop.permute.xlu2 %9117 }
 0x523   : > { %16409 = vst [vmem:[#allocation107_spill] sm:$0xff] %v12719_v56  ;;  %4124 = vmatpush.msrb.mxu1 %v4011_v16 }
 0x525   : > { %4125 = vmatpush.msrb.mxu1 %v4010_v30  ;;  %v4006_v30 = vld [vmem:[%s11925_s21 + $0x28] sm:$0xff] }
 0x527   : > { %4746 = vrot.lane.b32.xlu1 %v4450_v19, %s16398_s24  ;;  %4756 = vrot.lane.b32.xlu0 %v4455_v49, %s16398_s24  ;;  %v4458_v19 = vld [vmem:[#allocation2 + $0xc1] sm:$0xff]  ;;  %v4463_v49 = vld [vmem:[#allocation2 + $0xf9] sm:$0xff] }
 0x528   : > { %4766 = vrot.lane.b32.xlu2 %v4460_v20, %s16398_s24  ;;  %4126 = vmatpush.msrb.mxu1 %v4009_v37  ;;  %v4007_v20 = vld [vmem:[%s11925_s21 + $0x30] sm:$0xff] }
 0x529   : > { %v12730_v13 = vpop.permute.xlu1 %9037  ;;  %v12734_v3 = vpop.permute.xlu0 %9062  ;;  %v4456_v37 = vld [vmem:[#allocation2 + $0xa9] sm:$0xff] }
 0x52a   : > { %16410 = vst [vmem:[#allocation120_spill] sm:$0xff] %v12730_v13  ;;  %v12732_v56 = vpop.permute.xlu2 %9132  ;;  %4127 = vmatpush.msrb.mxu1 %v4008_v0  ;;  %v4003_v0 = vld [vmem:[%s11925_s21 + $0x10] sm:$0xff] }
 0x52c   : > { %4128 = vmatpush.msrb.mxu1 %v4007_v20 }
 0x52e   : > { %4129 = vmatpush.msrb.mxu1 %v4006_v30  ;;  %v4001_v30 = vld [vmem:[%s11925_s21] sm:$0xff] }
 0x52f   : > { %4752 = vrot.lane.b32.xlu1 %v4453_v26, %s16398_s24  ;;  %4762 = vrot.lane.b32.xlu0 %v4458_v19, %s16398_s24  ;;  %v4461_v26 = vld [vmem:[#allocation2 + $0xe1] sm:$0xff] }
 0x530   : > { %4772 = vrot.lane.b32.xlu2 %v4463_v49, %s16398_s24  ;;  %v4466_v19 = vld [vmem:[#allocation2 + $0x121] sm:$0xff]  ;;  %4130 = vmatpush.msrb.mxu1 %v4005_v33 }
 0x531   : > { %v12743_v50 = vpop.permute.xlu1 %9052  ;;  %v12747_v13 = vpop.permute.xlu0 %9077  ;;  %v4469_v33 = vld [vmem:[#allocation2 + $0x141] sm:$0xff] }
 0x532   : > { %v12745_v16 = vpop.permute.xlu2 %9147  ;;  %4131 = vmatpush.msrb.mxu1 %v4004_v31 }
 0x534   : > { %4132 = vmatpush.msrb.mxu1 %v4003_v0  ;;  %v4467_v0 = vld [vmem:[#allocation2 + $0x129] sm:$0xff] }
 0x536   : > { %4133 = vmatpush.msrb.mxu1 %v4002_v8 }
 0x537   : > { %4758 = vrot.lane.b32.xlu1 %v4456_v37, %s16398_s24  ;;  %4768 = vrot.lane.b32.xlu0 %v4461_v26, %s16398_s24 }
 0x538   : > { %4778 = vrot.lane.b32.xlu2 %v4466_v19, %s16398_s24  ;;  %4134 = vmatpush.msrb.mxu1 %v4001_v30  ;;  %v4462_v19 = vld [vmem:[#allocation2 + $0xf1] sm:$0xff] }
 0x539   : > { %v12756_v49 = vpop.permute.xlu1 %9067  ;;  %v12760_v45 = vpop.permute.xlu0 %9092  ;;  %v4465_v30 = vld [vmem:[#allocation2 + $0x111] sm:$0xff] }
 0x53a   : > { %v12758_v20 = vpop.permute.xlu2 %9162  ;;  %16412 = vst [vmem:[#allocation73_spill] sm:$0xff] %v12760_v45  ;;  %v4472_v45 = vld [vmem:[#allocation2 + $0x169] sm:$0xff] }
 0x53b   : > { %16411 = vst [vmem:[#allocation121_spill] sm:$0xff] %v12758_v20  ;;  %v2589_v20 = vld [vmem:[#allocation3] sm:$0xff] }
 0x53f   : > { %4764 = vrot.lane.b32.xlu1 %v4459_v6, %s16398_s24  ;;  %4774 = vrot.lane.b32.xlu0 %v4464_v39, %s16398_s24 }
 0x540   : > { %4784 = vrot.lane.b32.xlu2 %v4469_v33, %s16398_s24  ;;  %v4470_v33 = vld [vmem:[#allocation2 + $0x151] sm:$0xff] }
 0x541   : > { %v12767_v31 = vpop.permute.xlu1 %9082  ;;  %v12771_v26 = vpop.permute.xlu0 %9107 }
 0x542   : > { %16413 = vst [vmem:[#allocation131_spill] sm:$0xff] %v12767_v31  ;;  %v12769_v37 = vpop.permute.xlu2 %9177  ;;  %v8889_v31 = vunpack.i.l.bf16 %v12632_v53 }
 0x543   : > { %16414 = vst [vmem:[#allocation139_spill] sm:$0xff] %v12769_v37  ;;  %v4475_v37 = vld [vmem:[#allocation2 + $0xa] sm:$0xff] }
 0x544   : > { %16415 = vst [vmem:[#allocation152_spill] sm:$0xff] %v12771_v26  ;;  %v8649_v26 = vunpack.i.l.bf16 %v12435_v41 }
 0x547   : > { %4770 = vrot.lane.b32.xlu1 %v4462_v19, %s16398_s24  ;;  %4780 = vrot.lane.b32.xlu0 %v4467_v0, %s16398_s24  ;;  %v3774_v0 = vsel %vm573_vm2, %v2589_v20, %v8649_v26  ;;  %v9049_v26 = vunpack.i.l.bf16 %v12721_v59 }
 0x548   : > { %4790 = vrot.lane.b32.xlu2 %v4472_v45, %s16398_s24  ;;  %v8729_v45 = vunpack.i.l.bf16 %v12433_v62 }
 0x549   : > { %v12776_v6 = vpop.permute.xlu1 %9097  ;;  %v12780_v39 = vpop.permute.xlu0 %9122 }
 0x54a   : > { %16416 = vst [vmem:[#allocation165_spill] sm:$0xff] %v12776_v6  ;;  %v12778_v8 = vpop.permute.xlu2 %9192 }
 0x54b   : > { %16417 = vst [vmem:[#allocation166_spill] sm:$0xff] %v12778_v8 }
 0x54c   : > { %16418 = vst [vmem:[#allocation15_spill] sm:$0xff] %v12780_v39  ;;  %v8809_v39 = vunpack.i.l.bf16 %v12557_v2 }
 0x54f   : > { %4776 = vrot.lane.b32.xlu1 %v4465_v30, %s16398_s24  ;;  %4786 = vrot.lane.b32.xlu0 %v4470_v33, %s16398_s24  ;;  %v4473_v30 = vld [vmem:[#allocation2 + $0x171] sm:$0xff]  ;;  %v8650_v33 = vunpack.i.h.bf16 %v12435_v41 }
 0x550   : > { %4860 = vrot.lane.b32.xlu2 %v4475_v37, %s16342_s29  ;;  %v3806_v37 = vsel %vm2136_vm5, %v3774_v0, %v8729_v45  ;;  %v8730_v45 = vunpack.i.h.bf16 %v12433_v62  ;;  %v4476_v62 = vld [vmem:[#allocation2 + $0x1a] sm:$0xff] }
 0x551   : > { %v12787_v19 = vpop.permute.xlu1 %9112  ;;  %v12793_v6 = vpop.permute.xlu0 %9137  ;;  %v3775_v41 = vsel %vm573_vm2, %v2590_v14, %v8650_v33 }
 0x552   : > { %16419 = vst [vmem:[#allocation40_spill] sm:$0xff] %v12787_v19  ;;  %v12791_v8 = vpop.permute.xlu2 %4730  ;;  %v3838_v19 = vsel %vm2202_vm6, %v3806_v37, %v8809_v39  ;;  %v8810_v39 = vunpack.i.h.bf16 %v12557_v2  ;;  %v3807_v33 = vsel %vm2136_vm5, %v3775_v41, %v8730_v45  ;;  %v4481_v2 = vld [vmem:[#allocation2 + $0x52] sm:$0xff] }
 0x553   : > { %16420 = vst [vmem:[#allocation57_spill] sm:$0xff] %v12791_v8  ;;  %v3870_v20 = vsel %vm2268_vm7, %v3838_v19, %v8889_v31  ;;  %v8969_v8 = vunpack.i.l.bf16 %v12624_v21 }
 0x554   : > { %v3839_v32 = vsel %vm2202_vm6, %v3807_v33, %v8810_v39  ;;  %v4484_v33 = vld [vmem:[#allocation2 + $0x7a] sm:$0xff] }
 0x557   : > { %4782 = vrot.lane.b32.xlu1 %v4468_v48, %s16398_s24  ;;  %4792 = vrot.lane.b32.xlu0 %v4473_v30, %s16398_s24  ;;  %v3903_v48 = vsel %vm3902_vm11, %v3870_v20, %v8969_v8  ;;  %v8890_v30 = vunpack.i.h.bf16 %v12632_v53  ;;  %v8734_v8 = vunpack.i.l.bf16 %v12496_v40  ;;  %v9050_v20 = vunpack.i.h.bf16 %v12721_v59 }
 0x558   : > { %4866 = vrot.lane.b32.xlu2 %v4478_v44, %s16342_s29  ;;  %v3936_v35 = vsel %vm3935_vm12, %v3903_v48, %v9049_v26  ;;  %v4471_v44 = vld [vmem:[#allocation2 + $0x159] sm:$0xff]  ;;  %v8814_v53 = vunpack.i.l.bf16 %v12575_v10  ;;  %v8970_v26 = vunpack.i.h.bf16 %v12624_v21 }
 0x559   : > { %v9128_v0 = vpop.permute.xlu1 %9127  ;;  %v12810_v19 = vpop.permute.xlu0 %9152 }
 0x55a   : > { %v12808_v37 = vpop.permute.xlu2 %4736  ;;  %v9129_v31 = vunpack.i.l.bf16 %v9128_v0  ;;  %v9130_v41 = vunpack.i.h.bf16 %v9128_v0  ;;  %v8974_v0 = vunpack.i.l.bf16 %v12673_v63 }
 0x55b   : > { %16421 = vst [vmem:[#allocation75_spill] sm:$0xff] %v12808_v37  ;;  %v8654_v37 = vunpack.i.l.bf16 %v12355_v24 }
 0x55c   : > { %v3969_v14 = vsel %vm3968_vm13, %v3936_v35, %v9129_v31  ;;  %v3871_v35 = vsel %vm2268_vm7, %v3839_v32, %v8890_v30 }
 0x55d   : > { %4135 = vmatmul.f32.vlgmr.msrb.gmra.mxu1 %v3969_v14  ;;  %v3776_v39 = vsel %vm573_vm2, %v12359_v52, %v8654_v37  ;;  %v3904_v48 = vsel %vm3902_vm11, %v3871_v35, %v8970_v26  ;;  %v8894_v52 = vunpack.i.l.bf16 %v12567_v5  ;;  %v9054_v37 = vunpack.i.l.bf16 %v12743_v50 }
 0x55e   : > { %v3808_v32 = vsel %vm2136_vm5, %v3776_v39, %v8734_v8  ;;  %v3937_v30 = vsel %vm3935_vm12, %v3904_v48, %v9050_v20  ;;  %v8735_v8 = vunpack.i.h.bf16 %v12496_v40  ;;  %v8815_v35 = vunpack.i.h.bf16 %v12575_v10 }
 0x55f   : > { %4788 = vrot.lane.b32.xlu1 %v4471_v44, %s16398_s24  ;;  %4862 = vrot.lane.b32.xlu0 %v4476_v62, %s16342_s29  ;;  %v3840_v21 = vsel %vm2202_vm6, %v3808_v32, %v8814_v53  ;;  %v3970_v14 = vsel %vm3968_vm13, %v3937_v30, %v9130_v41  ;;  %v4474_v44 = vld [vmem:[#allocation2 + $0x2] sm:$0xff]  ;;  %v4479_v62 = vld [vmem:[#allocation2 + $0x3a] sm:$0xff]  ;;  %v9134_v40 = vunpack.i.l.bf16 %v12732_v56  ;;  %v8975_v30 = vunpack.i.h.bf16 %v12673_v63  ;;  %s16438_s24 = smov 24  }
 0x560   : > { %4872 = vrot.lane.b32.xlu2 %v4481_v2, %s16342_s29  ;;  %v8655_v2 = vunpack.i.h.bf16 %v12355_v24  ;;  %v3872_v20 = vsel %vm2268_vm7, %v3840_v21, %v8894_v52  ;;  %v8659_v52 = vunpack.i.l.bf16 %v12431_v7 }
 0x561   : > { %v12827_v45 = vpop.permute.xlu1 %9142  ;;  %v12833_v59 = vpop.permute.xlu0 %9167  ;;  %v3905_v53 = vsel %vm3902_vm11, %v3872_v20, %v8974_v0  ;;  %v4477_v0 = vld [vmem:[#allocation2 + $0x22] sm:$0xff] }
 0x562   : > { %v12831_v31 = vpop.permute.xlu2 %4742  ;;  %v3938_v41 = vsel %vm3935_vm12, %v3905_v53, %v9054_v37  ;;  %v3777_v24 = vsel %vm573_vm2, %v12357_v22, %v8655_v2  ;;  %v9055_v22 = vunpack.i.h.bf16 %v12743_v50  ;;  %v8739_v37 = vunpack.i.l.bf16 %v12517_v46 }
 0x563   : > { %16422 = vst [vmem:[#allocation76_spill] sm:$0xff] %v12831_v31  ;;  %v3809_v32 = vsel %vm2136_vm5, %v3777_v24, %v8735_v8  ;;  %v3971_v21 = vsel %vm3968_vm13, %v3938_v41, %v9134_v40  ;;  %v3778_v50 = vsel %vm573_vm2, %v12392_v15, %v8659_v52  ;;  %v9135_v8 = vunpack.i.h.bf16 %v12732_v56  ;;  %v4490_v15 = vld [vmem:[#allocation2 + $0xc2] sm:$0xff] }
 0x564   : > { %v3841_v10 = vsel %vm2202_vm6, %v3809_v32, %v8815_v35  ;;  %v3810_v53 = vsel %vm2136_vm5, %v3778_v50, %v8739_v37  ;;  %v8899_v41 = vunpack.i.l.bf16 %v12626_v58  ;;  %v8819_v24 = vunpack.i.l.bf16 %v12508_v38 }
 0x565   : > { %4138 = vmatmul.f32.gmra.mxu1 %v3970_v14  ;;  %v4482_v14 = vld [vmem:[#allocation2 + $0x62] sm:$0xff]  ;;  %v8979_v40 = vunpack.i.l.bf16 %v12688_v55  ;;  %v8660_v56 = vunpack.i.h.bf16 %v12431_v7  ;;  %v8820_v50 = vunpack.i.h.bf16 %v12508_v38  ;;  %v9140_v38 = vunpack.i.h.bf16 %v12793_v6 }
 0x567   : > { %4858 = vrot.lane.b32.xlu1 %v4474_v44, %s16342_s29  ;;  %4868 = vrot.lane.b32.xlu0 %v4479_v62, %s16342_s29  ;;  %v8895_v44 = vunpack.i.h.bf16 %v12567_v5  ;;  %v4487_v62 = vld [vmem:[#allocation2 + $0x9a] sm:$0xff]  ;;  %v3779_v7 = vsel %vm573_vm2, %v12390_v61, %v8660_v56  ;;  %v4493_v61 = vld [vmem:[#allocation2 + $0xe2] sm:$0xff]  ;;  %v8824_v56 = vunpack.i.l.bf16 %v12569_v27 }
 0x568   : > { %4878 = vrot.lane.b32.xlu2 %v4484_v33, %s16342_s29 }
 0x569   : > { %v12851_v26 = vpop.permute.xlu1 %9157  ;;  %v12859_v48 = vpop.permute.xlu0 %9182  ;;  %v3873_v63 = vsel %vm2268_vm7, %v3841_v10, %v8895_v44  ;;  %v4480_v10 = vld [vmem:[#allocation2 + $0x4a] sm:$0xff]  ;;  %v9139_v44 = vunpack.i.l.bf16 %v12793_v6 }
 0x56a   : > { %v12857_v39 = vpop.permute.xlu2 %4748  ;;  %v3906_v33 = vsel %vm3902_vm11, %v3873_v63, %v8975_v30  ;;  %v4485_v30 = vld [vmem:[#allocation2 + $0x82] sm:$0xff] }
 0x56b   : > { %16423 = vst [vmem:[#allocation95_spill] sm:$0xff] %v12857_v39  ;;  %v3939_v5 = vsel %vm3935_vm12, %v3906_v33, %v9055_v22  ;;  %v8900_v33 = vunpack.i.h.bf16 %v12626_v58  ;;  %v4433_v39 = vld [vmem:[#allocation2 + $0x110] sm:$0xff] }
 0x56c   : > { %v3972_v32 = vsel %vm3968_vm13, %v3939_v5, %v9135_v8  ;;  %v8980_v8 = vunpack.i.h.bf16 %v12688_v55 }
 0x56d   : > { %4141 = vmatmul.f32.gmra.mxu1 %v3971_v21  ;;  %v3842_v21 = vsel %vm2202_vm6, %v3810_v53, %v8819_v24  ;;  %v4488_v24 = vld [vmem:[#allocation2 + $0xaa] sm:$0xff] }
 0x56f   : > { %4864 = vrot.lane.b32.xlu1 %v4477_v0, %s16342_s29  ;;  %4874 = vrot.lane.b32.xlu0 %v4482_v14, %s16342_s29  ;;  %v8740_v0 = vunpack.i.h.bf16 %v12517_v46  ;;  %v3874_v14 = vsel %vm2268_vm7, %v3842_v21, %v8899_v41  ;;  %v4483_v41 = vld [vmem:[#allocation2 + $0x6a] sm:$0xff] }
 0x570   : > { %4884 = vrot.lane.b32.xlu2 %v4487_v62, %s16342_s29  ;;  %v3907_v22 = vsel %vm3902_vm11, %v3874_v14, %v8979_v40  ;;  %v9059_v62 = vunpack.i.l.bf16 %v12681_v60  ;;  %v8904_v14 = vunpack.i.l.bf16 %v12642_v34 }
 0x571   : > { %v12874_v2 = vpop.permute.xlu1 %9172  ;;  %v12882_v35 = vpop.permute.xlu0 %9197  ;;  %v3811_v63 = vsel %vm2136_vm5, %v3779_v7, %v8740_v0  ;;  %v4486_v7 = vld [vmem:[#allocation2 + $0x92] sm:$0xff] }
 0x572   : > { %v12880_v20 = vpop.permute.xlu2 %4754  ;;  %v3940_v5 = vsel %vm3935_vm12, %v3907_v22, %v9059_v62  ;;  %v3843_v40 = vsel %vm2202_vm6, %v3811_v63, %v8820_v50  ;;  %v4491_v63 = vld [vmem:[#allocation2 + $0xca] sm:$0xff]  ;;  %v9064_v50 = vunpack.i.l.bf16 %v12734_v3 }
 0x573   : > { %16424 = vst [vmem:[#allocation100_spill] sm:$0xff] %v12880_v20  ;;  %v3973_v53 = vsel %vm3968_vm13, %v3940_v5, %v9139_v44  ;;  %v3875_v58 = vsel %vm2268_vm7, %v3843_v40, %v8900_v33  ;;  %v9786_v44 = vld [vmem:[#allocation3 + $0x48] sm:$0xff]  ;;  %v4496_v33 = vld [vmem:[#allocation2 + $0x10a] sm:$0xff] }
 0x574   : > { %v3908_v55 = vsel %vm3902_vm11, %v3875_v58, %v8980_v8  ;;  %v8825_v58 = vunpack.i.h.bf16 %v12569_v27  ;;  %v4499_v27 = vld [vmem:[#allocation2 + $0x12a] sm:$0xff] }
 0x575   : > { %4144 = vmatmul.f32.gmra.mxu1 %v3972_v32  ;;  %v8664_v32 = vunpack.i.l.bf16 %v12451_v29 }
 0x577   : > { %4870 = vrot.lane.b32.xlu1 %v4480_v10, %s16342_s29  ;;  %4880 = vrot.lane.b32.xlu0 %v4485_v30, %s16342_s29  ;;  %v8744_v10 = vunpack.i.l.bf16 %v12449_v43  ;;  %v9060_v30 = vunpack.i.h.bf16 %v12681_v60  ;;  %v3780_v22 = vsel %vm573_vm2, %v9786_v44, %v8664_v32 }
 0x578   : > { %4890 = vrot.lane.b32.xlu2 %v4490_v15, %s16342_s29 }
 0x579   : > { %v12899_v52 = vpop.permute.xlu1 %9187  ;;  %v12905_v37 = vpop.permute.xlu0 %4732  ;;  %v3941_v6 = vsel %vm3935_vm12, %v3908_v55, %v9060_v30  ;;  %v3812_v60 = vsel %vm2136_vm5, %v3780_v22, %v8744_v10  ;;  %v9787_v30 = vld [vmem:[#allocation3 + $0x50] sm:$0xff]  ;;  %v8669_v22 = vunpack.i.l.bf16 %v12372_v47 }
 0x57a   : > { %v12903_v46 = vpop.permute.xlu2 %4760  ;;  %v3974_v62 = vsel %vm3968_vm13, %v3941_v6, %v9140_v38  ;;  %v3844_v5 = vsel %vm2202_vm6, %v3812_v60, %v8824_v56  ;;  %v4494_v6 = vld [vmem:[#allocation2 + $0xf2] sm:$0xff]  ;;  %v8829_v60 = vunpack.i.l.bf16 %v12587_v11 }
 0x57b   : > { %16425 = vst [vmem:[#allocation108_spill] sm:$0xff] %v12903_v46  ;;  %v3876_v8 = vsel %vm2268_vm7, %v3844_v5, %v8904_v14  ;;  %v9145_v5 = vunpack.i.h.bf16 %v12827_v45 }
 0x57d   : > { %4147 = vmatmul.f32.gmra.mxu1 %v3973_v53  ;;  %v8665_v53 = vunpack.i.h.bf16 %v12451_v29  ;;  %v8905_v29 = vunpack.i.h.bf16 %v12642_v34  ;;  %v9065_v34 = vunpack.i.h.bf16 %v12734_v3 }
 0x57f   : > { %4876 = vrot.lane.b32.xlu1 %v4483_v41, %s16342_s29  ;;  %4886 = vrot.lane.b32.xlu0 %v4488_v24, %s16342_s29  ;;  %v8984_v41 = vunpack.i.l.bf16 %v12634_v9  ;;  %v9144_v24 = vunpack.i.l.bf16 %v12827_v45  ;;  %v3781_v56 = vsel %vm573_vm2, %v9787_v30, %v8665_v53  ;;  %v8989_v45 = vunpack.i.l.bf16 %v12683_v12 }
 0x580   : > { %4896 = vrot.lane.b32.xlu2 %v4493_v61, %s16342_s29  ;;  %v8745_v61 = vunpack.i.h.bf16 %v12449_v43  ;;  %v4489_v43 = vld [vmem:[#allocation2 + $0xb2] sm:$0xff]  ;;  %v8909_v30 = vunpack.i.l.bf16 %v12577_v23 }
 0x581   : > { %v12923_v15 = vpop.permute.xlu1 %9202  ;;  %v12928_v0 = vpop.permute.xlu0 %4738  ;;  %v3909_v55 = vsel %vm3902_vm11, %v3876_v8, %v8984_v41  ;;  %v9788_v8 = vld [vmem:[#allocation3 + $0x60] sm:$0xff] }
 0x582   : > { %v12926_v21 = vpop.permute.xlu2 %4766  ;;  %16427 = vst [vmem:[#allocation117_spill] sm:$0xff] %v12928_v0  ;;  %v3942_v10 = vsel %vm3935_vm12, %v3909_v55, %v9064_v50  ;;  %v3813_v44 = vsel %vm2136_vm5, %v3781_v56, %v8745_v61  ;;  %v3782_v53 = vsel %vm573_vm2, %v9788_v8, %v8669_v22  ;;  %v9069_v56 = vunpack.i.l.bf16 %v12756_v49 }
 0x583   : > { %16426 = vst [vmem:[#allocation109_spill] sm:$0xff] %v12926_v21  ;;  %v3975_v14 = vsel %vm3968_vm13, %v3942_v10, %v9144_v24  ;;  %v4497_v10 = vld [vmem:[#allocation2 + $0x112] sm:$0xff] }
 0x585   : > { %4150 = vmatmul.f32.gmra.mxu1 %v3974_v62  ;;  %v3845_v62 = vsel %vm2202_vm6, %v3813_v44, %v8825_v58 }
 0x587   : > { %4882 = vrot.lane.b32.xlu1 %v4486_v7, %s16342_s29  ;;  %4892 = vrot.lane.b32.xlu0 %v4491_v63, %s16342_s29  ;;  %v8749_v7 = vunpack.i.l.bf16 %v12510_v17  ;;  %v3877_v63 = vsel %vm2268_vm7, %v3845_v62, %v8905_v29  ;;  %v4492_v29 = vld [vmem:[#allocation2 + $0xda] sm:$0xff] }
 0x588   : > { %4902 = vrot.lane.b32.xlu2 %v4496_v33, %s16342_s29  ;;  %v8985_v33 = vunpack.i.h.bf16 %v12634_v9 }
 0x589   : > { %v12945_v40 = vpop.permute.xlu1 %4734  ;;  %v12950_v38 = vpop.permute.xlu0 %4744  ;;  %v3814_v61 = vsel %vm2136_vm5, %v3782_v53, %v8749_v7  ;;  %v4495_v53 = vld [vmem:[#allocation2 + $0xfa] sm:$0xff] }
 0x58a   : > { %16428 = vst [vmem:[#allocation125_spill] sm:$0xff] %v12945_v40  ;;  %v12948_v32 = vpop.permute.xlu2 %4772  ;;  %v3910_v24 = vsel %vm3902_vm11, %v3877_v63, %v8985_v33  ;;  %v3846_v9 = vsel %vm2202_vm6, %v3814_v61, %v8829_v60  ;;  %v8910_v61 = vunpack.i.h.bf16 %v12577_v23 }
 0x58b   : > { %16429 = vst [vmem:[#allocation59_spill] sm:$0xff] %v12948_v32  ;;  %v3943_v58 = vsel %vm3935_vm12, %v3910_v24, %v9065_v34  ;;  %v3878_v44 = vsel %vm2268_vm7, %v3846_v9, %v8909_v30  ;;  %v9789_v34 = vld [vmem:[#allocation3 + $0x68] sm:$0xff] }
 0x58c   : > { %16430 = vst [vmem:[#allocation74_spill] sm:$0xff] %v12950_v38  ;;  %v3976_v55 = vsel %vm3968_vm13, %v3943_v58, %v9145_v5  ;;  %v3911_v22 = vsel %vm3902_vm11, %v3878_v44, %v8989_v45  ;;  %v8990_v5 = vunpack.i.h.bf16 %v12683_v12  ;;  %v4500_v24 = vld [vmem:[#allocation2 + $0x13a] sm:$0xff]  ;;  %v9070_v58 = vunpack.i.h.bf16 %v12756_v49  ;;  %v4505_v9 = vld [vmem:[#allocation2 + $0x172] sm:$0xff]  ;;  %v9790_v49 = vld [vmem:[#allocation3 + $0x78] sm:$0xff] }
 0x58d   : > { %4153 = vmatmul.f32.gmra.mxu1 %v3975_v14  ;;  %v4502_v14 = vld [vmem:[#allocation2 + $0x152] sm:$0xff]  ;;  %v3944_v7 = vsel %vm3935_vm12, %v3911_v22, %v9069_v56  ;;  %v8674_v45 = vunpack.i.l.bf16 %v12447_v25  ;;  %v9150_v56 = vunpack.i.h.bf16 %v12745_v16  ;;  %v8914_v44 = vunpack.i.l.bf16 %v12636_v18 }
 0x58e   : > { %v8994_v22 = vunpack.i.l.bf16 %v12697_v28 }
 0x58f   : > { %4888 = vrot.lane.b32.xlu1 %v4489_v43, %s16342_s29  ;;  %4898 = vrot.lane.b32.xlu0 %v4494_v6, %s16342_s29  ;;  %v8670_v43 = vunpack.i.h.bf16 %v12372_v47  ;;  %v8750_v6 = vunpack.i.h.bf16 %v12510_v17  ;;  %v9149_v17 = vunpack.i.l.bf16 %v12745_v16  ;;  %v3784_v30 = vsel %vm573_vm2, %v9790_v49, %v8674_v45 }
 0x590   : > { %4908 = vrot.lane.b32.xlu2 %v4499_v27, %s16342_s29  ;;  %v8830_v27 = vunpack.i.h.bf16 %v12587_v11 }
 0x591   : > { %v12969_v50 = vpop.permute.xlu1 %4740  ;;  %v12974_v41 = vpop.permute.xlu0 %4750  ;;  %v3783_v47 = vsel %vm573_vm2, %v9789_v34, %v8670_v43  ;;  %v3977_v8 = vsel %vm3968_vm13, %v3944_v7, %v9149_v17  ;;  %v4498_v34 = vld [vmem:[#allocation2 + $0x122] sm:$0xff]  ;;  %v8675_v17 = vunpack.i.h.bf16 %v12447_v25 }
 0x592   : > { %16431 = vst [vmem:[#allocation78_spill] sm:$0xff] %v12969_v50  ;;  %v12972_v3 = vpop.permute.xlu2 %4778  ;;  %v3815_v33 = vsel %vm2136_vm5, %v3783_v47, %v8750_v6  ;;  %v4503_v47 = vld [vmem:[#allocation2 + $0x15a] sm:$0xff] }
 0x593   : > { %16432 = vst [vmem:[#allocation138_spill] sm:$0xff] %v12972_v3  ;;  %v3847_v11 = vsel %vm2202_vm6, %v3815_v33, %v8830_v27  ;;  %v8834_v27 = vunpack.i.l.bf16 %v12519_v57  ;;  %v8755_v33 = vunpack.i.h.bf16 %v12530_v36 }
 0x594   : > { %16433 = vst [vmem:[#allocation144_spill] sm:$0xff] %v12974_v41  ;;  %v3879_v12 = vsel %vm2268_vm7, %v3847_v11, %v8910_v61  ;;  %v9791_v61 = vld [vmem:[#allocation3 + $0x80] sm:$0xff]  ;;  %v4428_v41 = vld [vmem:[#allocation2 + $0xd8] sm:$0xff] }
 0x595   : > { %4156 = vmatmul.f32.gmra.mxu1 %v3976_v55  ;;  %v8754_v55 = vunpack.i.l.bf16 %v12530_v36  ;;  %v3785_v36 = vsel %vm573_vm2, %v9791_v61, %v8675_v17  ;;  %v4415_v61 = vld [vmem:[#allocation2 + $0x38] sm:$0xff] }
 0x596   : > { %v3817_v45 = vsel %vm2136_vm5, %v3785_v36, %v8755_v33  ;;  %v8919_v33 = vunpack.i.l.bf16 %v12651_v51 }
 0x597   : > { %4894 = vrot.lane.b32.xlu1 %v4492_v29, %s16342_s29  ;;  %4904 = vrot.lane.b32.xlu0 %v4497_v10, %s16342_s29  ;;  %v3912_v29 = vsel %vm3902_vm11, %v3879_v12, %v8990_v5  ;;  %v3816_v6 = vsel %vm2136_vm5, %v3784_v30, %v8754_v55  ;;  %v4414_v5 = vld [vmem:[#allocation2 + $0x30] sm:$0xff]  ;;  %v8915_v55 = vunpack.i.h.bf16 %v12636_v18  ;;  %v4501_v30 = vld [vmem:[#allocation2 + $0x142] sm:$0xff]  ;;  %v8679_v18 = vunpack.i.l.bf16 %v12465_v54 }
 0x598   : > { %4914 = vrot.lane.b32.xlu2 %v4502_v14, %s16342_s29  ;;  %v3945_v23 = vsel %vm3935_vm12, %v3912_v29, %v9070_v58  ;;  %v3848_v16 = vsel %vm2202_vm6, %v3816_v6, %v8834_v27  ;;  %v8835_v29 = vunpack.i.h.bf16 %v12519_v57  ;;  %v4412_v6 = vld [vmem:[#allocation2 + $0x18] sm:$0xff]  ;;  %v4417_v27 = vld [vmem:[#allocation2 + $0x50] sm:$0xff]  ;;  %v9155_v57 = vunpack.i.h.bf16 %v12810_v19 }
 0x599   : > { %v12992_v62 = vpop.permute.xlu1 %4746  ;;  %v12999_v60 = vpop.permute.xlu0 %4756  ;;  %v3978_v7 = vsel %vm3968_vm13, %v3945_v23, %v9150_v56  ;;  %v3880_v11 = vsel %vm2268_vm7, %v3848_v16, %v8914_v44  ;;  %v8995_v23 = vunpack.i.h.bf16 %v12697_v28 }
 0x59a   : > { %16434 = vst [vmem:[#allocation153_spill] sm:$0xff] %v12992_v62  ;;  %v12997_v63 = vpop.permute.xlu2 %4784  ;;  %v3849_v56 = vsel %vm2202_vm6, %v3817_v45, %v8835_v29  ;;  %v9079_v45 = vunpack.i.l.bf16 %v12747_v13  ;;  %v16442_v29 = vld [vmem:[#allocation39_spill] sm:$0xff]  ;;  %v4438_v62 = vld [vmem:[#allocation2 + $0x150] sm:$0xff] }
 0x59b   : > { %16435 = vst [vmem:[#allocation154_spill] sm:$0xff] %v12997_v63  ;;  %v3881_v44 = vsel %vm2268_vm7, %v3849_v56, %v8915_v55  ;;  %v4420_v55 = vld [vmem:[#allocation2 + $0x78] sm:$0xff] }
 0x59c   : > { %v3914_v28 = vsel %vm3902_vm11, %v3881_v44, %v8995_v23  ;;  %v8999_v23 = vunpack.i.l.bf16 %v16442_v29 }
 0x59d   : > { %4159 = vmatmul.f32.gmra.mxu1 %v3977_v8  ;;  %v9154_v8 = vunpack.i.l.bf16 %v12810_v19 }
 0x59f   : > { %4900 = vrot.lane.b32.xlu1 %v4495_v53, %s16342_s29  ;;  %4910 = vrot.lane.b32.xlu0 %v4500_v24, %s16342_s29  ;;  %v3913_v53 = vsel %vm3902_vm11, %v3880_v11, %v8994_v22  ;;  %v9074_v24 = vunpack.i.l.bf16 %v12690_v1  ;;  %v8759_v22 = vunpack.i.l.bf16 %v12463_v42  ;;  %v9792_v11 = vld [vmem:[#allocation3 + $0x90] sm:$0xff] }
 0x5a0   : > { %4920 = vrot.lane.b32.xlu2 %v4505_v9, %s16342_s29 }
 0x5a1   : > { %v13014_v10 = vpop.permute.xlu1 %4752  ;;  %v13021_v43 = vpop.permute.xlu0 %4762  ;;  %v3946_v12 = vsel %vm3935_vm12, %v3913_v53, %v9074_v24  ;;  %v4504_v53 = vld [vmem:[#allocation2 + $0x16a] sm:$0xff] }
 0x5a2   : > { %16436 = vst [vmem:[#allocation162_spill] sm:$0xff] %v13014_v10  ;;  %v13019_v14 = vpop.permute.xlu2 %4790  ;;  %v3979_v49 = vsel %vm3968_vm13, %v3946_v12, %v9154_v8  ;;  %v8680_v12 = vunpack.i.h.bf16 %v12465_v54  ;;  %v8920_v54 = vunpack.i.h.bf16 %v12651_v51 }
 0x5a3   : > { %16437 = vst [vmem:[#allocation26_spill] sm:$0xff] %v13019_v14 }
 0x5a5   : > { %4162 = vmatmul.f32.gmra.mxu1 %v3978_v7  ;;  %v9075_v7 = vunpack.i.h.bf16 %v12690_v1 }
 0x5a7   : > { %4906 = vrot.lane.b32.xlu1 %v4498_v34, %s16342_s29  ;;  %4916 = vrot.lane.b32.xlu0 %v4503_v47, %s16342_s29  ;;  %v8839_v47 = vunpack.i.l.bf16 %v12579_v4  ;;  %v3947_v19 = vsel %vm3935_vm12, %v3914_v28, %v9075_v7 }
 0x5a8   : > { %4990 = vrot.lane.b32.xlu2 %v4414_v5, %s16438_s24  ;;  %v3786_v5 = vsel %vm573_vm2, %v9792_v11, %v8679_v18  ;;  %v3980_v8 = vsel %vm3968_vm13, %v3947_v19, %v9155_v57  ;;  %v13091_v57 = vpop.f32.mrf.mxu2  ;;  %v4413_v11 = vld [vmem:[#allocation2 + $0x20] sm:$0xff] }
 0x5a9   : > { %v13038_v25 = vpop.permute.xlu1 %4758  ;;  %v13043_v9 = vpop.permute.xlu0 %4768  ;;  %v3818_v1 = vsel %vm2136_vm5, %v3786_v5, %v8759_v22  ;;  %v9793_v22 = vld [vmem:[#allocation3 + $0x98] sm:$0xff]  ;;  %v4418_v5 = vld [vmem:[#allocation2 + $0x60] sm:$0xff] }
 0x5aa   : > { %16439 = vst [vmem:[#allocation42_spill] sm:$0xff] %v13038_v25  ;;  %v13041_v58 = vpop.permute.xlu2 %4860  ;;  %v3850_v24 = vsel %vm2202_vm6, %v3818_v1, %v8839_v47  ;;  %v3787_v7 = vsel %vm573_vm2, %v9793_v22, %v8680_v12  ;;  %v9080_v1 = vunpack.i.h.bf16 %v12747_v13  ;;  %v13826_v25 = vld [vmem:[#allocation2 + $0x15a] sm:$0xff] }
 0x5ab   : > { %v3882_v36 = vsel %vm2268_vm7, %v3850_v24, %v8919_v33  ;;  %v4423_v24 = vld [vmem:[#allocation2 + $0x98] sm:$0xff] }
 0x5ac   : > { %v3915_v18 = vsel %vm3902_vm11, %v3882_v36, %v8999_v23  ;;  %v9794_v23 = vld [vmem:[#allocation3 + $0xa8] sm:$0xff] }
 0x5ad   : > { %4165 = vmatmul.f32.gmra.mxu1 %v3979_v49  ;;  %v9159_v49 = vunpack.i.l.bf16 %v12851_v26  ;;  %v3948_v28 = vsel %vm3935_vm12, %v3915_v18, %v9079_v45  ;;  %v9000_v45 = vunpack.i.h.bf16 %v16442_v29 }
 0x5af   : > { %4912 = vrot.lane.b32.xlu1 %v4501_v30, %s16342_s29  ;;  %4986 = vrot.lane.b32.xlu0 %v4412_v6, %s16438_s24  ;;  %v8760_v30 = vunpack.i.h.bf16 %v12463_v42  ;;  %v8840_v6 = vunpack.i.h.bf16 %v12579_v4  ;;  %v3981_v42 = vsel %vm3968_vm13, %v3948_v28, %v9159_v49  ;;  %v16446_v4 = vld [vmem:[#allocation17_spill] sm:$0xff] }
 0x5b0   : > { %4996 = vrot.lane.b32.xlu2 %v4417_v27, %s16438_s24  ;;  %v8684_v33 = vunpack.i.l.bf16 %v16446_v4 }
 0x5b1   : > { %v13061_v34 = vpop.permute.xlu1 %4764  ;;  %v13066_v16 = vpop.permute.xlu0 %4774  ;;  %v3819_v47 = vsel %vm2136_vm5, %v3787_v7, %v8760_v30 }
 0x5b2   : > { %16440 = vst [vmem:[#allocation61_spill] sm:$0xff] %v13061_v34  ;;  %v13064_v17 = vpop.permute.xlu2 %4866  ;;  %v3851_v19 = vsel %vm2202_vm6, %v3819_v47, %v8840_v6  ;;  %v3788_v49 = vsel %vm573_vm2, %v9794_v23, %v8684_v33  ;;  %v13122_v7 = vpop.f32.mrf.mxu2  ;;  %v16454_v33 = vld [vmem:[#allocation131_spill] sm:$0xff]  ;;  %v13766_v34 = vld [vmem:[#allocation2 + $0xf2] sm:$0xff] }
 0x5b3   : > { %16441 = vst [vmem:[#allocation89_spill] sm:$0xff] %v13064_v17  ;;  %v3883_v51 = vsel %vm2268_vm7, %v3851_v19, %v8920_v54  ;;  %v9084_v19 = vunpack.i.l.bf16 %v16454_v33  ;;  %v9795_v23 = vld [vmem:[#allocation3 + $0xb0] sm:$0xff]  ;;  %v13770_v17 = vld [vmem:[#allocation2 + $0x16a] sm:$0xff] }
 0x5b4   : > { %v3916_v6 = vsel %vm3902_vm11, %v3883_v51, %v9000_v45  ;;  %v4421_v51 = vld [vmem:[#allocation2 + $0x80] sm:$0xff] }
 0x5b5   : > { %4168 = vmatmul.f32.gmra.mxu1 %v3980_v8  ;;  %v16447_v8 = vld [vmem:[#allocation51_spill] sm:$0xff]  ;;  %v3949_v54 = vsel %vm3935_vm12, %v3916_v6, %v9080_v1 }
 0x5b6   : > { %v4426_v1 = vld [vmem:[#allocation2 + $0xc0] sm:$0xff] }
 0x5b7   : > { %4918 = vrot.lane.b32.xlu1 %v4504_v53, %s16342_s29  ;;  %4992 = vrot.lane.b32.xlu0 %v4415_v61, %s16438_s24  ;;  %v8764_v53 = vunpack.i.l.bf16 %v16447_v8  ;;  %v16448_v61 = vld [vmem:[#allocation31_spill] sm:$0xff] }
 0x5b8   : > { %5002 = vrot.lane.b32.xlu2 %v4420_v55, %s16438_s24  ;;  %v8844_v36 = vunpack.i.l.bf16 %v16448_v61  ;;  %v9160_v55 = vunpack.i.h.bf16 %v12851_v26  ;;  %v16452_v26 = vld [vmem:[#allocation143_spill] sm:$0xff] }
 0x5b9   : > { %v13083_v56 = vpop.permute.xlu1 %4770  ;;  %v13088_v27 = vpop.permute.xlu0 %4780  ;;  %v3820_v18 = vsel %vm2136_vm5, %v3788_v49, %v8764_v53  ;;  %v9004_v28 = vunpack.i.l.bf16 %v16452_v26  ;;  %v8765_v53 = vunpack.i.h.bf16 %v16447_v8  ;;  %v16456_v49 = vld [vmem:[#allocation121_spill] sm:$0xff] }
 0x5ba   : > { %16443 = vst [vmem:[#allocation101_spill] sm:$0xff] %v13083_v56  ;;  %v13086_v44 = vpop.permute.xlu2 %4872  ;;  %v3852_v29 = vsel %vm2202_vm6, %v3820_v18, %v8844_v36  ;;  %v3982_v22 = vsel %vm3968_vm13, %v3949_v54, %v9160_v55  ;;  %v8845_v36 = vunpack.i.h.bf16 %v16448_v61  ;;  %v9164_v6 = vunpack.i.l.bf16 %v16456_v49 }
 0x5bb   : > { %16444 = vst [vmem:[#allocation102_spill] sm:$0xff] %v13086_v44  ;;  %v4440_v44 = vld [vmem:[#allocation2 + $0x168] sm:$0xff] }
 0x5bc   : > { %16445 = vst [vmem:[#allocation122_spill] sm:$0xff] %v13088_v27  ;;  %v4608_v27 = vld [vmem:[#allocation2 + $0x78] sm:$0xff] }
 0x5bd   : > { %4171 = vmatmul.f32.gmra.mxu1 %v3981_v42  ;;  %v16453_v42 = vld [vmem:[#allocation71_spill] sm:$0xff] }
 0x5be   : > { %v8924_v47 = vunpack.i.l.bf16 %v16453_v42 }
 0x5bf   : > { %4988 = vrot.lane.b32.xlu1 %v4413_v11, %s16438_s24  ;;  %4998 = vrot.lane.b32.xlu0 %v4418_v5, %s16438_s24  ;;  %v8685_v11 = vunpack.i.h.bf16 %v16446_v4  ;;  %v4416_v5 = vld [vmem:[#allocation2 + $0x48] sm:$0xff] }
 0x5c0   : > { %5008 = vrot.lane.b32.xlu2 %v4423_v24, %s16438_s24  ;;  %v3884_v24 = vsel %vm2268_vm7, %v3852_v29, %v8924_v47  ;;  %v8925_v47 = vunpack.i.h.bf16 %v16453_v42 }
 0x5c1   : > { %v13109_v12 = vpop.permute.xlu1 %4776  ;;  %v13114_v13 = vpop.permute.xlu0 %4786  ;;  %v3917_v45 = vsel %vm3902_vm11, %v3884_v24, %v9004_v28  ;;  %v3789_v8 = vsel %vm573_vm2, %v9795_v23, %v8685_v11  ;;  %v16458_v11 = vld [vmem:[#allocation62_spill] sm:$0xff] }
 0x5c2   : > { %16449 = vst [vmem:[#allocation44_spill] sm:$0xff] %v13109_v12  ;;  %v13112_v30 = vpop.permute.xlu2 %4878  ;;  %v3950_v4 = vsel %vm3935_vm12, %v3917_v45, %v9084_v19  ;;  %v3821_v29 = vsel %vm2136_vm5, %v3789_v8, %v8765_v53  ;;  %v9085_v19 = vunpack.i.h.bf16 %v16454_v33  ;;  %v13150_v24 = vpop.f32.mrf.mxu2  ;;  %v16459_v45 = vld [vmem:[#allocation22_spill] sm:$0xff]  ;;  %v4429_v53 = vld [vmem:[#allocation2 + $0xe0] sm:$0xff] }
 0x5c3   : > { %16450 = vst [vmem:[#allocation60_spill] sm:$0xff] %v13112_v30  ;;  %v3853_v61 = vsel %vm2202_vm6, %v3821_v29, %v8845_v36  ;;  %v3983_v28 = vsel %vm3968_vm13, %v3950_v4, %v9164_v6  ;;  %v8769_v23 = vunpack.i.l.bf16 %v16459_v45  ;;  %v9796_v4 = vld [vmem:[#allocation3 + $0xc0] sm:$0xff]  ;;  %v9165_v6 = vunpack.i.h.bf16 %v16456_v49 }
 0x5c4   : > { %16451 = vst [vmem:[#allocation132_spill] sm:$0xff] %v13114_v13  ;;  %v8770_v14 = vunpack.i.h.bf16 %v16459_v45 }
 0x5c5   : > { %4174 = vmatmul.f32.gmra.mxu1 %v3982_v22  ;;  %v9005_v22 = vunpack.i.h.bf16 %v16452_v26  ;;  %v3885_v26 = vsel %vm2268_vm7, %v3853_v61, %v8925_v47  ;;  %v16462_v47 = vld [vmem:[#allocation56_spill] sm:$0xff] }
 0x5c7   : > { %4994 = vrot.lane.b32.xlu1 %v4416_v5, %s16438_s24  ;;  %5004 = vrot.lane.b32.xlu0 %v4421_v51, %s16438_s24  ;;  %v8689_v5 = vunpack.i.l.bf16 %v16458_v11  ;;  %v4419_v51 = vld [vmem:[#allocation2 + $0x68] sm:$0xff]  ;;  %v3918_v42 = vsel %vm3902_vm11, %v3885_v26, %v9005_v22 }
 0x5c8   : > { %5014 = vrot.lane.b32.xlu2 %v4426_v1, %s16438_s24  ;;  %v4424_v1 = vld [vmem:[#allocation2 + $0xa8] sm:$0xff]  ;;  %v3951_v36 = vsel %vm3935_vm12, %v3918_v42, %v9085_v19  ;;  %v4422_v42 = vld [vmem:[#allocation2 + $0x90] sm:$0xff] }
 0x5c9   : > { %v13134_v55 = vpop.permute.xlu1 %4782  ;;  %v13141_v54 = vpop.permute.xlu0 %4792  ;;  %v3790_v8 = vsel %vm573_vm2, %v9796_v4, %v8689_v5  ;;  %v3984_v19 = vsel %vm3968_vm13, %v3951_v36, %v9165_v6  ;;  %v8690_v5 = vunpack.i.h.bf16 %v16458_v11  ;;  %v4427_v4 = vld [vmem:[#allocation2 + $0xc8] sm:$0xff]  ;;  %v9169_v36 = vunpack.i.l.bf16 %v12833_v59 }
 0x5ca   : > { %16455 = vst [vmem:[#allocation145_spill] sm:$0xff] %v13134_v55  ;;  %v13139_v18 = vpop.permute.xlu2 %4884  ;;  %v3822_v61 = vsel %vm2136_vm5, %v3790_v8, %v8769_v23  ;;  %v4432_v23 = vld [vmem:[#allocation2 + $0x108] sm:$0xff]  ;;  %v13179_v8 = vld [vmem:[%s11155_s0] ss:$0 sm:$0xff]  ;;  %v13184_v6 = vpop.f32.mrf.mxu2 }
 0x5cb   : > { %16457 = vst [vmem:[#allocation146_spill] sm:$0xff] %v13141_v54  ;;  %v4538_v55 = vld [vmem:[#allocation2 + $0x19] sm:$0xff] }
 0x5cd   : > { %4177 = vmatmul.f32.gmra.mxu1 %v3983_v28 }
 0x5cf   : > { %5000 = vrot.lane.b32.xlu1 %v4419_v51, %s16438_s24  ;;  %5010 = vrot.lane.b32.xlu0 %v4424_v1, %s16438_s24  ;;  %v8929_v51 = vunpack.i.l.bf16 %v16462_v47  ;;  %v16463_v1 = vld [vmem:[#allocation82_spill] sm:$0xff] }
 0x5d0   : > { %5020 = vrot.lane.b32.xlu2 %v4429_v53, %s16438_s24  ;;  %v8849_v22 = vunpack.i.l.bf16 %v16463_v1  ;;  %v16464_v53 = vld [vmem:[#allocation25_spill] sm:$0xff] }
 0x5d1   : > { %v13158_v33 = vpop.permute.xlu1 %4788  ;;  %v13165_v28 = vpop.permute.xlu0 %4862  ;;  %v9009_v26 = vunpack.i.l.bf16 %v16464_v53  ;;  %v9010_v32 = vunpack.i.h.bf16 %v16464_v53 }
 0x5d2   : > { %16460 = vst [vmem:[#allocation167_spill] sm:$0xff] %v13158_v33  ;;  %v13163_v29 = vpop.permute.xlu2 %4890  ;;  %v3854_v49 = vsel %vm2202_vm6, %v3822_v61, %v8849_v22  ;;  %v16465_v61 = vld [vmem:[#allocation164_spill] sm:$0xff] }
 0x5d3   : > { %16461 = vst [vmem:[#allocation27_spill] sm:$0xff] %v13165_v28  ;;  %v3886_v63 = vsel %vm2268_vm7, %v3854_v49, %v8929_v51  ;;  %v9089_v45 = vunpack.i.l.bf16 %v16465_v61  ;;  %v9797_v51 = vld [vmem:[#allocation3 + $0xc8] sm:$0xff] }
 0x5d4   : > { %v3919_v11 = vsel %vm3902_vm11, %v3886_v63, %v9009_v26  ;;  %v8850_v26 = vunpack.i.h.bf16 %v16463_v1 }
 0x5d5   : > { %4180 = vmatmul.f32.gmra.mxu1 %v3984_v19  ;;  %v3791_v19 = vsel %vm573_vm2, %v9797_v51, %v8690_v5  ;;  %v3952_v63 = vsel %vm3935_vm12, %v3919_v11, %v9089_v45  ;;  %v4430_v5 = vld [vmem:[#allocation2 + $0xf0] sm:$0xff]  ;;  %v4435_v11 = vld [vmem:[#allocation2 + $0x128] sm:$0xff] }
 0x5d6   : > { %v3985_v46 = vsel %vm3968_vm13, %v3952_v63, %v9169_v36  ;;  %v9170_v36 = vunpack.i.h.bf16 %v12833_v59  ;;  %v16470_v63 = vld [vmem:[#allocation115_spill] sm:$0xff] }
 0x5d7   : > { %5006 = vrot.lane.b32.xlu1 %v4422_v42, %s16438_s24  ;;  %5016 = vrot.lane.b32.xlu0 %v4427_v4, %s16438_s24  ;;  %v3823_v4 = vsel %vm2136_vm5, %v3791_v19, %v8770_v14  ;;  %v16468_v19 = vld [vmem:[#allocation46_spill] sm:$0xff]  ;;  %v7412_v59 = vld [vmem:[%s13206_s23 + $0x80] sm:$0xff] }
 0x5d8   : > { %5026 = vrot.lane.b32.xlu2 %v4432_v23, %s16438_s24  ;;  %v8930_v23 = vunpack.i.h.bf16 %v16462_v47  ;;  %v3855_v14 = vsel %vm2202_vm6, %v3823_v4, %v8850_v26  ;;  %v4425_v47 = vld [vmem:[#allocation2 + $0xb0] sm:$0xff]  ;;  %v8774_v4 = vunpack.i.l.bf16 %v16468_v19  ;;  %v8854_v26 = vunpack.i.l.bf16 %v16470_v63 }
 0x5d9   : > { %v13187_v22 = vpop.permute.xlu1 %4858  ;;  %v13192_v42 = vpop.permute.xlu0 %4868 }
 0x5da   : > { %v13190_v49 = vpop.permute.xlu2 %4896  ;;  %16466 = vst [vmem:[#allocation28_spill] sm:$0xff] %v13192_v42  ;;  %v4136_v3 = vpop.f32.mrf.mxu1  ;;  %v3887_v53 = vsel %vm2268_vm7, %v3855_v14, %v8930_v23  ;;  %v7413_v23 = vld [vmem:[%s13206_s23 + $0x88] sm:$0xff] }
 0x5db   : > { %v4137_v21 = vadd.f32 %v13179_v8, %v4136_v3  ;;  %v3920_v51 = vsel %vm3902_vm11, %v3887_v53, %v9010_v32  ;;  %7637 = vmatpush.msrb.mxu2 %v7413_v23  ;;  %v16472_v32 = vld [vmem:[#allocation99_spill] sm:$0xff] }
 0x5dc   : > { %v13706_v42 = vld [vmem:[#allocation2 + $0x82] sm:$0xff] }
 0x5dd   : > { %4183 = vmatmul.f32.gmra.mxu1 %v3985_v46  ;;  %v4250_v1 = vadd.f32 %v13091_v57, %v4137_v21  ;;  %v16467_v46 = vld [vmem:[#allocation11_spill] sm:$0xff]  ;;  %v9090_v21 = vunpack.i.h.bf16 %v16465_v61  ;;  %7638 = vmatpush.msrb.mxu2 %v7412_v59  ;;  %v8935_v59 = vunpack.i.h.bf16 %v16472_v32 }
 0x5de   : > { %v8694_v3 = vunpack.i.l.bf16 %v16467_v46 }
 0x5df   : > { %5012 = vrot.lane.b32.xlu1 %v4425_v47, %s16438_s24  ;;  %5022 = vrot.lane.b32.xlu0 %v4430_v5, %s16438_s24  ;;  %v4345_v45 = vmax.f32 %v4250_v1, 0.0  ;;  %v13229_v5 = vpop.f32.mrf.mxu2  ;;  %v8934_v1 = vunpack.i.l.bf16 %v16472_v32  ;;  %v3953_v61 = vsel %vm3935_vm12, %v3920_v51, %v9090_v21  ;;  %v16473_v51 = vld [vmem:[#allocation73_spill] sm:$0xff]  ;;  %v4431_v32 = vld [vmem:[#allocation2 + $0xf8] sm:$0xff] }
 0x5e0   : > { %5032 = vrot.lane.b32.xlu2 %v4435_v11, %s16438_s24  ;;  %v9798_v11 = vld [vmem:[#allocation3 + $0xd8] sm:$0xff]  ;;  %v9094_v21 = vunpack.i.l.bf16 %v16473_v51 }
 0x5e1   : > { %v13219_v57 = vpop.permute.xlu1 %4864  ;;  %4378 = vst.msk [vmem:[#allocation4 + $0x19] sm:$0xff] %vm573_vm2, %v4345_v45  ;;  %v13226_v47 = vpop.permute.xlu0 %4874  ;;  %v3792_v20 = vsel %vm573_vm2, %v9798_v11, %v8694_v3  ;;  %v3986_v45 = vsel %vm3968_vm13, %v3953_v61, %v9170_v36  ;;  %v8695_v3 = vunpack.i.h.bf16 %v16467_v46  ;;  %v16474_v36 = vld [vmem:[#allocation85_spill] sm:$0xff] }
 0x5e2   : > { %16469 = vst [vmem:[#allocation77_spill] sm:$0xff] %v13219_v57  ;;  %v13224_v14 = vpop.permute.xlu2 %4902  ;;  %v4139_v53 = vpop.f32.mrf.mxu1  ;;  %v3824_v30 = vsel %vm2136_vm5, %v3792_v20, %v8774_v4  ;;  %v9014_v20 = vunpack.i.l.bf16 %v16474_v36  ;;  %v9174_v4 = vunpack.i.l.bf16 %v12874_v2 }
 0x5e3   : > { %16471 = vst [vmem:[#allocation90_spill] sm:$0xff] %v13226_v47  ;;  %v4140_v10 = vadd.f32 %v13179_v8, %v4139_v53  ;;  %v3856_v23 = vsel %vm2202_vm6, %v3824_v30, %v8854_v26  ;;  %v8855_v26 = vunpack.i.h.bf16 %v16470_v63 }
 0x5e4   : > { %v3888_v33 = vsel %vm2268_vm7, %v3856_v23, %v8934_v1 }
 0x5e5   : > { %4186 = vmatmul.f32.gmra.mxu1 %v3986_v45  ;;  %v4253_v47 = vadd.f32 %v13122_v7, %v4140_v10  ;;  %v8775_v10 = vunpack.i.h.bf16 %v16468_v19  ;;  %v3921_v46 = vsel %vm3902_vm11, %v3888_v33, %v9014_v20  ;;  %v16478_v45 = vld [vmem:[#allocation58_spill] sm:$0xff] }
 0x5e6   : > { %v8699_v23 = vunpack.i.l.bf16 %v16478_v45  ;;  %v4436_v20 = vld [vmem:[#allocation2 + $0x138] sm:$0xff] }
 0x5e7   : > { %5018 = vrot.lane.b32.xlu1 %v4428_v41, %s16438_s24  ;;  %5028 = vrot.lane.b32.xlu0 %v4433_v39, %s16438_s24  ;;  %v4346_v30 = vmax.f32 %v4253_v47, 0.0  ;;  %v3954_v47 = vsel %vm3935_vm12, %v3921_v46, %v9094_v21  ;;  %v13262_v61 = vpop.f32.mrf.mxu2 }
 0x5e8   : > { %5038 = vrot.lane.b32.xlu2 %v4438_v62, %s16438_s24  ;;  %v9799_v62 = vld [vmem:[#allocation3 + $0xe0] sm:$0xff]  ;;  %v3987_v63 = vsel %vm3968_vm13, %v3954_v47, %v9174_v4 }
 0x5e9   : > { %v13248_v7 = vpop.permute.xlu1 %4870  ;;  %4379 = vst.msk [vmem:[#allocation4 + $0x21] sm:$0xff] %vm573_vm2, %v4346_v30  ;;  %v13254_v39 = vpop.permute.xlu0 %4880  ;;  %v3793_v19 = vsel %vm573_vm2, %v9799_v62, %v8695_v3  ;;  %v16479_v30 = vld [vmem:[#allocation21_spill] sm:$0xff]  ;;  %v9015_v62 = vunpack.i.h.bf16 %v16474_v36 }
 0x5ea   : > { %16475 = vst [vmem:[#allocation97_spill] sm:$0xff] %v13248_v7  ;;  %v13252_v41 = vpop.permute.xlu2 %4908  ;;  %v4142_v1 = vpop.f32.mrf.mxu1  ;;  %v3825_v11 = vsel %vm2136_vm5, %v3793_v19, %v8775_v10  ;;  %v8779_v46 = vunpack.i.l.bf16 %v16479_v30  ;;  %v4441_v4 = vld [vmem:[#allocation2 + $0x170] sm:$0xff] }
 0x5eb   : > { %16476 = vst [vmem:[#allocation110_spill] sm:$0xff] %v13252_v41  ;;  %v4143_v53 = vadd.f32 %v13179_v8, %v4142_v1  ;;  %v3857_v33 = vsel %vm2202_vm6, %v3825_v11, %v8855_v26  ;;  %v9095_v1 = vunpack.i.h.bf16 %v16473_v51  ;;  %v16480_v10 = vld [vmem:[#allocation141_spill] sm:$0xff]  ;;  %v9175_v26 = vunpack.i.h.bf16 %v12874_v2 }
 0x5ec   : > { %16477 = vst [vmem:[#allocation123_spill] sm:$0xff] %v13254_v39  ;;  %v3889_v3 = vsel %vm2268_vm7, %v3857_v33, %v8935_v59  ;;  %v8859_v47 = vunpack.i.l.bf16 %v16480_v10  ;;  %v16486_v39 = vld [vmem:[#allocation165_spill] sm:$0xff] }
 0x5ed   : > { %4189 = vmatmul.f32.gmra.mxu1 %v3987_v63  ;;  %v4256_v21 = vadd.f32 %v13150_v24, %v4143_v53  ;;  %v9800_v53 = vld [vmem:[#allocation3 + $0xf0] sm:$0xff]  ;;  %v3922_v11 = vsel %vm3902_vm11, %v3889_v3, %v9015_v62  ;;  %v8700_v3 = vunpack.i.h.bf16 %v16478_v45  ;;  %v4439_v62 = vld [vmem:[#allocation2 + $0x158] sm:$0xff] }
 0x5ee   : > { %v3794_v59 = vsel %vm573_vm2, %v9800_v53, %v8699_v23  ;;  %v3955_v2 = vsel %vm3935_vm12, %v3922_v11, %v9095_v1  ;;  %v8860_v11 = vunpack.i.h.bf16 %v16480_v10 }
 0x5ef   : > { %5024 = vrot.lane.b32.xlu1 %v4431_v32, %s16438_s24  ;;  %5034 = vrot.lane.b32.xlu0 %v4436_v20, %s16438_s24  ;;  %v4347_v19 = vmax.f32 %v4256_v21, 0.0  ;;  %v3826_v36 = vsel %vm2136_vm5, %v3794_v59, %v8779_v46  ;;  %v16484_v20 = vld [vmem:[#allocation24_spill] sm:$0xff]  ;;  %v3988_v23 = vsel %vm3968_vm13, %v3955_v2, %v9175_v26  ;;  %v4434_v46 = vld [vmem:[#allocation2 + $0x120] sm:$0xff]  ;;  %v13296_v59 = vpop.f32.mrf.mxu2 }
 0x5f0   : > { %5044 = vrot.lane.b32.xlu2 %v4441_v4, %s16438_s24  ;;  %v3858_v32 = vsel %vm2202_vm6, %v3826_v36, %v8859_v47  ;;  %v9019_v21 = vunpack.i.l.bf16 %v16484_v20  ;;  %v8780_v47 = vunpack.i.h.bf16 %v16479_v30  ;;  %v9801_v2 = vld [vmem:[#allocation3 + $0xf8] sm:$0xff] }
 0x5f1   : > { %v13277_v24 = vpop.permute.xlu1 %4876  ;;  %4380 = vst.msk [vmem:[#allocation4 + $0x31] sm:$0xff] %vm573_vm2, %v4347_v19  ;;  %v13283_v63 = vpop.permute.xlu0 %4886  ;;  %v16485_v19 = vld [vmem:[#allocation68_spill] sm:$0xff]  ;;  %v3795_v30 = vsel %vm573_vm2, %v9801_v2, %v8700_v3  ;;  %v4536_v3 = vld [vmem:[#allocation2 + $0x180] sm:$0xff] }
 0x5f2   : > { %16481 = vst [vmem:[#allocation30_spill] sm:$0xff] %v13277_v24  ;;  %v13281_v51 = vpop.permute.xlu2 %4914  ;;  %v4145_v33 = vpop.f32.mrf.mxu1  ;;  %v8939_v53 = vunpack.i.l.bf16 %v16485_v19  ;;  %v9099_v24 = vunpack.i.l.bf16 %v16486_v39  ;;  %v3827_v10 = vsel %vm2136_vm5, %v3795_v30, %v8780_v47  ;;  %v16492_v30 = vld [vmem:[#allocation13_spill] sm:$0xff] }
 0x5f3   : > { %16482 = vst [vmem:[#allocation127_spill] sm:$0xff] %v13281_v51  ;;  %v4146_v4 = vadd.f32 %v13179_v8, %v4145_v33  ;;  %v4604_v51 = vld [vmem:[#allocation2 + $0x48] sm:$0xff] }
 0x5f4   : > { %16483 = vst [vmem:[#allocation133_spill] sm:$0xff] %v13283_v63  ;;  %v3890_v26 = vsel %vm2268_vm7, %v3858_v32, %v8939_v53  ;;  %v9020_v53 = vunpack.i.h.bf16 %v16484_v20  ;;  %v13808_v63 = vld [vmem:[#allocation2 + $0x13a] sm:$0xff] }
 0x5f5   : > { %4192 = vmatmul.f32.gmra.mxu1 %v3988_v23  ;;  %v4259_v1 = vadd.f32 %v13184_v6, %v4146_v4  ;;  %v3923_v45 = vsel %vm3902_vm11, %v3890_v26, %v9019_v21  ;;  %v16488_v4 = vld [vmem:[#allocation139_spill] sm:$0xff]  ;;  %v3859_v21 = vsel %vm2202_vm6, %v3827_v10, %v8860_v11  ;;  %v9100_v26 = vunpack.i.h.bf16 %v16486_v39 }
 0x5f6   : > { %v3956_v6 = vsel %vm3935_vm12, %v3923_v45, %v9099_v24  ;;  %v9179_v23 = vunpack.i.l.bf16 %v16488_v4  ;;  %v16491_v45 = vld [vmem:[#allocation19_spill] sm:$0xff]  ;;  %v8784_v11 = vunpack.i.l.bf16 %v16492_v30 }
 0x5f7   : > { %5030 = vrot.lane.b32.xlu1 %v4434_v46, %s16438_s24  ;;  %5040 = vrot.lane.b32.xlu0 %v4439_v62, %s16438_s24  ;;  %v4348_v36 = vmax.f32 %v4259_v1, 0.0  ;;  %v8940_v1 = vunpack.i.h.bf16 %v16485_v19  ;;  %v8704_v2 = vunpack.i.l.bf16 %v16491_v45  ;;  %v13330_v19 = vpop.f32.mrf.mxu2 }
 0x5f8   : > { %5114 = vrot.lane.b32.xlu2 %v4538_v55, %s16358_s30  ;;  %v3989_v62 = vsel %vm3968_vm13, %v3956_v6, %v9179_v23 }
 0x5f9   : > { %v13305_v33 = vpop.permute.xlu1 %4882  ;;  %4381 = vst.msk [vmem:[#allocation4 + $0x39] sm:$0xff] %vm573_vm2, %v4348_v36  ;;  %v13313_v32 = vpop.permute.xlu0 %4892  ;;  %v4541_v36 = vld [vmem:[#allocation2 + $0x39] sm:$0xff]  ;;  %v3891_v20 = vsel %vm2268_vm7, %v3859_v21, %v8940_v1 }
 0x5fa   : > { %16487 = vst [vmem:[#allocation140_spill] sm:$0xff] %v13305_v33  ;;  %v13311_v46 = vpop.permute.xlu2 %4920  ;;  %v4148_v55 = vpop.f32.mrf.mxu1  ;;  %v4437_v33 = vld [vmem:[#allocation2 + $0x140] sm:$0xff]  ;;  %v3924_v39 = vsel %vm3902_vm11, %v3891_v20, %v9020_v53  ;;  %v16498_v20 = vld [vmem:[#allocation96_spill] sm:$0xff] }
 0x5fb   : > { %16489 = vst [vmem:[#allocation155_spill] sm:$0xff] %v13311_v46  ;;  %v4149_v24 = vadd.f32 %v13179_v8, %v4148_v55  ;;  %v9802_v55 = vld [vmem:[#allocation3 + $0x108] sm:$0xff]  ;;  %v13749_v46 = vld [vmem:[#allocation2 + $0x142] sm:$0xff] }
 0x5fc   : > { %16490 = vst [vmem:[#allocation168_spill] sm:$0xff] %v13313_v32 }
 0x5fd   : > { %4195 = vmatmul.f32.gmra.mxu1 %v3989_v62  ;;  %v4262_v47 = vadd.f32 %v13229_v5, %v4149_v24  ;;  %v3957_v5 = vsel %vm3935_vm12, %v3924_v39, %v9100_v26  ;;  %v3796_v24 = vsel %vm573_vm2, %v9802_v55, %v8704_v2  ;;  %v9024_v39 = vunpack.i.l.bf16 %v16498_v20  ;;  %v4544_v55 = vld [vmem:[#allocation2 + $0x61] sm:$0xff] }
 0x5fe   : > { %v3828_v53 = vsel %vm2136_vm5, %v3796_v24, %v8784_v11  ;;  %v8785_v24 = vunpack.i.h.bf16 %v16492_v30 }
 0x5ff   : > { %5036 = vrot.lane.b32.xlu1 %v4437_v33, %s16438_s24  ;;  %5046 = vrot.lane.b32.xlu0 %v4536_v3, %s16438_s24  ;;  %v4349_v6 = vmax.f32 %v4262_v47, 0.0  ;;  %v9180_v33 = vunpack.i.h.bf16 %v16488_v4  ;;  %v16496_v3 = vld [vmem:[#allocation98_spill] sm:$0xff]  ;;  %v16497_v47 = vld [vmem:[#allocation67_spill] sm:$0xff] }
 0x600   : > { %5120 = vrot.lane.b32.xlu2 %v4541_v36, %s16358_s30  ;;  %v6244_v10 = vld [vmem:[#allocation4 + $0x32] sm:$0xff]  ;;  %v8944_v1 = vunpack.i.l.bf16 %v16496_v3  ;;  %v8864_v26 = vunpack.i.l.bf16 %v16497_v47 }
 0x601   : > { %v13332_v23 = vpop.permute.xlu1 %4888  ;;  %4382 = vst.msk [vmem:[#allocation4 + $0x49] sm:$0xff] %vm573_vm2, %v4349_v6  ;;  %v13340_v62 = vpop.permute.xlu0 %4898  ;;  %8435 = vmatmul.msk.f32.vlgmr.msrb.gmra.mxu2 %vm573_vm2, %v6244_v10  ;;  %v3990_v4 = vsel %vm3968_vm13, %v3957_v5, %v9180_v33  ;;  %v4539_v6 = vld [vmem:[#allocation2 + $0x21] sm:$0xff]  ;;  %v9184_v5 = vunpack.i.l.bf16 %v12859_v48 }
 0x602   : > { %16493 = vst [vmem:[#allocation169_spill] sm:$0xff] %v13332_v23  ;;  %v13338_v21 = vpop.permute.xlu2 %4990  ;;  %v4151_v36 = vpop.f32.mrf.mxu1  ;;  %v8705_v23 = vunpack.i.h.bf16 %v16491_v45  ;;  %v3860_v10 = vsel %vm2202_vm6, %v3828_v53, %v8864_v26 }
 0x603   : > { %16494 = vst [vmem:[#allocation18_spill] sm:$0xff] %v13338_v21  ;;  %v4152_v2 = vadd.f32 %v13179_v8, %v4151_v36  ;;  %v3892_v38 = vsel %vm2268_vm7, %v3860_v10, %v8944_v1  ;;  %v16499_v36 = vld [vmem:[#allocation72_spill] sm:$0xff]  ;;  %v8865_v10 = vunpack.i.h.bf16 %v16497_v47  ;;  %v16503_v47 = vld [vmem:[#allocation66_spill] sm:$0xff] }
 0x604   : > { %16495 = vst [vmem:[#allocation43_spill] sm:$0xff] %v13340_v62  ;;  %v3925_v45 = vsel %vm3902_vm11, %v3892_v38, %v9024_v39  ;;  %v9104_v53 = vunpack.i.l.bf16 %v16499_v36  ;;  %v8945_v39 = vunpack.i.h.bf16 %v16496_v3  ;;  %v13841_v21 = vld [vmem:[#allocation2 + $0x182] sm:$0xff] }
 0x605   : > { %4198 = vmatmul.f32.gmra.mxu1 %v3990_v4  ;;  %v4265_v11 = vadd.f32 %v13262_v61, %v4152_v2  ;;  %v6245_v61 = vld [vmem:[#allocation4 + $0x3a] sm:$0xff]  ;;  %v13369_v4 = vpop.f32.mrf.mxu2 }
 0x606   : > { %v9803_v2 = vld [vmem:[#allocation3 + $0x110] sm:$0xff] }
 0x607   : > { %5042 = vrot.lane.b32.xlu1 %v4440_v44, %s16438_s24  ;;  %5116 = vrot.lane.b32.xlu0 %v4539_v6, %s16358_s30  ;;  %v4350_v33 = vmax.f32 %v4265_v11, 0.0  ;;  %v3797_v30 = vsel %vm573_vm2, %v9803_v2, %v8705_v23  ;;  %v9025_v23 = vunpack.i.h.bf16 %v16498_v20  ;;  %v4537_v2 = vld [vmem:[#allocation2 + $0x188] sm:$0xff]  ;;  %v8709_v20 = vunpack.i.l.bf16 %v16503_v47 }
 0x608   : > { %5126 = vrot.lane.b32.xlu2 %v4544_v55, %s16358_s30  ;;  %v3829_v38 = vsel %vm2136_vm5, %v3797_v30, %v8785_v24  ;;  %v3958_v55 = vsel %vm3935_vm12, %v3925_v45, %v9104_v53  ;;  %v9185_v45 = vunpack.i.h.bf16 %v12859_v48  ;;  %v16504_v30 = vld [vmem:[#allocation12_spill] sm:$0xff]  ;;  %v16509_v48 = vld [vmem:[#allocation55_spill] sm:$0xff] }
 0x609   : > { %v13360_v26 = vpop.permute.xlu1 %4894  ;;  %4383 = vst.msk [vmem:[#allocation4 + $0x51] sm:$0xff] %vm573_vm2, %v4350_v33  ;;  %v13366_v1 = vpop.permute.xlu0 %4904  ;;  %8436 = vmatmul.msk.f32.gmra.mxu2 %vm573_vm2, %v6245_v61  ;;  %v3991_v33 = vsel %vm3968_vm13, %v3958_v55, %v9184_v5  ;;  %v4547_v61 = vld [vmem:[#allocation2 + $0x81] sm:$0xff] }
 0x60a   : > { %16500 = vst [vmem:[#allocation80_spill] sm:$0xff] %v13360_v26  ;;  %v13364_v44 = vpop.permute.xlu2 %4996  ;;  %v4154_v6 = vpop.f32.mrf.mxu1  ;;  %v4542_v26 = vld [vmem:[#allocation2 + $0x49] sm:$0xff] }
 0x60b   : > { %16501 = vst [vmem:[#allocation81_spill] sm:$0xff] %v13364_v44  ;;  %v4155_v11 = vadd.f32 %v13179_v8, %v4154_v6  ;;  %v8789_v6 = vunpack.i.l.bf16 %v16504_v30 }
 0x60c   : > { %16502 = vst [vmem:[#allocation103_spill] sm:$0xff] %v13366_v1  ;;  %v3861_v1 = vsel %vm2202_vm6, %v3829_v38, %v8865_v10  ;;  %v9105_v38 = vunpack.i.h.bf16 %v16499_v36 }
 0x60d   : > { %4201 = vmatmul.f32.gmra.mxu1 %v3991_v33  ;;  %v4268_v24 = vadd.f32 %v13296_v59, %v4155_v11  ;;  %v3893_v3 = vsel %vm2268_vm7, %v3861_v1, %v8945_v39  ;;  %v16506_v39 = vld [vmem:[#allocation69_spill] sm:$0xff]  ;;  %v8949_v11 = vunpack.i.l.bf16 %v16509_v48 }
 0x60e   : > { %v3926_v5 = vsel %vm3902_vm11, %v3893_v3, %v9025_v23  ;;  %v8869_v55 = vunpack.i.l.bf16 %v16506_v39  ;;  %v4540_v3 = vld [vmem:[#allocation2 + $0x31] sm:$0xff] }
 0x60f   : > { %5048 = vrot.lane.b32.xlu1 %v4537_v2, %s16438_s24  ;;  %5122 = vrot.lane.b32.xlu0 %v4542_v26, %s16358_s30  ;;  %v4351_v53 = vmax.f32 %v4268_v24, 0.0  ;;  %v3959_v33 = vsel %vm3935_vm12, %v3926_v5, %v9105_v38  ;;  %v9804_v2 = vld [vmem:[#allocation3 + $0x120] sm:$0xff]  ;;  %v16510_v38 = vld [vmem:[#allocation152_spill] sm:$0xff] }
 0x610   : > { %5132 = vrot.lane.b32.xlu2 %v4547_v61, %s16358_s30  ;;  %v6246_v1 = vld [vmem:[#allocation4 + $0x4a] sm:$0xff]  ;;  %v3798_v36 = vsel %vm573_vm2, %v9804_v2, %v8709_v20  ;;  %v3992_v24 = vsel %vm3968_vm13, %v3959_v33, %v9185_v45  ;;  %v9109_v20 = vunpack.i.l.bf16 %v16510_v38  ;;  %v8710_v45 = vunpack.i.h.bf16 %v16503_v47 }
 0x611   : > { %v13389_v59 = vpop.permute.xlu1 %4900  ;;  %4384 = vst.msk [vmem:[#allocation4 + $0x61] sm:$0xff] %vm573_vm2, %v4351_v53  ;;  %v13395_v10 = vpop.permute.xlu0 %4910  ;;  %8437 = vmatmul.msk.f32.gmra.mxu2 %vm573_vm2, %v6246_v1  ;;  %v4545_v53 = vld [vmem:[#allocation2 + $0x69] sm:$0xff] }
 0x612   : > { %16505 = vst [vmem:[#allocation111_spill] sm:$0xff] %v13389_v59  ;;  %v13393_v26 = vpop.permute.xlu2 %5002  ;;  %v4157_v23 = vpop.f32.mrf.mxu1  ;;  %v4550_v1 = vld [vmem:[#allocation2 + $0xa9] sm:$0xff] }
 0x613   : > { %16507 = vst [vmem:[#allocation118_spill] sm:$0xff] %v13393_v26  ;;  %v4158_v61 = vadd.f32 %v13179_v8, %v4157_v23  ;;  %v13403_v59 = vpop.f32.mrf.mxu2  ;;  %v3830_v26 = vsel %vm2136_vm5, %v3798_v36, %v8789_v6  ;;  %v16511_v23 = vld [vmem:[#allocation119_spill] sm:$0xff]  ;;  %v9189_v6 = vunpack.i.l.bf16 %v12899_v52 }
 0x614   : > { %16508 = vst [vmem:[#allocation126_spill] sm:$0xff] %v13395_v10  ;;  %v3862_v10 = vsel %vm2202_vm6, %v3830_v26, %v8869_v55  ;;  %v9029_v33 = vunpack.i.l.bf16 %v16511_v23  ;;  %v8790_v55 = vunpack.i.h.bf16 %v16504_v30  ;;  %v6247_v26 = vld [vmem:[#allocation4 + $0x52] sm:$0xff] }
 0x615   : > { %4204 = vmatmul.f32.gmra.mxu1 %v3992_v24  ;;  %v4271_v7 = vadd.f32 %v13330_v19, %v4158_v61  ;;  %v3894_v5 = vsel %vm2268_vm7, %v3862_v10, %v8949_v11  ;;  %v8870_v10 = vunpack.i.h.bf16 %v16506_v39  ;;  %v9805_v24 = vld [vmem:[#allocation3 + $0x128] sm:$0xff] }
 0x616   : > { %v3927_v47 = vsel %vm3902_vm11, %v3894_v5, %v9029_v33 }
 0x617   : > { %5118 = vrot.lane.b32.xlu1 %v4540_v3, %s16358_s30  ;;  %5128 = vrot.lane.b32.xlu0 %v4545_v53, %s16358_s30  ;;  %v4352_v2 = vmax.f32 %v4271_v7, 0.0  ;;  %v8950_v7 = vunpack.i.h.bf16 %v16509_v48  ;;  %v3960_v30 = vsel %vm3935_vm12, %v3927_v47, %v9109_v20  ;;  %v3799_v3 = vsel %vm573_vm2, %v9805_v24, %v8710_v45  ;;  %v16516_v47 = vld [vmem:[#allocation84_spill] sm:$0xff] }
 0x618   : > { %5138 = vrot.lane.b32.xlu2 %v4550_v1, %s16358_s30  ;;  %v3993_v53 = vsel %vm3968_vm13, %v3960_v30, %v9189_v6  ;;  %v4543_v1 = vld [vmem:[#allocation2 + $0x51] sm:$0xff]  ;;  %v8794_v45 = vunpack.i.l.bf16 %v16516_v47  ;;  %v9110_v6 = vunpack.i.h.bf16 %v16510_v38  ;;  %v9030_v24 = vunpack.i.h.bf16 %v16511_v23 }
 0x619   : > { %v13417_v19 = vpop.permute.xlu1 %4906  ;;  %4385 = vst.msk [vmem:[#allocation4 + $0x69] sm:$0xff] %vm573_vm2, %v4352_v2  ;;  %v13423_v36 = vpop.permute.xlu0 %4916  ;;  %8438 = vmatmul.msk.f32.gmra.mxu2 %vm573_vm2, %v6247_v26  ;;  %v4548_v2 = vld [vmem:[#allocation2 + $0x91] sm:$0xff]  ;;  %v4553_v26 = vld [vmem:[#allocation2 + $0xc9] sm:$0xff] }
 0x61a   : > { %16512 = vst [vmem:[#allocation79_spill] sm:$0xff] %v13417_v19  ;;  %v13421_v11 = vpop.permute.xlu2 %5008  ;;  %v4160_v61 = vpop.f32.mrf.mxu1  ;;  %v3831_v19 = vsel %vm2136_vm5, %v3799_v3, %v8790_v55  ;;  %v16517_v55 = vld [vmem:[#allocation23_spill] sm:$0xff] }
 0x61b   : > { %16513 = vst [vmem:[#allocation128_spill] sm:$0xff] %v13421_v11  ;;  %v4161_v39 = vadd.f32 %v13179_v8, %v4160_v61  ;;  %v16515_v11 = vld [vmem:[#allocation16_spill] sm:$0xff]  ;;  %v3863_v48 = vsel %vm2202_vm6, %v3831_v19, %v8870_v10  ;;  %v13436_v20 = vpop.f32.mrf.mxu2  ;;  %v8874_v30 = vunpack.i.l.bf16 %v16517_v55  ;;  %v9190_v19 = vunpack.i.h.bf16 %v12899_v52 }
 0x61c   : > { %16514 = vst [vmem:[#allocation147_spill] sm:$0xff] %v13423_v36  ;;  %v8714_v5 = vunpack.i.l.bf16 %v16515_v11  ;;  %v3895_v61 = vsel %vm2268_vm7, %v3863_v48, %v8950_v7  ;;  %v16520_v48 = vld [vmem:[#allocation88_spill] sm:$0xff]  ;;  %v16521_v36 = vld [vmem:[#allocation151_spill] sm:$0xff] }
 0x61d   : > { %4207 = vmatmul.f32.gmra.mxu1 %v3993_v53  ;;  %v4274_v33 = vadd.f32 %v13369_v4, %v4161_v39  ;;  %v9806_v39 = vld [vmem:[#allocation3 + $0x138] sm:$0xff]  ;;  %v3928_v23 = vsel %vm3902_vm11, %v3895_v61, %v9030_v24  ;;  %v8954_v12 = vunpack.i.l.bf16 %v16521_v36  ;;  %v4556_v61 = vld [vmem:[#allocation2 + $0xf1] sm:$0xff] }
 0x61e   : > { %v3800_v7 = vsel %vm573_vm2, %v9806_v39, %v8714_v5  ;;  %v4546_v39 = vld [vmem:[#allocation2 + $0x79] sm:$0xff] }
 0x61f   : > { %5124 = vrot.lane.b32.xlu1 %v4543_v1, %s16358_s30  ;;  %5134 = vrot.lane.b32.xlu0 %v4548_v2, %s16358_s30  ;;  %v4353_v10 = vmax.f32 %v4274_v33, 0.0  ;;  %v3832_v52 = vsel %vm2136_vm5, %v3800_v7, %v8794_v45  ;;  %v3961_v2 = vsel %vm3935_vm12, %v3928_v23, %v9110_v6  ;;  %v9034_v33 = vunpack.i.l.bf16 %v16520_v48 }
 0x620   : > { %5144 = vrot.lane.b32.xlu2 %v4553_v26, %s16358_s30  ;;  %v6248_v3 = vld [vmem:[#allocation4 + $0x62] sm:$0xff]  ;;  %v3864_v26 = vsel %vm2202_vm6, %v3832_v52, %v8874_v30  ;;  %v8715_v45 = vunpack.i.h.bf16 %v16515_v11  ;;  %v8795_v30 = vunpack.i.h.bf16 %v16516_v47  ;;  %v6249_v11 = vld [vmem:[#allocation4 + $0x6a] sm:$0xff] }
 0x621   : > { %v13447_v4 = vpop.permute.xlu1 %4912  ;;  %4386 = vst.msk [vmem:[#allocation4 + $0x79] sm:$0xff] %vm573_vm2, %v4353_v10  ;;  %v13453_v53 = vpop.permute.xlu0 %4986  ;;  %8439 = vmatmul.msk.f32.gmra.mxu2 %vm573_vm2, %v6248_v3  ;;  %v3994_v10 = vsel %vm3968_vm13, %v3961_v2, %v9190_v19  ;;  %v16522_v3 = vld [vmem:[#allocation40_spill] sm:$0xff]  ;;  %v3896_v24 = vsel %vm2268_vm7, %v3864_v26, %v8954_v12  ;;  %v8875_v19 = vunpack.i.h.bf16 %v16517_v55  ;;  %v9807_v47 = vld [vmem:[#allocation3 + $0x140] sm:$0xff] }
 0x622   : > { %16518 = vst [vmem:[#allocation156_spill] sm:$0xff] %v13447_v4  ;;  %v13451_v38 = vpop.permute.xlu2 %5014  ;;  %v4163_v1 = vpop.f32.mrf.mxu1  ;;  %v4551_v4 = vld [vmem:[#allocation2 + $0xb1] sm:$0xff]  ;;  %v9114_v31 = vunpack.i.l.bf16 %v16522_v3  ;;  %v3929_v23 = vsel %vm3902_vm11, %v3896_v24, %v9034_v33  ;;  %v3801_v2 = vsel %vm573_vm2, %v9807_v47, %v8715_v45  ;;  %v4554_v24 = vld [vmem:[#allocation2 + $0xd9] sm:$0xff] }
 0x623   : > { %16519 = vst [vmem:[#allocation163_spill] sm:$0xff] %v13451_v38  ;;  %v4164_v5 = vadd.f32 %v13179_v8, %v4163_v1  ;;  %v4282_v52 = vpop.f32.mrf.mxu2  ;;  %v3833_v26 = vsel %vm2136_vm5, %v3801_v2, %v8795_v30  ;;  %v4559_v30 = vld [vmem:[#allocation2 + $0x111] sm:$0xff] }
 0x624   : > { %v16528_v2 = vld [vmem:[#allocation70_spill] sm:$0xff] }
 0x625   : > { %4210 = vmatmul.f32.gmra.mxu1 %v3994_v10  ;;  %v4277_v6 = vadd.f32 %v13403_v59, %v4164_v5  ;;  %v3962_v59 = vsel %vm3935_vm12, %v3929_v23, %v9114_v31  ;;  %v16524_v5 = vld [vmem:[#allocation166_spill] sm:$0xff]  ;;  %v2876_v10 = vld [vmem:[#allocation3 + $0x19a] sm:$0xff]  ;;  %v9035_v31 = vunpack.i.h.bf16 %v16520_v48  ;;  %v9115_v23 = vunpack.i.h.bf16 %v16522_v3 }
 0x626   : > { %8433 = vmatmul.msk.f32.gmra.mxu3 %vm573_vm2, %v2876_v10  ;;  %v8799_v48 = vunpack.i.l.bf16 %v16528_v2  ;;  %v9808_v10 = vld [vmem:[#allocation3 + $0x150] sm:$0xff] }
 0x627   : > { %5130 = vrot.lane.b32.xlu1 %v4546_v39, %s16358_s30  ;;  %5140 = vrot.lane.b32.xlu0 %v4551_v4, %s16358_s30  ;;  %v4354_v7 = vmax.f32 %v4277_v6, 0.0  ;;  %v9194_v4 = vunpack.i.l.bf16 %v16524_v5  ;;  %v3865_v39 = vsel %vm2202_vm6, %v3833_v26, %v8875_v19  ;;  %v4549_v6 = vld [vmem:[#allocation2 + $0x99] sm:$0xff] }
 0x628   : > { %5150 = vrot.lane.b32.xlu2 %v4556_v61, %s16358_s30 }
 0x629   : > { %v13474_v1 = vpop.permute.xlu1 %4918  ;;  %4387 = vst.msk [vmem:[#allocation4 + $0x81] sm:$0xff] %vm573_vm2, %v4354_v7  ;;  %v13482_v55 = vpop.permute.xlu0 %4992  ;;  %8440 = vmatmul.msk.f32.gmra.mxu2 %vm573_vm2, %v6249_v11  ;;  %v3995_v45 = vsel %vm3968_vm13, %v3962_v59, %v9194_v4  ;;  %v8955_v7 = vunpack.i.h.bf16 %v16521_v36  ;;  %v16527_v11 = vld [vmem:[#allocation63_spill] sm:$0xff] }
 0x62a   : > { %16523 = vst [vmem:[#allocation29_spill] sm:$0xff] %v13474_v1  ;;  %v13480_v12 = vpop.permute.xlu2 %5020  ;;  %v4166_v33 = vpop.f32.mrf.mxu1  ;;  %v8719_v47 = vunpack.i.l.bf16 %v16527_v11  ;;  %v4557_v1 = vld [vmem:[#allocation2 + $0xf9] sm:$0xff] }
 0x62b   : > { %16525 = vst [vmem:[#allocation47_spill] sm:$0xff] %v13480_v12  ;;  %v4167_v61 = vadd.f32 %v13179_v8, %v4166_v33  ;;  %v3897_v59 = vsel %vm2268_vm7, %v3865_v39, %v8955_v7  ;;  %v13724_v12 = vld [vmem:[#allocation2 + $0xaa] sm:$0xff] }
 0x62c   : > { %16526 = vst [vmem:[#allocation65_spill] sm:$0xff] %v13482_v55  ;;  %v3930_v36 = vsel %vm3902_vm11, %v3897_v59, %v9035_v31 }
 0x62d   : > { %4213 = vmatmul.f32.gmra.mxu1 %v3995_v45  ;;  %v4280_v19 = vadd.f32 %v13436_v20, %v4167_v61  ;;  %v3963_v33 = vsel %vm3935_vm12, %v3930_v36, %v9115_v23  ;;  %v3802_v20 = vsel %vm573_vm2, %v9808_v10, %v8719_v47  ;;  %v9195_v61 = vunpack.i.h.bf16 %v16524_v5  ;;  %v2877_v23 = vld [vmem:[#allocation3 + $0x1a2] sm:$0xff]  ;;  %v16533_v47 = vld [vmem:[#allocation120_spill] sm:$0xff] }
 0x62e   : > { %v3834_v31 = vsel %vm2136_vm5, %v3802_v20, %v8799_v48  ;;  %v9039_v36 = vunpack.i.l.bf16 %v16533_v47  ;;  %v4552_v10 = vld [vmem:[#allocation2 + $0xc1] sm:$0xff]  ;;  %8434 = vmatmul.msk.f32.gmra.mxu3 %vm573_vm2, %v2877_v23  ;;  %v8720_v48 = vunpack.i.h.bf16 %v16527_v11 }
 0x62f   : > { %5136 = vrot.lane.b32.xlu1 %v4549_v6, %s16358_s30  ;;  %5146 = vrot.lane.b32.xlu0 %v4554_v24, %s16358_s30  ;;  %v4355_v4 = vmax.f32 %v4280_v19, 0.0  ;;  %v4285_v6 = vpop.f32.mrf.mxu2  ;;  %v16531_v24 = vld [vmem:[#allocation37_spill] sm:$0xff]  ;;  %v16532_v19 = vld [vmem:[#allocation34_spill] sm:$0xff]  ;;  %v16534_v23 = vld [vmem:[#allocation107_spill] sm:$0xff] }
 0x630   : > { %5156 = vrot.lane.b32.xlu2 %v4559_v30, %s16358_s30  ;;  %v6250_v26 = vld [vmem:[#allocation4 + $0x7a] sm:$0xff]  ;;  %v8959_v7 = vunpack.i.l.bf16 %v16531_v24  ;;  %v8879_v59 = vunpack.i.l.bf16 %v16532_v19  ;;  %v9119_v11 = vunpack.i.l.bf16 %v16534_v23 }
 0x631   : > { %v13501_v3 = vpop.permute.xlu1 %4988  ;;  %4388 = vst.msk [vmem:[#allocation4 + $0x91] sm:$0xff] %vm573_vm2, %v4355_v4  ;;  %v13509_v39 = vpop.permute.xlu0 %4998  ;;  %8441 = vmatmul.msk.f32.gmra.mxu2 %vm573_vm2, %v6250_v26  ;;  %v3996_v4 = vsel %vm3968_vm13, %v3963_v33, %v9195_v61  ;;  %v4562_v26 = vld [vmem:[#allocation2 + $0x139] sm:$0xff]  ;;  %v9199_v33 = vunpack.i.l.bf16 %v12882_v35 }
 0x632   : > { %v13507_v45 = vpop.permute.xlu2 %5026  ;;  %16530 = vst [vmem:[#allocation104_spill] sm:$0xff] %v13509_v39  ;;  %v4169_v30 = vpop.f32.mrf.mxu1  ;;  %v3866_v20 = vsel %vm2202_vm6, %v3834_v31, %v8879_v59  ;;  %v9809_v31 = vld [vmem:[#allocation3 + $0x158] sm:$0xff] }
 0x633   : > { %16529 = vst [vmem:[#allocation91_spill] sm:$0xff] %v13507_v45  ;;  %v4170_v5 = vadd.f32 %v13179_v8, %v4169_v30  ;;  %v8800_v45 = vunpack.i.h.bf16 %v16528_v2  ;;  %v3898_v44 = vsel %vm2268_vm7, %v3866_v20, %v8959_v7  ;;  %v3803_v2 = vsel %vm573_vm2, %v9809_v31, %v8720_v48  ;;  %v13545_v20 = vld [vmem:[#allocation2 + $0xe1] sm:$0xff] }
 0x634   : > { %v3931_v30 = vsel %vm3902_vm11, %v3898_v44, %v9039_v36  ;;  %v8960_v44 = vunpack.i.h.bf16 %v16531_v24 }
 0x635   : > { %4216 = vmatmul.f32.gmra.mxu1 %v3996_v4  ;;  %v4283_v39 = vadd.f32 %v4282_v52, %v4170_v5  ;;  %v6251_v52 = vld [vmem:[#allocation4 + $0x82] sm:$0xff]  ;;  %v3964_v36 = vsel %vm3935_vm12, %v3931_v30, %v9119_v11  ;;  %v8880_v5 = vunpack.i.h.bf16 %v16532_v19  ;;  %v9200_v19 = vunpack.i.h.bf16 %v12882_v35 }
 0x636   : > { %v3997_v48 = vsel %vm3968_vm13, %v3964_v36, %v9199_v33  ;;  %v9120_v11 = vunpack.i.h.bf16 %v16534_v23  ;;  %v16540_v36 = vld [vmem:[#allocation160_spill] sm:$0xff] }
 0x637   : > { %5142 = vrot.lane.b32.xlu1 %v4552_v10, %s16358_s30  ;;  %5152 = vrot.lane.b32.xlu0 %v4557_v1, %s16358_s30  ;;  %v4356_v61 = vmax.f32 %v4283_v39, 0.0  ;;  %v3835_v39 = vsel %vm2136_vm5, %v3803_v2, %v8800_v45  ;;  %v9040_v10 = vunpack.i.h.bf16 %v16533_v47  ;;  %v4288_v31 = vpop.f32.mrf.mxu2  ;;  %v16538_v45 = vld [vmem:[#allocation33_spill] sm:$0xff] }
 0x638   : > { %5162 = vrot.lane.b32.xlu2 %v4562_v26, %s16358_s30  ;;  %v8724_v2 = vunpack.i.l.bf16 %v16538_v45  ;;  %v3867_v24 = vsel %vm2202_vm6, %v3835_v39, %v8880_v5  ;;  %v8884_v5 = vunpack.i.l.bf16 %v16540_v36 }
 0x639   : > { %v13529_v4 = vpop.permute.xlu1 %4994  ;;  %4389 = vst.msk [vmem:[#allocation4 + $0x99] sm:$0xff] %vm573_vm2, %v4356_v61  ;;  %v13535_v1 = vpop.permute.xlu0 %5004  ;;  %8442 = vmatmul.msk.f32.gmra.mxu2 %vm573_vm2, %v6251_v52  ;;  %v4560_v61 = vld [vmem:[#allocation2 + $0x121] sm:$0xff]  ;;  %v4565_v52 = vld [vmem:[#allocation2 + $0x159] sm:$0xff]  ;;  %v3899_v30 = vsel %vm2268_vm7, %v3867_v24, %v8960_v44 }
 0x63a   : > { %16535 = vst [vmem:[#allocation105_spill] sm:$0xff] %v13529_v4  ;;  %v13533_v7 = vpop.permute.xlu2 %5032  ;;  %v4172_v59 = vpop.f32.mrf.mxu1  ;;  %v3932_v33 = vsel %vm3902_vm11, %v3899_v30, %v9040_v10  ;;  %v13572_v30 = vld [vmem:[#allocation2 + $0x109] sm:$0xff] }
 0x63b   : > { %16536 = vst [vmem:[#allocation124_spill] sm:$0xff] %v13533_v7  ;;  %v4173_v26 = vadd.f32 %v13179_v8, %v4172_v59  ;;  %v13745_v4 = vld [vmem:[#allocation2 + $0xca] sm:$0xff] }
 0x63c   : > { %16537 = vst [vmem:[#allocation45_spill] sm:$0xff] %v13535_v1 }
 0x63d   : > { %4219 = vmatmul.f32.gmra.mxu1 %v3997_v48  ;;  %v4286_v1 = vadd.f32 %v4285_v6, %v4173_v26  ;;  %v9810_v6 = vld [vmem:[#allocation3 + $0x168] sm:$0xff] }
 0x63e   : > { %v3804_v44 = vsel %vm573_vm2, %v9810_v6, %v8724_v2  ;;  %v16544_v48 = vld [vmem:[#allocation142_spill] sm:$0xff] }
 0x63f   : > { %5148 = vrot.lane.b32.xlu1 %v13545_v20, %s16358_s30  ;;  %5158 = vrot.lane.b32.xlu0 %v4560_v61, %s16358_s30  ;;  %v4357_v47 = vmax.f32 %v4286_v1, 0.0  ;;  %v16543_v1 = vld [vmem:[#allocation20_spill] sm:$0xff]  ;;  %v8964_v23 = vunpack.i.l.bf16 %v16544_v48  ;;  %v4291_v7 = vpop.f32.mrf.mxu2 }
 0x640   : > { %5168 = vrot.lane.b32.xlu2 %v4565_v52, %s16358_s30  ;;  %v6252_v39 = vld [vmem:[#allocation4 + $0x92] sm:$0xff]  ;;  %v8804_v10 = vunpack.i.l.bf16 %v16543_v1  ;;  %v3965_v52 = vsel %vm3935_vm12, %v3932_v33, %v9120_v11  ;;  %v16545_v33 = vld [vmem:[#allocation15_spill] sm:$0xff] }
 0x641   : > { %v13557_v59 = vpop.permute.xlu1 %5000  ;;  %4390 = vst.msk [vmem:[#allocation4 + $0xa9] sm:$0xff] %vm573_vm2, %v4357_v47  ;;  %v13564_v35 = vpop.permute.xlu0 %5010  ;;  %8443 = vmatmul.msk.f32.gmra.mxu2 %vm573_vm2, %v6252_v39  ;;  %v3998_v2 = vsel %vm3968_vm13, %v3965_v52, %v9200_v19  ;;  %v4563_v47 = vld [vmem:[#allocation2 + $0x141] sm:$0xff]  ;;  %v8725_v39 = vunpack.i.h.bf16 %v16538_v45  ;;  %v9124_v11 = vunpack.i.l.bf16 %v16545_v33  ;;  %v16546_v19 = vld [vmem:[#allocation86_spill] sm:$0xff] }
 0x642   : > { %16539 = vst [vmem:[#allocation64_spill] sm:$0xff] %v13557_v59  ;;  %v13562_v26 = vpop.permute.xlu2 %5038  ;;  %v4175_v61 = vpop.f32.mrf.mxu1  ;;  %v3836_v6 = vsel %vm2136_vm5, %v3804_v44, %v8804_v10  ;;  %v9204_v44 = vunpack.i.l.bf16 %v12923_v15 }
 0x643   : > { %16541 = vst [vmem:[#allocation134_spill] sm:$0xff] %v13562_v26  ;;  %v4176_v24 = vadd.f32 %v13179_v8, %v4175_v61  ;;  %v3868_v26 = vsel %vm2202_vm6, %v3836_v6, %v8884_v5  ;;  %v9044_v61 = vunpack.i.l.bf16 %v16546_v19  ;;  %v9811_v5 = vld [vmem:[#allocation3 + $0x170] sm:$0xff] }
 0x644   : > { %16542 = vst [vmem:[#allocation148_spill] sm:$0xff] %v13564_v35  ;;  %v4568_v35 = vld [vmem:[#allocation2 + $0x181] sm:$0xff]  ;;  %v3900_v62 = vsel %vm2268_vm7, %v3868_v26, %v8964_v23  ;;  %v3805_v26 = vsel %vm573_vm2, %v9811_v5, %v8725_v39  ;;  %v8885_v23 = vunpack.i.h.bf16 %v16540_v36  ;;  %v4566_v5 = vld [vmem:[#allocation2 + $0x169] sm:$0xff] }
 0x645   : > { %4222 = vmatmul.f32.gmra.mxu1 %v3998_v2  ;;  %v4289_v59 = vadd.f32 %v4288_v31, %v4176_v24  ;;  %v6253_v31 = vld [vmem:[#allocation4 + $0x9a] sm:$0xff]  ;;  %v8965_v2 = vunpack.i.h.bf16 %v16544_v48 }
 0x647   : > { %5154 = vrot.lane.b32.xlu1 %v13572_v30, %s16358_s30  ;;  %5164 = vrot.lane.b32.xlu0 %v4563_v47, %s16358_s30  ;;  %v4358_v10 = vmax.f32 %v4289_v59, 0.0  ;;  %v3933_v59 = vsel %vm3902_vm11, %v3900_v62, %v9044_v61 }
 0x648   : > { %5174 = vrot.lane.b32.xlu2 %v4568_v35, %s16358_s30  ;;  %v8805_v35 = vunpack.i.h.bf16 %v16543_v1  ;;  %v3966_v6 = vsel %vm3935_vm12, %v3933_v59, %v9124_v11  ;;  %v13605_v1 = vpop.f32.mrf.mxu3  ;;  %v9125_v11 = vunpack.i.h.bf16 %v16545_v33 }
 0x649   : > { %v13585_v45 = vpop.permute.xlu1 %5006  ;;  %4391 = vst.msk [vmem:[#allocation4 + $0xb1] sm:$0xff] %vm573_vm2, %v4358_v10  ;;  %v13592_v24 = vpop.permute.xlu0 %5016  ;;  %8444 = vmatmul.msk.f32.gmra.mxu2 %vm573_vm2, %v6253_v31  ;;  %v3999_v36 = vsel %vm3968_vm13, %v3966_v6, %v9204_v44  ;;  %v13601_v10 = vld [vmem:[#allocation2 + $0x129] sm:$0xff]  ;;  %v9045_v44 = vunpack.i.h.bf16 %v16546_v19 }
 0x64a   : > { %16547 = vst [vmem:[#allocation149_spill] sm:$0xff] %v13585_v45  ;;  %v13590_v52 = vpop.permute.xlu2 %5044  ;;  %v4178_v47 = vpop.f32.mrf.mxu1  ;;  %v4571_v31 = vld [vmem:[#allocation2 + $0x22] sm:$0xff] }
 0x64b   : > { %16548 = vst [vmem:[#allocation170_spill] sm:$0xff] %v13590_v52  ;;  %v4179_v39 = vadd.f32 %v13179_v8, %v4178_v47  ;;  %v13690_v52 = vld [vmem:[#allocation2 + $0x62] sm:$0xff] }
 0x64c   : > { %16549 = vst [vmem:[#allocation32_spill] sm:$0xff] %v13592_v24  ;;  %v3837_v24 = vsel %vm2136_vm5, %v3805_v26, %v8805_v35  ;;  %v9205_v26 = vunpack.i.h.bf16 %v12923_v15 }
 0x64d   : > { %4225 = vmatmul.f32.gmra.mxu1 %v3999_v36  ;;  %v3869_v62 = vsel %vm2202_vm6, %v3837_v24, %v8885_v23  ;;  %v4292_v61 = vadd.f32 %v4291_v7, %v4179_v39  ;;  %v4294_v23 = vpop.f32.mrf.mxu2  ;;  %v13627_v39 = vld [vmem:[#allocation2 + $0x151] sm:$0xff]  ;;  %v4569_v36 = vld [vmem:[#allocation2 + $0x189] sm:$0xff] }
 0x64e   : > { %v3901_v48 = vsel %vm2268_vm7, %v3869_v62, %v8965_v2 }
 0x64f   : > { %5160 = vrot.lane.b32.xlu1 %v13601_v10, %s16358_s30  ;;  %5170 = vrot.lane.b32.xlu0 %v4566_v5, %s16358_s30  ;;  %v4359_v59 = vmax.f32 %v4292_v61, 0.0  ;;  %v3934_v2 = vsel %vm3902_vm11, %v3901_v48, %v9045_v44  ;;  %v4574_v5 = vld [vmem:[#allocation2 + $0x4a] sm:$0xff] }
 0x650   : > { %5244 = vrot.lane.b32.xlu2 %v4571_v31, %s16550_s19  ;;  %v6254_v24 = vld [vmem:[#allocation4 + $0xaa] sm:$0xff]  ;;  %v3967_v15 = vsel %vm3935_vm12, %v3934_v2, %v9125_v11  ;;  %v13633_v61 = vpop.f32.mrf.mxu3  ;;  %v6255_v11 = vld [vmem:[#allocation4 + $0xb2] sm:$0xff] }
 0x651   : > { %v13615_v7 = vpop.permute.xlu1 %5012  ;;  %4392 = vst.msk [vmem:[#allocation4 + $0xc1] sm:$0xff] %vm573_vm2, %v4359_v59  ;;  %v13620_v33 = vpop.permute.xlu0 %5022  ;;  %8445 = vmatmul.msk.f32.gmra.mxu2 %vm573_vm2, %v6254_v24  ;;  %v4000_v6 = vsel %vm3968_vm13, %v3967_v15, %v9205_v26  ;;  %v13644_v2 = vld [vmem:[#allocation2 + $0x171] sm:$0xff] }
 0x652   : > { %v13618_v35 = vpop.permute.xlu2 %5114  ;;  %16551 = vst [vmem:[#allocation92_spill] sm:$0xff] %v13620_v33  ;;  %v4181_v19 = vpop.f32.mrf.mxu1  ;;  %v4577_v15 = vld [vmem:[#allocation2 + $0x6a] sm:$0xff] }
 0x653   : > { %v4182_v47 = vadd.f32 %v13179_v8, %v4181_v19  ;;  %v4572_v19 = vld [vmem:[#allocation2 + $0x32] sm:$0xff] }
 0x655   : > { %4228 = vmatmul.f32.gmra.mxu1 %v4000_v6  ;;  %v4295_v31 = vadd.f32 %v4294_v23, %v4182_v47  ;;  %v4297_v59 = vpop.f32.mrf.mxu2 }
 0x657   : > { %5166 = vrot.lane.b32.xlu1 %v13627_v39, %s16358_s30  ;;  %5176 = vrot.lane.b32.xlu0 %v4569_v36, %s16358_s30  ;;  %v4360_v62 = vmax.f32 %v4295_v31, 0.0 }
 0x658   : > { %5250 = vrot.lane.b32.xlu2 %v4574_v5, %s16550_s19 }
 0x659   : > { %v13635_v48 = vpop.permute.xlu1 %5018  ;;  %4393 = vst.msk [vmem:[#allocation4 + $0xc9] sm:$0xff] %vm573_vm2, %v4360_v62  ;;  %v13640_v26 = vpop.permute.xlu0 %5028  ;;  %8446 = vmatmul.msk.f32.gmra.mxu2 %vm573_vm2, %v6255_v11  ;;  %v13659_v11 = vld [vmem:[%s11155_s0] ss:$0 sm:$0xff]  ;;  %s16633_s0 = smov 64  }
 0x65a   : > { %v13638_v44 = vpop.permute.xlu2 %5120  ;;  %16553 = vst [vmem:[#allocation36_spill] sm:$0xff] %v13640_v26  ;;  %v4184_v23 = vpop.f32.mrf.mxu1 }
 0x65b   : > { %16552 = vst [vmem:[#allocation112_spill] sm:$0xff] %v13638_v44  ;;  %v4185_v24 = vadd.f32 %v13179_v8, %v4184_v23  ;;  %v4570_v23 = vld [vmem:[#allocation2 + $0x1a] sm:$0xff]  ;;  %v13791_v44 = vld [vmem:[#allocation2 + $0x18a] sm:$0xff] }
 0x65d   : > { %v4298_v47 = vadd.f32 %v4297_v59, %v4185_v24  ;;  %v4575_v24 = vld [vmem:[#allocation2 + $0x52] sm:$0xff] }
 0x65f   : > { %5172 = vrot.lane.b32.xlu1 %v13644_v2, %s16358_s30  ;;  %5246 = vrot.lane.b32.xlu0 %v4572_v19, %s16550_s19  ;;  %v4361_v6 = vmax.f32 %v4298_v47, 0.0  ;;  %v4309_v19 = vpop.f32.mrf.mxu3  ;;  %v4580_v47 = vld [vmem:[#allocation2 + $0x92] sm:$0xff] }
 0x660   : > { %5256 = vrot.lane.b32.xlu2 %v4577_v15, %s16550_s19  ;;  %v6256_v5 = vld [vmem:[#allocation4 + $0xc2] sm:$0xff]  ;;  %v4300_v15 = vpop.f32.mrf.mxu2 }
 0x661   : > { %v13650_v36 = vpop.permute.xlu1 %5024  ;;  %4394 = vst.msk [vmem:[#allocation4 + $0xd9] sm:$0xff] %vm573_vm2, %v4361_v6  ;;  %v13655_v31 = vpop.permute.xlu0 %5034  ;;  %8447 = vmatmul.msk.f32.gmra.mxu2 %vm573_vm2, %v6256_v5  ;;  %v6257_v5 = vld [vmem:[#allocation4 + $0xca] sm:$0xff] }
 0x662   : > { %v13653_v8 = vpop.permute.xlu2 %5126  ;;  %16555 = vst [vmem:[#allocation157_spill] sm:$0xff] %v13655_v31  ;;  %v4187_v62 = vpop.f32.mrf.mxu1 }
 0x663   : > { %16554 = vst [vmem:[#allocation135_spill] sm:$0xff] %v13653_v8  ;;  %v4188_v59 = vadd.f32 %v13659_v11, %v4187_v62 }
 0x665   : > { %v4301_v26 = vadd.f32 %v4300_v15, %v4188_v59 }
 0x667   : > { %5242 = vrot.lane.b32.xlu1 %v4570_v23, %s16550_s19  ;;  %5252 = vrot.lane.b32.xlu0 %v4575_v24, %s16550_s19  ;;  %v4362_v6 = vmax.f32 %v4301_v26, 0.0  ;;  %v13674_v23 = vld [vmem:[#allocation2 + $0x3a] sm:$0xff]  ;;  %v4583_v26 = vld [vmem:[#allocation2 + $0xb2] sm:$0xff] }
 0x668   : > { %5262 = vrot.lane.b32.xlu2 %v4580_v47, %s16550_s19  ;;  %v4578_v24 = vld [vmem:[#allocation2 + $0x7a] sm:$0xff]  ;;  %v4312_v47 = vpop.f32.mrf.mxu3 }
 0x669   : > { %v13665_v31 = vpop.permute.xlu1 %5030  ;;  %4395 = vst.msk [vmem:[#allocation4 + $0xe1] sm:$0xff] %vm573_vm2, %v4362_v6  ;;  %v13670_v62 = vpop.permute.xlu0 %5040  ;;  %8448 = vmatmul.msk.f32.gmra.mxu2 %vm573_vm2, %v6257_v5 }
 0x66a   : > { %v13668_v33 = vpop.permute.xlu2 %5132  ;;  %16557 = vst [vmem:[#allocation48_spill] sm:$0xff] %v13670_v62  ;;  %v4190_v45 = vpop.f32.mrf.mxu1 }
 0x66b   : > { %16556 = vst [vmem:[#allocation171_spill] sm:$0xff] %v13668_v33  ;;  %v4191_v59 = vadd.f32 %v13659_v11, %v4190_v45 }
 0x66d   : > { %v4304_v15 = vadd.f32 %v13605_v1, %v4191_v59 }
 0x66f   : > { %5248 = vrot.lane.b32.xlu1 %v13674_v23, %s16550_s19  ;;  %5258 = vrot.lane.b32.xlu0 %v4578_v24, %s16550_s19  ;;  %v4363_v6 = vmax.f32 %v4304_v15, 0.0  ;;  %v4581_v24 = vld [vmem:[#allocation2 + $0x9a] sm:$0xff] }
 0x670   : > { %5268 = vrot.lane.b32.xlu2 %v4583_v26, %s16550_s19  ;;  %v6258_v5 = vld [vmem:[#allocation4 + $0xda] sm:$0xff] }
 0x671   : > { %v13681_v62 = vpop.permute.xlu1 %5036  ;;  %4396 = vst.msk [vmem:[#allocation4 + $0xf1] sm:$0xff] %vm573_vm2, %v4363_v6  ;;  %v13686_v33 = vpop.permute.xlu0 %5046  ;;  %8449 = vmatmul.msk.f32.gmra.mxu2 %vm573_vm2, %v6258_v5  ;;  %v4586_v15 = vld [vmem:[#allocation2 + $0xda] sm:$0xff]  ;;  %v6259_v5 = vld [vmem:[#allocation4 + $0xe2] sm:$0xff] }
 0x672   : > { %16558 = vst [vmem:[#allocation83_spill] sm:$0xff] %v13681_v62  ;;  %v13684_v45 = vpop.permute.xlu2 %5138  ;;  %v4193_v1 = vpop.f32.mrf.mxu1 }
 0x673   : > { %16559 = vst [vmem:[#allocation113_spill] sm:$0xff] %v13684_v45  ;;  %v4194_v59 = vadd.f32 %v13659_v11, %v4193_v1 }
 0x674   : > { %16560 = vst [vmem:[#allocation49_spill] sm:$0xff] %v13686_v33  ;;  %v4315_v33 = vpop.f32.mrf.mxu3 }
 0x675   : > { %v4307_v26 = vadd.f32 %v13633_v61, %v4194_v59 }
 0x677   : > { %5254 = vrot.lane.b32.xlu1 %v13690_v52, %s16550_s19  ;;  %5264 = vrot.lane.b32.xlu0 %v4581_v24, %s16550_s19  ;;  %v4364_v6 = vmax.f32 %v4307_v26, 0.0  ;;  %v13708_v24 = vld [vmem:[#allocation2 + $0xc2] sm:$0xff] }
 0x678   : > { %5274 = vrot.lane.b32.xlu2 %v4586_v15, %s16550_s19  ;;  %v4589_v15 = vld [vmem:[#allocation2 + $0xfa] sm:$0xff] }
 0x679   : > { %v13697_v45 = vpop.permute.xlu1 %5042  ;;  %4397 = vst.msk [vmem:[#allocation4 + $0xf9] sm:$0xff] %vm573_vm2, %v4364_v6  ;;  %v13702_v8 = vpop.permute.xlu0 %5116  ;;  %8450 = vmatmul.msk.f32.gmra.mxu2 %vm573_vm2, %v6259_v5 }
 0x67a   : > { %16561 = vst [vmem:[#allocation129_spill] sm:$0xff] %v13697_v45  ;;  %v13700_v1 = vpop.permute.xlu2 %5144  ;;  %v4196_v61 = vpop.f32.mrf.mxu1  ;;  %v13787_v45 = vld [vmem:[#allocation2 + $0x112] sm:$0xff] }
 0x67b   : > { %16562 = vst [vmem:[#allocation158_spill] sm:$0xff] %v13700_v1  ;;  %v4197_v59 = vadd.f32 %v13659_v11, %v4196_v61 }
 0x67d   : > { %v4310_v26 = vadd.f32 %v4309_v19, %v4197_v59  ;;  %v4318_v19 = vpop.f32.mrf.mxu3 }
 0x67f   : > { %5260 = vrot.lane.b32.xlu1 %v13706_v42, %s16550_s19  ;;  %5270 = vrot.lane.b32.xlu0 %v13708_v24, %s16550_s19  ;;  %v4365_v6 = vmax.f32 %v4310_v26, 0.0  ;;  %v13726_v26 = vld [vmem:[#allocation2 + $0xe2] sm:$0xff] }
 0x680   : > { %5280 = vrot.lane.b32.xlu2 %v4589_v15, %s16550_s19  ;;  %v6260_v5 = vld [vmem:[#allocation4 + $0xf2] sm:$0xff]  ;;  %v13728_v15 = vld [vmem:[#allocation2 + $0x122] sm:$0xff] }
 0x681   : > { %v13715_v1 = vpop.permute.xlu1 %5048  ;;  %4398 = vst.msk [vmem:[#allocation4 + $0x109] sm:$0xff] %vm573_vm2, %v4365_v6  ;;  %v13720_v56 = vpop.permute.xlu0 %5122  ;;  %8451 = vmatmul.msk.f32.gmra.mxu2 %vm573_vm2, %v6260_v5 }
 0x682   : > { %16563 = vst [vmem:[#allocation14_spill] sm:$0xff] %v13715_v1  ;;  %v13718_v61 = vpop.permute.xlu2 %5150  ;;  %v4199_v59 = vpop.f32.mrf.mxu1 }
 0x683   : > { %16564 = vst [vmem:[#allocation52_spill] sm:$0xff] %v13718_v61  ;;  %v4200_v50 = vadd.f32 %v13659_v11, %v4199_v59  ;;  %v6261_v59 = vld [vmem:[#allocation4 + $0xfa] sm:$0xff] }
 0x684   : > { %16565 = vst [vmem:[#allocation93_spill] sm:$0xff] %v13720_v56  ;;  %v13843_v28 = vpop.f32.mrf.mxu2 }
 0x685   : > { %v4313_v1 = vadd.f32 %v4312_v47, %v4200_v50  ;;  %v4321_v32 = vpop.f32.mrf.mxu3  ;;  %16579 = vst [vmem:[#allocation87_spill] sm:$0xff] %v13843_v28  ;;  %v4603_v28 = vld [vmem:[#allocation2 + $0x38] sm:$0xff] }
 0x687   : > { %5266 = vrot.lane.b32.xlu1 %v13724_v12, %s16550_s19  ;;  %5276 = vrot.lane.b32.xlu0 %v13726_v26, %s16550_s19  ;;  %v4366_v6 = vmax.f32 %v4313_v1, 0.0  ;;  %v13747_v1 = vld [vmem:[#allocation2 + $0x10a] sm:$0xff] }
 0x688   : > { %5286 = vrot.lane.b32.xlu2 %v13728_v15, %s16550_s19 }
 0x689   : > { %v13736_v5 = vpop.permute.xlu1 %5118  ;;  %4399 = vst.msk [vmem:[#allocation4 + $0x111] sm:$0xff] %vm573_vm2, %v4366_v6  ;;  %v13741_v56 = vpop.permute.xlu0 %5128  ;;  %8452 = vmatmul.msk.f32.gmra.mxu2 %vm573_vm2, %v6261_v59 }
 0x68a   : > { %16566 = vst [vmem:[#allocation106_spill] sm:$0xff] %v13736_v5  ;;  %v13739_v61 = vpop.permute.xlu2 %5156  ;;  %v4202_v50 = vpop.f32.mrf.mxu1  ;;  %v4607_v5 = vld [vmem:[#allocation2 + $0x68] sm:$0xff] }
 0x68b   : > { %16567 = vst [vmem:[#allocation50_spill] sm:$0xff] %v13739_v61  ;;  %v4203_v47 = vadd.f32 %v13659_v11, %v4202_v50 }
 0x68c   : > { %16568 = vst [vmem:[#allocation136_spill] sm:$0xff] %v13741_v56 }
 0x68d   : > { %v4316_v54 = vadd.f32 %v4315_v33, %v4203_v47 }
 0x68f   : > { %5272 = vrot.lane.b32.xlu1 %v13745_v4, %s16550_s19  ;;  %5282 = vrot.lane.b32.xlu0 %v13747_v1, %s16550_s19  ;;  %v4367_v6 = vmax.f32 %v4316_v54, 0.0  ;;  %v13768_v54 = vld [vmem:[#allocation2 + $0x12a] sm:$0xff] }
 0x690   : > { %5292 = vrot.lane.b32.xlu2 %v13749_v46, %s16550_s19  ;;  %v6262_v50 = vld [vmem:[#allocation4 + $0x10a] sm:$0xff] }
 0x691   : > { %v13757_v59 = vpop.permute.xlu1 %5124  ;;  %4400 = vst.msk [vmem:[#allocation4 + $0x121] sm:$0xff] %vm573_vm2, %v4367_v6  ;;  %v13762_v56 = vpop.permute.xlu0 %5134  ;;  %8453 = vmatmul.msk.f32.gmra.mxu2 %vm573_vm2, %v6262_v50 }
 0x692   : > { %16569 = vst [vmem:[#allocation150_spill] sm:$0xff] %v13757_v59  ;;  %v13760_v61 = vpop.permute.xlu2 %5162  ;;  %v4205_v33 = vpop.f32.mrf.mxu1 }
 0x693   : > { %16570 = vst [vmem:[#allocation41_spill] sm:$0xff] %v13760_v61  ;;  %v4206_v47 = vadd.f32 %v13659_v11, %v4205_v33  ;;  %v4324_v59 = vpop.f32.mrf.mxu3  ;;  %v6263_v33 = vld [vmem:[#allocation4 + $0x112] sm:$0xff] }
 0x694   : > { %16571 = vst [vmem:[#allocation38_spill] sm:$0xff] %v13762_v56 }
 0x695   : > { %v4319_v0 = vadd.f32 %v4318_v19, %v4206_v47 }
 0x697   : > { %5278 = vrot.lane.b32.xlu1 %v13766_v34, %s16550_s19  ;;  %5288 = vrot.lane.b32.xlu0 %v13768_v54, %s16550_s19  ;;  %v4368_v6 = vmax.f32 %v4319_v0, 0.0  ;;  %v13789_v0 = vld [vmem:[#allocation2 + $0x152] sm:$0xff] }
 0x698   : > { %5298 = vrot.lane.b32.xlu2 %v13770_v17, %s16550_s19 }
 0x699   : > { %v13778_v50 = vpop.permute.xlu1 %5130  ;;  %4401 = vst.msk [vmem:[#allocation4 + $0x129] sm:$0xff] %vm573_vm2, %v4368_v6  ;;  %v13783_v56 = vpop.permute.xlu0 %5140  ;;  %8454 = vmatmul.msk.f32.gmra.mxu2 %vm573_vm2, %v6263_v33 }
 0x69a   : > { %16572 = vst [vmem:[#allocation94_spill] sm:$0xff] %v13778_v50  ;;  %v13781_v61 = vpop.permute.xlu2 %5168  ;;  %v4208_v19 = vpop.f32.mrf.mxu1 }
 0x69b   : > { %16573 = vst [vmem:[#allocation114_spill] sm:$0xff] %v13781_v61  ;;  %v4209_v47 = vadd.f32 %v13659_v11, %v4208_v19  ;;  %v4327_v33 = vpop.f32.mrf.mxu3 }
 0x69d   : > { %v4322_v38 = vadd.f32 %v4321_v32, %v4209_v47 }
 0x69f   : > { %5284 = vrot.lane.b32.xlu1 %v13787_v45, %s16550_s19  ;;  %5294 = vrot.lane.b32.xlu0 %v13789_v0, %s16550_s19  ;;  %v4369_v6 = vmax.f32 %v4322_v38, 0.0  ;;  %v13810_v38 = vld [vmem:[#allocation2 + $0x172] sm:$0xff] }
 0x6a0   : > { %5304 = vrot.lane.b32.xlu2 %v13791_v44, %s16550_s19  ;;  %v6264_v19 = vld [vmem:[#allocation4 + $0x122] sm:$0xff] }
 0x6a1   : > { %v13799_v61 = vpop.permute.xlu1 %5136  ;;  %4402 = vst.msk [vmem:[#allocation4 + $0x139] sm:$0xff] %vm573_vm2, %v4369_v6  ;;  %v13804_v55 = vpop.permute.xlu0 %5146  ;;  %8455 = vmatmul.msk.f32.gmra.mxu2 %vm573_vm2, %v6264_v19  ;;  %v6265_v19 = vld [vmem:[#allocation4 + $0x12a] sm:$0xff] }
 0x6a2   : > { %16574 = vst [vmem:[#allocation35_spill] sm:$0xff] %v13799_v61  ;;  %v13802_v50 = vpop.permute.xlu2 %5174  ;;  %v4211_v32 = vpop.f32.mrf.mxu1 }
 0x6a3   : > { %16575 = vst [vmem:[#allocation137_spill] sm:$0xff] %v13802_v50  ;;  %v4212_v47 = vadd.f32 %v13659_v11, %v4211_v32 }
 0x6a5   : > { %v4325_v57 = vadd.f32 %v4324_v59, %v4212_v47  ;;  %v4330_v47 = vpop.f32.mrf.mxu3 }
 0x6a7   : > { %5290 = vrot.lane.b32.xlu1 %v13808_v63, %s16550_s19  ;;  %5300 = vrot.lane.b32.xlu0 %v13810_v38, %s16550_s19  ;;  %v4370_v6 = vmax.f32 %v4325_v57, 0.0  ;;  %v4602_v57 = vld [vmem:[#allocation2 + $0x30] sm:$0xff] }
 0x6a8   : > { %5374 = vrot.lane.b32.xlu2 %v4604_v51, %s16359_s12 }
 0x6a9   : > { %v13817_v50 = vpop.permute.xlu1 %5142  ;;  %4403 = vst.msk [vmem:[#allocation4 + $0x141] sm:$0xff] %vm573_vm2, %v4370_v6  ;;  %v13822_v61 = vpop.permute.xlu0 %5152  ;;  %8456 = vmatmul.msk.f32.gmra.mxu2 %vm573_vm2, %v6265_v19 }
 0x6aa   : > { %16576 = vst [vmem:[#allocation159_spill] sm:$0xff] %v13817_v50  ;;  %v13820_v32 = vpop.permute.xlu2 %5244  ;;  %v4214_v59 = vpop.f32.mrf.mxu1 }
 0x6ab   : > { %v4215_v13 = vadd.f32 %v13659_v11, %v4214_v59 }
 0x6ad   : > { %v4328_v51 = vadd.f32 %v4327_v33, %v4215_v13  ;;  %v4333_v41 = vpop.f32.mrf.mxu3 }
 0x6af   : > { %5296 = vrot.lane.b32.xlu1 %v13826_v25, %s16550_s19  ;;  %5370 = vrot.lane.b32.xlu0 %v4602_v57, %s16359_s12  ;;  %v4371_v6 = vmax.f32 %v4328_v51, 0.0  ;;  %v4605_v57 = vld [vmem:[#allocation2 + $0x50] sm:$0xff] }
 0x6b0   : > { %5380 = vrot.lane.b32.xlu2 %v4607_v5, %s16359_s12  ;;  %v6266_v19 = vld [vmem:[#allocation4 + $0x13a] sm:$0xff]  ;;  %v4610_v51 = vld [vmem:[#allocation2 + $0x90] sm:$0xff] }
 0x6b1   : > { %v13832_v50 = vpop.permute.xlu1 %5148  ;;  %4404 = vst.msk [vmem:[#allocation4 + $0x151] sm:$0xff] %vm573_vm2, %v4371_v6  ;;  %v13837_v59 = vpop.permute.xlu0 %5158  ;;  %8457 = vmatmul.msk.f32.gmra.mxu2 %vm573_vm2, %v6266_v19 }
 0x6b2   : > { %16577 = vst [vmem:[#allocation172_spill] sm:$0xff] %v13832_v50  ;;  %v13835_v62 = vpop.permute.xlu2 %5250  ;;  %v4217_v13 = vpop.f32.mrf.mxu1  ;;  %v6267_v50 = vld [vmem:[#allocation4 + $0x142] sm:$0xff] }
 0x6b3   : > { %16578 = vst [vmem:[#allocation53_spill] sm:$0xff] %v13835_v62  ;;  %v4218_v33 = vadd.f32 %v13659_v11, %v4217_v13 }
 0x6b5   : > { %v4331_v5 = vadd.f32 %v4330_v47, %v4218_v33 }
 0x6b7   : > { %5302 = vrot.lane.b32.xlu1 %v13841_v21, %s16550_s19  ;;  %5376 = vrot.lane.b32.xlu0 %v4605_v57, %s16359_s12  ;;  %v4372_v6 = vmax.f32 %v4331_v5, 0.0  ;;  %v4613_v57 = vld [vmem:[#allocation2 + $0xb0] sm:$0xff]  ;;  %s16663_s19 = smov 80  }
 0x6b8   : > { %5386 = vrot.lane.b32.xlu2 %v4610_v51, %s16359_s12  ;;  %v4336_v51 = vpop.f32.mrf.mxu3 }
 0x6b9   : > { %v13849_v19 = vpop.permute.xlu1 %5154  ;;  %4405 = vst.msk [vmem:[#allocation4 + $0x159] sm:$0xff] %vm573_vm2, %v4372_v6  ;;  %v13854_v62 = vpop.permute.xlu0 %5164  ;;  %8458 = vmatmul.msk.f32.gmra.mxu2 %vm573_vm2, %v6267_v50 }
 0x6ba   : > { %16580 = vst [vmem:[#allocation116_spill] sm:$0xff] %v13849_v19  ;;  %v13852_v13 = vpop.permute.xlu2 %5256  ;;  %v4220_v47 = vpop.f32.mrf.mxu1 }
 0x6bb   : > { %16581 = vst [vmem:[#allocation54_spill] sm:$0xff] %v13852_v13  ;;  %v4221_v33 = vadd.f32 %v13659_v11, %v4220_v47  ;;  %v13861_v6 = vpop.f32.mrf.mxu2 }
 0x6bc   : > { %16582 = vst [vmem:[#allocation130_spill] sm:$0xff] %v13854_v62 }
 0x6bd   : > { %v4334_v5 = vadd.f32 %v4333_v41, %v4221_v33  ;;  %16583 = vst [vmem:[#allocation161_spill] sm:$0xff] %v13861_v6  ;;  %v4606_v41 = vld [vmem:[#allocation2 + $0x60] sm:$0xff]  ;;  %v4611_v33 = vld [vmem:[#allocation2 + $0x98] sm:$0xff] }
 0x6bf   : > { %5372 = vrot.lane.b32.xlu1 %v4603_v28, %s16359_s12  ;;  %5382 = vrot.lane.b32.xlu0 %v4608_v27, %s16359_s12  ;;  %v4373_v19 = vmax.f32 %v4334_v5, 0.0  ;;  %v4616_v5 = vld [vmem:[#allocation2 + $0xd8] sm:$0xff] }
 0x6c0   : > { %5392 = vrot.lane.b32.xlu2 %v4613_v57, %s16359_s12  ;;  %v6268_v50 = vld [vmem:[#allocation4 + $0x152] sm:$0xff] }
 0x6c1   : > { %v13863_v13 = vpop.permute.xlu1 %5160  ;;  %4406 = vst.msk [vmem:[#allocation4 + $0x169] sm:$0xff] %vm573_vm2, %v4373_v19  ;;  %v13868_v62 = vpop.permute.xlu0 %5170  ;;  %8459 = vmatmul.msk.f32.gmra.mxu2 %vm573_vm2, %v6268_v50 }
 0x6c2   : > { %16584 = vst [vmem:[#allocation173_spill] sm:$0xff] %v13863_v13  ;;  %v13866_v47 = vpop.permute.xlu2 %5262  ;;  %v4223_v28 = vpop.f32.mrf.mxu1 }
 0x6c3   : > { %16585 = vst [vmem:[#allocation39_spill] sm:$0xff] %v13866_v47  ;;  %v4224_v27 = vadd.f32 %v13659_v11, %v4223_v28  ;;  %v6269_v47 = vld [vmem:[#allocation4 + $0x15a] sm:$0xff]  ;;  %v4339_v13 = vpop.f32.mrf.mxu3 }
 0x6c4   : > { %16586 = vst [vmem:[#allocation17_spill] sm:$0xff] %v13868_v62 }
 0x6c5   : > { %v4337_v57 = vadd.f32 %v4336_v51, %v4224_v27  ;;  %v13883_v51 = vpop.f32.mrf.mxu2 }
 0x6c6   : > { %16589 = vst [vmem:[#allocation143_spill] sm:$0xff] %v13883_v51 }
 0x6c7   : > { %5378 = vrot.lane.b32.xlu1 %v4606_v41, %s16359_s12  ;;  %5388 = vrot.lane.b32.xlu0 %v4611_v33, %s16359_s12  ;;  %v4374_v6 = vmax.f32 %v4337_v57, 0.0  ;;  %v4609_v33 = vld [vmem:[#allocation2 + $0x80] sm:$0xff] }
 0x6c8   : > { %5398 = vrot.lane.b32.xlu2 %v4616_v5, %s16359_s12  ;;  %v4614_v57 = vld [vmem:[#allocation2 + $0xc0] sm:$0xff]  ;;  %v4619_v5 = vld [vmem:[#allocation2 + $0xf8] sm:$0xff] }
 0x6c9   : > { %v13875_v19 = vpop.permute.xlu1 %5166  ;;  %4407 = vst.msk [vmem:[#allocation4 + $0x171] sm:$0xff] %vm573_vm2, %v4374_v6  ;;  %v13880_v28 = vpop.permute.xlu0 %5176  ;;  %8460 = vmatmul.msk.f32.gmra.mxu2 %vm573_vm2, %v6269_v47 }
 0x6ca   : > { %16587 = vst [vmem:[#allocation51_spill] sm:$0xff] %v13875_v19  ;;  %v13878_v50 = vpop.permute.xlu2 %5268  ;;  %v4226_v27 = vpop.f32.mrf.mxu1 }
 0x6cb   : > { %16588 = vst [vmem:[#allocation31_spill] sm:$0xff] %v13880_v28  ;;  %v4227_v41 = vadd.f32 %v13659_v11, %v4226_v27 }
 0x6cd   : > { %v4340_v62 = vadd.f32 %v4339_v13, %v4227_v41  ;;  %v4342_v13 = vpop.f32.mrf.mxu3 }
 0x6cf   : > { %5384 = vrot.lane.b32.xlu1 %v4609_v33, %s16359_s12  ;;  %5394 = vrot.lane.b32.xlu0 %v4614_v57, %s16359_s12  ;;  %v4375_v6 = vmax.f32 %v4340_v62, 0.0  ;;  %v4612_v33 = vld [vmem:[#allocation2 + $0xa8] sm:$0xff]  ;;  %v4617_v57 = vld [vmem:[#allocation2 + $0xe0] sm:$0xff]  ;;  %v13898_v62 = vpop.f32.mrf.mxu2 }
 0x6d0   : > { %5404 = vrot.lane.b32.xlu2 %v4619_v5, %s16359_s12  ;;  %v6270_v28 = vld [vmem:[#allocation4 + $0x16a] sm:$0xff]  ;;  %16592 = vst [vmem:[#allocation121_spill] sm:$0xff] %v13898_v62  ;;  %v4622_v5 = vld [vmem:[#allocation2 + $0x120] sm:$0xff] }
 0x6d1   : > { %v13889_v19 = vpop.permute.xlu1 %5172  ;;  %4408 = vst.msk [vmem:[#allocation4 + $0x181] sm:$0xff] %vm573_vm2, %v4375_v6  ;;  %v13894_v51 = vpop.permute.xlu0 %5246  ;;  %8461 = vmatmul.msk.f32.gmra.mxu2 %vm573_vm2, %v6270_v28  ;;  %v6271_v28 = vld [vmem:[#allocation4 + $0x172] sm:$0xff]  ;;  %v4623_v62 = vld [vmem:[#allocation2 + $0x128] sm:$0xff] }
 0x6d2   : > { %16590 = vst [vmem:[#allocation71_spill] sm:$0xff] %v13889_v19  ;;  %v13892_v47 = vpop.permute.xlu2 %5274  ;;  %v4229_v27 = vpop.f32.mrf.mxu1 }
 0x6d3   : > { %16591 = vst [vmem:[#allocation131_spill] sm:$0xff] %v13894_v51  ;;  %v4230_v41 = vadd.f32 %v13659_v11, %v4229_v27  ;;  %v4615_v27 = vld [vmem:[#allocation2 + $0xc8] sm:$0xff] }
 0x6d5   : > { %v4343_v40 = vadd.f32 %v4342_v13, %v4230_v41  ;;  %v4620_v13 = vld [vmem:[#allocation2 + $0x108] sm:$0xff]  ;;  %v4625_v41 = vld [vmem:[#allocation2 + $0x140] sm:$0xff] }
 0x6d7   : > { %5390 = vrot.lane.b32.xlu1 %v4612_v33, %s16359_s12  ;;  %5400 = vrot.lane.b32.xlu0 %v4617_v57, %s16359_s12  ;;  %v4376_v6 = vmax.f32 %v4343_v40, 0.0  ;;  %v13911_v33 = vpop.f32.mrf.mxu2 }
 0x6d8   : > { %5410 = vrot.lane.b32.xlu2 %v4622_v5, %s16359_s12  ;;  %16594 = vst [vmem:[#allocation22_spill] sm:$0xff] %v13911_v33 }
 0x6d9   : > { %v13903_v19 = vpop.permute.xlu1 %5242  ;;  %4409 = vst.msk [vmem:[#allocation4 + $0x189] sm:$0xff] %vm573_vm2, %v4376_v6  ;;  %v13908_v11 = vpop.permute.xlu0 %5252  ;;  %8462 = vmatmul.msk.f32.gmra.mxu2 %vm573_vm2, %v6271_v28  ;;  %v4618_v28 = vld [vmem:[#allocation2 + $0xf0] sm:$0xff] }
 0x6da   : > { %v13906_v51 = vpop.permute.xlu2 %5280  ;;  %16593 = vst [vmem:[#allocation62_spill] sm:$0xff] %v13908_v11  ;;  %v4628_v11 = vld [vmem:[#allocation2 + $0x168] sm:$0xff] }
 0x6df   : > { %5396 = vrot.lane.b32.xlu1 %v4615_v27, %s16359_s12  ;;  %5406 = vrot.lane.b32.xlu0 %v4620_v13, %s16359_s12  ;;  %v13926_v27 = vpop.f32.mrf.mxu2 }
 0x6e0   : > { %5416 = vrot.lane.b32.xlu2 %v4625_v41, %s16359_s12  ;;  %v6272_v57 = vld [vmem:[#allocation4 + $0x182] sm:$0xff]  ;;  %16598 = vst [vmem:[#allocation164_spill] sm:$0xff] %v13926_v27  ;;  %v6273_v41 = vld [vmem:[#allocation4 + $0x18a] sm:$0xff]  ;;  %v4624_v27 = vld [vmem:[#allocation2 + $0x138] sm:$0xff] }
 0x6e1   : > { %v13916_v40 = vpop.permute.xlu1 %5248  ;;  %v13920_v6 = vpop.permute.xlu0 %5258  ;;  %8463 = vmatmul.msk.f32.gmra.mxu2 %vm573_vm2, %v6272_v57  ;;  %v4621_v57 = vld [vmem:[#allocation2 + $0x110] sm:$0xff] }
 0x6e2   : > { %16595 = vst [vmem:[#allocation56_spill] sm:$0xff] %v13916_v40  ;;  %v13918_v5 = vpop.permute.xlu2 %5286 }
 0x6e3   : > { %16596 = vst [vmem:[#allocation82_spill] sm:$0xff] %v13918_v5  ;;  %v4631_v5 = vld [vmem:[#allocation2 + $0x188] sm:$0xff] }
 0x6e4   : > { %16597 = vst [vmem:[#allocation25_spill] sm:$0xff] %v13920_v6  ;;  %v4626_v6 = vld [vmem:[#allocation2 + $0x150] sm:$0xff] }
 0x6e7   : > { %5402 = vrot.lane.b32.xlu1 %v4618_v28, %s16359_s12  ;;  %5412 = vrot.lane.b32.xlu0 %v4623_v62, %s16359_s12 }
 0x6e8   : > { %5422 = vrot.lane.b32.xlu2 %v4628_v11, %s16359_s12 }
 0x6e9   : > { %v13928_v13 = vpop.permute.xlu1 %5254  ;;  %v13932_v40 = vpop.permute.xlu0 %5264  ;;  %8464 = vmatmul.msk.f32.gmra.mxu2 %vm573_vm2, %v6273_v41 }
 0x6ea   : > { %16599 = vst [vmem:[#allocation11_spill] sm:$0xff] %v13928_v13  ;;  %v13930_v33 = vpop.permute.xlu2 %5292  ;;  %v4629_v13 = vld [vmem:[#allocation2 + $0x170] sm:$0xff] }
 0x6eb   : > { %16600 = vst [vmem:[#allocation46_spill] sm:$0xff] %v13932_v40  ;;  %v4634_v40 = vld [vmem:[#allocation2 + $0x31] sm:$0xff] }
 0x6ef   : > { %5408 = vrot.lane.b32.xlu1 %v4621_v57, %s16359_s12  ;;  %5418 = vrot.lane.b32.xlu0 %v4626_v6, %s16359_s12  ;;  %v4627_v57 = vld [vmem:[#allocation2 + $0x158] sm:$0xff] }
 0x6f0   : > { %5428 = vrot.lane.b32.xlu2 %v4631_v5, %s16359_s12 }
 0x6f1   : > { %v13938_v62 = vpop.permute.xlu1 %5260  ;;  %v13942_v28 = vpop.permute.xlu0 %5270 }
 0x6f2   : > { %16601 = vst [vmem:[#allocation115_spill] sm:$0xff] %v13938_v62  ;;  %v13940_v11 = vpop.permute.xlu2 %5298  ;;  %v4632_v62 = vld [vmem:[#allocation2 + $0x198] sm:$0xff] }
 0x6f3   : > { %16602 = vst [vmem:[#allocation99_spill] sm:$0xff] %v13940_v11  ;;  %v4637_v11 = vld [vmem:[#allocation2 + $0x51] sm:$0xff] }
 0x6f4   : > { %16603 = vst [vmem:[#allocation73_spill] sm:$0xff] %v13942_v28  ;;  %v4635_v28 = vld [vmem:[#allocation2 + $0x39] sm:$0xff] }
 0x6f7   : > { %5414 = vrot.lane.b32.xlu1 %v4624_v27, %s16359_s12  ;;  %5424 = vrot.lane.b32.xlu0 %v4629_v13, %s16359_s12 }
 0x6f8   : > { %5498 = vrot.lane.b32.xlu2 %v4634_v40, %s9963_s28 }
 0x6f9   : > { %v13947_v41 = vpop.permute.xlu1 %5266  ;;  %v13951_v5 = vpop.permute.xlu0 %5276 }
 0x6fa   : > { %16604 = vst [vmem:[#allocation85_spill] sm:$0xff] %v13947_v41  ;;  %v13949_v6 = vpop.permute.xlu2 %5304  ;;  %v4630_v41 = vld [vmem:[#allocation2 + $0x180] sm:$0xff] }
 0x6fb   : > { %16605 = vst [vmem:[#allocation58_spill] sm:$0xff] %v13949_v6  ;;  %v4640_v6 = vld [vmem:[#allocation2 + $0x79] sm:$0xff] }
 0x6fc   : > { %16606 = vst [vmem:[#allocation21_spill] sm:$0xff] %v13951_v5  ;;  %v4638_v5 = vld [vmem:[#allocation2 + $0x61] sm:$0xff] }
 0x6ff   : > { %5420 = vrot.lane.b32.xlu1 %v4627_v57, %s16359_s12  ;;  %5430 = vrot.lane.b32.xlu0 %v4632_v62, %s16359_s12 }
 0x700   : > { %5504 = vrot.lane.b32.xlu2 %v4637_v11, %s9963_s28 }
 0x701   : > { %v13956_v27 = vpop.permute.xlu1 %5272  ;;  %v13960_v40 = vpop.permute.xlu0 %5282 }
 0x702   : > { %16607 = vst [vmem:[#allocation141_spill] sm:$0xff] %v13956_v27  ;;  %v13958_v13 = vpop.permute.xlu2 %5374  ;;  %v4633_v27 = vld [vmem:[#allocation2 + $0x1a0] sm:$0xff] }
 0x703   : > { %16608 = vst [vmem:[#allocation24_spill] sm:$0xff] %v13958_v13  ;;  %v4643_v13 = vld [vmem:[#allocation2 + $0x99] sm:$0xff] }
 0x704   : > { %16609 = vst [vmem:[#allocation68_spill] sm:$0xff] %v13960_v40  ;;  %v4641_v40 = vld [vmem:[#allocation2 + $0x81] sm:$0xff] }
 0x707   : > { %5426 = vrot.lane.b32.xlu1 %v4630_v41, %s16359_s12  ;;  %5500 = vrot.lane.b32.xlu0 %v4635_v28, %s9963_s28 }
 0x708   : > { %5510 = vrot.lane.b32.xlu2 %v4640_v6, %s9963_s28 }
 0x709   : > { %v13965_v57 = vpop.permute.xlu1 %5278  ;;  %v13969_v11 = vpop.permute.xlu0 %5288 }
 0x70a   : > { %16610 = vst [vmem:[#allocation165_spill] sm:$0xff] %v13965_v57  ;;  %v13967_v62 = vpop.permute.xlu2 %5380  ;;  %v4636_v57 = vld [vmem:[#allocation2 + $0x49] sm:$0xff] }
 0x70b   : > { %16611 = vst [vmem:[#allocation139_spill] sm:$0xff] %v13967_v62  ;;  %v4646_v62 = vld [vmem:[#allocation2 + $0xc1] sm:$0xff] }
 0x70c   : > { %16612 = vst [vmem:[#allocation19_spill] sm:$0xff] %v13969_v11  ;;  %v4644_v11 = vld [vmem:[#allocation2 + $0xa9] sm:$0xff] }
 0x70f   : > { %5432 = vrot.lane.b32.xlu1 %v4633_v27, %s16359_s12  ;;  %5506 = vrot.lane.b32.xlu0 %v4638_v5, %s9963_s28 }
 0x710   : > { %5516 = vrot.lane.b32.xlu2 %v4643_v13, %s9963_s28 }
 0x711   : > { %v13974_v41 = vpop.permute.xlu1 %5284  ;;  %v13978_v6 = vpop.permute.xlu0 %5294 }
 0x712   : > { %16613 = vst [vmem:[#allocation13_spill] sm:$0xff] %v13974_v41  ;;  %v13976_v28 = vpop.permute.xlu2 %5386  ;;  %v4639_v41 = vld [vmem:[#allocation2 + $0x69] sm:$0xff] }
 0x713   : > { %16614 = vst [vmem:[#allocation98_spill] sm:$0xff] %v13976_v28  ;;  %v4647_v28 = vld [vmem:[#allocation2 + $0xc9] sm:$0xff] }
 0x714   : > { %16615 = vst [vmem:[#allocation67_spill] sm:$0xff] %v13978_v6  ;;  %v4651_v6 = vld [vmem:[#allocation2 + $0xf9] sm:$0xff] }
 0x717   : > { %5502 = vrot.lane.b32.xlu1 %v4636_v57, %s9963_s28  ;;  %5512 = vrot.lane.b32.xlu0 %v4641_v40, %s9963_s28 }
 0x718   : > { %5522 = vrot.lane.b32.xlu2 %v4646_v62, %s9963_s28 }
 0x719   : > { %v13983_v27 = vpop.permute.xlu1 %5290  ;;  %v13987_v13 = vpop.permute.xlu0 %5300 }
 0x71a   : > { %16616 = vst [vmem:[#allocation96_spill] sm:$0xff] %v13983_v27  ;;  %v13985_v5 = vpop.permute.xlu2 %5392  ;;  %v4642_v27 = vld [vmem:[#allocation2 + $0x91] sm:$0xff] }
 0x71b   : > { %16617 = vst [vmem:[#allocation72_spill] sm:$0xff] %v13985_v5  ;;  %v4650_v5 = vld [vmem:[#allocation2 + $0xf1] sm:$0xff] }
 0x71c   : > { %16618 = vst [vmem:[#allocation66_spill] sm:$0xff] %v13987_v13  ;;  %v4653_v13 = vld [vmem:[#allocation2 + $0x111] sm:$0xff] }
 0x71f   : > { %5508 = vrot.lane.b32.xlu1 %v4639_v41, %s9963_s28  ;;  %5518 = vrot.lane.b32.xlu0 %v4644_v11, %s9963_s28 }
 0x720   : > { %5528 = vrot.lane.b32.xlu2 %v13545_v20, %s9963_s28 }
 0x721   : > { %v13993_v57 = vpop.permute.xlu1 %5296  ;;  %v13997_v62 = vpop.permute.xlu0 %5370 }
 0x722   : > { %16619 = vst [vmem:[#allocation12_spill] sm:$0xff] %v13993_v57  ;;  %v13995_v40 = vpop.permute.xlu2 %5398  ;;  %v4645_v57 = vld [vmem:[#allocation2 + $0xb1] sm:$0xff] }
 0x727   : > { %5514 = vrot.lane.b32.xlu1 %v4642_v27, %s9963_s28  ;;  %5524 = vrot.lane.b32.xlu0 %v4647_v28, %s9963_s28 }
 0x728   : > { %5534 = vrot.lane.b32.xlu2 %v13572_v30, %s9963_s28 }
 0x729   : > { %v14003_v41 = vpop.permute.xlu1 %5302  ;;  %v14007_v20 = vpop.permute.xlu0 %5376 }
 0x72a   : > { %16620 = vst [vmem:[#allocation69_spill] sm:$0xff] %v14003_v41  ;;  %v14005_v11 = vpop.permute.xlu2 %5404  ;;  %v4648_v41 = vld [vmem:[#allocation2 + $0xd9] sm:$0xff] }
 0x72b   : > { %16621 = vst [vmem:[#allocation55_spill] sm:$0xff] %v14005_v11  ;;  %v4656_v11 = vld [vmem:[#allocation2 + $0x139] sm:$0xff] }
 0x72f   : > { %5520 = vrot.lane.b32.xlu1 %v4645_v57, %s9963_s28  ;;  %5530 = vrot.lane.b32.xlu0 %v4650_v5, %s9963_s28 }
 0x730   : > { %5540 = vrot.lane.b32.xlu2 %v13601_v10, %s9963_s28 }
 0x731   : > { %v14013_v27 = vpop.permute.xlu1 %5372  ;;  %v14017_v30 = vpop.permute.xlu0 %5382 }
 0x732   : > { %v14015_v28 = vpop.permute.xlu2 %5410  ;;  %16623 = vst [vmem:[#allocation119_spill] sm:$0xff] %v14017_v30  ;;  %v4654_v30 = vld [vmem:[#allocation2 + $0x121] sm:$0xff] }
 0x733   : > { %16622 = vst [vmem:[#allocation152_spill] sm:$0xff] %v14015_v28  ;;  %v4659_v28 = vld [vmem:[#allocation2 + $0x159] sm:$0xff] }
 0x737   : > { %5526 = vrot.lane.b32.xlu1 %v4648_v41, %s9963_s28  ;;  %5536 = vrot.lane.b32.xlu0 %v4653_v13, %s9963_s28 }
 0x738   : > { %5546 = vrot.lane.b32.xlu2 %v13627_v39, %s9963_s28 }
 0x739   : > { %v14023_v57 = vpop.permute.xlu1 %5378  ;;  %v14027_v10 = vpop.permute.xlu0 %5388 }
 0x73a   : > { %16624 = vst [vmem:[#allocation16_spill] sm:$0xff] %v14023_v57  ;;  %v14025_v5 = vpop.permute.xlu2 %5416  ;;  %v4674_v57 = vld [vmem:[#allocation2 + $0x92] sm:$0xff] }
 0x73b   : > { %16625 = vst [vmem:[#allocation84_spill] sm:$0xff] %v14025_v5  ;;  %v4664_v5 = vld [vmem:[#allocation2 + $0x199] sm:$0xff] }
 0x73c   : > { %16626 = vst [vmem:[#allocation23_spill] sm:$0xff] %v14027_v10  ;;  %v4657_v10 = vld [vmem:[#allocation2 + $0x141] sm:$0xff] }
 0x73f   : > { %5532 = vrot.lane.b32.xlu1 %v4651_v6, %s9963_s28  ;;  %5542 = vrot.lane.b32.xlu0 %v4656_v11, %s9963_s28 }
 0x740   : > { %5552 = vrot.lane.b32.xlu2 %v13644_v2, %s9963_s28 }
 0x741   : > { %v14033_v41 = vpop.permute.xlu1 %5384  ;;  %v14037_v39 = vpop.permute.xlu0 %5394 }
 0x742   : > { %16627 = vst [vmem:[#allocation88_spill] sm:$0xff] %v14033_v41  ;;  %v14035_v13 = vpop.permute.xlu2 %5422  ;;  %v4662_v41 = vld [vmem:[#allocation2 + $0x181] sm:$0xff] }
 0x743   : > { %16628 = vst [vmem:[#allocation151_spill] sm:$0xff] %v14035_v13  ;;  %v4671_v13 = vld [vmem:[#allocation2 + $0x6a] sm:$0xff] }
 0x744   : > { %16629 = vst [vmem:[#allocation40_spill] sm:$0xff] %v14037_v39  ;;  %v4660_v39 = vld [vmem:[#allocation2 + $0x169] sm:$0xff] }
 0x747   : > { %5538 = vrot.lane.b32.xlu1 %v4654_v30, %s9963_s28  ;;  %5548 = vrot.lane.b32.xlu0 %v4659_v28, %s9963_s28 }
 0x748   : > { %5558 = vrot.lane.b32.xlu2 %v4664_v5, %s9963_s28 }
 0x749   : > { %v14042_v6 = vpop.permute.xlu1 %5390  ;;  %v14046_v2 = vpop.permute.xlu0 %5400 }
 0x74a   : > { %16630 = vst [vmem:[#allocation166_spill] sm:$0xff] %v14042_v6  ;;  %v14044_v11 = vpop.permute.xlu2 %5428  ;;  %v4665_v6 = vld [vmem:[#allocation2 + $0x1a1] sm:$0xff] }
 0x74b   : > { %16631 = vst [vmem:[#allocation63_spill] sm:$0xff] %v14044_v11  ;;  %v4668_v11 = vld [vmem:[#allocation2 + $0x4a] sm:$0xff] }
 0x74c   : > { %16632 = vst [vmem:[#allocation70_spill] sm:$0xff] %v14046_v2  ;;  %v4663_v2 = vld [vmem:[#allocation2 + $0x189] sm:$0xff] }
 0x74f   : > { %5544 = vrot.lane.b32.xlu1 %v4657_v10, %s9963_s28  ;;  %5554 = vrot.lane.b32.xlu0 %v4662_v41, %s9963_s28 }
 0x750   : > { %5628 = vrot.lane.b32.xlu2 %v13674_v23, %s16633_s0 }
 0x751   : > { %v14052_v30 = vpop.permute.xlu1 %5396  ;;  %v14056_v5 = vpop.permute.xlu0 %5406 }
 0x752   : > { %v14054_v28 = vpop.permute.xlu2 %5498  ;;  %16634 = vst [vmem:[#allocation37_spill] sm:$0xff] %v14056_v5  ;;  %v4666_v5 = vld [vmem:[#allocation2 + $0x32] sm:$0xff] }
 0x757   : > { %5550 = vrot.lane.b32.xlu1 %v4660_v39, %s9963_s28  ;;  %5560 = vrot.lane.b32.xlu0 %v4665_v6, %s9963_s28 }
 0x758   : > { %5634 = vrot.lane.b32.xlu2 %v13690_v52, %s16633_s0 }
 0x759   : > { %v14062_v10 = vpop.permute.xlu1 %5402  ;;  %v14066_v23 = vpop.permute.xlu0 %5412 }
 0x75a   : > { %v14064_v41 = vpop.permute.xlu2 %5504  ;;  %16635 = vst [vmem:[#allocation34_spill] sm:$0xff] %v14066_v23  ;;  %v4669_v23 = vld [vmem:[#allocation2 + $0x52] sm:$0xff] }
 0x75f   : > { %5556 = vrot.lane.b32.xlu1 %v4663_v2, %s9963_s28  ;;  %5630 = vrot.lane.b32.xlu0 %v4668_v11, %s16633_s0  ;;  %s16655_s28 = smul.u32 72, %s11140_s22 }
 0x760   : > { %5640 = vrot.lane.b32.xlu2 %v13706_v42, %s16633_s0 }
 0x761   : > { %v14072_v39 = vpop.permute.xlu1 %5408  ;;  %v14076_v52 = vpop.permute.xlu0 %5418  ;;  %s14177_s21 = scalar_lea.vmem %s15856_s5, %s16655_s28  ;;  %s16669_s28 = smov 96  }
 0x762   : > { %v14074_v6 = vpop.permute.xlu2 %5510  ;;  %16637 = vst [vmem:[#allocation107_spill] sm:$0xff] %v14076_v52  ;;  %v4672_v52 = vld [vmem:[#allocation2 + $0x7a] sm:$0xff] }
 0x763   : > { %16636 = vst [vmem:[#allocation120_spill] sm:$0xff] %v14074_v6  ;;  %v4677_v6 = vld [vmem:[#allocation2 + $0xb2] sm:$0xff] }
 0x767   : > { %5626 = vrot.lane.b32.xlu1 %v4666_v5, %s16633_s0  ;;  %5636 = vrot.lane.b32.xlu0 %v4671_v13, %s16633_s0 }
 0x768   : > { %5646 = vrot.lane.b32.xlu2 %v13724_v12, %s16633_s0 }
 0x769   : > { %v14082_v2 = vpop.permute.xlu1 %5414  ;;  %v14086_v42 = vpop.permute.xlu0 %5424 }
 0x76a   : > { %v14084_v11 = vpop.permute.xlu2 %5516  ;;  %16639 = vst [vmem:[#allocation160_spill] sm:$0xff] %v14086_v42  ;;  %v4675_v42 = vld [vmem:[#allocation2 + $0x9a] sm:$0xff] }
 0x76b   : > { %16638 = vst [vmem:[#allocation33_spill] sm:$0xff] %v14084_v11  ;;  %v4680_v11 = vld [vmem:[#allocation2 + $0xda] sm:$0xff] }
 0x76f   : > { %5632 = vrot.lane.b32.xlu1 %v4669_v23, %s16633_s0  ;;  %5642 = vrot.lane.b32.xlu0 %v4674_v57, %s16633_s0 }
 0x770   : > { %5652 = vrot.lane.b32.xlu2 %v13745_v4, %s16633_s0 }
 0x771   : > { %v14092_v5 = vpop.permute.xlu1 %5420  ;;  %v14096_v12 = vpop.permute.xlu0 %5430 }
 0x772   : > { %v14094_v13 = vpop.permute.xlu2 %5522  ;;  %16641 = vst [vmem:[#allocation142_spill] sm:$0xff] %v14096_v12  ;;  %v4683_v12 = vld [vmem:[#allocation2 + $0xfa] sm:$0xff] }
 0x773   : > { %16640 = vst [vmem:[#allocation20_spill] sm:$0xff] %v14094_v13  ;;  %v6029_v13 = vld [vmem:[#allocation4 + $0x79] sm:$0xff] }
 0x777   : > { %5638 = vrot.lane.b32.xlu1 %v4672_v52, %s16633_s0  ;;  %5648 = vrot.lane.b32.xlu0 %v4677_v6, %s16633_s0 }
 0x778   : > { %5658 = vrot.lane.b32.xlu2 %v13766_v34, %s16633_s0 }
 0x779   : > { %v14102_v23 = vpop.permute.xlu1 %5426  ;;  %v14106_v4 = vpop.permute.xlu0 %5500 }
 0x77a   : > { %v14104_v57 = vpop.permute.xlu2 %5528 }
 0x77b   : > { %16642 = vst [vmem:[#allocation15_spill] sm:$0xff] %v14104_v57  ;;  %v5985_v57 = vld [vmem:[%s14177_s21 + $0x38] sm:$0xff] }
 0x77f   : > { %5644 = vrot.lane.b32.xlu1 %v4675_v42, %s16633_s0  ;;  %5654 = vrot.lane.b32.xlu0 %v4680_v11, %s16633_s0 }
 0x780   : > { %5664 = vrot.lane.b32.xlu2 %v13787_v45, %s16633_s0 }
 0x781   : > { %v14112_v52 = vpop.permute.xlu1 %5432  ;;  %v14116_v34 = vpop.permute.xlu0 %5506 }
 0x782   : > { %16643 = vst [vmem:[#allocation86_spill] sm:$0xff] %v14112_v52  ;;  %v14114_v6 = vpop.permute.xlu2 %5534  ;;  %v6031_v52 = vld [vmem:[#allocation4 + $0x91] sm:$0xff] }
 0x783   : > { %16644 = vst [vmem:[#allocation174_spill] sm:$0xff] %v14114_v6 }
 0x784   : > { %16645 = vst [vmem:[#allocation175_spill] sm:$0xff] %v14116_v34  ;;  %v6025_v34 = vld [vmem:[#allocation4 + $0x49] sm:$0xff] }
 0x787   : > { %5650 = vrot.lane.b32.xlu1 %v13708_v24, %s16633_s0  ;;  %5660 = vrot.lane.b32.xlu0 %v4683_v12, %s16633_s0 }
 0x788   : > { %5670 = vrot.lane.b32.xlu2 %v13808_v63, %s16633_s0 }
 0x789   : > { %v14123_v42 = vpop.permute.xlu1 %5502  ;;  %v14127_v45 = vpop.permute.xlu0 %5512 }
 0x78a   : > { %v14125_v11 = vpop.permute.xlu2 %5540  ;;  %16647 = vst [vmem:[#allocation177_spill] sm:$0xff] %v14127_v45 }
 0x78b   : > { %16646 = vst [vmem:[#allocation176_spill] sm:$0xff] %v14125_v11  ;;  %v4697_v11 = vld [vmem:[#allocation2 + $0x1a2] sm:$0xff] }
 0x78f   : > { %5656 = vrot.lane.b32.xlu1 %v13726_v26, %s16633_s0  ;;  %5666 = vrot.lane.b32.xlu0 %v13728_v15, %s16633_s0 }
 0x790   : > { %5676 = vrot.lane.b32.xlu2 %v13826_v25, %s16633_s0 }
 0x791   : > { %v14135_v24 = vpop.permute.xlu1 %5508  ;;  %v14139_v63 = vpop.permute.xlu0 %5518 }
 0x792   : > { %16648 = vst [vmem:[#allocation178_spill] sm:$0xff] %v14135_v24  ;;  %v14137_v12 = vpop.permute.xlu2 %5546 }
 0x793   : > { %16649 = vst [vmem:[#allocation179_spill] sm:$0xff] %v14137_v12  ;;  %v6024_v12 = vld [vmem:[#allocation4 + $0x39] sm:$0xff] }
 0x794   : > { %16650 = vst [vmem:[#allocation180_spill] sm:$0xff] %v14139_v63 }
 0x797   : > { %5662 = vrot.lane.b32.xlu1 %v13747_v1, %s16633_s0  ;;  %5672 = vrot.lane.b32.xlu0 %v13749_v46, %s16633_s0 }
 0x798   : > { %5682 = vrot.lane.b32.xlu2 %v13841_v21, %s16633_s0 }
 0x799   : > { %v14147_v26 = vpop.permute.xlu1 %5514  ;;  %v14151_v25 = vpop.permute.xlu0 %5524 }
 0x79a   : > { %16651 = vst [vmem:[#allocation181_spill] sm:$0xff] %v14147_v26  ;;  %v14149_v15 = vpop.permute.xlu2 %5552  ;;  %v6052_v26 = vld [vmem:[#allocation4 + $0xa] sm:$0xff] }
 0x79b   : > { %16652 = vst [vmem:[#allocation182_spill] sm:$0xff] %v14149_v15  ;;  %v6023_v15 = vld [vmem:[#allocation4 + $0x31] sm:$0xff] }
 0x79c   : > { %v14164_v6 = vpack.i.bf16 %v6024_v12, %v6023_v15  ;;  %v6030_v15 = vld [vmem:[#allocation4 + $0x81] sm:$0xff] }
 0x79d   : > { %v14188_v63 = vpack.i.bf16 %v6030_v15, %v6029_v13  ;;  %v5981_v15 = vld [vmem:[%s14177_s21 + $0x18] sm:$0xff] }
 0x79f   : > { %5668 = vrot.lane.b32.xlu1 %v13768_v54, %s16633_s0  ;;  %5678 = vrot.lane.b32.xlu0 %v13770_v17, %s16633_s0  ;;  %v6019_v17 = vld [vmem:[#allocation4 + $0x1] sm:$0xff]  ;;  %v6020_v54 = vld [vmem:[#allocation4 + $0x9] sm:$0xff]  ;;  %16657 = vst [vmem:[#allocation186_spill] sm:$0xff] %v14188_v63 }
 0x7a0   : > { %5688 = vrot.lane.b32.xlu2 %v4697_v11, %s16633_s0  ;;  %v9206_v12 = vpack.i.bf16 %v6020_v54, %v6019_v17  ;;  %v5983_v17 = vld [vmem:[%s14177_s21 + $0x28] sm:$0xff] }
 0x7a1   : > { %v14158_v46 = vpop.permute.xlu1 %5520  ;;  %v14162_v21 = vpop.permute.xlu0 %5530 }
 0x7a2   : > { %16653 = vst [vmem:[#allocation183_spill] sm:$0xff] %v14158_v46  ;;  %v14160_v1 = vpop.permute.xlu2 %5558  ;;  %v5984_v46 = vld [vmem:[%s14177_s21 + $0x30] sm:$0xff] }
 0x7a3   : > { %16654 = vst [vmem:[#allocation184_spill] sm:$0xff] %v14160_v1  ;;  %v5986_v1 = vld [vmem:[%s14177_s21 + $0x40] sm:$0xff] }
 0x7a4   : > { %7839 = vmatpush.msrb.mxu0 %v5986_v1  ;;  %v6051_v1 = vld [vmem:[#allocation4 + $0x2] sm:$0xff] }
 0x7a5   : > { %v9246_v24 = vpack.i.bf16 %v6052_v26, %v6051_v1  ;;  %v6032_v1 = vld [vmem:[#allocation4 + $0x99] sm:$0xff] }
 0x7a6   : > { %7840 = vmatpush.msrb.mxu0 %v5985_v57  ;;  %v6026_v57 = vld [vmem:[#allocation4 + $0x51] sm:$0xff] }
 0x7a7   : > { %5674 = vrot.lane.b32.xlu1 %v13789_v0, %s16633_s0  ;;  %5684 = vrot.lane.b32.xlu0 %v13791_v44, %s16633_s0 }
 0x7a8   : > { %9217 = vrot.lane.b32.xlu2 %v14164_v6, %s16342_s29  ;;  %7841 = vmatpush.msrb.mxu0 %v5984_v46  ;;  %v14204_v46 = vpack.i.bf16 %v6026_v57, %v6025_v34  ;;  %v6022_v34 = vld [vmem:[#allocation4 + $0x21] sm:$0xff] }
 0x7a9   : > { %v14179_v11 = vpop.permute.xlu1 %5526  ;;  %v14183_v44 = vpop.permute.xlu0 %5536  ;;  %v6147_v57 = vld [vmem:[#allocation4 + $0x1a] sm:$0xff] }
 0x7aa   : > { %16656 = vst [vmem:[#allocation185_spill] sm:$0xff] %v14179_v11  ;;  %v14181_v0 = vpop.permute.xlu2 %5628  ;;  %7842 = vmatpush.msrb.mxu0 %v5983_v17  ;;  %v5979_v17 = vld [vmem:[%s14177_s21 + $0x8] sm:$0xff] }
 0x7af   : > { %5680 = vrot.lane.b32.xlu1 %v13810_v38, %s16633_s0  ;;  %9207 = vrot.lane.b32.xlu0 %v9206_v12, %s16342_s29  ;;  %v5982_v38 = vld [vmem:[%s14177_s21 + $0x20] sm:$0xff] }
 0x7b0   : > { %9232 = vrot.lane.b32.xlu2 %v14188_v63, %s16342_s29  ;;  %v4696_v12 = vld [vmem:[#allocation2 + $0x19a] sm:$0xff]  ;;  %7843 = vmatpush.msrb.mxu0 %v5982_v38  ;;  %v5980_v63 = vld [vmem:[%s14177_s21 + $0x10] sm:$0xff]  ;;  %v6148_v38 = vld [vmem:[#allocation4 + $0x22] sm:$0xff] }
 0x7b1   : > { %v14196_v54 = vpop.permute.xlu1 %5532  ;;  %v14200_v13 = vpop.permute.xlu0 %5542 }
 0x7b2   : > { %16658 = vst [vmem:[#allocation187_spill] sm:$0xff] %v14196_v54  ;;  %v14198_v45 = vpop.permute.xlu2 %5634  ;;  %7844 = vmatpush.msrb.mxu0 %v5981_v15  ;;  %v5978_v15 = vld [vmem:[%s14177_s21] sm:$0xff] }
 0x7b3   : > { %16659 = vst [vmem:[#allocation188_spill] sm:$0xff] %v14198_v45 }
 0x7b4   : > { %7845 = vmatpush.msrb.mxu0 %v5980_v63  ;;  %v9261_v63 = vpack.i.bf16 %v6148_v38, %v6147_v57  ;;  %v6027_v57 = vld [vmem:[#allocation4 + $0x61] sm:$0xff]  ;;  %v14238_v38 = vld [vmem:[#allocation4 + $0x18] sm:$0xff] }
 0x7b5   : > { %16668 = vst [vmem:[#allocation196_spill] sm:$0xff] %v14238_v38 }
 0x7b6   : > { %7846 = vmatpush.msrb.mxu0 %v5979_v17 }
 0x7b7   : > { %5686 = vrot.lane.b32.xlu1 %v4696_v12, %s16633_s0  ;;  %9222 = vrot.lane.b32.xlu0 %v14204_v46, %s16342_s29  ;;  %v6021_v12 = vld [vmem:[#allocation4 + $0x19] sm:$0xff] }
 0x7b8   : > { %9247 = vrot.lane.b32.xlu2 %v9246_v24, %s16358_s30  ;;  %7847 = vmatpush.msrb.mxu0 %v5978_v15  ;;  %v14219_v11 = vpack.i.bf16 %v6022_v34, %v6021_v12  ;;  %v14221_v24 = vpack.i.bf16 %v6032_v1, %v6031_v52  ;;  %v6028_v15 = vld [vmem:[#allocation4 + $0x69] sm:$0xff]  ;;  %v14234_v34 = vld [vmem:[#allocation4 + $0x20] sm:$0xff]  ;;  %v9813_v52 = vld [vmem:[#allocation2 + $0x98] sm:$0xff] }
 0x7b9   : > { %v14212_v45 = vpop.permute.xlu1 %5538  ;;  %v14216_v26 = vpop.permute.xlu0 %5548  ;;  %16667 = vst [vmem:[#allocation195_spill] sm:$0xff] %v14234_v34  ;;  %v5735_v1 = vsel %vm528_vm0, %v9813_v52, %v12999_v60 }
 0x7ba   : > { %16660 = vst [vmem:[#allocation189_spill] sm:$0xff] %v14212_v45  ;;  %v14214_v54 = vpop.permute.xlu2 %5640  ;;  %v5767_v12 = vsel %vm573_vm2, %v5735_v1, %v13139_v18  ;;  %v6181_v1 = vld [vmem:[#allocation4 + $0x38] sm:$0xff] }
 0x7bb   : > { %16661 = vst [vmem:[#allocation190_spill] sm:$0xff] %v14214_v54 }
 0x7bc   : > { %16662 = vst [vmem:[#allocation191_spill] sm:$0xff] %v14221_v24 }
 0x7bf   : > { %9212 = vrot.lane.b32.xlu1 %v14219_v11, %s16342_s29  ;;  %9237 = vrot.lane.b32.xlu0 %v14221_v24, %s16342_s29  ;;  %v14242_v24 = vpack.i.bf16 %v6028_v15, %v6027_v57  ;;  %v6149_v57 = vld [vmem:[#allocation4 + $0x32] sm:$0xff] }
 0x7c0   : > { %9262 = vrot.lane.b32.xlu2 %v9261_v63, %s16663_s19 }
 0x7c1   : > { %v14228_v17 = vpop.permute.xlu1 %5544  ;;  %v14232_v45 = vpop.permute.xlu0 %5554 }
 0x7c2   : > { %16664 = vst [vmem:[#allocation192_spill] sm:$0xff] %v14228_v17  ;;  %v14230_v54 = vpop.permute.xlu2 %5646  ;;  %v5799_v17 = vsel %vm2103_vm3, %v5767_v12, %v13615_v7  ;;  %v6180_v12 = vld [vmem:[#allocation4 + $0x30] sm:$0xff] }
 0x7c3   : > { %16665 = vst [vmem:[#allocation193_spill] sm:$0xff] %v14230_v54  ;;  %v9251_v54 = vpack.i.bf16 %v14234_v34, %v14238_v38 }
 0x7c4   : > { %16666 = vst [vmem:[#allocation194_spill] sm:$0xff] %v14232_v45  ;;  %v5831_v45 = vsel %vm2136_vm5, %v5799_v17, %v13783_v56  ;;  %v6034_v17 = vld [vmem:[#allocation4 + $0xb1] sm:$0xff] }
 0x7c5   : > { %v5863_v60 = vsel %vm2169_vm4, %v5831_v45, %v13878_v50  ;;  %v6150_v50 = vld [vmem:[#allocation4 + $0x3a] sm:$0xff] }
 0x7c6   : > { %v5895_v18 = vsel %vm2202_vm6, %v5863_v60, %v14052_v30  ;;  %v9814_v45 = vld [vmem:[#allocation2 + $0xc0] sm:$0xff]  ;;  %v6033_v30 = vld [vmem:[#allocation4 + $0xa9] sm:$0xff]  ;;  %v9291_v38 = vpack.i.bf16 %v6150_v50, %v6149_v57 }
 0x7c7   : > { %9227 = vrot.lane.b32.xlu1 %v14242_v24, %s16342_s29  ;;  %9252 = vrot.lane.b32.xlu0 %v9251_v54, %s16359_s12  ;;  %v5927_v7 = vsel %vm2235_vm8, %v5895_v18, %v14151_v25  ;;  %v14271_v25 = vpack.i.bf16 %v6034_v17, %v6033_v30  ;;  %v9266_v18 = vpack.i.bf16 %v6181_v1, %v6180_v12  ;;  %v16670_v1 = vld [vmem:[#allocation57_spill] sm:$0xff] }
 0x7c8   : > { %9277 = vrot.lane.b32.xlu2 %v9261_v63, %s16358_s30  ;;  %v5738_v63 = vsel %vm528_vm0, %v9814_v45, %v13021_v43  ;;  %v4410_v43 = vld [vmem:[#allocation2] sm:$0xff] }
 0x7c9   : > { %v14258_v15 = vpop.permute.xlu1 %5550  ;;  %v14262_v56 = vpop.permute.xlu0 %5560  ;;  %v5770_v60 = vsel %vm573_vm2, %v5738_v63, %v13163_v29  ;;  %v5722_v57 = vsel %vm528_vm0, %v4410_v43, %v16670_v1 }
 0x7ca   : > { %v5653_v52 = vpop.permute.xlu2 %5652  ;;  %v5802_v34 = vsel %vm2103_vm3, %v5770_v60, %v13635_v48 }
 0x7cb   : > { %v14265_v54 = vsel %vm2268_vm7, %v5927_v7, %v5653_v52  ;;  %v5834_v7 = vsel %vm2136_vm5, %v5802_v34, %v13804_v55 }
 0x7cc   : > { %v5866_v52 = vsel %vm2169_vm4, %v5834_v7, %v13892_v47  ;;  %v9815_v47 = vld [vmem:[#allocation2 + $0xe0] sm:$0xff] }
 0x7cd   : > { %v5898_v29 = vsel %vm2202_vm6, %v5866_v52, %v14062_v10  ;;  %v5741_v45 = vsel %vm528_vm0, %v9815_v47, %v13043_v9  ;;  %v5754_v10 = vsel %vm573_vm2, %v5722_v57, %v13187_v22  ;;  %v4411_v22 = vld [vmem:[#allocation2 + $0x8] sm:$0xff] }
 0x7ce   : > { %v5930_v48 = vsel %vm2235_vm8, %v5898_v29, %v14162_v21  ;;  %v5773_v63 = vsel %vm573_vm2, %v5741_v45, %v13190_v49  ;;  %v5786_v21 = vsel %vm2103_vm3, %v5754_v10, %v13453_v53  ;;  %v6182_v29 = vld [vmem:[#allocation4 + $0x48] sm:$0xff] }
 0x7cf   : > { %9242 = vrot.lane.b32.xlu1 %v14271_v25, %s16342_s29  ;;  %9267 = vrot.lane.b32.xlu0 %v9266_v18, %s16669_s28  ;;  %v5818_v30 = vsel %vm2136_vm5, %v5786_v21, %v13618_v35  ;;  %v5805_v12 = vsel %vm2103_vm3, %v5773_v63, %v13650_v36 }
 0x7d0   : > { %9292 = vrot.lane.b32.xlu2 %v9291_v38, %s16663_s19  ;;  %v5837_v60 = vsel %vm2136_vm5, %v5805_v12, %v13822_v61  ;;  %v5850_v9 = vsel %vm2169_vm4, %v5818_v30, %v13903_v19  ;;  %v16673_v30 = vld [vmem:[#allocation125_spill] sm:$0xff] }
 0x7d1   : > { %v14285_v17 = vpop.permute.xlu1 %5556  ;;  %v14289_v34 = vpop.permute.xlu0 %5630  ;;  %v5869_v49 = vsel %vm2169_vm4, %v5837_v60, %v13906_v51  ;;  %v5882_v53 = vsel %vm2202_vm6, %v5850_v9, %v13997_v62  ;;  %v6183_v51 = vld [vmem:[#allocation4 + $0x50] sm:$0xff]  ;;  %v5723_v62 = vsel %vm528_vm0, %v4411_v22, %v12905_v37  ;;  %v16674_v60 = vld [vmem:[#allocation122_spill] sm:$0xff] }
 0x7d2   : > { %v5659_v55 = vpop.permute.xlu2 %5658  ;;  %v5914_v35 = vsel %vm2235_vm8, %v5882_v53, %v14054_v28  ;;  %v5901_v36 = vsel %vm2202_vm6, %v5869_v49, %v14072_v39  ;;  %v6151_v28 = vld [vmem:[#allocation4 + $0x4a] sm:$0xff]  ;;  %v6152_v39 = vld [vmem:[#allocation4 + $0x52] sm:$0xff]  ;;  %v5755_v43 = vsel %vm573_vm2, %v5723_v62, %v13041_v58  ;;  %v16681_v62 = vld [vmem:[#allocation131_spill] sm:$0xff] }
 0x7d3   : > { %v14294_v50 = vsel %vm2268_vm7, %v5930_v48, %v5659_v55  ;;  %v5933_v19 = vsel %vm2235_vm8, %v5901_v36, %v14183_v44  ;;  %v9816_v44 = vld [vmem:[#allocation2 + $0x108] sm:$0xff]  ;;  %v5787_v37 = vsel %vm2103_vm3, %v5755_v43, %v13501_v3  ;;  %v9296_v55 = vpack.i.bf16 %v6183_v51, %v6182_v29  ;;  %v16676_v49 = vld [vmem:[#allocation110_spill] sm:$0xff]  ;;  %v16678_v36 = vld [vmem:[#allocation83_spill] sm:$0xff] }
 0x7d4   : > { %v5744_v52 = vsel %vm528_vm0, %v9816_v44, %v13066_v16  ;;  %v5819_v57 = vsel %vm2136_vm5, %v5787_v37, %v13702_v8  ;;  %v9321_v47 = vpack.i.bf16 %v6152_v39, %v6151_v28  ;;  %v16682_v43 = vld [vmem:[#allocation24_spill] sm:$0xff] }
 0x7d5   : > { %v5776_v48 = vsel %vm573_vm2, %v5744_v52, %v13224_v14  ;;  %v5851_v58 = vsel %vm2169_vm4, %v5819_v57, %v13820_v32  ;;  %v16672_v14 = vld [vmem:[#allocation82_spill] sm:$0xff]  ;;  %v9819_v57 = vld [vmem:[#allocation2 + $0x20] sm:$0xff] }
 0x7d6   : > { %v5808_v1 = vsel %vm2103_vm3, %v5776_v48, %v13665_v31  ;;  %v5883_v31 = vsel %vm2202_vm6, %v5851_v58, %v14013_v27  ;;  %v9817_v27 = vld [vmem:[#allocation2 + $0x18] sm:$0xff] }
 0x7d7   : > { %9257 = vrot.lane.b32.xlu1 %v14219_v11, %s16633_s0  ;;  %9282 = vrot.lane.b32.xlu0 %v9266_v18, %s16359_s12  ;;  %v5840_v16 = vsel %vm2136_vm5, %v5808_v1, %v13837_v59  ;;  %v5915_v32 = vsel %vm2235_vm8, %v5883_v31, %v14106_v4  ;;  %v5724_v12 = vsel %vm528_vm0, %v9817_v27, %v16673_v30  ;;  %v9818_v4 = vld [vmem:[#allocation2 + $0x128] sm:$0xff]  ;;  %v9821_v31 = vld [vmem:[#allocation2 + $0x150] sm:$0xff] }
 0x7d8   : > { %9307 = vrot.lane.b32.xlu2 %v9291_v38, %s16358_s30  ;;  %v5872_v3 = vsel %vm2169_vm4, %v5840_v16, %v16672_v14  ;;  %v5947_v21 = vsel %vm2268_vm7, %v5915_v32, %v14181_v0  ;;  %v5747_v9 = vsel %vm528_vm0, %v9818_v4, %v16674_v60  ;;  %v16677_v0 = vld [vmem:[#allocation18_spill] sm:$0xff]  ;;  %v6185_v1 = vld [vmem:[#allocation4 + $0x68] sm:$0xff]  ;;  %v16686_v32 = vld [vmem:[#allocation77_spill] sm:$0xff] }
 0x7d9   : > { %v5627_v61 = vpop.permute.xlu1 %5626  ;;  %v14327_v7 = vpop.permute.xlu0 %5636  ;;  %v5904_v8 = vsel %vm2202_vm6, %v5872_v3, %v14082_v2  ;;  %v5779_v53 = vsel %vm573_vm2, %v5747_v9, %v16676_v49  ;;  %v6154_v16 = vld [vmem:[#allocation4 + $0x6a] sm:$0xff] }
 0x7da   : > { %v5665_v11 = vpop.permute.xlu2 %5664  ;;  %v5946_v18 = vsel %vm2268_vm7, %v5914_v35, %v5627_v61  ;;  %v5936_v45 = vsel %vm2235_vm8, %v5904_v8, %v14200_v13  ;;  %v16675_v13 = vld [vmem:[#allocation27_spill] sm:$0xff]  ;;  %v5811_v61 = vsel %vm2103_vm3, %v5779_v53, %v16678_v36  ;;  %v9820_v14 = vld [vmem:[#allocation2 + $0xa8] sm:$0xff]  ;;  %v16688_v30 = vld [vmem:[#allocation133_spill] sm:$0xff] }
 0x7db   : > { %v14332_v38 = vsel %vm2268_vm7, %v5933_v19, %v5665_v11  ;;  %8467 = vmatmul.msk.f32.vlgmr.msrb.gmra.mxu0 %vm2314_vm9, %v5946_v18  ;;  %v5756_v22 = vsel %vm573_vm2, %v5724_v12, %v16675_v13  ;;  %v16679_v19 = vld [vmem:[#allocation106_spill] sm:$0xff]  ;;  %v16685_v8 = vld [vmem:[#allocation132_spill] sm:$0xff]  ;;  %v16689_v4 = vld [vmem:[#allocation65_spill] sm:$0xff] }
 0x7dc   : > { %v5788_v35 = vsel %vm2103_vm3, %v5756_v22, %v16677_v0  ;;  %v16680_v18 = vld [vmem:[#allocation130_spill] sm:$0xff]  ;;  %v16690_v13 = vld [vmem:[#allocation163_spill] sm:$0xff]  ;;  %v16691_v49 = vld [vmem:[#allocation112_spill] sm:$0xff] }
 0x7dd   : > { %v5820_v11 = vsel %vm2136_vm5, %v5788_v35, %v16679_v19  ;;  %v5843_v51 = vsel %vm2136_vm5, %v5811_v61, %v16680_v18  ;;  %v16692_v0 = vld [vmem:[#allocation129_spill] sm:$0xff]  ;;  %v16693_v61 = vld [vmem:[#allocation159_spill] sm:$0xff] }
 0x7de   : > { %v5852_v28 = vsel %vm2169_vm4, %v5820_v11, %v16681_v62  ;;  %v5875_v39 = vsel %vm2169_vm4, %v5843_v51, %v13930_v33  ;;  %v16694_v11 = vld [vmem:[#allocation17_spill] sm:$0xff]  ;;  %v16695_v51 = vld [vmem:[#allocation56_spill] sm:$0xff] }
 0x7df   : > { %9272 = vrot.lane.b32.xlu1 %v14164_v6, %s16671_s25  ;;  %9297 = vrot.lane.b32.xlu0 %v9296_v55, %s16669_s28  ;;  %v5884_v44 = vsel %vm2202_vm6, %v5852_v28, %v16682_v43  ;;  %v5907_v52 = vsel %vm2202_vm6, %v5875_v39, %v14092_v5  ;;  %v16696_v28 = vld [vmem:[#allocation99_spill] sm:$0xff]  ;;  %v16697_v43 = vld [vmem:[#allocation73_spill] sm:$0xff] }
 0x7e0   : > { %9322 = vrot.lane.b32.xlu2 %v9321_v47, %s16663_s19  ;;  %v5916_v29 = vsel %vm2235_vm8, %v5884_v44, %v14123_v42  ;;  %v6153_v42 = vld [vmem:[#allocation4 + $0x62] sm:$0xff] }
 0x7e1   : > { %v14363_v59 = vpop.permute.xlu1 %5632  ;;  %v14367_v63 = vpop.permute.xlu0 %5642  ;;  %v5948_v33 = vsel %vm2268_vm7, %v5916_v29, %v14289_v34  ;;  %v5750_v34 = vsel %vm528_vm0, %v9821_v31, %v16685_v8  ;;  %v9351_v36 = vpack.i.bf16 %v6154_v16, %v6153_v42  ;;  %v9823_v8 = vld [vmem:[#allocation2 + $0xc8] sm:$0xff] }
 0x7e2   : > { %v5671_v10 = vpop.permute.xlu2 %5670 }
 0x7e3   : > { %v14374_v2 = vsel %vm2268_vm7, %v5936_v45, %v5671_v10  ;;  %8468 = vmatmul.msk.f32.gmra.mxu0 %vm2314_vm9, %v5947_v21  ;;  %v6184_v10 = vld [vmem:[#allocation4 + $0x60] sm:$0xff] }
 0x7e4   : > { %v16687_v21 = vld [vmem:[#allocation127_spill] sm:$0xff]  ;;  %v9326_v9 = vpack.i.bf16 %v6185_v1, %v6184_v10  ;;  %v16698_v1 = vld [vmem:[#allocation185_spill] sm:$0xff] }
 0x7e5   : > { %v5782_v27 = vsel %vm573_vm2, %v5750_v34, %v16687_v21  ;;  %v16702_v34 = vld [vmem:[#allocation61_spill] sm:$0xff]  ;;  %v16704_v21 = vld [vmem:[#allocation155_spill] sm:$0xff] }
 0x7e6   : > { %v5814_v35 = vsel %vm2103_vm3, %v5782_v27, %v16692_v0  ;;  %v16709_v0 = vld [vmem:[#allocation93_spill] sm:$0xff] }
 0x7e7   : > { %9287 = vrot.lane.b32.xlu1 %v14164_v6, %s16633_s0  ;;  %9312 = vrot.lane.b32.xlu0 %v9296_v55, %s16359_s12  ;;  %v5939_v6 = vsel %vm2235_vm8, %v5907_v52, %v14216_v26  ;;  %v16684_v26 = vld [vmem:[#allocation42_spill] sm:$0xff]  ;;  %v5846_v18 = vsel %vm2136_vm5, %v5814_v35, %v16694_v11  ;;  %v16711_v11 = vld [vmem:[#allocation172_spill] sm:$0xff] }
 0x7e8   : > { %9337 = vrot.lane.b32.xlu2 %v9321_v47, %s16358_s30  ;;  %v16683_v47 = vld [vmem:[#allocation75_spill] sm:$0xff]  ;;  %v5736_v3 = vsel %vm528_vm0, %v9820_v14, %v16684_v26  ;;  %v5878_v39 = vsel %vm2169_vm4, %v5846_v18, %v16696_v28  ;;  %v16700_v14 = vld [vmem:[#allocation117_spill] sm:$0xff]  ;;  %v16713_v28 = vld [vmem:[#allocation58_spill] sm:$0xff] }
 0x7e9   : > { %v14405_v48 = vpop.permute.xlu1 %5638  ;;  %v14409_v55 = vpop.permute.xlu0 %5648  ;;  %v5725_v58 = vsel %vm528_vm0, %v9819_v57, %v16683_v47  ;;  %v5768_v12 = vsel %vm573_vm2, %v5736_v3, %v16688_v30  ;;  %v16699_v47 = vld [vmem:[#allocation194_spill] sm:$0xff]  ;;  %v16701_v3 = vld [vmem:[#allocation89_spill] sm:$0xff]  ;;  %v16705_v30 = vld [vmem:[#allocation168_spill] sm:$0xff] }
 0x7ea   : > { %v5677_v37 = vpop.permute.xlu2 %5676  ;;  %v5757_v45 = vsel %vm573_vm2, %v5725_v58, %v16686_v32  ;;  %v5800_v22 = vsel %vm2103_vm3, %v5768_v12, %v16690_v13  ;;  %v5739_v32 = vsel %vm528_vm0, %v9823_v8, %v16702_v34  ;;  %v16707_v13 = vld [vmem:[#allocation47_spill] sm:$0xff] }
 0x7eb   : > { %v14416_v5 = vsel %vm2268_vm7, %v5939_v6, %v5677_v37  ;;  %8469 = vmatmul.msk.f32.gmra.mxu0 %vm2314_vm9, %v5948_v33  ;;  %v5789_v60 = vsel %vm2103_vm3, %v5757_v45, %v16689_v4  ;;  %v5832_v19 = vsel %vm2136_vm5, %v5800_v22, %v16693_v61  ;;  %v5910_v37 = vsel %vm2202_vm6, %v5878_v39, %v14102_v23  ;;  %v16703_v45 = vld [vmem:[#allocation146_spill] sm:$0xff]  ;;  %v16706_v4 = vld [vmem:[#allocation105_spill] sm:$0xff] }
 0x7ec   : > { %v5821_v53 = vsel %vm2136_vm5, %v5789_v60, %v16691_v49  ;;  %v5864_v44 = vsel %vm2169_vm4, %v5832_v19, %v16697_v43  ;;  %v5942_v58 = vsel %vm2235_vm8, %v5910_v37, %v16699_v47  ;;  %v5771_v12 = vsel %vm573_vm2, %v5739_v32, %v16705_v30  ;;  %v16708_v49 = vld [vmem:[#allocation14_spill] sm:$0xff]  ;;  %v16710_v61 = vld [vmem:[#allocation53_spill] sm:$0xff] }
 0x7ed   : > { %v5853_v62 = vsel %vm2169_vm4, %v5821_v53, %v16695_v51  ;;  %v5896_v29 = vsel %vm2202_vm6, %v5864_v44, %v13995_v40  ;;  %v9822_v40 = vld [vmem:[#allocation2 + $0x30] sm:$0xff]  ;;  %v5803_v22 = vsel %vm2103_vm3, %v5771_v12, %v16707_v13  ;;  %v16712_v51 = vld [vmem:[#allocation31_spill] sm:$0xff]  ;;  %v6186_v12 = vld [vmem:[#allocation4 + $0x78] sm:$0xff] }
 0x7ee   : > { %v5885_v52 = vsel %vm2202_vm6, %v5853_v62, %v14007_v20  ;;  %v5928_v57 = vsel %vm2235_vm8, %v5896_v29, %v16698_v1  ;;  %v5835_v18 = vsel %vm2136_vm5, %v5803_v22, %v16711_v11  ;;  %v16714_v43 = vld [vmem:[#allocation21_spill] sm:$0xff]  ;;  %v16717_v1 = vld [vmem:[#allocation86_spill] sm:$0xff]  ;;  %v16728_v11 = vld [vmem:[#allocation116_spill] sm:$0xff] }
 0x7ef   : > { %9302 = vrot.lane.b32.xlu1 %v14204_v46, %s16671_s25  ;;  %9327 = vrot.lane.b32.xlu0 %v9326_v9, %s16669_s28  ;;  %v5917_v6 = vsel %vm2235_vm8, %v5885_v52, %v14064_v41  ;;  %v5726_v41 = vsel %vm528_vm0, %v9822_v40, %v16700_v14  ;;  %v5867_v44 = vsel %vm2169_vm4, %v5835_v18, %v16714_v43  ;;  %v16715_v52 = vld [vmem:[#allocation16_spill] sm:$0xff]  ;;  %v16725_v13 = vld [vmem:[#allocation81_spill] sm:$0xff]  ;;  %v16731_v43 = vld [vmem:[#allocation139_spill] sm:$0xff] }
 0x7f0   : > { %9352 = vrot.lane.b32.xlu2 %v9351_v36, %s16663_s19  ;;  %v5949_v16 = vsel %vm2268_vm7, %v5917_v6, %v14363_v59  ;;  %v5758_v31 = vsel %vm573_vm2, %v5726_v41, %v16701_v3  ;;  %v9824_v59 = vld [vmem:[#allocation2 + $0x170] sm:$0xff]  ;;  %v16716_v6 = vld [vmem:[#allocation55_spill] sm:$0xff]  ;;  %v9825_v3 = vld [vmem:[#allocation2 + $0x38] sm:$0xff] }
 0x7f1   : > { %v14459_v33 = vpop.permute.xlu1 %5644  ;;  %v5655_v42 = vpop.permute.xlu0 %5654  ;;  %v5753_v10 = vsel %vm528_vm0, %v9824_v59, %v16703_v45  ;;  %v5790_v60 = vsel %vm2103_vm3, %v5758_v31, %v16706_v4  ;;  %v5899_v37 = vsel %vm2202_vm6, %v5867_v44, %v16716_v6  ;;  %v6187_v41 = vld [vmem:[#allocation4 + $0x80] sm:$0xff]  ;;  %v16721_v31 = vld [vmem:[#allocation78_spill] sm:$0xff]  ;;  %v9826_v45 = vld [vmem:[#allocation2 + $0xf0] sm:$0xff] }
 0x7f2   : > { %v5683_v20 = vpop.permute.xlu2 %5682  ;;  %v14473_v23 = vsel %vm2268_vm7, %v5928_v57, %v5655_v42  ;;  %v5785_v27 = vsel %vm573_vm2, %v5753_v10, %v16704_v21  ;;  %v5822_v35 = vsel %vm2136_vm5, %v5790_v60, %v16709_v0  ;;  %v5727_v8 = vsel %vm528_vm0, %v9825_v3, %v16721_v31  ;;  %v6155_v59 = vld [vmem:[#allocation4 + $0x7a] sm:$0xff]  ;;  %v16722_v10 = vld [vmem:[#allocation101_spill] sm:$0xff] }
 0x7f3   : > { %v14470_v26 = vsel %vm2268_vm7, %v5942_v58, %v5683_v20  ;;  %8470 = vmatmul.msk.f32.gmra.mxu0 %vm2314_vm9, %v5949_v16  ;;  %v5817_v53 = vsel %vm2103_vm3, %v5785_v27, %v16708_v49  ;;  %v5854_v19 = vsel %vm2169_vm4, %v5822_v35, %v16710_v61  ;;  %v16719_v58 = vld [vmem:[#allocation187_spill] sm:$0xff]  ;;  %v5742_v21 = vsel %vm528_vm0, %v9826_v45, %v16722_v10  ;;  %v16723_v27 = vld [vmem:[#allocation28_spill] sm:$0xff]  ;;  %v16727_v35 = vld [vmem:[#allocation150_spill] sm:$0xff] }
 0x7f4   : > { %v5849_v62 = vsel %vm2136_vm5, %v5817_v53, %v16712_v51  ;;  %v5886_v29 = vsel %vm2202_vm6, %v5854_v19, %v16715_v52  ;;  %v5931_v20 = vsel %vm2235_vm8, %v5899_v37, %v16719_v58  ;;  %v5759_v30 = vsel %vm573_vm2, %v5727_v8, %v16723_v27  ;;  %v16724_v4 = vld [vmem:[#allocation43_spill] sm:$0xff]  ;;  %v16729_v51 = vld [vmem:[#allocation62_spill] sm:$0xff]  ;;  %v16732_v52 = vld [vmem:[#allocation152_spill] sm:$0xff] }
 0x7f5   : > { %v5881_v39 = vsel %vm2169_vm4, %v5849_v62, %v16713_v28  ;;  %v5774_v60 = vsel %vm573_vm2, %v5742_v21, %v16724_v4  ;;  %v5791_v22 = vsel %vm2103_vm3, %v5759_v30, %v16725_v13  ;;  %v9356_v49 = vpack.i.bf16 %v6187_v41, %v6186_v12  ;;  %v16726_v53 = vld [vmem:[#allocation91_spill] sm:$0xff]  ;;  %v16730_v28 = vld [vmem:[#allocation68_spill] sm:$0xff]  ;;  %v16733_v6 = vld [vmem:[#allocation178_spill] sm:$0xff] }
 0x7f6   : > { %v5913_v57 = vsel %vm2202_vm6, %v5881_v39, %v16717_v1  ;;  %v5806_v0 = vsel %vm2103_vm3, %v5774_v60, %v16726_v53  ;;  %v5823_v61 = vsel %vm2136_vm5, %v5791_v22, %v16727_v35  ;;  %v16736_v41 = vld [vmem:[#allocation44_spill] sm:$0xff]  ;;  %v16737_v31 = vld [vmem:[#allocation97_spill] sm:$0xff]  ;;  %v16741_v27 = vld [vmem:[#allocation135_spill] sm:$0xff] }
 0x7f7   : > { %9317 = vrot.lane.b32.xlu1 %v14204_v46, %s16633_s0  ;;  %9342 = vrot.lane.b32.xlu0 %v9326_v9, %s16359_s12  ;;  %v16718_v46 = vld [vmem:[#allocation175_spill] sm:$0xff]  ;;  %v5945_v42 = vsel %vm2235_vm8, %v5913_v57, %v14262_v56  ;;  %v5838_v18 = vsel %vm2136_vm5, %v5806_v0, %v16728_v11  ;;  %v5855_v62 = vsel %vm2169_vm4, %v5823_v61, %v16729_v51  ;;  %v16734_v57 = vld [vmem:[#allocation189_spill] sm:$0xff]  ;;  %v16740_v10 = vld [vmem:[#allocation124_spill] sm:$0xff] }
 0x7f8   : > { %9367 = vrot.lane.b32.xlu2 %v9351_v36, %s16358_s30  ;;  %v5918_v9 = vsel %vm2235_vm8, %v5886_v29, %v16718_v46  ;;  %v16720_v36 = vld [vmem:[#allocation188_spill] sm:$0xff]  ;;  %v5870_v39 = vsel %vm2169_vm4, %v5838_v18, %v16730_v28  ;;  %v5887_v44 = vsel %vm2202_vm6, %v5855_v62, %v16731_v43  ;;  %v16742_v12 = vld [vmem:[#allocation173_spill] sm:$0xff]  ;;  %v16743_v60 = vld [vmem:[#allocation11_spill] sm:$0xff] }
 0x7f9   : > { %v14516_v47 = vpop.permute.xlu1 %5650  ;;  %v5661_v40 = vpop.permute.xlu0 %5660  ;;  %v5950_v14 = vsel %vm2268_vm7, %v5918_v9, %v16720_v36  ;;  %v6156_v56 = vld [vmem:[#allocation4 + $0x82] sm:$0xff]  ;;  %v5902_v29 = vsel %vm2202_vm6, %v5870_v39, %v16732_v52  ;;  %v5919_v37 = vsel %vm2235_vm8, %v5887_v44, %v16733_v6  ;;  %v6189_v44 = vld [vmem:[#allocation4 + $0x98] sm:$0xff]  ;;  %v9829_v52 = vld [vmem:[#allocation2 + $0x50] sm:$0xff] }
 0x7fa   : > { %v5689_v16 = vpop.permute.xlu2 %5688  ;;  %v14530_v32 = vsel %vm2268_vm7, %v5931_v20, %v5661_v40  ;;  %v9381_v19 = vpack.i.bf16 %v6156_v56, %v6155_v59  ;;  %v5934_v46 = vsel %vm2235_vm8, %v5902_v29, %v16734_v57  ;;  %v5951_v20 = vsel %vm2268_vm7, %v5919_v37, %v14327_v7  ;;  %v16738_v59 = vld [vmem:[#allocation103_spill] sm:$0xff]  ;;  %v16739_v7 = vld [vmem:[#allocation104_spill] sm:$0xff]  ;;  %v6157_v37 = vld [vmem:[#allocation4 + $0x92] sm:$0xff] }
 0x7fb   : > { %v14527_v34 = vsel %vm2268_vm7, %v5945_v42, %v5689_v16  ;;  %8471 = vmatmul.msk.f32.gmra.mxu0 %vm2314_vm9, %v5950_v14  ;;  %v9827_v42 = vld [vmem:[#allocation2 + $0x48] sm:$0xff]  ;;  %v9828_v14 = vld [vmem:[#allocation2 + $0x110] sm:$0xff]  ;;  %v16744_v22 = vld [vmem:[#allocation19_spill] sm:$0xff] }
 0x7fc   : > { %v16735_v16 = vld [vmem:[#allocation76_spill] sm:$0xff]  ;;  %v5745_v3 = vsel %vm528_vm0, %v9828_v14, %v16736_v41  ;;  %v16745_v0 = vld [vmem:[#allocation119_spill] sm:$0xff] }
 0x7fd   : > { %v5728_v40 = vsel %vm528_vm0, %v9827_v42, %v16735_v16  ;;  %v5777_v56 = vsel %vm573_vm2, %v5745_v3, %v16738_v59  ;;  %v16746_v61 = vld [vmem:[#allocation84_spill] sm:$0xff]  ;;  %v6158_v57 = vld [vmem:[#allocation4 + $0x9a] sm:$0xff]  ;;  %v16751_v42 = vld [vmem:[#allocation145_spill] sm:$0xff] }
 0x7fe   : > { %v5760_v8 = vsel %vm573_vm2, %v5728_v40, %v16737_v31  ;;  %v5809_v21 = vsel %vm2103_vm3, %v5777_v56, %v16740_v10  ;;  %v16747_v18 = vld [vmem:[#allocation120_spill] sm:$0xff]  ;;  %v16752_v40 = vld [vmem:[#allocation126_spill] sm:$0xff] }
 0x7ff   : > { %9332 = vrot.lane.b32.xlu1 %v14242_v24, %s16671_s25  ;;  %9357 = vrot.lane.b32.xlu0 %v9356_v49, %s16669_s28  ;;  %v5792_v45 = vsel %vm2103_vm3, %v5760_v8, %v16739_v7  ;;  %v5841_v4 = vsel %vm2136_vm5, %v5809_v21, %v16742_v12  ;;  %v16748_v28 = vld [vmem:[#allocation192_spill] sm:$0xff]  ;;  %v16754_v8 = vld [vmem:[#allocation134_spill] sm:$0xff] }
 0x800   : > { %9382 = vrot.lane.b32.xlu2 %v9381_v19, %s16663_s19  ;;  %v5824_v30 = vsel %vm2136_vm5, %v5792_v45, %v16741_v27  ;;  %v5873_v53 = vsel %vm2169_vm4, %v5841_v4, %v16744_v22  ;;  %v16753_v41 = vld [vmem:[#allocation64_spill] sm:$0xff]  ;;  %v9411_v45 = vpack.i.bf16 %v6158_v57, %v6157_v37  ;;  %v16756_v10 = vld [vmem:[#allocation54_spill] sm:$0xff]  ;;  %v16757_v27 = vld [vmem:[#allocation51_spill] sm:$0xff] }
 0x801   : > { %v14561_v1 = vpop.permute.xlu1 %5656  ;;  %v5667_v9 = vpop.permute.xlu0 %5666  ;;  %v5856_v13 = vsel %vm2169_vm4, %v5824_v30, %v16743_v60  ;;  %v5905_v11 = vsel %vm2202_vm6, %v5873_v53, %v16746_v61  ;;  %v16755_v56 = vld [vmem:[#allocation136_spill] sm:$0xff]  ;;  %v16758_v12 = vld [vmem:[#allocation186_spill] sm:$0xff]  ;;  %v16759_v4 = vld [vmem:[#allocation67_spill] sm:$0xff] }
 0x802   : > { %v14565_v58 = vpop.permute.xlu2 %9217  ;;  %v14572_v36 = vsel %vm2268_vm7, %v5934_v46, %v5667_v9  ;;  %v5888_v35 = vsel %vm2202_vm6, %v5856_v13, %v16745_v0  ;;  %v16750_v46 = vld [vmem:[#allocation102_spill] sm:$0xff]  ;;  %v16760_v13 = vld [vmem:[#allocation88_spill] sm:$0xff]  ;;  %v16761_v53 = vld [vmem:[#allocation151_spill] sm:$0xff] }
 0x803   : > { %8472 = vmatmul.msk.f32.gmra.mxu0 %vm2314_vm9, %v5951_v20  ;;  %v5920_v51 = vsel %vm2235_vm8, %v5888_v35, %v16747_v18  ;;  %v9830_v20 = vld [vmem:[#allocation2 + $0x138] sm:$0xff]  ;;  %v16762_v35 = vld [vmem:[#allocation177_spill] sm:$0xff]  ;;  %v16765_v37 = vld [vmem:[#allocation167_spill] sm:$0xff] }
 0x804   : > { %v5952_v43 = vsel %vm2268_vm7, %v5920_v51, %v14405_v48  ;;  %v5748_v16 = vsel %vm528_vm0, %v9830_v20, %v16751_v42  ;;  %v6188_v48 = vld [vmem:[#allocation4 + $0x90] sm:$0xff]  ;;  %v16766_v57 = vld [vmem:[#allocation90_spill] sm:$0xff]  ;;  %v16768_v42 = vld [vmem:[#allocation147_spill] sm:$0xff] }
 0x805   : > { %v5780_v14 = vsel %vm573_vm2, %v5748_v16, %v16752_v40  ;;  %v9386_v31 = vpack.i.bf16 %v6189_v44, %v6188_v48  ;;  %v16764_v44 = vld [vmem:[#allocation153_spill] sm:$0xff]  ;;  %v7411_v48 = vld [vmem:[%s13206_s23 + $0x78] sm:$0xff] }
 0x806   : > { %v5812_v59 = vsel %vm2103_vm3, %v5780_v14, %v16754_v8  ;;  %v16769_v40 = vld [vmem:[#allocation170_spill] sm:$0xff]  ;;  %7510 = vmatpush.msra.mxu3 %v7411_v48  ;;  %v16771_v8 = vld [vmem:[#allocation71_spill] sm:$0xff] }
 0x807   : > { %9347 = vrot.lane.b32.xlu1 %v14242_v24, %s16633_s0  ;;  %9372 = vrot.lane.b32.xlu0 %v9356_v49, %s16359_s12  ;;  %v5937_v24 = vsel %vm2235_vm8, %v5905_v11, %v16748_v28  ;;  %v5844_v30 = vsel %vm2136_vm5, %v5812_v59, %v16757_v27  ;;  %v16774_v27 = vld [vmem:[#allocation66_spill] sm:$0xff] }
 0x808   : > { %9397 = vrot.lane.b32.xlu2 %v9381_v19, %s16358_s30  ;;  %v16749_v19 = vld [vmem:[#allocation74_spill] sm:$0xff]  ;;  %v5876_v60 = vsel %vm2169_vm4, %v5844_v30, %v16759_v4  ;;  %v7410_v4 = vld [vmem:[%s13206_s23 + $0x70] sm:$0xff] }
 0x809   : > { %v14603_v62 = vpop.permute.xlu1 %5662  ;;  %v5673_v49 = vpop.permute.xlu0 %5672  ;;  %v5729_v29 = vsel %vm528_vm0, %v9829_v52, %v16749_v19  ;;  %v5908_v0 = vsel %vm2202_vm6, %v5876_v60, %v16761_v53  ;;  %v16775_v60 = vld [vmem:[#allocation63_spill] sm:$0xff]  ;;  %7511 = vmatpush.msra.mxu3 %v7410_v4  ;;  %v16785_v4 = vld [vmem:[#allocation144_spill] sm:$0xff] }
 0x80a   : > { %v14607_v39 = vpop.permute.xlu2 %9232  ;;  %v14614_v6 = vsel %vm2268_vm7, %v5937_v24, %v5673_v49  ;;  %v5761_v9 = vsel %vm573_vm2, %v5729_v29, %v16750_v46  ;;  %v5940_v18 = vsel %vm2235_vm8, %v5908_v0, %v14258_v15  ;;  %v16763_v24 = vld [vmem:[#allocation190_spill] sm:$0xff] }
 0x80b   : > { %8473 = vmatmul.msk.f32.gmra.mxu0 %vm2314_vm9, %v5952_v43  ;;  %v5793_v3 = vsel %vm2103_vm3, %v5761_v9, %v16753_v41  ;;  %v9831_v43 = vld [vmem:[#allocation2 + $0x60] sm:$0xff]  ;;  %v9832_v29 = vld [vmem:[#allocation2 + $0x158] sm:$0xff] }
 0x80c   : > { %v5825_v7 = vsel %vm2136_vm5, %v5793_v3, %v16755_v56  ;;  %v5730_v52 = vsel %vm528_vm0, %v9831_v43, %v16764_v44  ;;  %v5751_v15 = vsel %vm528_vm0, %v9832_v29, %v16765_v37  ;;  %v16767_v9 = vld [vmem:[#allocation118_spill] sm:$0xff]  ;;  %v16772_v56 = vld [vmem:[#allocation25_spill] sm:$0xff] }
 0x80d   : > { %v5857_v21 = vsel %vm2169_vm4, %v5825_v7, %v16756_v10  ;;  %v5762_v46 = vsel %vm573_vm2, %v5730_v52, %v16766_v57  ;;  %v5783_v16 = vsel %vm573_vm2, %v5751_v15, %v16768_v42  ;;  %v16770_v41 = vld [vmem:[#allocation94_spill] sm:$0xff]  ;;  %v6159_v43 = vld [vmem:[#allocation4 + $0xaa] sm:$0xff] }
 0x80e   : > { %v5889_v22 = vsel %vm2202_vm6, %v5857_v21, %v16760_v13  ;;  %v5794_v20 = vsel %vm2103_vm3, %v5762_v46, %v16767_v9  ;;  %v5815_v14 = vsel %vm2103_vm3, %v5783_v16, %v16769_v40  ;;  %v16773_v10 = vld [vmem:[#allocation98_spill] sm:$0xff]  ;;  %v16779_v29 = vld [vmem:[#allocation45_spill] sm:$0xff]  ;;  %v7409_v57 = vld [vmem:[%s13206_s23 + $0x68] sm:$0xff] }
 0x80f   : > { %9362 = vrot.lane.b32.xlu1 %v16758_v12, %s16671_s25  ;;  %9387 = vrot.lane.b32.xlu0 %v9386_v31, %s16669_s28  ;;  %v5921_v61 = vsel %vm2235_vm8, %v5889_v22, %v16762_v35  ;;  %v5826_v3 = vsel %vm2136_vm5, %v5794_v20, %v16770_v41  ;;  %v5847_v59 = vsel %vm2136_vm5, %v5815_v14, %v16771_v8  ;;  %v16776_v22 = vld [vmem:[#allocation181_spill] sm:$0xff]  ;;  %v16778_v44 = vld [vmem:[#allocation30_spill] sm:$0xff]  ;;  %v7408_v46 = vld [vmem:[%s13206_s23 + $0x60] sm:$0xff] }
 0x810   : > { %9412 = vrot.lane.b32.xlu2 %v9411_v45, %s16663_s19  ;;  %v5953_v49 = vsel %vm2268_vm7, %v5921_v61, %v16763_v24  ;;  %v5858_v7 = vsel %vm2169_vm4, %v5826_v3, %v16772_v56  ;;  %v5879_v30 = vsel %vm2169_vm4, %v5847_v59, %v16774_v27  ;;  %v6191_v61 = vld [vmem:[#allocation4 + $0xb0] sm:$0xff]  ;;  %v16780_v9 = vld [vmem:[#allocation171_spill] sm:$0xff]  ;;  %7512 = vmatpush.msra.mxu3 %v7409_v57  ;;  %v7407_v14 = vld [vmem:[%s13206_s23 + $0x58] sm:$0xff] }
 0x811   : > { %v14645_v11 = vpop.permute.xlu1 %5668  ;;  %v5679_v51 = vpop.permute.xlu0 %5678  ;;  %v5890_v21 = vsel %vm2202_vm6, %v5858_v7, %v16773_v10  ;;  %v5911_v13 = vsel %vm2202_vm6, %v5879_v30, %v16775_v60  ;;  %v16781_v16 = vld [vmem:[#allocation115_spill] sm:$0xff]  ;;  %v16784_v8 = vld [vmem:[#allocation33_spill] sm:$0xff]  ;;  %v9834_v30 = vld [vmem:[#allocation2 + $0x78] sm:$0xff] }
 0x812   : > { %v14649_v28 = vpop.permute.xlu2 %9247  ;;  %v14656_v19 = vsel %vm2268_vm7, %v5940_v18, %v5679_v51  ;;  %v5922_v53 = vsel %vm2235_vm8, %v5890_v21, %v16776_v22  ;;  %v9833_v18 = vld [vmem:[#allocation2 + $0x68] sm:$0xff]  ;;  %v16777_v51 = vld [vmem:[#allocation95_spill] sm:$0xff]  ;;  %7513 = vmatpush.msra.mxu3 %v7408_v46  ;;  %v7406_v7 = vld [vmem:[%s13206_s23 + $0x50] sm:$0xff]  ;;  %v5732_v60 = vsel %vm528_vm0, %v9834_v30, %v16785_v4 }
 0x813   : > { %8474 = vmatmul.msk.f32.gmra.mxu0 %vm2314_vm9, %v5953_v49  ;;  %v5731_v24 = vsel %vm528_vm0, %v9833_v18, %v16777_v51  ;;  %v16782_v40 = vld [vmem:[#allocation191_spill] sm:$0xff] }
 0x814   : > { %v5763_v52 = vsel %vm573_vm2, %v5731_v24, %v16778_v44  ;;  %v16783_v41 = vld [vmem:[#allocation23_spill] sm:$0xff]  ;;  %7514 = vmatpush.msra.mxu3 %v7407_v14  ;;  %v7403_v24 = vld [vmem:[%s13206_s23 + $0x38] sm:$0xff]  ;;  %v16791_v44 = vld [vmem:[#allocation180_spill] sm:$0xff] }
 0x815   : > { %v5795_v37 = vsel %vm2103_vm3, %v5763_v52, %v16779_v29  ;;  %v16789_v18 = vld [vmem:[#allocation39_spill] sm:$0xff]  ;;  %v7402_v29 = vld [vmem:[%s13206_s23 + $0x30] sm:$0xff] }
 0x816   : > { %v5827_v20 = vsel %vm2136_vm5, %v5795_v37, %v16780_v9  ;;  %7515 = vmatpush.msra.mxu3 %v7406_v7  ;;  %v16792_v37 = vld [vmem:[#allocation193_spill] sm:$0xff]  ;;  %v6193_v9 = vld [vmem:[#allocation4 + $0xc8] sm:$0xff]  ;;  %v16794_v14 = vld [vmem:[#allocation123_spill] sm:$0xff] }
 0x817   : > { %9377 = vrot.lane.b32.xlu1 %v16758_v12, %s16633_s0  ;;  %9402 = vrot.lane.b32.xlu0 %v9386_v31, %s16359_s12  ;;  %v5943_v31 = vsel %vm2235_vm8, %v5911_v13, %v14285_v17  ;;  %v5954_v12 = vsel %vm2268_vm7, %v5922_v53, %v14367_v63  ;;  %v6160_v17 = vld [vmem:[#allocation4 + $0xb2] sm:$0xff]  ;;  %v6190_v63 = vld [vmem:[#allocation4 + $0xa8] sm:$0xff]  ;;  %v5859_v48 = vsel %vm2169_vm4, %v5827_v20, %v16781_v16  ;;  %v9835_v20 = vld [vmem:[#allocation2 + $0x80] sm:$0xff] }
 0x818   : > { %9427 = vrot.lane.b32.xlu2 %v9411_v45, %s16358_s30  ;;  %v9416_v15 = vpack.i.bf16 %v6191_v61, %v6190_v63  ;;  %v9441_v42 = vpack.i.bf16 %v6160_v17, %v6159_v43  ;;  %v5891_v3 = vsel %vm2202_vm6, %v5859_v48, %v16783_v41  ;;  %v16786_v13 = vld [vmem:[#allocation60_spill] sm:$0xff]  ;;  %v16787_v53 = vld [vmem:[#allocation149_spill] sm:$0xff]  ;;  %v16790_v43 = vld [vmem:[#allocation166_spill] sm:$0xff] }
 0x819   : > { %v14689_v0 = vpop.permute.xlu1 %5674  ;;  %v5685_v35 = vpop.permute.xlu0 %5684  ;;  %v5923_v59 = vsel %vm2235_vm8, %v5891_v3, %v16784_v8  ;;  %v5764_v22 = vsel %vm573_vm2, %v5732_v60, %v16786_v13  ;;  %v6161_v48 = vld [vmem:[#allocation4 + $0xc2] sm:$0xff] }
 0x81a   : > { %v14695_v45 = vpop.permute.xlu2 %9262  ;;  %v14700_v49 = vsel %vm2268_vm7, %v5943_v31, %v5685_v35  ;;  %v5955_v10 = vsel %vm2268_vm7, %v5923_v59, %v14459_v33  ;;  %v5796_v33 = vsel %vm2103_vm3, %v5764_v22, %v16787_v53  ;;  %v7405_v31 = vld [vmem:[%s13206_s23 + $0x48] sm:$0xff]  ;;  %v16788_v35 = vld [vmem:[#allocation38_spill] sm:$0xff]  ;;  %v6192_v3 = vld [vmem:[#allocation4 + $0xc0] sm:$0xff] }
 0x81b   : > { %8475 = vmatmul.msk.f32.gmra.mxu0 %vm2314_vm9, %v5954_v12  ;;  %v7404_v12 = vld [vmem:[%s13206_s23 + $0x40] sm:$0xff]  ;;  %v5828_v61 = vsel %vm2136_vm5, %v5796_v33, %v16788_v35  ;;  %7516 = vmatpush.msra.mxu3 %v7405_v31  ;;  %v16795_v8 = vld [vmem:[#allocation128_spill] sm:$0xff]  ;;  %v9446_v7 = vpack.i.bf16 %v6193_v9, %v6192_v3  ;;  %v16797_v22 = vld [vmem:[#allocation46_spill] sm:$0xff] }
 0x81c   : > { %v5860_v51 = vsel %vm2169_vm4, %v5828_v61, %v16789_v18  ;;  %v7400_v30 = vld [vmem:[%s13206_s23 + $0x20] sm:$0xff]  ;;  %v7399_v33 = vld [vmem:[%s13206_s23 + $0x18] sm:$0xff]  ;;  %v16798_v31 = vld [vmem:[#allocation72_spill] sm:$0xff] }
 0x81d   : > { %v5892_v17 = vsel %vm2202_vm6, %v5860_v51, %v16790_v43  ;;  %7517 = vmatpush.msra.mxu3 %v7404_v12  ;;  %v16796_v4 = vld [vmem:[#allocation35_spill] sm:$0xff]  ;;  %v7398_v51 = vld [vmem:[%s13206_s23 + $0x10] sm:$0xff] }
 0x81e   : > { %v5924_v52 = vsel %vm2235_vm8, %v5892_v17, %v16791_v44  ;;  %v16799_v35 = vld [vmem:[#allocation183_spill] sm:$0xff]  ;;  %v9836_v44 = vld [vmem:[#allocation2 + $0x90] sm:$0xff] }
 0x81f   : > { %9392 = vrot.lane.b32.xlu1 %v16782_v40, %s16671_s25  ;;  %9417 = vrot.lane.b32.xlu0 %v9416_v15, %s16669_s28  ;;  %v5956_v57 = vsel %vm2268_vm7, %v5924_v52, %v16792_v37  ;;  %v16800_v52 = vld [vmem:[#allocation100_spill] sm:$0xff]  ;;  %v16804_v3 = vld [vmem:[#allocation85_spill] sm:$0xff] }
 0x820   : > { %9442 = vrot.lane.b32.xlu2 %v9441_v42, %s16663_s19  ;;  %7518 = vmatpush.msra.mxu3 %v7403_v24  ;;  %v6036_v37 = vld [vmem:[#allocation4 + $0xc9] sm:$0xff] }
 0x821   : > { %v14722_v56 = vpop.permute.xlu1 %5680  ;;  %v14727_v21 = vpop.permute.xlu0 %9207 }
 0x822   : > { %v14729_v27 = vpop.permute.xlu2 %9277  ;;  %7519 = vmatpush.msra.mxu3 %v7402_v29  ;;  %v5734_v29 = vsel %vm528_vm0, %v9836_v44, %v16800_v52  ;;  %v6229_v44 = vld [vmem:[#allocation4 + $0xf9] sm:$0xff]  ;;  %v9209_v52 = vunpack.i.l.bf16 %v14727_v21 }
 0x823   : > { %8476 = vmatmul.msk.f32.gmra.mxu0 %vm2314_vm9, %v5955_v10  ;;  %v7401_v10 = vld [vmem:[%s13206_s23 + $0x28] sm:$0xff] }
 0x824   : > { %7520 = vmatpush.msra.mxu3 %v7401_v10 }
 0x826   : > { %7521 = vmatpush.msra.mxu3 %v7400_v30  ;;  %v16806_v30 = vld [vmem:[#allocation20_spill] sm:$0xff] }
 0x827   : > { %9407 = vrot.lane.b32.xlu1 %v16782_v40, %s16633_s0  ;;  %9432 = vrot.lane.b32.xlu0 %v9416_v15, %s16359_s12  ;;  %v6162_v40 = vld [vmem:[#allocation4 + $0xca] sm:$0xff] }
 0x828   : > { %9457 = vrot.lane.b32.xlu2 %v9441_v42, %s16358_s30  ;;  %v16793_v42 = vld [vmem:[#allocation162_spill] sm:$0xff]  ;;  %v9471_v13 = vpack.i.bf16 %v6162_v40, %v6161_v48  ;;  %7522 = vmatpush.msra.mxu3 %v7399_v33  ;;  %v7396_v48 = vld [vmem:[%s13206_s23] sm:$0xff]  ;;  %v16803_v40 = vld [vmem:[#allocation113_spill] sm:$0xff] }
 0x829   : > { %v14753_v63 = vpop.permute.xlu1 %5686  ;;  %v14760_v15 = vpop.permute.xlu0 %9222  ;;  %v5733_v16 = vsel %vm528_vm0, %v9835_v20, %v16793_v42  ;;  %v16802_v20 = vld [vmem:[#allocation148_spill] sm:$0xff] }
 0x82a   : > { %v14758_v46 = vpop.permute.xlu2 %9292  ;;  %v5765_v41 = vsel %vm573_vm2, %v5733_v16, %v16794_v14  ;;  %7523 = vmatpush.msra.mxu3 %v7398_v51  ;;  %v7397_v16 = vld [vmem:[%s13206_s23 + $0x8] sm:$0xff]  ;;  %s8535_s23 = sshll.u32 %s9942_s17, 2 }
 0x82b   : > { %8477 = vmatmul.msk.f32.gmra.mxu0 %vm2314_vm9, %v5956_v57  ;;  %v5797_v59 = vsel %vm2103_vm3, %v5765_v41, %v16795_v8  ;;  %v16801_v57 = vld [vmem:[#allocation140_spill] sm:$0xff] }
 0x82c   : > { %v5829_v60 = vsel %vm2136_vm5, %v5797_v59, %v16796_v4  ;;  %v5766_v9 = vsel %vm573_vm2, %v5734_v29, %v16801_v57  ;;  %7524 = vmatpush.msra.mxu3 %v7397_v16  ;;  %v16805_v59 = vld [vmem:[#allocation40_spill] sm:$0xff]  ;;  %v5987_v29 = vld [vmem:[#allocation4] sm:$0xff] }
 0x82d   : > { %v5861_v53 = vsel %vm2169_vm4, %v5829_v60, %v16797_v22  ;;  %v5798_v42 = vsel %vm2103_vm3, %v5766_v9, %v16802_v20  ;;  %v9249_v9 = vunpack.i.l.bf16 %v14649_v28  ;;  %v7172_v20 = vsel %vm573_vm2, %v5987_v29, %v9209_v52  ;;  %v16810_v29 = vld [vmem:[#allocation158_spill] sm:$0xff] }
 0x82e   : > { %v5893_v12 = vsel %vm2202_vm6, %v5861_v53, %v16798_v31  ;;  %v5830_v14 = vsel %vm2136_vm5, %v5798_v42, %v16803_v40  ;;  %7525 = vmatpush.msra.mxu3 %v7396_v48  ;;  %v6194_v31 = vld [vmem:[#allocation4 + $0xd8] sm:$0xff] }
 0x82f   : > { %9422 = vrot.lane.b32.xlu1 %v14271_v25, %s16671_s25  ;;  %9447 = vrot.lane.b32.xlu0 %v9446_v7, %s16669_s28  ;;  %v5925_v61 = vsel %vm2235_vm8, %v5893_v12, %v16799_v35  ;;  %v5862_v8 = vsel %vm2169_vm4, %v5830_v14, %v16804_v3  ;;  %v6131_v12 = vld [vmem:[#allocation4 + $0xd9] sm:$0xff]  ;;  %v6164_v14 = vld [vmem:[#allocation4 + $0xe2] sm:$0xff]  ;;  %v9837_v3 = vld [vmem:[#allocation2 + $0xb0] sm:$0xff] }
 0x830   : > { %9472 = vrot.lane.b32.xlu2 %v9471_v13, %s16663_s19  ;;  %v5957_v24 = vsel %vm2268_vm7, %v5925_v61, %v14409_v55  ;;  %v6035_v55 = vld [vmem:[#allocation4 + $0xc1] sm:$0xff]  ;;  %v5894_v10 = vsel %vm2202_vm6, %v5862_v8, %v16805_v59  ;;  %v6102_v59 = vld [vmem:[#allocation4 + $0xf8] sm:$0xff] }
 0x831   : > { %v14784_v18 = vpop.permute.xlu1 %9212  ;;  %v14791_v17 = vpop.permute.xlu0 %9237  ;;  %v9486_v41 = vpack.i.bf16 %v6036_v37, %v6035_v55  ;;  %v5926_v4 = vsel %vm2235_vm8, %v5894_v10, %v16806_v30  ;;  %v6228_v37 = vld [vmem:[#allocation4 + $0xf1] sm:$0xff]  ;;  %v6163_v40 = vld [vmem:[#allocation4 + $0xda] sm:$0xff]  ;;  %v16807_v8 = vld [vmem:[#allocation108_spill] sm:$0xff] }
 0x832   : > { %v14789_v43 = vpop.permute.xlu2 %9307  ;;  %v5958_v22 = vsel %vm2268_vm7, %v5926_v4, %v14516_v47  ;;  %v14841_v57 = vpack.i.bf16 %v6229_v44, %v6228_v37  ;;  %v16808_v10 = vld [vmem:[#allocation169_spill] sm:$0xff]  ;;  %v9210_v4 = vunpack.i.h.bf16 %v14727_v21  ;;  %v14866_v52 = vpack.i.bf16 %v6164_v14, %v6163_v40 }
 0x833   : > { %8478 = vmatmul.msk.f32.gmra.mxu0 %vm2314_vm9, %v5957_v24  ;;  %v6101_v44 = vld [vmem:[#allocation4 + $0xf0] sm:$0xff]  ;;  %v9264_v37 = vunpack.i.l.bf16 %v14695_v45 }
 0x837   : > { %9437 = vrot.lane.b32.xlu1 %v14271_v25, %s16633_s0  ;;  %9462 = vrot.lane.b32.xlu0 %v9446_v7, %s16359_s12  ;;  %v6195_v25 = vld [vmem:[#allocation4 + $0xe0] sm:$0xff] }
 0x838   : > { %9487 = vrot.lane.b32.xlu2 %v9486_v41, %s16342_s29  ;;  %v6132_v7 = vld [vmem:[#allocation4 + $0xe1] sm:$0xff]  ;;  %v14823_v35 = vpack.i.bf16 %v6195_v25, %v6194_v31 }
 0x839   : > { %v14814_v60 = vpop.permute.xlu1 %9227  ;;  %v14820_v33 = vpop.permute.xlu0 %9252  ;;  %v14825_v61 = vpack.i.bf16 %v6132_v7, %v6131_v12  ;;  %v16809_v25 = vld [vmem:[#allocation32_spill] sm:$0xff] }
 0x83a   : > { %v14818_v53 = vpop.permute.xlu2 %9322  ;;  %v9254_v42 = vunpack.i.l.bf16 %v14820_v33  ;;  %v5988_v31 = vld [vmem:[#allocation4 + $0x8] sm:$0xff] }
 0x83b   : > { %8479 = vmatmul.msk.f32.gmra.mxu0 %vm2314_vm9, %v5958_v22  ;;  %v7173_v14 = vsel %vm573_vm2, %v5988_v31, %v9210_v4  ;;  %v6199_v31 = vld [vmem:[#allocation4 + $0x110] sm:$0xff] }
 0x83f   : > { %9452 = vrot.lane.b32.xlu1 %v9486_v41, %s16671_s25  ;;  %9477 = vrot.lane.b32.xlu0 %v14823_v35, %s16669_s28 }
 0x840   : > { %9502 = vrot.lane.b32.xlu2 %v14825_v61, %s16633_s0 }
 0x841   : > { %v14832_v47 = vpop.permute.xlu1 %9242  ;;  %v14836_v24 = vpop.permute.xlu0 %9267 }
 0x842   : > { %v14834_v51 = vpop.permute.xlu2 %9337 }
 0x843   : > { %8480 = vmatmul.msk.f32.gmra.mxu0 %vm2314_vm9, %v14265_v54 }
 0x847   : > { %9467 = vrot.lane.b32.xlu1 %v9486_v41, %s16633_s0  ;;  %9492 = vrot.lane.b32.xlu0 %v9471_v13, %s16358_s30  ;;  %v5737_v41 = vsel %vm528_vm0, %v9837_v3, %v16807_v8  ;;  %v7204_v13 = vsel %vm2136_vm5, %v7172_v20, %v9249_v9  ;;  %v9531_v9 = vpack.i.bf16 %v6102_v59, %v6101_v44  ;;  %v16811_v20 = vld [vmem:[#allocation141_spill] sm:$0xff]  ;;  %v9255_v3 = vunpack.i.h.bf16 %v14820_v33 }
 0x848   : > { %9517 = vrot.lane.b32.xlu2 %v14841_v57, %s16671_s25  ;;  %v5769_v30 = vsel %vm573_vm2, %v5737_v41, %v16808_v10  ;;  %v7236_v22 = vsel %vm2202_vm6, %v7204_v13, %v9254_v42  ;;  %v9250_v42 = vunpack.i.h.bf16 %v14649_v28  ;;  %v16813_v41 = vld [vmem:[#allocation15_spill] sm:$0xff]  ;;  %v9269_v13 = vunpack.i.l.bf16 %v14836_v24 }
 0x849   : > { %v9258_v54 = vpop.permute.xlu1 %9257  ;;  %v14852_v48 = vpop.permute.xlu0 %9282  ;;  %v5801_v7 = vsel %vm2103_vm3, %v5769_v30, %v16809_v25 }
 0x84a   : > { %v9259_v55 = vunpack.i.l.bf16 %v9258_v54  ;;  %v14850_v16 = vpop.permute.xlu2 %9352  ;;  %v9260_v59 = vunpack.i.h.bf16 %v9258_v54  ;;  %v7205_v33 = vsel %vm2136_vm5, %v7173_v14, %v9250_v42  ;;  %v9284_v42 = vunpack.i.l.bf16 %v14852_v48 }
 0x84b   : > { %8481 = vmatmul.msk.f32.gmra.mxu0 %vm2314_vm9, %v14473_v23  ;;  %v5833_v23 = vsel %vm2136_vm5, %v5801_v7, %v16810_v29  ;;  %v7237_v54 = vsel %vm2202_vm6, %v7205_v33, %v9255_v3  ;;  %v6198_v29 = vld [vmem:[#allocation4 + $0x108] sm:$0xff]  ;;  %v9270_v14 = vunpack.i.h.bf16 %v14836_v24  ;;  %v9294_v33 = vunpack.i.l.bf16 %v14758_v46 }
 0x84c   : > { %v7268_v12 = vsel %vm2268_vm7, %v7236_v22, %v9259_v55  ;;  %v5865_v21 = vsel %vm2169_vm4, %v5833_v23, %v16811_v20  ;;  %v16812_v55 = vld [vmem:[#allocation70_spill] sm:$0xff]  ;;  %v9265_v23 = vunpack.i.h.bf16 %v14695_v45  ;;  %v16814_v20 = vld [vmem:[#allocation196_spill] sm:$0xff]  ;;  %v9279_v45 = vunpack.i.l.bf16 %v14729_v27 }
 0x84d   : > { %v5897_v40 = vsel %vm2202_vm6, %v5865_v21, %v16812_v55  ;;  %v7300_v8 = vsel %vm3902_vm11, %v7268_v12, %v9264_v37  ;;  %v9214_v12 = vunpack.i.l.bf16 %v14784_v18  ;;  %v14901_v37 = vpack.i.bf16 %v6199_v31, %v6198_v29 }
 0x84e   : > { %v5929_v28 = vsel %vm2235_vm8, %v5897_v40, %v16813_v41  ;;  %v7332_v7 = vsel %vm3935_vm12, %v7300_v8, %v9269_v13  ;;  %v6071_v13 = vld [vmem:[#allocation4 + $0xf2] sm:$0xff] }
 0x84f   : > { %9482 = vrot.lane.b32.xlu1 %v14825_v61, %s16671_s25  ;;  %9507 = vrot.lane.b32.xlu0 %v14866_v52, %s16663_s19  ;;  %v5961_v30 = vsel %vm2268_vm7, %v5929_v28, %v14561_v1  ;;  %v7269_v1 = vsel %vm2268_vm7, %v7237_v54, %v9260_v59  ;;  %v7174_v21 = vsel %vm573_vm2, %v16814_v20, %v9214_v12  ;;  %v6072_v59 = vld [vmem:[#allocation4 + $0xfa] sm:$0xff]  ;;  %v9280_v54 = vunpack.i.h.bf16 %v14729_v27 }
 0x850   : > { %9532 = vrot.lane.b32.xlu2 %v9531_v9, %s16359_s12  ;;  %v7301_v40 = vsel %vm3902_vm11, %v7269_v1, %v9265_v23  ;;  %v7206_v41 = vsel %vm2136_vm5, %v7174_v21, %v9279_v45  ;;  %v6231_v21 = vld [vmem:[#allocation4 + $0x111] sm:$0xff] }
 0x851   : > { %v9273_v10 = vpop.permute.xlu1 %9272  ;;  %v14891_v4 = vpop.permute.xlu0 %9297  ;;  %v7333_v28 = vsel %vm3935_vm12, %v7301_v40, %v9270_v14  ;;  %v6167_v45 = vld [vmem:[#allocation4 + $0x10a] sm:$0xff]  ;;  %v6168_v14 = vld [vmem:[#allocation4 + $0x112] sm:$0xff] }
 0x852   : > { %v9274_v22 = vunpack.i.l.bf16 %v9273_v10  ;;  %v14889_v25 = vpop.permute.xlu2 %9367  ;;  %v9275_v55 = vunpack.i.h.bf16 %v9273_v10  ;;  %v9215_v10 = vunpack.i.h.bf16 %v14784_v18  ;;  %v9285_v18 = vunpack.i.h.bf16 %v14852_v48 }
 0x853   : > { %8482 = vmatmul.msk.f32.gmra.mxu0 %vm2314_vm9, %v5961_v30  ;;  %v7238_v30 = vsel %vm2202_vm6, %v7206_v41, %v9284_v42  ;;  %v9838_v42 = vld [vmem:[#allocation2 + $0xd8] sm:$0xff] }
 0x854   : > { %v7364_v44 = vsel %vm3968_vm13, %v7332_v7, %v9274_v22  ;;  %v7365_v24 = vsel %vm3968_vm13, %v7333_v28, %v9275_v55  ;;  %v9561_v7 = vpack.i.bf16 %v6072_v59, %v6071_v13  ;;  %v16816_v55 = vld [vmem:[#allocation109_spill] sm:$0xff]  ;;  %v16818_v59 = vld [vmem:[#allocation92_spill] sm:$0xff] }
 0x855   : > { %7526 = vmatmul.f32.vlgmr.msra.gmra.mxu3 %v7364_v44  ;;  %v9299_v44 = vunpack.i.l.bf16 %v14891_v4  ;;  %v5740_v48 = vsel %vm528_vm0, %v9838_v42, %v16816_v55  ;;  %v6230_v13 = vld [vmem:[#allocation4 + $0x109] sm:$0xff]  ;;  %v16822_v42 = vld [vmem:[#allocation174_spill] sm:$0xff] }
 0x857   : > { %9497 = vrot.lane.b32.xlu1 %v14823_v35, %s16359_s12  ;;  %9522 = vrot.lane.b32.xlu0 %v14825_v61, %s16342_s29 }
 0x858   : > { %9547 = vrot.lane.b32.xlu2 %v14901_v37, %s16669_s28 }
 0x859   : > { %v9288_v3 = vpop.permute.xlu1 %9287  ;;  %v14917_v61 = vpop.permute.xlu0 %9312 }
 0x85a   : > { %v9289_v35 = vunpack.i.l.bf16 %v9288_v3  ;;  %v14915_v8 = vpop.permute.xlu2 %9382  ;;  %v9290_v1 = vunpack.i.h.bf16 %v9288_v3  ;;  %v16817_v3 = vld [vmem:[#allocation80_spill] sm:$0xff] }
 0x85b   : > { %8483 = vmatmul.msk.f32.gmra.mxu0 %vm2314_vm9, %v14294_v50  ;;  %v16815_v50 = vld [vmem:[#allocation195_spill] sm:$0xff] }
 0x85c   : > { %v7270_v22 = vsel %vm2268_vm7, %v7238_v30, %v9289_v35  ;;  %v7175_v31 = vsel %vm573_vm2, %v16815_v50, %v9215_v10  ;;  %v5772_v35 = vsel %vm573_vm2, %v5740_v48, %v16817_v3  ;;  %v9295_v50 = vunpack.i.h.bf16 %v14758_v46 }
 0x85d   : > { %7529 = vmatmul.f32.gmra.mxu3 %v7365_v24  ;;  %v7302_v12 = vsel %vm3902_vm11, %v7270_v22, %v9294_v33  ;;  %v7207_v40 = vsel %vm2136_vm5, %v7175_v31, %v9280_v54  ;;  %v5804_v10 = vsel %vm2103_vm3, %v5772_v35, %v16818_v59  ;;  %v14955_v24 = vpack.i.bf16 %v6231_v21, %v6230_v13 }
 0x85e   : > { %v7334_v27 = vsel %vm3935_vm12, %v7302_v12, %v9299_v44  ;;  %v7239_v41 = vsel %vm2202_vm6, %v7207_v40, %v9285_v18  ;;  %v9219_v33 = vunpack.i.l.bf16 %v14565_v58  ;;  %v14961_v31 = vpack.i.bf16 %v6168_v14, %v6167_v45  ;;  %v16820_v18 = vld [vmem:[#allocation165_spill] sm:$0xff] }
 0x85f   : > { %9512 = vrot.lane.b32.xlu1 %v9531_v9, %s16669_s28  ;;  %9537 = vrot.lane.b32.xlu0 %v14841_v57, %s16633_s0  ;;  %v7271_v30 = vsel %vm2268_vm7, %v7239_v41, %v9290_v1  ;;  %v9309_v54 = vunpack.i.l.bf16 %v14789_v43  ;;  %v16821_v44 = vld [vmem:[#allocation37_spill] sm:$0xff]  ;;  %v9300_v48 = vunpack.i.h.bf16 %v14891_v4  ;;  %v9324_v59 = vunpack.i.l.bf16 %v14818_v53 }
 0x860   : > { %9562 = vrot.lane.b32.xlu2 %v9561_v7, %s16358_s30  ;;  %v7303_v46 = vsel %vm3902_vm11, %v7271_v30, %v9295_v50  ;;  %v9839_v40 = vld [vmem:[#allocation4 + $0x30] sm:$0xff]  ;;  %v9315_v30 = vunpack.i.h.bf16 %v14917_v61  ;;  %v9840_v50 = vld [vmem:[#allocation4 + $0x38] sm:$0xff] }
 0x861   : > { %v9303_v29 = vpop.permute.xlu1 %9302  ;;  %v14940_v20 = vpop.permute.xlu0 %9327  ;;  %v7335_v41 = vsel %vm3935_vm12, %v7303_v46, %v9300_v48  ;;  %v9325_v48 = vunpack.i.h.bf16 %v14818_v53 }
 0x862   : > { %v9304_v23 = vunpack.i.l.bf16 %v9303_v29  ;;  %v14938_v9 = vpop.permute.xlu2 %9397  ;;  %v9305_v21 = vunpack.i.h.bf16 %v9303_v29  ;;  %v9330_v53 = vunpack.i.h.bf16 %v14940_v20 }
 0x863   : > { %8484 = vmatmul.msk.f32.gmra.mxu0 %vm2314_vm9, %v14530_v32  ;;  %v16819_v32 = vld [vmem:[#allocation52_spill] sm:$0xff] }
 0x864   : > { %v7366_v28 = vsel %vm3968_vm13, %v7334_v27, %v9304_v23  ;;  %v5836_v22 = vsel %vm2136_vm5, %v5804_v10, %v16819_v32  ;;  %v9314_v23 = vunpack.i.l.bf16 %v14917_v61  ;;  %v7176_v27 = vsel %vm573_vm2, %v9839_v40, %v9219_v33 }
 0x865   : > { %7532 = vmatmul.f32.gmra.mxu3 %v7366_v28  ;;  %v5868_v12 = vsel %vm2169_vm4, %v5836_v22, %v16820_v18  ;;  %v7208_v35 = vsel %vm2136_vm5, %v7176_v27, %v9309_v54  ;;  %v7367_v28 = vsel %vm3968_vm13, %v7335_v41, %v9305_v21  ;;  %v9310_v10 = vunpack.i.h.bf16 %v14789_v43  ;;  %v6138_v54 = vld [vmem:[#allocation4 + $0x129] sm:$0xff]  ;;  %v15016_v21 = vld [vmem:[#allocation4 + $0x120] sm:$0xff] }
 0x866   : > { %v5900_v1 = vsel %vm2202_vm6, %v5868_v12, %v16821_v44  ;;  %v7240_v4 = vsel %vm2202_vm6, %v7208_v35, %v9314_v23  ;;  %v9329_v22 = vunpack.i.l.bf16 %v14940_v20  ;;  %v9339_v40 = vunpack.i.l.bf16 %v14834_v51  ;;  %v9841_v41 = vld [vmem:[#allocation4 + $0x48] sm:$0xff]  ;;  %v16824_v20 = vld [vmem:[#allocation111_spill] sm:$0xff] }
 0x867   : > { %9527 = vrot.lane.b32.xlu1 %v14866_v52, %s16358_s30  ;;  %9552 = vrot.lane.b32.xlu0 %v14955_v24, %s16671_s25  ;;  %v5932_v55 = vsel %vm2235_vm8, %v5900_v1, %v16822_v42  ;;  %v6137_v42 = vld [vmem:[#allocation4 + $0x121] sm:$0xff] }
 0x868   : > { %9577 = vrot.lane.b32.xlu2 %v14961_v31, %s16663_s19  ;;  %v5964_v45 = vsel %vm2268_vm7, %v5932_v55, %v14603_v62  ;;  %v9220_v62 = vunpack.i.h.bf16 %v14565_v58 }
 0x869   : > { %v9318_v52 = vpop.permute.xlu1 %9317  ;;  %v14984_v29 = vpop.permute.xlu0 %9342 }
 0x86a   : > { %v9319_v14 = vunpack.i.l.bf16 %v9318_v52  ;;  %v14982_v3 = vpop.permute.xlu2 %9412  ;;  %v9320_v33 = vunpack.i.h.bf16 %v9318_v52  ;;  %v7177_v18 = vsel %vm573_vm2, %v9840_v50, %v9220_v62  ;;  %v15025_v52 = vpack.i.bf16 %v6138_v54, %v6137_v42  ;;  %v16823_v62 = vld [vmem:[#allocation59_spill] sm:$0xff]  ;;  %v16825_v50 = vld [vmem:[#allocation36_spill] sm:$0xff]  ;;  %v16827_v42 = vld [vmem:[#allocation13_spill] sm:$0xff] }
 0x86b   : > { %8485 = vmatmul.msk.f32.gmra.mxu0 %vm2314_vm9, %v5964_v45  ;;  %v9344_v27 = vunpack.i.l.bf16 %v14984_v29  ;;  %v9225_v54 = vunpack.i.h.bf16 %v14760_v15 }
 0x86c   : > { %v7272_v13 = vsel %vm2268_vm7, %v7240_v4, %v9319_v14 }
 0x86d   : > { %7535 = vmatmul.f32.gmra.mxu3 %v7367_v28  ;;  %v7304_v32 = vsel %vm3902_vm11, %v7272_v13, %v9324_v59 }
 0x86e   : > { %v7336_v61 = vsel %vm3935_vm12, %v7304_v32, %v9329_v22  ;;  %v6235_v32 = vld [vmem:[#allocation4 + $0x141] sm:$0xff] }
 0x86f   : > { %9542 = vrot.lane.b32.xlu1 %v9561_v7, %s16663_s19  ;;  %9567 = vrot.lane.b32.xlu0 %v14901_v37, %s16359_s12  ;;  %v15006_v7 = vld [vmem:[#allocation4 + $0x128] sm:$0xff]  ;;  %v7209_v37 = vsel %vm2136_vm5, %v7177_v18, %v9310_v10 }
 0x870   : > { %9592 = vrot.lane.b32.xlu2 %v14955_v24, %s16342_s29  ;;  %v7241_v44 = vsel %vm2202_vm6, %v7209_v37, %v9315_v30  ;;  %v15021_v55 = vpack.i.bf16 %v15006_v7, %v15016_v21  ;;  %v6234_v37 = vld [vmem:[#allocation4 + $0x139] sm:$0xff] }
 0x871   : > { %v9333_v58 = vpop.permute.xlu1 %9332  ;;  %v15004_v12 = vpop.permute.xlu0 %9357  ;;  %v7273_v46 = vsel %vm2268_vm7, %v7241_v44, %v9320_v33  ;;  %v9354_v44 = vunpack.i.l.bf16 %v14850_v16 }
 0x872   : > { %v9334_v43 = vunpack.i.l.bf16 %v9333_v58  ;;  %v15013_v1 = vpop.permute.xlu2 %9427  ;;  %v9335_v45 = vunpack.i.h.bf16 %v9333_v58  ;;  %v7305_v14 = vsel %vm3902_vm11, %v7273_v46, %v9325_v48  ;;  %v15059_v46 = vpack.i.bf16 %v6235_v32, %v6234_v37  ;;  %v6108_v32 = vld [vmem:[#allocation4 + $0x140] sm:$0xff] }
 0x873   : > { %8486 = vmatmul.msk.f32.gmra.mxu0 %vm2314_vm9, %v14332_v38  ;;  %v9224_v38 = vunpack.i.l.bf16 %v14760_v15  ;;  %v7337_v30 = vsel %vm3935_vm12, %v7305_v14, %v9330_v53  ;;  %v9340_v48 = vunpack.i.h.bf16 %v14834_v51  ;;  %v16829_v14 = vld [vmem:[#allocation176_spill] sm:$0xff]  ;;  %v9359_v51 = vunpack.i.l.bf16 %v15004_v12 }
 0x874   : > { %v7368_v23 = vsel %vm3968_vm13, %v7336_v61, %v9334_v43  ;;  %v7369_v58 = vsel %vm3968_vm13, %v7337_v30, %v9335_v45  ;;  %v16826_v61 = vld [vmem:[#allocation50_spill] sm:$0xff] }
 0x875   : > { %7538 = vmatmul.f32.gmra.mxu3 %v7368_v23  ;;  %v7178_v4 = vsel %vm573_vm2, %v9841_v41, %v9224_v38 }
 0x876   : > { %v7210_v10 = vsel %vm2136_vm5, %v7178_v4, %v9339_v40  ;;  %v16828_v40 = vld [vmem:[#allocation34_spill] sm:$0xff]  ;;  %v9843_v4 = vld [vmem:[#allocation4 + $0x50] sm:$0xff] }
 0x877   : > { %9557 = vrot.lane.b32.xlu1 %v14841_v57, %s16342_s29  ;;  %9582 = vrot.lane.b32.xlu0 %v15021_v55, %s16669_s28  ;;  %v9842_v57 = vld [vmem:[#allocation2 + $0xf8] sm:$0xff]  ;;  %v7242_v33 = vsel %vm2202_vm6, %v7210_v10, %v9344_v27  ;;  %v9345_v27 = vunpack.i.h.bf16 %v14984_v29 }
 0x878   : > { %9607 = vrot.lane.b32.xlu2 %v15025_v52, %s16633_s0  ;;  %v5743_v59 = vsel %vm528_vm0, %v9842_v57, %v16823_v62  ;;  %v6169_v62 = vld [vmem:[#allocation4 + $0x122] sm:$0xff] }
 0x879   : > { %v9348_v35 = vpop.permute.xlu1 %9347  ;;  %v15038_v13 = vpop.permute.xlu0 %9372  ;;  %v5775_v22 = vsel %vm573_vm2, %v5743_v59, %v16824_v20  ;;  %v6170_v59 = vld [vmem:[#allocation4 + $0x12a] sm:$0xff] }
 0x87a   : > { %v9349_v28 = vunpack.i.l.bf16 %v9348_v35  ;;  %v5807_v18 = vsel %vm2103_vm3, %v5775_v22, %v16825_v50  ;;  %v15057_v23 = vpop.permute.xlu2 %9442  ;;  %v9350_v41 = vunpack.i.h.bf16 %v9348_v35  ;;  %v6107_v22 = vld [vmem:[#allocation4 + $0x138] sm:$0xff]  ;;  %v9355_v50 = vunpack.i.h.bf16 %v14850_v16 }
 0x87b   : > { %8487 = vmatmul.msk.f32.gmra.mxu0 %vm2314_vm9, %v14572_v36  ;;  %v5839_v36 = vsel %vm2136_vm5, %v5807_v18, %v16826_v61  ;;  %v9636_v18 = vpack.i.bf16 %v6108_v32, %v6107_v22  ;;  %v9374_v37 = vunpack.i.l.bf16 %v15038_v13  ;;  %v9360_v16 = vunpack.i.h.bf16 %v15004_v12  ;;  %v15112_v12 = vpop.f32.mrf.mxu0  ;;  %v6077_v22 = vld [vmem:[#allocation4 + $0x13a] sm:$0xff] }
 0x87c   : > { %v7274_v43 = vsel %vm2268_vm7, %v7242_v33, %v9349_v28  ;;  %v5871_v38 = vsel %vm2169_vm4, %v5839_v36, %v16827_v42  ;;  %v7179_v28 = vsel %vm573_vm2, %v9843_v4, %v9225_v54  ;;  %v15088_v33 = vpack.i.bf16 %v6170_v59, %v6169_v62  ;;  %v9844_v42 = vld [vmem:[#allocation4 + $0x60] sm:$0xff]  ;;  %16830 = vst [vmem:[#allocation57_spill] sm:$0xff] %v15112_v12 }
 0x87d   : > { %7541 = vmatmul.f32.gmra.mxu3 %v7369_v58  ;;  %v5903_v15 = vsel %vm2202_vm6, %v5871_v38, %v16828_v40  ;;  %v7306_v45 = vsel %vm3902_vm11, %v7274_v43, %v9354_v44  ;;  %v7211_v10 = vsel %vm2136_vm5, %v7179_v28, %v9340_v48  ;;  %v9229_v58 = vunpack.i.l.bf16 %v14814_v60 }
 0x87e   : > { %v5935_v53 = vsel %vm2235_vm8, %v5903_v15, %v16829_v14  ;;  %v7338_v30 = vsel %vm3935_vm12, %v7306_v45, %v9359_v51  ;;  %v7243_v35 = vsel %vm2202_vm6, %v7211_v10, %v9345_v27  ;;  %v9369_v43 = vunpack.i.l.bf16 %v14889_v25  ;;  %v6205_v45 = vld [vmem:[#allocation4 + $0x158] sm:$0xff]  ;;  %v9845_v10 = vld [vmem:[#allocation4 + $0x68] sm:$0xff] }
 0x87f   : > { %9572 = vrot.lane.b32.xlu1 %v14955_v24, %s16633_s0  ;;  %9597 = vrot.lane.b32.xlu0 %v14961_v31, %s16358_s30  ;;  %v5967_v31 = vsel %vm2268_vm7, %v5935_v53, %v14645_v11  ;;  %v7275_v11 = vsel %vm2268_vm7, %v7243_v35, %v9350_v41  ;;  %v7180_v38 = vsel %vm573_vm2, %v9844_v42, %v9229_v58  ;;  %v15115_v41 = vld [vmem:[#allocation4 + $0x150] sm:$0xff]  ;;  %v9370_v4 = vunpack.i.h.bf16 %v14889_v25  ;;  %v16831_v35 = vld [vmem:[#allocation138_spill] sm:$0xff]  ;;  %v6078_v58 = vld [vmem:[#allocation4 + $0x142] sm:$0xff] }
 0x880   : > { %9622 = vrot.lane.b32.xlu2 %v15059_v46, %s16671_s25  ;;  %v7307_v54 = vsel %vm3902_vm11, %v7275_v11, %v9355_v50  ;;  %v7212_v15 = vsel %vm2136_vm5, %v7180_v38, %v9369_v43  ;;  %v9375_v28 = vunpack.i.h.bf16 %v15038_v13  ;;  %v16832_v50 = vld [vmem:[#allocation79_spill] sm:$0xff]  ;;  %v16834_v42 = vld [vmem:[#allocation41_spill] sm:$0xff]  ;;  %v9234_v38 = vunpack.i.l.bf16 %v14607_v39 }
 0x881   : > { %v9363_v24 = vpop.permute.xlu1 %9362  ;;  %v15080_v29 = vpop.permute.xlu0 %9387  ;;  %v7339_v27 = vsel %vm3935_vm12, %v7307_v54, %v9360_v16  ;;  %v7244_v14 = vsel %vm2202_vm6, %v7212_v15, %v9374_v37  ;;  %v16833_v54 = vld [vmem:[#allocation157_spill] sm:$0xff]  ;;  %v9666_v15 = vpack.i.bf16 %v6078_v58, %v6077_v22 }
 0x882   : > { %v9364_v57 = vunpack.i.l.bf16 %v9363_v24  ;;  %v9365_v61 = vunpack.i.h.bf16 %v9363_v24  ;;  %v15098_v36 = vpop.permute.xlu2 %9457  ;;  %v9230_v24 = vunpack.i.h.bf16 %v14814_v60 }
 0x883   : > { %8488 = vmatmul.msk.f32.gmra.mxu0 %vm2314_vm9, %v5967_v31  ;;  %v9384_v31 = vunpack.i.l.bf16 %v14915_v8 }
 0x884   : > { %v7370_v20 = vsel %vm3968_vm13, %v7338_v30, %v9364_v57  ;;  %v7371_v53 = vsel %vm3968_vm13, %v7339_v27, %v9365_v61  ;;  %v9389_v57 = vunpack.i.l.bf16 %v15080_v29  ;;  %v7181_v25 = vsel %vm573_vm2, %v9845_v10, %v9230_v24  ;;  %v16835_v27 = vld [vmem:[#allocation96_spill] sm:$0xff] }
 0x885   : > { %7544 = vmatmul.f32.gmra.mxu3 %v7370_v20  ;;  %v7213_v20 = vsel %vm2136_vm5, %v7181_v25, %v9370_v4 }
 0x886   : > { %v7245_v37 = vsel %vm2202_vm6, %v7213_v20, %v9375_v28  ;;  %v16838_v28 = vld [vmem:[#allocation179_spill] sm:$0xff]  ;;  %v6173_v20 = vld [vmem:[#allocation4 + $0x152] sm:$0xff] }
 0x887   : > { %9587 = vrot.lane.b32.xlu1 %v15025_v52, %s16671_s25  ;;  %9612 = vrot.lane.b32.xlu0 %v15088_v33, %s16663_s19 }
 0x888   : > { %9637 = vrot.lane.b32.xlu2 %v9636_v18, %s16359_s12 }
 0x889   : > { %v9378_v44 = vpop.permute.xlu1 %9377  ;;  %v15104_v40 = vpop.permute.xlu0 %9402 }
 0x88a   : > { %v9379_v48 = vunpack.i.l.bf16 %v9378_v44  ;;  %v9380_v62 = vunpack.i.h.bf16 %v9378_v44  ;;  %v15133_v30 = vpop.permute.xlu2 %9472 }
 0x88b   : > { %8489 = vmatmul.msk.f32.gmra.mxu0 %vm2314_vm9, %v14374_v2  ;;  %v15120_v2 = vpack.i.bf16 %v6205_v45, %v15115_v41 }
 0x88c   : > { %v7276_v51 = vsel %vm2268_vm7, %v7244_v14, %v9379_v48  ;;  %v7277_v44 = vsel %vm2268_vm7, %v7245_v37, %v9380_v62  ;;  %v9385_v48 = vunpack.i.h.bf16 %v14915_v8  ;;  %v15156_v14 = vpop.f32.mrf.mxu0  ;;  %v9235_v37 = vunpack.i.h.bf16 %v14607_v39 }
 0x88d   : > { %7547 = vmatmul.f32.gmra.mxu3 %v7371_v53  ;;  %v7308_v60 = vsel %vm3902_vm11, %v7276_v51, %v9384_v31  ;;  %16836 = vst [vmem:[#allocation82_spill] sm:$0xff] %v15156_v14  ;;  %v9399_v53 = vunpack.i.l.bf16 %v14938_v9  ;;  %v16837_v51 = vld [vmem:[#allocation107_spill] sm:$0xff]  ;;  %v9404_v31 = vunpack.i.l.bf16 %v15104_v40 }
 0x88e   : > { %v7340_v11 = vsel %vm3935_vm12, %v7308_v60, %v9389_v57  ;;  %v7309_v8 = vsel %vm3902_vm11, %v7277_v44, %v9385_v48  ;;  %v9390_v57 = vunpack.i.h.bf16 %v15080_v29  ;;  %v9405_v44 = vunpack.i.h.bf16 %v15104_v40 }
 0x88f   : > { %9602 = vrot.lane.b32.xlu1 %v15021_v55, %s16359_s12  ;;  %9627 = vrot.lane.b32.xlu0 %v15025_v52, %s16342_s29  ;;  %v9846_v52 = vld [vmem:[#allocation2 + $0x120] sm:$0xff] }
 0x890   : > { %9652 = vrot.lane.b32.xlu2 %v15120_v2, %s16669_s28  ;;  %v5746_v13 = vsel %vm528_vm0, %v9846_v52, %v16831_v35 }
 0x891   : > { %v9393_v59 = vpop.permute.xlu1 %9392  ;;  %v15135_v32 = vpop.permute.xlu0 %9417  ;;  %v5778_v43 = vsel %vm573_vm2, %v5746_v13, %v16832_v50  ;;  %v7341_v13 = vsel %vm3935_vm12, %v7309_v8, %v9390_v57  ;;  %v6236_v50 = vld [vmem:[#allocation4 + $0x151] sm:$0xff]  ;;  %v9415_v8 = vunpack.i.h.bf16 %v14982_v3 }
 0x892   : > { %v9394_v55 = vunpack.i.l.bf16 %v9393_v59  ;;  %v5810_v16 = vsel %vm2103_vm3, %v5778_v43, %v16833_v54  ;;  %v9395_v4 = vunpack.i.h.bf16 %v9393_v59  ;;  %v6237_v59 = vld [vmem:[#allocation4 + $0x159] sm:$0xff]  ;;  %v15179_v22 = vpop.permute.xlu2 %9487 }
 0x893   : > { %8490 = vmatmul.msk.f32.gmra.mxu0 %vm2314_vm9, %v14614_v6  ;;  %v5842_v6 = vsel %vm2136_vm5, %v5810_v16, %v16834_v42  ;;  %v15183_v43 = vpack.i.bf16 %v6237_v59, %v6236_v50  ;;  %v9400_v16 = vunpack.i.h.bf16 %v14938_v9  ;;  %v9848_v9 = vld [vmem:[#allocation4 + $0x80] sm:$0xff] }
 0x894   : > { %v7372_v61 = vsel %vm3968_vm13, %v7340_v11, %v9394_v55  ;;  %v5874_v45 = vsel %vm2169_vm4, %v5842_v6, %v16835_v27  ;;  %v6174_v11 = vld [vmem:[#allocation4 + $0x15a] sm:$0xff]  ;;  %v7373_v58 = vsel %vm3968_vm13, %v7341_v13, %v9395_v4  ;;  %v15198_v39 = vpop.f32.mrf.mxu0  ;;  %v9419_v6 = vunpack.i.l.bf16 %v15135_v32 }
 0x895   : > { %7550 = vmatmul.f32.gmra.mxu3 %v7372_v61  ;;  %v5906_v24 = vsel %vm2202_vm6, %v5874_v45, %v16837_v51  ;;  %v9414_v61 = vunpack.i.l.bf16 %v14982_v3  ;;  %v15187_v54 = vpack.i.bf16 %v6174_v11, %v6173_v20  ;;  %v7183_v27 = vsel %vm573_vm2, %v9848_v9, %v9235_v37 }
 0x896   : > { %v5938_v60 = vsel %vm2235_vm8, %v5906_v24, %v16838_v28  ;;  %v9239_v4 = vunpack.i.l.bf16 %v14791_v17  ;;  %v9240_v9 = vunpack.i.h.bf16 %v14791_v17 }
 0x897   : > { %9617 = vrot.lane.b32.xlu1 %v9636_v18, %s16669_s28  ;;  %9642 = vrot.lane.b32.xlu0 %v15059_v46, %s16633_s0  ;;  %v9847_v18 = vld [vmem:[#allocation4 + $0x78] sm:$0xff]  ;;  %v5970_v25 = vsel %vm2268_vm7, %v5938_v60, %v14689_v0  ;;  %v9429_v60 = vunpack.i.l.bf16 %v15013_v1 }
 0x898   : > { %9667 = vrot.lane.b32.xlu2 %v9666_v15, %s16358_s30  ;;  %v7182_v10 = vsel %vm573_vm2, %v9847_v18, %v9234_v38  ;;  %v9420_v18 = vunpack.i.h.bf16 %v15135_v32 }
 0x899   : > { %v9408_v62 = vpop.permute.xlu1 %9407  ;;  %v15173_v52 = vpop.permute.xlu0 %9432  ;;  %v7214_v35 = vsel %vm2136_vm5, %v7182_v10, %v9399_v53  ;;  %v7215_v53 = vsel %vm2136_vm5, %v7183_v27, %v9400_v16  ;;  %v9849_v10 = vld [vmem:[#allocation4 + $0x90] sm:$0xff]  ;;  %v16841_v16 = vld [vmem:[#allocation48_spill] sm:$0xff]  ;;  %v9444_v27 = vunpack.i.l.bf16 %v15057_v23 }
 0x89a   : > { %v9409_v55 = vunpack.i.l.bf16 %v9408_v62  ;;  %v7246_v29 = vsel %vm2202_vm6, %v7214_v35, %v9404_v31  ;;  %v9410_v38 = vunpack.i.h.bf16 %v9408_v62  ;;  %v7247_v51 = vsel %vm2202_vm6, %v7215_v53, %v9405_v44  ;;  %v15213_v28 = vpop.permute.xlu2 %9502  ;;  %v16839_v35 = vld [vmem:[#allocation154_spill] sm:$0xff]  ;;  %v16843_v53 = vld [vmem:[#allocation12_spill] sm:$0xff] }
 0x89b   : > { %8491 = vmatmul.msk.f32.gmra.mxu0 %vm2314_vm9, %v5970_v25  ;;  %v7184_v25 = vsel %vm573_vm2, %v9849_v10, %v9239_v4  ;;  %v9435_v17 = vunpack.i.h.bf16 %v15173_v52 }
 0x89c   : > { %v7278_v0 = vsel %vm2268_vm7, %v7246_v29, %v9409_v55  ;;  %v7279_v31 = vsel %vm2268_vm7, %v7247_v51, %v9410_v38  ;;  %v15231_v20 = vpop.f32.mrf.mxu0  ;;  %v7216_v11 = vsel %vm2136_vm5, %v7184_v25, %v9429_v60  ;;  %v6144_v29 = vld [vmem:[#allocation4 + $0x171] sm:$0xff]  ;;  %v9430_v51 = vunpack.i.h.bf16 %v15013_v1 }
 0x89d   : > { %7553 = vmatmul.f32.gmra.mxu3 %v7373_v58  ;;  %v7310_v42 = vsel %vm3902_vm11, %v7278_v0, %v9414_v61  ;;  %v7311_v62 = vsel %vm3902_vm11, %v7279_v31, %v9415_v8  ;;  %v16840_v58 = vld [vmem:[#allocation156_spill] sm:$0xff]  ;;  %v16842_v38 = vld [vmem:[#allocation114_spill] sm:$0xff] }
 0x89e   : > { %v7342_v40 = vsel %vm3935_vm12, %v7310_v42, %v9419_v6  ;;  %v7343_v32 = vsel %vm3935_vm12, %v7311_v62, %v9420_v18  ;;  %v15241_v61 = vld [vmem:[#allocation4 + $0x168] sm:$0xff]  ;;  %v16845_v60 = vld [vmem:[#allocation182_spill] sm:$0xff] }
 0x89f   : > { %9632 = vrot.lane.b32.xlu1 %v15088_v33, %s16358_s30  ;;  %9657 = vrot.lane.b32.xlu0 %v15183_v43, %s16671_s25  ;;  %v6143_v6 = vld [vmem:[#allocation4 + $0x169] sm:$0xff]  ;;  %v9851_v18 = vld [vmem:[#allocation4 + $0x98] sm:$0xff] }
 0x8a0   : > { %9682 = vrot.lane.b32.xlu2 %v15187_v54, %s16663_s19 }
 0x8a1   : > { %v9423_v48 = vpop.permute.xlu1 %9422  ;;  %v15202_v45 = vpop.permute.xlu0 %9447 }
 0x8a2   : > { %v9424_v33 = vunpack.i.l.bf16 %v9423_v48  ;;  %v9425_v57 = vunpack.i.h.bf16 %v9423_v48  ;;  %v15266_v4 = vpop.permute.xlu2 %9517 }
 0x8a3   : > { %8492 = vmatmul.msk.f32.gmra.mxu0 %vm2314_vm9, %v14416_v5  ;;  %v9434_v5 = vunpack.i.l.bf16 %v15173_v52  ;;  %v7185_v52 = vsel %vm573_vm2, %v9851_v18, %v9240_v9 }
 0x8a4   : > { %v7374_v24 = vsel %vm3968_vm13, %v7342_v40, %v9424_v33  ;;  %v7375_v37 = vsel %vm3968_vm13, %v7343_v32, %v9425_v57  ;;  %v15254_v33 = vpack.i.bf16 %v6144_v29, %v6143_v6  ;;  %v6240_v32 = vld [vmem:[#allocation4 + $0x181] sm:$0xff]  ;;  %v9244_v29 = vunpack.i.l.bf16 %v14832_v47 }
 0x8a5   : > { %7556 = vmatmul.f32.gmra.mxu3 %v7374_v24  ;;  %v7248_v0 = vsel %vm2202_vm6, %v7216_v11, %v9434_v5  ;;  %v16844_v24 = vld [vmem:[#allocation160_spill] sm:$0xff]  ;;  %v15284_v11 = vpop.f32.mrf.mxu0 }
 0x8a6   : > { %v9852_v6 = vld [vmem:[#allocation4 + $0xa8] sm:$0xff] }
 0x8a7   : > { %9647 = vrot.lane.b32.xlu1 %v9666_v15, %s16663_s19  ;;  %9672 = vrot.lane.b32.xlu0 %v15120_v2, %s16359_s12  ;;  %v15227_v15 = vld [vmem:[#allocation4 + $0x170] sm:$0xff]  ;;  %v9850_v2 = vld [vmem:[#allocation2 + $0x140] sm:$0xff] }
 0x8a8   : > { %9697 = vrot.lane.b32.xlu2 %v15183_v43, %s16342_s29  ;;  %v5749_v13 = vsel %vm528_vm0, %v9850_v2, %v16839_v35  ;;  %v6241_v35 = vld [vmem:[#allocation4 + $0x189] sm:$0xff] }
 0x8a9   : > { %v9438_v3 = vpop.permute.xlu1 %9437  ;;  %v15225_v59 = vpop.permute.xlu0 %9462  ;;  %v5781_v50 = vsel %vm573_vm2, %v5749_v13, %v16840_v58  ;;  %v9445_v58 = vunpack.i.h.bf16 %v15057_v23  ;;  %v9450_v23 = vunpack.i.h.bf16 %v15202_v45 }
 0x8aa   : > { %v9439_v55 = vunpack.i.l.bf16 %v9438_v3  ;;  %v5813_v44 = vsel %vm2103_vm3, %v5781_v50, %v16841_v16  ;;  %v9440_v5 = vunpack.i.h.bf16 %v9438_v3  ;;  %v15289_v50 = vpack.i.bf16 %v6241_v35, %v6240_v32  ;;  %v9854_v35 = vld [vmem:[#allocation2 + $0x168] sm:$0xff]  ;;  %v16847_v32 = vld [vmem:[#allocation29_spill] sm:$0xff] }
 0x8ab   : > { %8493 = vmatmul.msk.f32.gmra.mxu0 %vm2314_vm9, %v14656_v19  ;;  %v15248_v19 = vpack.i.bf16 %v15227_v15, %v15241_v61  ;;  %v5845_v48 = vsel %vm2136_vm5, %v5813_v44, %v16842_v38  ;;  %v7186_v38 = vsel %vm573_vm2, %v9852_v6, %v9244_v29  ;;  %v9475_v6 = vunpack.i.h.bf16 %v15133_v30 }
 0x8ac   : > { %v7280_v42 = vsel %vm2268_vm7, %v7248_v0, %v9439_v55  ;;  %v5877_v40 = vsel %vm2169_vm4, %v5845_v48, %v16843_v53  ;;  %v7217_v55 = vsel %vm2136_vm5, %v7185_v52, %v9430_v51  ;;  %v9459_v0 = vunpack.i.l.bf16 %v15098_v36  ;;  %v15302_v48 = vpop.permute.xlu2 %9532  ;;  %v6114_v51 = vld [vmem:[#allocation4 + $0x188] sm:$0xff] }
 0x8ad   : > { %7559 = vmatmul.f32.gmra.mxu3 %v7375_v37  ;;  %v5909_v31 = vsel %vm2202_vm6, %v5877_v40, %v16844_v24  ;;  %v7312_v8 = vsel %vm3902_vm11, %v7280_v42, %v9444_v27  ;;  %v7249_v13 = vsel %vm2202_vm6, %v7217_v55, %v9435_v17  ;;  %v9464_v37 = vunpack.i.l.bf16 %v15225_v59  ;;  %v6176_v27 = vld [vmem:[#allocation4 + $0x172] sm:$0xff]  ;;  %v6113_v17 = vld [vmem:[#allocation4 + $0x180] sm:$0xff] }
 0x8ae   : > { %v5941_v1 = vsel %vm2235_vm8, %v5909_v31, %v16845_v60  ;;  %v7218_v53 = vsel %vm2136_vm5, %v7186_v38, %v9459_v0  ;;  %v9245_v60 = vunpack.i.h.bf16 %v14832_v47  ;;  %v16850_v38 = vld [vmem:[#allocation69_spill] sm:$0xff] }
 0x8af   : > { %9662 = vrot.lane.b32.xlu1 %v15059_v46, %s16342_s29  ;;  %9687 = vrot.lane.b32.xlu0 %v15248_v19, %s16669_s28  ;;  %v9449_v46 = vunpack.i.l.bf16 %v15202_v45  ;;  %v5973_v62 = vsel %vm2268_vm7, %v5941_v1, %v14722_v56  ;;  %v7281_v56 = vsel %vm2268_vm7, %v7249_v13, %v9440_v5  ;;  %v7250_v45 = vsel %vm2202_vm6, %v7218_v53, %v9464_v37  ;;  %v15317_v5 = vpop.f32.mrf.mxu0  ;;  %v16846_v13 = vld [vmem:[#allocation26_spill] sm:$0xff] }
 0x8b0   : > { %9712 = vrot.lane.b32.xlu2 %v15254_v33, %s16633_s0  ;;  %v7313_v44 = vsel %vm3902_vm11, %v7281_v56, %v9445_v58  ;;  %v9474_v1 = vunpack.i.l.bf16 %v15133_v30  ;;  %v16852_v30 = vld [vmem:[#allocation184_spill] sm:$0xff] }
 0x8b1   : > { %v9453_v57 = vpop.permute.xlu1 %9452  ;;  %v15277_v25 = vpop.permute.xlu0 %9477  ;;  %v7344_v2 = vsel %vm3935_vm12, %v7312_v8, %v9449_v46  ;;  %v7345_v40 = vsel %vm3935_vm12, %v7313_v44, %v9450_v23  ;;  %v9741_v46 = vpack.i.bf16 %v6114_v51, %v6113_v17 }
 0x8b2   : > { %v9454_v10 = vunpack.i.l.bf16 %v9453_v57  ;;  %v9455_v16 = vunpack.i.h.bf16 %v9453_v57  ;;  %v9465_v57 = vunpack.i.h.bf16 %v15225_v59  ;;  %v9479_v47 = vunpack.i.l.bf16 %v15277_v25 }
 0x8b3   : > { %8494 = vmatmul.msk.f32.gmra.mxu0 %vm2314_vm9, %v5973_v62  ;;  %v9480_v17 = vunpack.i.h.bf16 %v15277_v25  ;;  %v9490_v25 = vunpack.i.h.bf16 %v15179_v22 }
 0x8b4   : > { %v7376_v3 = vsel %vm3968_vm13, %v7344_v2, %v9454_v10  ;;  %v7377_v24 = vsel %vm3968_vm13, %v7345_v40, %v9455_v16  ;;  %v9853_v10 = vld [vmem:[#allocation4 + $0xb0] sm:$0xff]  ;;  %v15340_v0 = vpop.permute.xlu2 %9547 }
 0x8b5   : > { %7562 = vmatmul.f32.gmra.mxu3 %v7376_v3  ;;  %v7187_v55 = vsel %vm573_vm2, %v9853_v10, %v9245_v60  ;;  %v5752_v3 = vsel %vm528_vm0, %v9854_v35, %v16846_v13  ;;  %v16848_v16 = vld [vmem:[#allocation49_spill] sm:$0xff]  ;;  %v9856_v13 = vld [vmem:[#allocation4 + $0xc8] sm:$0xff] }
 0x8b6   : > { %v5784_v29 = vsel %vm573_vm2, %v5752_v3, %v16847_v32 }
 0x8b7   : > { %9677 = vrot.lane.b32.xlu1 %v15183_v43, %s16633_s0  ;;  %9702 = vrot.lane.b32.xlu0 %v15187_v54, %s16358_s30  ;;  %v6175_v54 = vld [vmem:[#allocation4 + $0x16a] sm:$0xff]  ;;  %v5816_v44 = vsel %vm2103_vm3, %v5784_v29, %v16848_v16 }
 0x8b8   : > { %9727 = vrot.lane.b32.xlu2 %v15289_v50, %s16671_s25  ;;  %v15313_v8 = vpack.i.bf16 %v6176_v27, %v6175_v54  ;;  %v9489_v54 = vunpack.i.l.bf16 %v15179_v22  ;;  %v16851_v27 = vld [vmem:[#allocation142_spill] sm:$0xff]  ;;  %v7189_v22 = vsel %vm573_vm2, %v9856_v13, %v9490_v25  ;;  %v9549_v13 = vunpack.i.l.bf16 %v15340_v0 }
 0x8b9   : > { %v9468_v42 = vpop.permute.xlu1 %9467  ;;  %v15304_v9 = vpop.permute.xlu0 %9492 }
 0x8ba   : > { %v9469_v43 = vunpack.i.l.bf16 %v9468_v42  ;;  %v9470_v18 = vunpack.i.h.bf16 %v9468_v42  ;;  %v16849_v42 = vld [vmem:[#allocation137_spill] sm:$0xff]  ;;  %v9494_v40 = vunpack.i.l.bf16 %v15304_v9 }
 0x8bb   : > { %8495 = vmatmul.msk.f32.gmra.mxu0 %vm2314_vm9, %v14470_v26  ;;  %v9460_v26 = vunpack.i.h.bf16 %v15098_v36 }
 0x8bc   : > { %v7282_v31 = vsel %vm2268_vm7, %v7250_v45, %v9469_v43  ;;  %v15377_v10 = vpop.permute.xlu2 %9562 }
 0x8bd   : > { %7565 = vmatmul.f32.gmra.mxu3 %v7377_v24  ;;  %v7314_v62 = vsel %vm3902_vm11, %v7282_v31, %v9474_v1  ;;  %v7219_v59 = vsel %vm2136_vm5, %v7187_v55, %v9460_v26  ;;  %v15362_v31 = vpop.f32.mrf.mxu0  ;;  %v9855_v26 = vld [vmem:[#allocation4 + $0xc0] sm:$0xff]  ;;  %v9495_v55 = vunpack.i.h.bf16 %v15304_v9 }
 0x8be   : > { %v7346_v56 = vsel %vm3935_vm12, %v7314_v62, %v9479_v47  ;;  %v7251_v58 = vsel %vm2202_vm6, %v7219_v59, %v9465_v57  ;;  %v7188_v57 = vsel %vm573_vm2, %v9855_v26, %v9489_v54  ;;  %v6177_v26 = vld [vmem:[#allocation4 + $0x182] sm:$0xff] }
 0x8bf   : > { %9692 = vrot.lane.b32.xlu1 %v15254_v33, %s16671_s25  ;;  %9717 = vrot.lane.b32.xlu0 %v15313_v8, %s16663_s19  ;;  %v7283_v23 = vsel %vm2268_vm7, %v7251_v58, %v9470_v18  ;;  %v7220_v47 = vsel %vm2136_vm5, %v7188_v57, %v9494_v40  ;;  %v6006_v57 = vld [vmem:[#allocation4 + $0xe0] sm:$0xff] }
 0x8c0   : > { %9742 = vrot.lane.b32.xlu2 %v9741_v46, %s16359_s12  ;;  %v7315_v45 = vsel %vm3902_vm11, %v7283_v23, %v9475_v6 }
 0x8c1   : > { %v9483_v52 = vpop.permute.xlu1 %9482  ;;  %v15329_v2 = vpop.permute.xlu0 %9507  ;;  %v7347_v62 = vsel %vm3935_vm12, %v7315_v45, %v9480_v17 }
 0x8c2   : > { %v9484_v36 = vunpack.i.l.bf16 %v9483_v52  ;;  %v9485_v51 = vunpack.i.h.bf16 %v9483_v52  ;;  %v9509_v3 = vunpack.i.l.bf16 %v15329_v2  ;;  %v9510_v6 = vunpack.i.h.bf16 %v15329_v2 }
 0x8c3   : > { %8496 = vmatmul.msk.f32.gmra.mxu0 %vm2314_vm9, %v14700_v49  ;;  %v5848_v49 = vsel %vm2136_vm5, %v5816_v44, %v16849_v42  ;;  %v6242_v44 = vld [vmem:[#allocation4 + $0x199] sm:$0xff] }
 0x8c4   : > { %v7378_v37 = vsel %vm3968_vm13, %v7346_v56, %v9484_v36  ;;  %v5880_v43 = vsel %vm2169_vm4, %v5848_v49, %v16850_v38  ;;  %v7379_v18 = vsel %vm3968_vm13, %v7347_v62, %v9485_v51  ;;  %v7221_v56 = vsel %vm2136_vm5, %v7189_v22, %v9495_v55  ;;  %v6005_v51 = vld [vmem:[#allocation4 + $0xd8] sm:$0xff] }
 0x8c5   : > { %7568 = vmatmul.f32.gmra.mxu3 %v7378_v37  ;;  %v5912_v53 = vsel %vm2202_vm6, %v5880_v43, %v16851_v27  ;;  %v15389_v9 = vpop.f32.mrf.mxu0  ;;  %v9505_v37 = vunpack.i.h.bf16 %v15213_v28  ;;  %v6210_v43 = vld [vmem:[#allocation4 + $0x198] sm:$0xff] }
 0x8c6   : > { %v5944_v24 = vsel %vm2235_vm8, %v5912_v53, %v16852_v30 }
 0x8c7   : > { %9707 = vrot.lane.b32.xlu1 %v15248_v19, %s16359_s12  ;;  %9732 = vrot.lane.b32.xlu0 %v15254_v33, %s16342_s29  ;;  %v5976_v19 = vsel %vm2268_vm7, %v5944_v24, %v14753_v63  ;;  %v9504_v63 = vunpack.i.l.bf16 %v15213_v28  ;;  %v6243_v24 = vld [vmem:[#allocation4 + $0x1a1] sm:$0xff]  ;;  %s8369_s12 = sshll.u32 %s11140_s22, 2  ;;  %s483_s29 = sand.u32 1, %s9930_s14  }
 0x8c8   : > { %7008 = vrot.lane.b32.xlu2 %v6210_v43, %s16669_s28  ;;  %s523_s21 = scalar_lea.vmem %s15859_s8, %s8369_s12 }
 0x8c9   : > { %v9498_v60 = vpop.permute.xlu1 %9497  ;;  %v15367_v1 = vpop.permute.xlu0 %9522 }
 0x8ca   : > { %v9499_v33 = vunpack.i.l.bf16 %v9498_v60  ;;  %v9500_v36 = vunpack.i.h.bf16 %v9498_v60  ;;  %v9524_v28 = vunpack.i.l.bf16 %v15367_v1  ;;  %v9525_v45 = vunpack.i.h.bf16 %v15367_v1 }
 0x8cb   : > { %8497 = vmatmul.msk.f32.gmra.mxu0 %vm2314_vm9, %v5976_v19 }
 0x8cc   : > { %v7252_v52 = vsel %vm2202_vm6, %v7220_v47, %v9499_v33  ;;  %v7253_v58 = vsel %vm2202_vm6, %v7221_v56, %v9500_v36  ;;  %v7190_v30 = vsel %vm573_vm2, %v6005_v51, %v9524_v28  ;;  %v9534_v33 = vunpack.i.l.bf16 %v15302_v48  ;;  %v6211_v47 = vld [vmem:[#allocation4 + $0x1a0] sm:$0xff] }
 0x8cd   : > { %7571 = vmatmul.f32.gmra.mxu3 %v7379_v18  ;;  %v7284_v35 = vsel %vm2268_vm7, %v7252_v52, %v9504_v63  ;;  %v7285_v49 = vsel %vm2268_vm7, %v7253_v58, %v9505_v37  ;;  %v9535_v63 = vunpack.i.h.bf16 %v15302_v48  ;;  %v15437_v37 = vpop.f32.mrf.mxu2 }
 0x8ce   : > { %v7317_v27 = vsel %vm3902_vm11, %v7285_v49, %v9510_v6 }
 0x8cf   : > { %9722 = vrot.lane.b32.xlu1 %v9741_v46, %s16669_s28  ;;  %9747 = vrot.lane.b32.xlu0 %v15289_v50, %s16633_s0  ;;  %v9519_v46 = vunpack.i.l.bf16 %v15266_v4  ;;  %v7316_v50 = vsel %vm3902_vm11, %v7284_v35, %v9509_v3 }
 0x8d0   : > { %7010 = vrot.lane.b32.xlu2 %v6211_v47, %s16669_s28  ;;  %v9565_v47 = vunpack.i.h.bf16 %v15377_v10 }
 0x8d1   : > { %v9513_v59 = vpop.permute.xlu1 %9512  ;;  %v15387_v29 = vpop.permute.xlu0 %9537 }
 0x8d2   : > { %v9514_v32 = vunpack.i.l.bf16 %v9513_v59  ;;  %v9515_v42 = vunpack.i.h.bf16 %v9513_v59  ;;  %v9539_v18 = vunpack.i.l.bf16 %v15387_v29 }
 0x8d3   : > { %8498 = vmatmul.msk.f32.gmra.mxu0 %vm2314_vm9, %v14527_v34  ;;  %v15404_v34 = vpop.permute.xlu2 %9577 }
 0x8d4   : > { %v7348_v16 = vsel %vm3935_vm12, %v7316_v50, %v9514_v32  ;;  %v7349_v2 = vsel %vm3935_vm12, %v7317_v27, %v9515_v42  ;;  %v6178_v50 = vld [vmem:[#allocation4 + $0x18a] sm:$0xff]  ;;  %v9550_v42 = vunpack.i.h.bf16 %v15340_v0 }
 0x8d5   : > { %v7380_v23 = vsel %vm3968_vm13, %v7348_v16, %v9519_v46  ;;  %v9540_v46 = vunpack.i.h.bf16 %v15387_v29  ;;  %v6007_v27 = vld [vmem:[#allocation4 + $0xf0] sm:$0xff] }
 0x8d6   : > { %7574 = vmatmul.f32.gmra.mxu3 %v7380_v23 }
 0x8d7   : > { %9737 = vrot.lane.b32.xlu1 %v15313_v8, %s16358_s30  ;;  %7136 = vrot.lane.b32.xlu0 %v6242_v44, %s16671_s25  ;;  %v9520_v8 = vunpack.i.h.bf16 %v15266_v4  ;;  %v7191_v4 = vsel %vm573_vm2, %v6006_v57, %v9525_v45  ;;  %v15453_v45 = vpop.f32.mrf.mxu2  ;;  %v9579_v57 = vunpack.i.l.bf16 %v15404_v34  ;;  %s16854_s30 = scalar_lea.vmem %s15858_s7, %s11140_s22  ;;  %s527_s22 = scalar_lea.vmem %s15860_s9, %s8369_s12 }
 0x8d8   : > { %v15407_v38 = vpop.f32.mrf.mxu3  ;;  %s8362_s12 = sshll.u32 %s483_s29, 3 }
 0x8d9   : > { %16853 = vst [vmem:[#allocation125_spill] sm:$0xff] %v15407_v38  ;;  %v9528_v54 = vpop.permute.xlu1 %9527  ;;  %v9553_v40 = vpop.permute.xlu0 %9552  ;;  %v7381_v19 = vsel %vm3968_vm13, %v7349_v2, %v9520_v8  ;;  %v9564_v8 = vunpack.i.l.bf16 %v15377_v10  ;;  %s485_s28 = scalar_lea.vmem [#allocation5], %s8362_s12  ;;  %s9880_s12 = scalar_lea.hbm %s15861_s10, 32 }
 0x8da   : > { %v9529_v53 = vunpack.i.l.bf16 %v9528_v54  ;;  %v9530_v17 = vunpack.i.h.bf16 %v9528_v54  ;;  %v9554_v59 = vunpack.i.l.bf16 %v9553_v40  ;;  %v9555_v54 = vunpack.i.h.bf16 %v9553_v40 }
 0x8db   : > { %v15428_v55 = vpop.permute.xlu2 %9592 }
 0x8dc   : > { %v7222_v60 = vsel %vm2136_vm5, %v7190_v30, %v9529_v53  ;;  %v7223_v25 = vsel %vm2136_vm5, %v7191_v4, %v9530_v17 }
 0x8dd   : > { %v7254_v1 = vsel %vm2202_vm6, %v7222_v60, %v9534_v33  ;;  %v7255_v3 = vsel %vm2202_vm6, %v7223_v25, %v9535_v63  ;;  %v6008_v33 = vld [vmem:[#allocation4 + $0xf8] sm:$0xff] }
 0x8de   : > { %7577 = vmatmul.f32.gmra.mxu3 %v7381_v19  ;;  %v7286_v22 = vsel %vm2268_vm7, %v7254_v1, %v9539_v18  ;;  %v7287_v16 = vsel %vm2268_vm7, %v7255_v3, %v9540_v46 }
 0x8df   : > { %6880 = vrot.lane.b32.xlu1 %v6177_v26, %s16663_s19  ;;  %7138 = vrot.lane.b32.xlu0 %v6243_v24, %s16671_s25  ;;  %s8534_s25 = sshll.u32 %s9938_s16, 1  ;;  %s8167_s16 = scalar_lea.sflag [#allocation6], %s483_s29 }
 0x8e0   : > { %v15422_v62 = vpop.f32.mrf.mxu3 }
 0x8e1   : > { %v9543_v52 = vpop.permute.xlu1 %9542  ;;  %v9568_v35 = vpop.permute.xlu0 %9567 }
 0x8e2   : > { %v9544_v36 = vunpack.i.l.bf16 %v9543_v52  ;;  %v9545_v56 = vunpack.i.h.bf16 %v9543_v52  ;;  %v9569_v24 = vunpack.i.l.bf16 %v9568_v35 }
 0x8e3   : > { %v15446_v43 = vpop.permute.xlu2 %9607 }
 0x8e4   : > { %v7318_v32 = vsel %vm3902_vm11, %v7286_v22, %v9544_v36  ;;  %v7319_v23 = vsel %vm3902_vm11, %v7287_v16, %v9545_v56  ;;  %v9570_v22 = vunpack.i.h.bf16 %v9568_v35  ;;  %v15467_v56 = vpop.f32.mrf.mxu2  ;;  %v9594_v16 = vunpack.i.l.bf16 %v15428_v55 }
 0x8e5   : > { %v7350_v58 = vsel %vm3935_vm12, %v7318_v32, %v9549_v13  ;;  %v7351_v28 = vsel %vm3935_vm12, %v7319_v23, %v9550_v42 }
 0x8e6   : > { %v7382_v48 = vsel %vm3968_vm13, %v7350_v58, %v9554_v59  ;;  %v7383_v2 = vsel %vm3968_vm13, %v7351_v28, %v9555_v54  ;;  %v15472_v58 = vpop.f32.mrf.mxu0 }
 0x8e7   : > { %6882 = vrot.lane.b32.xlu1 %v6178_v50, %s16663_s19  ;;  %7580 = vmatmul.f32.gmra.mxu3 %v7382_v48  ;;  %v9580_v48 = vunpack.i.h.bf16 %v15404_v34 }
 0x8e8   : > { %v15441_v44 = vpop.f32.mrf.mxu3 }
 0x8e9   : > { %v9558_v49 = vpop.permute.xlu1 %9557  ;;  %v9583_v6 = vpop.permute.xlu0 %9582 }
 0x8ea   : > { %v9559_v29 = vunpack.i.l.bf16 %v9558_v49  ;;  %v9560_v17 = vunpack.i.h.bf16 %v9558_v49  ;;  %v9584_v63 = vunpack.i.l.bf16 %v9583_v6  ;;  %v9585_v28 = vunpack.i.h.bf16 %v9583_v6 }
 0x8eb   : > { %v15459_v4 = vpop.permute.xlu2 %9622  ;;  %v9609_v6 = vunpack.i.l.bf16 %v15446_v43 }
 0x8ec   : > { %v7192_v53 = vsel %vm573_vm2, %v6007_v27, %v9559_v29  ;;  %v7193_v1 = vsel %vm573_vm2, %v6008_v33, %v9560_v17  ;;  %v9595_v17 = vunpack.i.h.bf16 %v15428_v55 }
 0x8ed   : > { %v7224_v0 = vsel %vm2136_vm5, %v7192_v53, %v9564_v8  ;;  %v7225_v52 = vsel %vm2136_vm5, %v7193_v1, %v9565_v47  ;;  %v9858_v47 = vld [vmem:[#allocation4 + $0x110] sm:$0xff] }
 0x8ee   : > { %v7256_v40 = vsel %vm2202_vm6, %v7224_v0, %v9569_v24  ;;  %v7257_v46 = vsel %vm2202_vm6, %v7225_v52, %v9570_v22  ;;  %v15486_v24 = vpop.f32.mrf.mxu2  ;;  %v15491_v33 = vpop.f32.mrf.mxu0 }
 0x8ef   : > { %7583 = vmatmul.f32.gmra.mxu3 %v7383_v2  ;;  %v9857_v2 = vld [vmem:[#allocation4 + $0x108] sm:$0xff] }
 0x8f0   : > { %v15451_v51 = vpop.f32.mrf.mxu3  ;;  %v7194_v8 = vsel %vm573_vm2, %v9857_v2, %v9594_v16 }
 0x8f1   : > { %v9573_v30 = vpop.permute.xlu1 %9572  ;;  %v9598_v19 = vpop.permute.xlu0 %9597 }
 0x8f2   : > { %v9574_v60 = vunpack.i.l.bf16 %v9573_v30  ;;  %v9575_v36 = vunpack.i.h.bf16 %v9573_v30  ;;  %v9599_v23 = vunpack.i.l.bf16 %v9598_v19 }
 0x8f3   : > { %v15477_v35 = vpop.permute.xlu2 %9637 }
 0x8f4   : > { %v7288_v26 = vsel %vm2268_vm7, %v7256_v40, %v9574_v60  ;;  %v7289_v50 = vsel %vm2268_vm7, %v7257_v46, %v9575_v36  ;;  %v7226_v34 = vsel %vm2136_vm5, %v7194_v8, %v9599_v23  ;;  %v9600_v40 = vunpack.i.h.bf16 %v9598_v19 }
 0x8f5   : > { %v7320_v25 = vsel %vm3902_vm11, %v7288_v26, %v9579_v57  ;;  %v7321_v29 = vsel %vm3902_vm11, %v7289_v50, %v9580_v48  ;;  %v9624_v19 = vunpack.i.l.bf16 %v15459_v4  ;;  %v9610_v46 = vunpack.i.h.bf16 %v15446_v43 }
 0x8f6   : > { %v7352_v32 = vsel %vm3935_vm12, %v7320_v25, %v9584_v63  ;;  %v7353_v0 = vsel %vm3935_vm12, %v7321_v29, %v9585_v28  ;;  %v7195_v25 = vsel %vm573_vm2, %v9858_v47, %v9595_v17  ;;  %v15507_v23 = vpop.f32.mrf.mxu2 }
 0x8f7   : > { %v7227_v55 = vsel %vm2136_vm5, %v7195_v25, %v9600_v40 }
 0x8f8   : > { %v15463_v18 = vpop.f32.mrf.mxu3 }
 0x8f9   : > { %v9588_v13 = vpop.permute.xlu1 %9587  ;;  %v9613_v59 = vpop.permute.xlu0 %9612 }
 0x8fa   : > { %v9589_v3 = vunpack.i.l.bf16 %v9588_v13  ;;  %v9590_v42 = vunpack.i.h.bf16 %v9588_v13  ;;  %v9614_v52 = vunpack.i.l.bf16 %v9613_v59 }
 0x8fb   : > { %v15497_v36 = vpop.permute.xlu2 %9652 }
 0x8fc   : > { %v7384_v10 = vsel %vm3968_vm13, %v7352_v32, %v9589_v3  ;;  %v7385_v30 = vsel %vm3968_vm13, %v7353_v0, %v9590_v42  ;;  %v9615_v42 = vunpack.i.h.bf16 %v9613_v59 }
 0x8fd   : > { %7586 = vmatmul.f32.gmra.mxu3 %v7384_v10 }
 0x8fe   : > { %v15528_v25 = vpop.f32.mrf.mxu2 }
 0x900   : > { %v15479_v49 = vpop.f32.mrf.mxu3 }
 0x901   : > { %v9603_v54 = vpop.permute.xlu1 %9602  ;;  %v9628_v53 = vpop.permute.xlu0 %9627 }
 0x902   : > { %v9604_v27 = vunpack.i.l.bf16 %v9603_v54  ;;  %v9605_v26 = vunpack.i.h.bf16 %v9603_v54  ;;  %v9629_v29 = vunpack.i.l.bf16 %v9628_v53  ;;  %v15511_v54 = vpop.f32.mrf.mxu0  ;;  %v9630_v17 = vunpack.i.h.bf16 %v9628_v53 }
 0x904   : > { %v7258_v60 = vsel %vm2202_vm6, %v7226_v34, %v9604_v27  ;;  %v7259_v3 = vsel %vm2202_vm6, %v7227_v55, %v9605_v26  ;;  %v9625_v34 = vunpack.i.h.bf16 %v15459_v4  ;;  %v7196_v59 = vsel %vm573_vm2, %v15016_v21, %v9629_v29 }
 0x905   : > { %7589 = vmatmul.f32.gmra.mxu3 %v7385_v30  ;;  %v7290_v1 = vsel %vm2268_vm7, %v7258_v60, %v9609_v6  ;;  %v7291_v16 = vsel %vm2268_vm7, %v7259_v3, %v9610_v46  ;;  %v15516_v30 = vpop.permute.xlu2 %9667  ;;  %v9639_v26 = vunpack.i.l.bf16 %v15477_v35  ;;  %v9654_v3 = vunpack.i.l.bf16 %v15497_v36 }
 0x906   : > { %v7322_v32 = vsel %vm3902_vm11, %v7290_v1, %v9614_v52  ;;  %v7323_v2 = vsel %vm3902_vm11, %v7291_v16, %v9615_v42  ;;  %v7197_v1 = vsel %vm573_vm2, %v15006_v7, %v9630_v17 }
 0x908   : > { %v15493_v57 = vpop.f32.mrf.mxu3 }
 0x909   : > { %v9618_v63 = vpop.permute.xlu1 %9617  ;;  %v9643_v22 = vpop.permute.xlu0 %9642 }
 0x90a   : > { %v9619_v13 = vunpack.i.l.bf16 %v9618_v63  ;;  %v9620_v48 = vunpack.i.h.bf16 %v9618_v63  ;;  %v9644_v53 = vunpack.i.l.bf16 %v9643_v22  ;;  %v9640_v63 = vunpack.i.h.bf16 %v15477_v35 }
 0x90c   : > { %v7354_v10 = vsel %vm3935_vm12, %v7322_v32, %v9619_v13  ;;  %v7355_v0 = vsel %vm3935_vm12, %v7323_v2, %v9620_v48  ;;  %v9645_v48 = vunpack.i.h.bf16 %v9643_v22 }
 0x90d   : > { %v7386_v50 = vsel %vm3968_vm13, %v7354_v10, %v9624_v19  ;;  %v7387_v40 = vsel %vm3968_vm13, %v7355_v0, %v9625_v34  ;;  %v15532_v19 = vpop.f32.mrf.mxu0  ;;  %v9683_v42 = vpop.permute.xlu2 %9682 }
 0x90e   : > { %7592 = vmatmul.f32.gmra.mxu3 %v7386_v50 }
 0x910   : > { %v15509_v28 = vpop.f32.mrf.mxu3 }
 0x911   : > { %v9633_v27 = vpop.permute.xlu1 %9632  ;;  %v9658_v8 = vpop.permute.xlu0 %9657 }
 0x912   : > { %v9634_v43 = vunpack.i.l.bf16 %v9633_v27  ;;  %v9635_v60 = vunpack.i.h.bf16 %v9633_v27  ;;  %v9659_v46 = vunpack.i.l.bf16 %v9658_v8 }
 0x914   : > { %v7228_v6 = vsel %vm2136_vm5, %v7196_v59, %v9634_v43  ;;  %v7229_v21 = vsel %vm2136_vm5, %v7197_v1, %v9635_v60  ;;  %v9655_v43 = vunpack.i.h.bf16 %v15497_v36  ;;  %v15545_v59 = vpop.f32.mrf.mxu2  ;;  %v9660_v60 = vunpack.i.h.bf16 %v9658_v8 }
 0x915   : > { %v7260_v47 = vsel %vm2202_vm6, %v7228_v6, %v9639_v26  ;;  %v7261_v32 = vsel %vm2202_vm6, %v7229_v21, %v9640_v63  ;;  %v15548_v6 = vpop.f32.mrf.mxu0 }
 0x916   : > { %7595 = vmatmul.f32.gmra.mxu3 %v7387_v40  ;;  %v7292_v7 = vsel %vm2268_vm7, %v7260_v47, %v9644_v53  ;;  %v7293_v29 = vsel %vm2268_vm7, %v7261_v32, %v9645_v48  ;;  %v6013_v40 = vld [vmem:[#allocation4 + $0x138] sm:$0xff]  ;;  %v9669_v47 = vunpack.i.l.bf16 %v15516_v30  ;;  %v15553_v53 = vpop.permute.xlu2 %9697 }
 0x918   : > { %v15526_v4 = vpop.f32.mrf.mxu3 }
 0x919   : > { %v9648_v52 = vpop.permute.xlu1 %9647  ;;  %v9673_v13 = vpop.permute.xlu0 %9672 }
 0x91a   : > { %v9649_v55 = vunpack.i.l.bf16 %v9648_v52  ;;  %v9650_v10 = vunpack.i.h.bf16 %v9648_v52  ;;  %v9674_v63 = vunpack.i.l.bf16 %v9673_v13 }
 0x91c   : > { %v7324_v50 = vsel %vm3902_vm11, %v7292_v7, %v9649_v55  ;;  %v7325_v2 = vsel %vm3902_vm11, %v7293_v29, %v9650_v10  ;;  %v15559_v32 = vpop.f32.mrf.mxu2 }
 0x91d   : > { %v7356_v16 = vsel %vm3935_vm12, %v7324_v50, %v9654_v3  ;;  %v7357_v22 = vsel %vm3935_vm12, %v7325_v2, %v9655_v43  ;;  %v9684_v50 = vunpack.i.l.bf16 %v9683_v42 }
 0x91e   : > { %v7388_v35 = vsel %vm3968_vm13, %v7356_v16, %v9659_v46  ;;  %v7389_v1 = vsel %vm3968_vm13, %v7357_v22, %v9660_v60  ;;  %v6014_v46 = vld [vmem:[#allocation4 + $0x140] sm:$0xff]  ;;  %v15563_v16 = vpop.f32.mrf.mxu0  ;;  %v9713_v60 = vpop.permute.xlu2 %9712 }
 0x91f   : > { %7598 = vmatmul.f32.gmra.mxu3 %v7388_v35  ;;  %v9670_v35 = vunpack.i.h.bf16 %v15516_v30 }
 0x920   : > { %v15541_v27 = vpop.f32.mrf.mxu3 }
 0x921   : > { %v9663_v0 = vpop.permute.xlu1 %9662  ;;  %v9688_v17 = vpop.permute.xlu0 %9687 }
 0x922   : > { %v9664_v34 = vunpack.i.l.bf16 %v9663_v0  ;;  %v9665_v55 = vunpack.i.h.bf16 %v9663_v0  ;;  %v9689_v0 = vunpack.i.l.bf16 %v9688_v17 }
 0x924   : > { %v7198_v26 = vsel %vm573_vm2, %v6013_v40, %v9664_v34  ;;  %v7199_v48 = vsel %vm573_vm2, %v6014_v46, %v9665_v55  ;;  %v9675_v40 = vunpack.i.h.bf16 %v9673_v13  ;;  %v9685_v55 = vunpack.i.h.bf16 %v9683_v42 }
 0x925   : > { %v7230_v21 = vsel %vm2136_vm5, %v7198_v26, %v9669_v47  ;;  %v7231_v43 = vsel %vm2136_vm5, %v7199_v48, %v9670_v35  ;;  %v9690_v35 = vunpack.i.h.bf16 %v9688_v17 }
 0x926   : > { %v7262_v7 = vsel %vm2202_vm6, %v7230_v21, %v9674_v63  ;;  %v7263_v21 = vsel %vm2202_vm6, %v7231_v43, %v9675_v40  ;;  %v15581_v48 = vpop.f32.mrf.mxu0 }
 0x927   : > { %7601 = vmatmul.f32.gmra.mxu3 %v7389_v1 }
 0x928   : > { %v15555_v36 = vpop.f32.mrf.mxu3 }
 0x929   : > { %v9678_v52 = vpop.permute.xlu1 %9677  ;;  %v9703_v3 = vpop.permute.xlu0 %9702 }
 0x92a   : > { %v9679_v8 = vunpack.i.l.bf16 %v9678_v52  ;;  %v9680_v34 = vunpack.i.h.bf16 %v9678_v52  ;;  %v6274_v52 = vld [vmem:[#allocation4 + $0x19a] sm:$0xff]  ;;  %v9704_v46 = vunpack.i.l.bf16 %v9703_v3  ;;  %v9705_v17 = vunpack.i.h.bf16 %v9703_v3 }
 0x92b   : > { %8465 = vmatmul.msk.f32.gmra.mxu2 %vm573_vm2, %v6274_v52 }
 0x92c   : > { %v7294_v10 = vsel %vm2268_vm7, %v7262_v7, %v9679_v8  ;;  %v7295_v30 = vsel %vm2268_vm7, %v7263_v21, %v9680_v34  ;;  %v15574_v8 = vpop.f32.mrf.mxu2  ;;  %v9699_v7 = vunpack.i.l.bf16 %v15553_v53  ;;  %v9728_v34 = vpop.permute.xlu2 %9727 }
 0x92d   : > { %v7326_v2 = vsel %vm3902_vm11, %v7294_v10, %v9684_v50  ;;  %v7327_v50 = vsel %vm3902_vm11, %v7295_v30, %v9685_v55 }
 0x92e   : > { %v7358_v47 = vsel %vm3935_vm12, %v7326_v2, %v9689_v0  ;;  %v7200_v42 = vsel %vm573_vm2, %v15115_v41, %v9699_v7  ;;  %v7359_v0 = vsel %vm3935_vm12, %v7327_v50, %v9690_v35  ;;  %v6275_v41 = vld [vmem:[#allocation4 + $0x1a2] sm:$0xff]  ;;  %v9859_v50 = vld [vmem:[#allocation4 + $0x158] sm:$0xff] }
 0x92f   : > { %v7232_v40 = vsel %vm2136_vm5, %v7200_v42, %v9704_v46 }
 0x930   : > { %v15566_v29 = vpop.f32.mrf.mxu3 }
 0x931   : > { %v9693_v22 = vpop.permute.xlu1 %9692  ;;  %v9718_v1 = vpop.permute.xlu0 %9717 }
 0x932   : > { %v9694_v26 = vunpack.i.l.bf16 %v9693_v22  ;;  %v9695_v10 = vunpack.i.h.bf16 %v9693_v22  ;;  %v9719_v46 = vunpack.i.l.bf16 %v9718_v1 }
 0x933   : > { %8466 = vmatmul.msk.f32.gmra.mxu2 %vm573_vm2, %v6275_v41  ;;  %v9720_v41 = vunpack.i.h.bf16 %v9718_v1 }
 0x934   : > { %v7390_v63 = vsel %vm3968_vm13, %v7358_v47, %v9694_v26  ;;  %v7391_v22 = vsel %vm3968_vm13, %v7359_v0, %v9695_v10  ;;  %v9700_v26 = vunpack.i.h.bf16 %v15553_v53  ;;  %v7685_v7 = vpop.f32.mrf.mxu2  ;;  %v9729_v0 = vunpack.i.l.bf16 %v9728_v34 }
 0x935   : > { %7604 = vmatmul.f32.gmra.mxu3 %v7390_v63  ;;  %v9714_v63 = vunpack.i.l.bf16 %v9713_v60 }
 0x936   : > { %v7201_v35 = vsel %vm573_vm2, %v9859_v50, %v9700_v26 }
 0x937   : > { %v7233_v53 = vsel %vm2136_vm5, %v7201_v35, %v9705_v17 }
 0x938   : > { %v15577_v13 = vpop.f32.mrf.mxu3 }
 0x939   : > { %v9708_v2 = vpop.permute.xlu1 %9707  ;;  %v9733_v21 = vpop.permute.xlu0 %9732 }
 0x93a   : > { %v9709_v43 = vunpack.i.l.bf16 %v9708_v2  ;;  %v9710_v30 = vunpack.i.h.bf16 %v9708_v2  ;;  %v9734_v12 = vunpack.i.l.bf16 %v9733_v21 }
 0x93c   : > { %v7264_v47 = vsel %vm2202_vm6, %v7232_v40, %v9709_v43  ;;  %v7894_v43 = vpop.f32.mrf.mxu0  ;;  %v7265_v3 = vsel %vm2202_vm6, %v7233_v53, %v9710_v30  ;;  %v9715_v40 = vunpack.i.h.bf16 %v9713_v60  ;;  %v15601_v60 = vpop.f32.mrf.mxu2  ;;  %v7202_v53 = vsel %vm573_vm2, %v15241_v61, %v9734_v12 }
 0x93d   : > { %7607 = vmatmul.f32.gmra.mxu3 %v7391_v22  ;;  %v7296_v52 = vsel %vm2268_vm7, %v7264_v47, %v9714_v63  ;;  %v9743_v63 = vpop.permute.xlu2 %9742 }
 0x93e   : > { %v7328_v2 = vsel %vm3902_vm11, %v7296_v52, %v9719_v46  ;;  %v7297_v50 = vsel %vm2268_vm7, %v7265_v3, %v9715_v40  ;;  %v9730_v46 = vunpack.i.h.bf16 %v9728_v34  ;;  %v9735_v3 = vunpack.i.h.bf16 %v9733_v21 }
 0x93f   : > { %v7329_v38 = vsel %vm3902_vm11, %v7297_v50, %v9720_v41 }
 0x940   : > { %v7566_v55 = vpop.f32.mrf.mxu3  ;;  %v7203_v41 = vsel %vm573_vm2, %v15227_v15, %v9735_v3 }
 0x941   : > { %v9723_v42 = vpop.permute.xlu1 %9722  ;;  %v9748_v17 = vpop.permute.xlu0 %9747 }
 0x942   : > { %v9724_v10 = vunpack.i.l.bf16 %v9723_v42  ;;  %v9725_v26 = vunpack.i.h.bf16 %v9723_v42  ;;  %v9744_v42 = vunpack.i.l.bf16 %v9743_v63 }
 0x944   : > { %v7360_v22 = vsel %vm3935_vm12, %v7328_v2, %v9724_v10  ;;  %v7361_v52 = vsel %vm3935_vm12, %v7329_v38, %v9725_v26  ;;  %v9749_v38 = vunpack.i.l.bf16 %v9748_v17 }
 0x945   : > { %v7392_v47 = vsel %vm3968_vm13, %v7360_v22, %v9729_v0  ;;  %v15606_v0 = vpop.f32.mrf.mxu0  ;;  %v7393_v1 = vsel %vm3968_vm13, %v7361_v52, %v9730_v46  ;;  %v7009_v40 = vpop.permute.xlu2 %7008  ;;  %v15621_v52 = vld [vmem:[%s16854_s30] ss:$0 sm:$0xff]  ;;  %v9745_v46 = vunpack.i.h.bf16 %v9743_v63  ;;  %s8178_s30 = sadd.s32 %s8535_s23, %s8534_s25 }
 0x946   : > { %7610 = vmatmul.f32.gmra.mxu3 %v7392_v47  ;;  %s8536_s0 = sshll.u32 %s8178_s30, 2 }
 0x947   : > { %s8180_s19 = scalar_lea.hbm %s15861_s10, %s8536_s0 }
 0x948   : > { %v7569_v35 = vpop.f32.mrf.mxu3  ;;  %s8184_s1 = sshll.u32 %s8180_s19, 4  ;;  %s8185_s1 = int_to_ptr.hbm [resolvable:$true] %s8184_s1 }
 0x949   : > { %v9738_v14 = vpop.permute.xlu1 %9737  ;;  %v7683_v22 = vadd.f32 %v15574_v8, %v7569_v35  ;;  %v7137_v47 = vpop.permute.xlu0 %7136  ;;  %s9874_s17 = sshra.s32 %s8185_s1, 4  ;;  %s9875_s17 = int_to_ptr.hbm [resolvable:$true] %s9874_s17 }
 0x94a   : > { %v9739_v30 = vunpack.i.l.bf16 %v9738_v14  ;;  %v9740_v34 = vunpack.i.h.bf16 %v9738_v14  ;;  %s9876_s25 = scalar_lea.hbm %s9875_s17, 8  ;;  %p9881_p4 = scmp.lt.s32.totalorder %s9875_s17, %s15861_s10 }
 0x94b   : > { %v7892_v14 = vadd.f32 %v15581_v48, %v7683_v22  ;;  %p9877_p0 = scmp.ne.s32.totalorder %s9875_s17, %s9876_s25  ;;  %p9882_p5 = scmp.lt.s32.totalorder %s9880_s12, %s9876_s25 }
 0x94c   : > { %v7234_v10 = vsel %vm2136_vm5, %v7202_v53, %v9739_v30  ;;  %v7680_v30 = vadd.f32 %v15559_v32, %v7566_v55  ;;  %v7235_v8 = vsel %vm2136_vm5, %v7203_v41, %v9740_v34  ;;  %v15627_v53 = vpop.f32.mrf.mxu2  ;;  %v7677_v55 = vadd.f32 %v15545_v59, %v15577_v13 }
 0x94d   : > { %v7266_v2 = vsel %vm2202_vm6, %v7234_v10, %v9744_v42  ;;  %v7267_v42 = vsel %vm2202_vm6, %v7235_v8, %v9745_v46  ;;  %v15633_v10 = vpop.f32.mrf.mxu0  ;;  %v7011_v3 = vpop.permute.xlu2 %7010  ;;  %v7674_v59 = vadd.f32 %v15528_v25, %v15566_v29  ;;  %v7671_v25 = vadd.f32 %v15507_v23, %v15555_v36  ;;  %p9878_p1 = pnand %p9877_p0, %p10075_p3  ;;  %p9883_p6 = por %p9882_p5, %p9881_p4 }
 0x94e   : > { %7613 = vmatmul.f32.gmra.mxu3 %v7393_v1  ;;  %v7298_v50 = vsel %vm2268_vm7, %v7266_v2, %v9749_v38  ;;  %v7889_v48 = vadd.f32 %v15563_v16, %v7680_v30  ;;  %v7963_v1 = vadd.f32 %v15621_v52, %v7892_v14  ;;  %v7886_v16 = vadd.f32 %v15548_v6, %v7677_v55 }
 0x94f   : > { %v7883_v29 = vadd.f32 %v15532_v19, %v7674_v59  ;;  %v7668_v41 = vadd.f32 %v15486_v24, %v15541_v27  ;;  %v7880_v30 = vadd.f32 %v15511_v54, %v7671_v25  ;;  %v7665_v23 = vadd.f32 %v15467_v56, %v15526_v4  ;;  %p9879_p2 = pneg %p9878_p1 }
 0x950   : > { %v7572_v26 = vpop.f32.mrf.mxu3  ;;  %v7995_v34 = vmax.f32 %v7963_v1, 0.0  ;;  %v7662_v54 = vadd.f32 %v15453_v45, %v15509_v28 }
 0x951   : > { %v7686_v12 = vadd.f32 %v7685_v7, %v7572_v26  ;;  %v6881_v61 = vpop.permute.xlu1 %6880  ;;  %v7139_v38 = vpop.permute.xlu0 %7138  ;;  %v7877_v19 = vadd.f32 %v15491_v33, %v7668_v41  ;;  %v7959_v36 = vadd.f32 %v15621_v52, %v7880_v30  ;;  %v7874_v27 = vadd.f32 %v15472_v58, %v7665_v23  ;;  %v16855_v58 = vld [vmem:[#allocation164_spill] sm:$0xff]  ;;  %v16862_v30 = vld [vmem:[#allocation82_spill] sm:$0xff]  ;;  %p9884_p7 = pnand %p9883_p6, %p9879_p2 }
 0x952   : > { %v7330_v21 = vsel %vm3902_vm11, %v7298_v50, %v6881_v61  ;;  %v7961_v61 = vadd.f32 %v15621_v52, %v7886_v16  ;;  %v7659_v33 = vadd.f32 %v15437_v37, %v15493_v57  ;;  %v7871_v4 = vadd.f32 %v15389_v9, %v7662_v54  ;;  %v16856_v9 = vld [vmem:[#allocation22_spill] sm:$0xff] }
 0x953   : > { %v7895_v7 = vadd.f32 %v7894_v43, %v7686_v12  ;;  %v7362_v35 = vsel %vm3935_vm12, %v7330_v21, %v7009_v40  ;;  %v9750_v43 = vunpack.i.h.bf16 %v9748_v17  ;;  %v7962_v17 = vadd.f32 %v15621_v52, %v7889_v48 }
 0x954   : > { %v7394_v15 = vsel %vm3968_vm13, %v7362_v35, %v7137_v47  ;;  %v15649_v12 = vpop.f32.mrf.mxu2  ;;  %v7960_v21 = vadd.f32 %v15621_v52, %v7883_v29  ;;  %v7993_v14 = vmax.f32 %v7961_v61, 0.0  ;;  %v7958_v46 = vadd.f32 %v15621_v52, %v7877_v19 }
 0x955   : > { %v7964_v32 = vadd.f32 %v15621_v52, %v7895_v7  ;;  %v7299_v40 = vsel %vm2268_vm7, %v7267_v42, %v9750_v43  ;;  %v7994_v6 = vmax.f32 %v7962_v17, 0.0  ;;  %v15655_v50 = vpop.f32.mrf.mxu0  ;;  %v7656_v28 = vadd.f32 %v16855_v58, %v15479_v49 }
 0x956   : > { %7616 = vmatmul.f32.gmra.mxu3 %v7394_v15  ;;  %v7992_v7 = vmax.f32 %v7960_v21, 0.0  ;;  %v7991_v15 = vmax.f32 %v7959_v36, 0.0  ;;  %v7990_v55 = vmax.f32 %v7958_v46, 0.0  ;;  %v7868_v42 = vadd.f32 %v15362_v31, %v7659_v33  ;;  %v16857_v31 = vld [vmem:[#allocation121_spill] sm:$0xff] }
 0x957   : > { %v7996_v63 = vmax.f32 %v7964_v32, 0.0  ;;  %v7957_v32 = vadd.f32 %v15621_v52, %v7874_v27  ;;  %v7956_v48 = vadd.f32 %v15621_v52, %v7871_v4  ;;  %v7653_v37 = vadd.f32 %v16856_v9, %v15463_v18 }
 0x958   : > { %v7865_v57 = vadd.f32 %v15317_v5, %v7656_v28  ;;  %v7650_v49 = vadd.f32 %v16857_v31, %v15451_v51  ;;  %v16858_v5 = vld [vmem:[#allocation143_spill] sm:$0xff] }
 0x959   : > { %v6883_v2 = vpop.permute.xlu1 %6882  ;;  %8499 = vmatpush.xpose.msk.msra.mxu1 %vm573_vm2, %v7996_v63  ;;  %v15642_v22 = vpop.f32.mrf.mxu3  ;;  %v7989_v43 = vmax.f32 %v7957_v32, 0.0  ;;  %v7955_v63 = vadd.f32 %v15621_v52, %v7868_v42  ;;  %v7647_v18 = vadd.f32 %v16858_v5, %v15441_v44  ;;  %v16860_v44 = vld [vmem:[#allocation125_spill] sm:$0xff] }
 0x95a   : > { %v7331_v13 = vsel %vm3902_vm11, %v7299_v40, %v6883_v2  ;;  %v7862_v40 = vadd.f32 %v15284_v11, %v7653_v37  ;;  %v7859_v16 = vadd.f32 %v15231_v20, %v7650_v49  ;;  %v16859_v11 = vld [vmem:[#allocation161_spill] sm:$0xff] }
 0x95b   : > { %v7363_v47 = vsel %vm3935_vm12, %v7331_v13, %v7011_v3  ;;  %v7988_v3 = vmax.f32 %v7956_v48, 0.0  ;;  %v7987_v59 = vmax.f32 %v7955_v63, 0.0  ;;  %v7856_v25 = vadd.f32 %v15198_v39, %v7647_v18  ;;  %v16863_v39 = vld [vmem:[#allocation57_spill] sm:$0xff] }
 0x95c   : > { %v7395_v26 = vsel %vm3968_vm13, %v7363_v47, %v7139_v38  ;;  %v15669_v35 = vpop.f32.mrf.mxu2  ;;  %v7954_v38 = vadd.f32 %v15621_v52, %v7865_v57  ;;  %v7953_v17 = vadd.f32 %v15621_v52, %v7862_v40  ;;  %v7952_v29 = vadd.f32 %v15621_v52, %v7859_v16 }
 0x95d   : > { %8500 = vmatpush.xpose.msk.msra.mxu1 %vm573_vm2, %v7995_v34  ;;  %v15672_v24 = vpop.f32.mrf.mxu0 }
 0x95e   : > { %7619 = vmatmul.f32.gmra.mxu3 %v7395_v26  ;;  %v7986_v47 = vmax.f32 %v7954_v38, 0.0  ;;  %v7644_v26 = vadd.f32 %v16859_v11, %v15422_v62  ;;  %v7985_v61 = vmax.f32 %v7953_v17, 0.0  ;;  %v7984_v23 = vmax.f32 %v7952_v29, 0.0 }
 0x960   : > { %v7853_v21 = vadd.f32 %v16862_v30, %v7644_v26 }
 0x961   : > { %8501 = vmatpush.xpose.msk.msra.mxu1 %vm573_vm2, %v7994_v6  ;;  %v15662_v8 = vpop.f32.mrf.mxu3  ;;  %v16861_v6 = vld [vmem:[#allocation87_spill] sm:$0xff] }
 0x962   : > { %v7641_v41 = vadd.f32 %v16861_v6, %v16860_v44 }
 0x964   : > { %v15686_v45 = vpop.f32.mrf.mxu2  ;;  %v7850_v36 = vadd.f32 %v16863_v39, %v7641_v41 }
 0x965   : > { %8502 = vmatpush.xpose.msk.msra.mxu1 %vm573_vm2, %v7993_v14  ;;  %v15692_v1 = vpop.f32.mrf.mxu0  ;;  %v7951_v14 = vadd.f32 %v15621_v52, %v7856_v25 }
 0x966   : > { %v7949_v27 = vadd.f32 %v15621_v52, %v7850_v36 }
 0x967   : > { %v7983_v54 = vmax.f32 %v7951_v14, 0.0 }
 0x968   : > { %v7981_v4 = vmax.f32 %v7949_v27, 0.0 }
 0x969   : > { %8503 = vmatpush.xpose.msk.msra.mxu1 %vm573_vm2, %v7992_v7  ;;  %v7950_v7 = vadd.f32 %v15621_v52, %v7853_v21 }
 0x96a   : > { %v15679_v56 = vpop.f32.mrf.mxu3 }
 0x96b   : > { %v7982_v46 = vmax.f32 %v7950_v7, 0.0 }
 0x96c   : > { %v15706_v13 = vpop.f32.mrf.mxu2 }
 0x96d   : > { %8504 = vmatpush.xpose.msk.msra.mxu1 %vm573_vm2, %v7991_v15  ;;  %v15713_v34 = vpop.f32.mrf.mxu0 }
 0x971   : > { %8505 = vmatpush.xpose.msk.msra.mxu1 %vm573_vm2, %v7990_v55 }
 0x972   : > { %v15699_v2 = vpop.f32.mrf.mxu3 }
 0x974   : > { %v15723_v20 = vpop.f32.mrf.mxu2 }
 0x975   : > { %8506 = vmatpush.xpose.msk.msra.mxu1 %vm573_vm2, %v7989_v43  ;;  %v15731_v62 = vpop.f32.mrf.mxu0 }
 0x979   : > { %8507 = vmatpush.xpose.msk.msra.mxu1 %vm573_vm2, %v7988_v3 }
 0x97c   : > { %v7709_v15 = vpop.f32.mrf.mxu2 }
 0x97d   : > { %8508 = vmatpush.xpose.msk.msra.mxu1 %vm573_vm2, %v7987_v59  ;;  %v15741_v32 = vpop.f32.mrf.mxu0 }
 0x980   : > { %v15715_v51 = vpop.f32.mrf.mxu3 }
 0x981   : > { %8509 = vmatpush.xpose.msk.msra.mxu1 %vm573_vm2, %v7986_v47 }
 0x984   : > { %v7712_v55 = vpop.f32.mrf.mxu2 }
 0x985   : > { %8510 = vmatpush.xpose.msk.msra.mxu1 %vm573_vm2, %v7985_v61  ;;  %v7921_v28 = vpop.f32.mrf.mxu0 }
 0x988   : > { %v15729_v19 = vpop.f32.mrf.mxu3 }
 0x989   : > { %8511 = vmatpush.xpose.msk.msra.mxu1 %vm573_vm2, %v7984_v23 }
 0x98c   : > { %v7715_v42 = vpop.f32.mrf.mxu2 }
 0x98d   : > { %8512 = vmatpush.xpose.msk.msra.mxu1 %vm573_vm2, %v7983_v54  ;;  %v7924_v43 = vpop.f32.mrf.mxu0 }
 0x991   : > { %8513 = vmatpush.xpose.msk.msra.mxu1 %vm573_vm2, %v7982_v46  ;;  %v15739_v33 = vpop.f32.mrf.mxu3 }
 0x994   : > { %v7718_v9 = vpop.f32.mrf.mxu2 }
 0x995   : > { %8514 = vmatpush.xpose.msk.msra.mxu1 %vm573_vm2, %v7981_v4  ;;  %v7927_v57 = vpop.f32.mrf.mxu0 }
 0x999   : > { %v7596_v58 = vpop.f32.mrf.mxu3 }
 0x99c   : > { %v7721_v3 = vpop.f32.mrf.mxu2 }
 0x99d   : > { %v7930_v31 = vpop.f32.mrf.mxu0 }
 0x9a2   : > { %v7599_v48 = vpop.f32.mrf.mxu3 }
 0x9a4   : > { %v7724_v40 = vpop.f32.mrf.mxu2 }
 0x9a5   : > { %v7933_v38 = vpop.f32.mrf.mxu0 }
 0x9aa   : > { %v7602_v37 = vpop.f32.mrf.mxu3 }
 0x9ac   : > { %v7727_v5 = vpop.f32.mrf.mxu2 }
 0x9ad   : > { %v7936_v18 = vpop.f32.mrf.mxu0 }
 0x9b4   : > { %v7730_v17 = vpop.f32.mrf.mxu2 }
 0x9b5   : > { %v7939_v47 = vpop.f32.mrf.mxu0 }
 0x9b8   : > { %v7605_v63 = vpop.f32.mrf.mxu3 }
 0x9b9   : > { %v7719_v4 = vadd.f32 %v7718_v9, %v7605_v63  ;;  %v7710_v9 = vadd.f32 %v7709_v15, %v7596_v58  ;;  %v7704_v15 = vadd.f32 %v15706_v13, %v15729_v19 }
 0x9bc   : > { %v7733_v26 = vpop.f32.mrf.mxu2 }
 0x9bd   : > { %v7942_v44 = vpop.f32.mrf.mxu0 }
 0x9c0   : > { %v7608_v49 = vpop.f32.mrf.mxu3 }
 0x9c1   : > { %v7722_v7 = vadd.f32 %v7721_v3, %v7608_v49  ;;  %v7713_v3 = vadd.f32 %v7712_v55, %v7599_v48 }
 0x9c3   : > { %v7922_v63 = vadd.f32 %v7921_v28, %v7713_v3 }
 0x9c5   : > { %v7973_v55 = vadd.f32 %v15621_v52, %v7922_v63 }
 0x9c9   : > { %v7611_v59 = vpop.f32.mrf.mxu3 }
 0x9ca   : > { %v7725_v14 = vadd.f32 %v7724_v40, %v7611_v59  ;;  %v7716_v40 = vadd.f32 %v7715_v42, %v7602_v37  ;;  %v7928_v59 = vadd.f32 %v7927_v57, %v7719_v4  ;;  %v7707_v42 = vadd.f32 %v15723_v20, %v15739_v33  ;;  %v8013_v33 = vld [vmem:[%s523_s21] sm:$0xf] }
 0x9cb   : > { %v7919_v37 = vadd.f32 %v15741_v32, %v7710_v9  ;;  %v8005_v20 = vmax.f32 %v7973_v55, 0.0  ;;  %8515 = vmatmul.msk.f32.vlgmr.msra.gmra.mxu1 %vm573_vm2, %v8013_v33  ;;  %v7701_v32 = vadd.f32 %v15686_v45, %v15715_v51  ;;  %v9968_v57 = vmov 0  }
 0x9cc   : > { %v7934_v54 = vadd.f32 %v7933_v38, %v7725_v14  ;;  %v7925_v49 = vadd.f32 %v7924_v43, %v7716_v40  ;;  %v7975_v38 = vadd.f32 %v15621_v52, %v7928_v59  ;;  %v7916_v58 = vadd.f32 %v15731_v62, %v7707_v42  ;;  %v8014_v62 = vld [vmem:[%s527_s22] sm:$0xf]  ;;  %9751 = vset.pattern.permute.xlu1 %v9968_v57  ;;  %s8182_s22 = sshll.u32 %s485_s28, 4  ;;  %s8183_s22 = int_to_ptr.vmem [resolvable:$true] %s8182_s22 }
 0x9cd   : > { %v7972_v28 = vadd.f32 %v15621_v52, %v7919_v37  ;;  %v7913_v43 = vadd.f32 %v15713_v34, %v7704_v15  ;;  %8017 = vperm.xlu1 %9751, %v8014_v62   ;;  %9752 = vset.pattern.permute.xlu0 %v9968_v57  ;;  %v7695_v34 = vadd.f32 %v15649_v12, %v15679_v56 }
 0x9ce   : > { %v7971_v13 = vadd.f32 %v15621_v52, %v7916_v58  ;;  %v7689_v12 = vadd.f32 %v15601_v60, %v15642_v22 }
 0x9cf   : > { %v8004_v19 = vmax.f32 %v7972_v28, 0.0 }
 0x9d0   : > { %v8003_v45 = vmax.f32 %v7971_v13, 0.0 }
 0x9d1   : > { %v7614_v16 = vpop.f32.mrf.mxu3 }
 0x9d2   : > { %v7728_v6 = vadd.f32 %v7727_v5, %v7614_v16  ;;  %v7931_v5 = vadd.f32 %v7930_v31, %v7722_v7  ;;  %v7977_v16 = vadd.f32 %v15621_v52, %v7934_v54  ;;  %v7974_v31 = vadd.f32 %v15621_v52, %v7925_v49 }
 0x9d4   : > { %v7937_v23 = vadd.f32 %v7936_v18, %v7728_v6  ;;  %v7976_v18 = vadd.f32 %v15621_v52, %v7931_v5  ;;  %v8006_v48 = vmax.f32 %v7974_v31, 0.0 }
 0x9d6   : > { %v7978_v27 = vadd.f32 %v15621_v52, %v7937_v23 }
 0x9d9   : > { %v7617_v11 = vpop.f32.mrf.mxu3 }
 0x9da   : > { %v7731_v25 = vadd.f32 %v7730_v17, %v7617_v11  ;;  %v8010_v17 = vmax.f32 %v7978_v27, 0.0  ;;  %v8008_v11 = vmax.f32 %v7976_v18, 0.0 }
 0x9dc   : > { %v7940_v41 = vadd.f32 %v7939_v47, %v7731_v25  ;;  %v8009_v47 = vmax.f32 %v7977_v16, 0.0  ;;  %v7698_v25 = vadd.f32 %v15669_v35, %v15699_v2  ;;  %v7692_v35 = vadd.f32 %v15627_v53, %v15662_v8 }
 0x9dd   : > { %v7898_v53 = vadd.f32 %v15606_v0, %v7689_v12 }
 0x9de   : > { %v7979_v39 = vadd.f32 %v15621_v52, %v7940_v41  ;;  %v7907_v51 = vadd.f32 %v15672_v24, %v7698_v25  ;;  %v7901_v24 = vadd.f32 %v15633_v10, %v7692_v35 }
 0x9e0   : > { %v8011_v46 = vmax.f32 %v7979_v39, 0.0  ;;  %v7968_v2 = vadd.f32 %v15621_v52, %v7907_v51 }
 0x9e1   : > { %v7620_v29 = vpop.f32.mrf.mxu3 }
 0x9e2   : > { %v7734_v61 = vadd.f32 %v7733_v26, %v7620_v29  ;;  %v8007_v26 = vmax.f32 %v7975_v38, 0.0  ;;  %v7910_v29 = vadd.f32 %v15692_v1, %v7701_v32  ;;  %v7904_v1 = vadd.f32 %v15655_v50, %v7695_v34 }
 0x9e3   : > { %v7966_v50 = vadd.f32 %v15621_v52, %v7901_v24 }
 0x9e4   : > { %v7943_v30 = vadd.f32 %v7942_v44, %v7734_v61  ;;  %v7970_v61 = vadd.f32 %v15621_v52, %v7913_v43  ;;  %v7969_v44 = vadd.f32 %v15621_v52, %v7910_v29  ;;  %v7967_v56 = vadd.f32 %v15621_v52, %v7904_v1 }
 0x9e5   : > { %v7998_v14 = vmax.f32 %v7966_v50, 0.0 }
 0x9e6   : > { %v7980_v21 = vadd.f32 %v15621_v52, %v7943_v30  ;;  %v8002_v6 = vmax.f32 %v7970_v61, 0.0  ;;  %v8001_v41 = vmax.f32 %v7969_v44, 0.0  ;;  %v8000_v30 = vmax.f32 %v7968_v2, 0.0 }
 0x9e7   : > { %v7999_v8 = vmax.f32 %v7967_v56, 0.0 }
 0x9e8   : > { %v8012_v36 = vmax.f32 %v7980_v21, 0.0  ;;  %v7965_v21 = vadd.f32 %v15621_v52, %v7898_v53 }
 0x9ea   : > { %8516 = vmatpush.xpose.msk.msrb.mxu3 %vm573_vm2, %v8012_v36  ;;  %v7997_v60 = vmax.f32 %v7965_v21, 0.0 }
 0x9ee   : > { %8517 = vmatpush.xpose.msk.msrb.mxu3 %vm573_vm2, %v8011_v46 }
 0x9f2   : > { %8518 = vmatpush.xpose.msk.msrb.mxu3 %vm573_vm2, %v8010_v17 }
 0x9f6   : > { %8519 = vmatpush.xpose.msk.msrb.mxu3 %vm573_vm2, %v8009_v47 }
 0x9fa   : > { %8520 = vmatpush.xpose.msk.msrb.mxu3 %vm573_vm2, %v8008_v11 }
 0x9fe   : > { %8521 = vmatpush.xpose.msk.msrb.mxu3 %vm573_vm2, %v8007_v26 }
 0xa02   : > { %8522 = vmatpush.xpose.msk.msrb.mxu3 %vm573_vm2, %v8006_v48 }
 0xa06   : > { %8523 = vmatpush.xpose.msk.msrb.mxu3 %vm573_vm2, %v8005_v20 }
 0xa0a   : > { %8524 = vmatpush.xpose.msk.msrb.mxu3 %vm573_vm2, %v8004_v19 }
 0xa0e   : > { %8525 = vmatpush.xpose.msk.msrb.mxu3 %vm573_vm2, %v8003_v45 }
 0xa12   : > { %8526 = vmatpush.xpose.msk.msrb.mxu3 %vm573_vm2, %v8002_v6 }
 0xa16   : > { %8527 = vmatpush.xpose.msk.msrb.mxu3 %vm573_vm2, %v8001_v41 }
 0xa1a   : > { %8528 = vmatpush.xpose.msk.msrb.mxu3 %vm573_vm2, %v8000_v30 }
 0xa1e   : > { %8529 = vmatpush.xpose.msk.msrb.mxu3 %vm573_vm2, %v7999_v8 }
 0xa22   : > { %8530 = vmatpush.xpose.msk.msrb.mxu3 %vm573_vm2, %v7998_v14 }
 0xa26   : > { %8531 = vmatpush.xpose.msk.msrb.mxu3 %vm573_vm2, %v7997_v60 }
 0xa29   : > { %8532 = vmatmul.msk.f32.vlgmr.msrb.gmra.mxu3 %vm573_vm2, %v8013_v33 }
 0xa3f   : > { %v8018_v0 = vpop.permute.xlu1 %8017 }
 0xa48   : > { %v8136_v10 = vpop.f32.mrf.mxu1 }
 0xa49   : > { %v8137_v39 = vadd.f32 %v8136_v10, %v8018_v0 }
 0xaac   : > { %v8156_v52 = vpop.f32.mrf.mxu3 }
 0xaad   : > { %v8157_v22 = vadd.f32 %v8156_v52, %v8018_v0 }
 0xaaf   : > { %v8161_v23 = vrot.slane %v8157_v22, 4 }
 0xab1   : > { %v8163_v36 = vsel %vm8162_vm14, %v8137_v39, %v8161_v23 }
 0xab2   : > { %8165 = vst [vmem:[%s485_s28] sm:$0xff] %v8163_v36 }
 0xab3   : > { %9887 = shalt.err (!%p9884_p7)
}
 0xab4   : > { %8562 = dma.vmem_to_hbm [thread:$0]  (%p10075_p3), %s8183_s22, 128, %s8185_s1, %s8167_s16  }
 0xab5 PF: > { %p8568_p9 = scmp.ge.s32.totalorder %s9954_s20, 2  ;;  %s8196_s29 = sand.u32 1, %s9926_s13  }
 0xab6   : > { %s8197_s21 = scalar_lea.sflag [#allocation6], %s8196_s29 }
 0xab7   : > { %p8565_p10 = pnand %p8568_p9, %p10084_p8 }
 0xab9   : > { %p8566_p11 = pneg %p8565_p10 }
 0xabb   : > { %9921 = dma.done.wait (%p8566_p11), %s8197_s21, 128  }
 0xabc   : > { %9923 = vsyncadd (%p8566_p11), %s8197_s21, 4294967168  ;;  %s23_s20 = sadd.s32 1, %s9954_s20   ;;  %s16864_s17 = sld [smem:[#allocation8_spill]] }
 0xabd   : > { %p20_p12 = scmp.ge.s32.totalorder %s23_s20, 6   ;;  %s16865_s1 = sld [smem:[#allocation9_spill]] }
 0xabe   : > { %s16866_s19 = sld [smem:[#allocation10_spill]]  ;;  %s16867_s13 = smov %s9930_s14 }
 0xabf   : > { %s16868_s14 = smov %s9934_s15  ;;  %s16869_s15 = smov %s10093_s11 }
 0xac0   : > { %s16870_s16 = smov %s9946_s18  ;;  %22 = sbr.rel (!%p20_p12) target bundleno = 8 (0x8), region = 131 }
 0xac3   : > { %s16871_s18 = smov %s16865_s1 }
 0xac5   :  { %8203 = vsyncpa [#allocation6], 1 }
 0xac6   :  { %8205 = vsyncpa [#allocation6 + $0x1], 1 }

</bundles_post_ra>
